<compile_context>
chip_gen: v7x
topology: tpu7x:2x2x1
jax: 0.10.0
libtpu: 0.0.40
codegen_flags: <defaults>
</compile_context>

<pallas_src>
import functools

import jax
import jax.numpy as jnp
import numpy as np
from jax.experimental import pallas as pl
from jax.experimental.pallas import tpu as pltpu

_EPS = 1e-5

_CPARAMS = pltpu.CompilerParams(
    dimension_semantics=("parallel",),          # per-step stats -> batch axis fully parallel
    vmem_limit_bytes=64 * 1024 * 1024,          # raise scoped-VMEM budget (v5e default is 16 MiB)
)


# ----------------------------------------------------------------------------
# In-kernel conv3x3 core: 3 MXU matmuls of K = 3*Cin (one per filter row).
# ----------------------------------------------------------------------------
def _conv_core(buf_ref, w_ref, H, W, Cin, Cout):
    """buf_ref: (H+2, W+2, Cin) bf16 zero-padded activation in VMEM.
    w_ref: (3, 3*Cin, Cout) bf16 (rows ordered kw-major, channel-minor).
    Returns the f32 (H*W, Cout) accumulator."""
    acc = jnp.zeros((H * W, Cout), jnp.float32)
    for kh in range(3):                                           # unrolled (static)
        patch = jnp.concatenate(
            [buf_ref[kh:kh + H, kw:kw + W, :] for kw in range(3)], axis=-1)
        acc = acc + jnp.dot(patch.reshape(H * W, 3 * Cin), w_ref[kh],
                            preferred_element_type=jnp.float32)
    return acc


def _write_out_and_stats(acc, o_ref, sum_ref, sq_ref):
    o_ref[0] = acc.astype(o_ref.dtype)                            # bf16 activation out
    sum_ref[0] = jnp.sum(acc, axis=0, keepdims=True)              # f32 per-step stats
    sq_ref[0] = jnp.sum(acc * acc, axis=0, keepdims=True)


# ----------------------------------------------------------------------------
# Pallas kernels
# ----------------------------------------------------------------------------
def _conv3x3_s1_kernel(x_ref, w_ref, o_ref, sum_ref, sq_ref, buf_ref):
    # x_ref: (1, H, W, Cin) bf16 unpadded.  buf_ref: (H+2, W+2, Cin) bf16 scratch.
    H, W, Cin = x_ref.shape[1], x_ref.shape[2], x_ref.shape[3]
    Cout = o_ref.shape[2]
    buf_ref[...] = jnp.zeros_like(buf_ref)                        # zero border (cheap VMEM store)
    buf_ref[1:H + 1, 1:W + 1, :] = x_ref[0]
    acc = _conv_core(buf_ref, w_ref, H, W, Cin, Cout)
    _write_out_and_stats(acc, o_ref, sum_ref, sq_ref)


def _conv3x3_s1_bnrelu_kernel(s_ref, b_ref, y_ref, w_ref, o_ref, sum_ref,
                              sq_ref, buf_ref):
    # Fused prologue: a = relu(y * scale + bias) (previous-stage BN+ReLU) in f32,
    # then a stride-1 3x3 conv.  y_ref: (1, H*W, Cin) bf16 conv1 output.
    Hp, Wp, Cin = buf_ref.shape
    H, W = Hp - 2, Wp - 2
    Cout = o_ref.shape[2]
    a = y_ref[0].astype(jnp.float32)                              # (H*W, Cin)
    a = jnp.maximum(a * s_ref[...] + b_ref[...], 0.0)             # broadcast (1, Cin)
    buf_ref[...] = jnp.zeros_like(buf_ref)
    buf_ref[1:H + 1, 1:W + 1, :] = a.reshape(H, W, Cin).astype(jnp.bfloat16)
    acc = _conv_core(buf_ref, w_ref, H, W, Cin, Cout)
    _write_out_and_stats(acc, o_ref, sum_ref, sq_ref)


def _conv3x3_s2_kernel(xs_ref, w_ref, o_ref, sum_ref, sq_ref):
    # Direct stride-2 conv on the parity-split padded input.
    # xs_ref: (1, 4, Ho+1, Wo+1, Cin) bf16, group g = row_parity*2 + col_parity.
    Hp, Wp, Cin = xs_ref.shape[2], xs_ref.shape[3], xs_ref.shape[4]
    Ho, Wo = Hp - 1, Wp - 1
    Cout = o_ref.shape[2]
    acc = jnp.zeros((Ho * Wo, Cout), jnp.float32)
    for kh in range(3):
        taps = []
        for kw in range(3):
            g = (kh % 2) * 2 + (kw % 2)
            taps.append(xs_ref[0, g, kh // 2:kh // 2 + Ho, kw // 2:kw // 2 + Wo, :])
        patch = jnp.concatenate(taps, axis=-1).reshape(Ho * Wo, 3 * Cin)
        acc = acc + jnp.dot(patch, w_ref[kh], preferred_element_type=jnp.float32)
    _write_out_and_stats(acc, o_ref, sum_ref, sq_ref)


def _conv1x1_kernel(x_ref, w_ref, o_ref, sum_ref, sq_ref):
    # Downsample path: x_ref (1, Ho*Wo, Cin) bf16, w_ref (Cin, Cout) bf16.
    acc = jnp.dot(x_ref[0], w_ref[...], preferred_element_type=jnp.float32)
    _write_out_and_stats(acc, o_ref, sum_ref, sq_ref)


def _fuse_bn_kernel(y_ref, r_ref, s2_ref, b2_ref, s3_ref, b3_ref, o_ref):
    # out = relu( bn2(conv2_out) + bn3(downsample_out) ); per-channel vectors
    # broadcast in-kernel (no tiled full-size scale/bias arrays in HBM).
    y = y_ref[0].astype(jnp.float32)
    r = r_ref[0].astype(jnp.float32)
    o_ref[0] = jnp.maximum(
        y * s2_ref[...] + b2_ref[...] + r * s3_ref[...] + b3_ref[...], 0.0)


def _fuse_id_kernel(y_ref, x_ref, s2_ref, b2_ref, o_ref):
    # out = relu( bn2(conv2_out) + x )   (identity shortcut, x kept in f32)
    y = y_ref[0].astype(jnp.float32)
    o_ref[0] = jnp.maximum(y * s2_ref[...] + b2_ref[...] + x_ref[0].astype(jnp.float32), 0.0)


# ----------------------------------------------------------------------------
# Pallas wrappers
# ----------------------------------------------------------------------------
def _conv_outs(B, M, Cout):
    shapes = (jax.ShapeDtypeStruct((B, M, Cout), jnp.bfloat16),   # bf16 activation
              jax.ShapeDtypeStruct((B, 1, Cout), jnp.float32),    # per-step sum
              jax.ShapeDtypeStruct((B, 1, Cout), jnp.float32))    # per-step sum of squares
    specs = (pl.BlockSpec((1, M, Cout), lambda b: (b, 0, 0)),
             pl.BlockSpec((1, 1, Cout), lambda b: (b, 0, 0)),
             pl.BlockSpec((1, 1, Cout), lambda b: (b, 0, 0)))
    return shapes, specs


def conv1_3x3(x, w, stride):
    """3x3 conv, pad=1.  x: (B, H, W, Cin) f32.
    Returns (y bf16 (B, Ho*Wo, Cout), sums (B,1,Cout), sumsqs (B,1,Cout))."""
    B, H, W, Cin = x.shape
    Cout = w.shape[-1]
    wk = w.reshape(3, 3 * Cin, Cout).astype(jnp.bfloat16)
    w_spec = pl.BlockSpec((3, 3 * Cin, Cout), lambda b: (0, 0, 0))

    if stride == 1:
        out_shapes, out_specs = _conv_outs(B, H * W, Cout)
        return pl.pallas_call(
            _conv3x3_s1_kernel,
            out_shape=out_shapes,
            grid=(B,),
            in_specs=[pl.BlockSpec((1, H, W, Cin), lambda b: (b, 0, 0, 0)), w_spec],
            out_specs=out_specs,
            scratch_shapes=[pltpu.VMEM((H + 2, W + 2, Cin), jnp.bfloat16)],
            compiler_params=_CPARAMS,
        )(x.astype(jnp.bfloat16), wk)

    assert stride == 2 and H % 2 == 0 and W % 2 == 0
    Ho, Wo = H // 2, W // 2
    Hp, Wp = Ho + 1, Wo + 1
    # TODO(synk): parity split still an XLA pass; in-kernel strided taps would remove it.
    xp = jnp.pad(x, ((0, 0), (1, 1), (1, 1), (0, 0)))
    xs = xp.reshape(B, Hp, 2, Wp, 2, Cin).transpose(0, 2, 4, 1, 3, 5)
    xs = xs.reshape(B, 4, Hp, Wp, Cin).astype(jnp.bfloat16)
    out_shapes, out_specs = _conv_outs(B, Ho * Wo, Cout)
    return pl.pallas_call(
        _conv3x3_s2_kernel,
        out_shape=out_shapes,
        grid=(B,),
        in_specs=[pl.BlockSpec((1, 4, Hp, Wp, Cin), lambda b: (b, 0, 0, 0, 0)), w_spec],
        out_specs=out_specs,
        compiler_params=_CPARAMS,
    )(xs, wk)


def conv2_3x3_bnrelu(y1, w, scale, bias, H, W):
    """relu(y1*scale + bias) prologue (= bn1+relu) + 3x3 conv stride 1 pad 1.
    y1: (B, H*W, Cin) bf16."""
    B, HW, Cin = y1.shape
    Cout = w.shape[-1]
    wk = w.reshape(3, 3 * Cin, Cout).astype(jnp.bfloat16)
    out_shapes, out_specs = _conv_outs(B, HW, Cout)
    vec = pl.BlockSpec((1, Cin), lambda b: (0, 0))
    return pl.pallas_call(
        _conv3x3_s1_bnrelu_kernel,
        out_shape=out_shapes,
        grid=(B,),
        in_specs=[vec, vec,
                  pl.BlockSpec((1, HW, Cin), lambda b: (b, 0, 0)),
                  pl.BlockSpec((3, 3 * Cin, Cout), lambda b: (0, 0, 0))],
        out_specs=out_specs,
        scratch_shapes=[pltpu.VMEM((H + 2, W + 2, Cin), jnp.bfloat16)],
        compiler_params=_CPARAMS,
    )(scale.reshape(1, Cin).astype(jnp.float32),
      bias.reshape(1, Cin).astype(jnp.float32), y1, wk)


def conv_down_1x1(x, w, stride):
    """1x1 conv (downsample path) + fused per-step batch statistics."""
    if stride != 1:
        x = x[:, ::stride, ::stride, :]          # exact for a 1x1 stride-s conv
    B, Ho, Wo, Cin = x.shape
    Cout = w.shape[-1]
    xr = x.reshape(B, Ho * Wo, Cin).astype(jnp.bfloat16)
    out_shapes, out_specs = _conv_outs(B, Ho * Wo, Cout)
    return pl.pallas_call(
        _conv1x1_kernel,
        out_shape=out_shapes,
        grid=(B,),
        in_specs=[pl.BlockSpec((1, Ho * Wo, Cin), lambda b: (b, 0, 0)),
                  pl.BlockSpec((Cin, Cout), lambda b: (0, 0))],
        out_specs=out_specs,
        compiler_params=_CPARAMS,
    )(xr, w.astype(jnp.bfloat16))


def fuse_residual(y2, s2, b2, r, s3=None, b3=None):
    """relu(y2*s2 + b2 + [r*s3 + b3 | r]) on (B, H*W, C) blocks; per-channel
    scale/bias passed as (1, C) vectors and broadcast in-kernel."""
    B, M, C = y2.shape
    row = pl.BlockSpec((1, M, C), lambda b: (b, 0, 0))
    vec = pl.BlockSpec((1, C), lambda b: (0, 0))
    out_shape = jax.ShapeDtypeStruct((B, M, C), jnp.float32)
    s2 = s2.reshape(1, C).astype(jnp.float32)
    b2 = b2.reshape(1, C).astype(jnp.float32)
    if s3 is None:
        return pl.pallas_call(
            _fuse_id_kernel, out_shape=out_shape, grid=(B,),
            in_specs=[row, row, vec, vec], out_specs=row,
            compiler_params=_CPARAMS,
        )(y2, r, s2, b2)
    return pl.pallas_call(
        _fuse_bn_kernel, out_shape=out_shape, grid=(B,),
        in_specs=[row, row, vec, vec, vec, vec], out_specs=row,
        compiler_params=_CPARAMS,
    )(y2, r, s2, b2, s3.reshape(1, C).astype(jnp.float32),
      b3.reshape(1, C).astype(jnp.float32))


def _bn_fold(sums, sqs, n, gamma, beta):
    """Train-mode BN folded into (scale, bias) from per-step sum / sumsq."""
    s = jnp.sum(sums, axis=(0, 1))
    q = jnp.sum(sqs, axis=(0, 1))
    mean = s / n
    var = jnp.maximum(q / n - mean * mean, 0.0)      # biased variance
    scale = gamma / jnp.sqrt(var + _EPS)
    bias = beta - mean * scale
    return scale, bias


# ----------------------------------------------------------------------------
# BasicBlock forward (NCHW in / NCHW out, like PyTorch)
# ----------------------------------------------------------------------------
@functools.partial(jax.jit, static_argnums=(2,))
def basic_block(x_nchw, p, stride):
    x = jnp.transpose(x_nchw, (0, 2, 3, 1)).astype(jnp.float32)   # NCHW -> NHWC
    B, H, W, Cin = x.shape
    Ho, Wo = H // stride, W // stride
    planes = p["w1"].shape[-1]
    n = B * Ho * Wo

    # conv1 (+ fused BN1 batch statistics)
    y1, s1, q1 = conv1_3x3(x, p["w1"], stride)
    sc1, bi1 = _bn_fold(s1, q1, n, p["g1"], p["b1"])

    # relu(bn1(.)) as the prologue of conv2 (+ fused BN2 statistics)
    y2, s2, q2 = conv2_3x3_bnrelu(y1, p["w2"], sc1, bi1, Ho, Wo)
    sc2, bi2 = _bn_fold(s2, q2, n, p["g2"], p["b2"])

    if "wd" in p:
        r, s3, q3 = conv_down_1x1(x, p["wd"], stride)
        sc3, bi3 = _bn_fold(s3, q3, n, p["g3"], p["b3"])
        out = fuse_residual(y2, sc2, bi2, r, sc3, bi3)
    else:
        out = fuse_residual(y2, sc2, bi2, x.reshape(B, H * W, Cin))

    out = out.reshape(B, Ho, Wo, planes)
    return jnp.transpose(out, (0, 3, 1, 2))                       # NHWC -> NCHW


# ----------------------------------------------------------------------------
# Pure-JAX reference (for correctness check)
# ----------------------------------------------------------------------------
def _ref_conv(x, w, stride, pad):
    return jax.lax.conv_general_dilated(
        x, w, (stride, stride), ((pad, pad), (pad, pad)),
        dimension_numbers=("NHWC", "HWIO", "NHWC"),
        precision=jax.lax.Precision.HIGHEST)


def _ref_fold(y, gamma, beta):
    m = jnp.mean(y, axis=(0, 1, 2))
    v = jnp.maximum(jnp.mean(y * y, axis=(0, 1, 2)) - m * m, 0.0)
    scale = gamma / jnp.sqrt(v + _EPS)
    return scale, beta - m * scale


def ref_basic_block(x_nchw, p, stride, match_bf16):
    """match_bf16=True replicates the kernels' quantization points (bf16 conv
    inputs/weights + bf16 intermediate activations, f32 accumulation, BN stats
    from the f32 conv outputs); match_bf16=False is plain f32 semantics."""
    rnd = ((lambda a: a.astype(jnp.bfloat16).astype(jnp.float32))
           if match_bf16 else (lambda a: a))
    x = jnp.transpose(x_nchw, (0, 2, 3, 1)).astype(jnp.float32)

    y1 = _ref_conv(rnd(x), rnd(p["w1"]), stride, 1)
    sc1, bi1 = _ref_fold(y1, p["g1"], p["b1"])
    a = jax.nn.relu(rnd(y1) * sc1 + bi1)

    y2 = _ref_conv(rnd(a), rnd(p["w2"]), 1, 1)
    sc2, bi2 = _ref_fold(y2, p["g2"], p["b2"])

    if "wd" in p:
        r = _ref_conv(rnd(x), rnd(p["wd"])[None, None], stride, 0)
        sc3, bi3 = _ref_fold(r, p["g3"], p["b3"])
        out = jax.nn.relu(rnd(y2) * sc2 + bi2 + rnd(r) * sc3 + bi3)
    else:
        out = jax.nn.relu(rnd(y2) * sc2 + bi2 + x)
    return jnp.transpose(out, (0, 3, 1, 2))


# ----------------------------------------------------------------------------
# Deterministic parameter init (shapes from BasicBlock.__init__)
# ----------------------------------------------------------------------------
def init_params(key, in_planes, planes, stride):
    ks = jax.random.split(key, 8)
    p = {
        "w1": 0.1 * jax.random.normal(ks[0], (3, 3, in_planes, planes), jnp.float32),
        "g1": 1.0 + 0.1 * jax.random.normal(ks[1], (planes,), jnp.float32),
        "b1": 0.1 * jax.random.normal(ks[2], (planes,), jnp.float32),
        "w2": 0.1 * jax.random.normal(ks[3], (3, 3, planes, planes), jnp.float32),
        "g2": 1.0 + 0.1 * jax.random.normal(ks[4], (planes,), jnp.float32),
        "b2": 0.1 * jax.random.normal(ks[5], (planes,), jnp.float32),
    }
    if stride != 1 or in_planes != planes:
        p["wd"] = 0.1 * jax.random.normal(ks[6], (in_planes, planes), jnp.float32)
        p["g3"] = 1.0 + 0.1 * jax.random.normal(ks[7], (planes,), jnp.float32)
        p["b3"] = jnp.zeros((planes,), jnp.float32)
    return p


if __name__ == "__main__":
    key = jax.random.PRNGKey(0)
    kx, ka, kb = jax.random.split(key, 3)

    B, Cin, H, W = 2, 4, 16, 16
    x = jax.random.normal(kx, (B, Cin, H, W), jnp.float32)        # NCHW, like PyTorch

    # Case A: identity shortcut (in_planes == planes, stride == 1)
    pa = init_params(ka, in_planes=4, planes=4, stride=1)
    ya = basic_block(x, pa, 1)
    assert ya.shape == (B, 4, 16, 16)
    ra_match = ref_basic_block(x, pa, 1, match_bf16=True)
    ra_f32 = ref_basic_block(x, pa, 1, match_bf16=False)
    np.testing.assert_allclose(np.asarray(ya), np.asarray(ra_match), rtol=1e-2, atol=1e-2)
    np.testing.assert_allclose(np.asarray(ya), np.asarray(ra_f32), rtol=1.5e-1, atol=1.5e-1)

    # Case B: downsample shortcut (channel change + stride 2)
    pb = init_params(kb, in_planes=4, planes=8, stride=2)
    yb = basic_block(x, pb, 2)
    assert yb.shape == (B, 8, 8, 8)
    rb_match = ref_basic_block(x, pb, 2, match_bf16=True)
    rb_f32 = ref_basic_block(x, pb, 2, match_bf16=False)
    np.testing.assert_allclose(np.asarray(yb), np.asarray(rb_match), rtol=1e-2, atol=1e-2)
    np.testing.assert_allclose(np.asarray(yb), np.asarray(rb_f32), rtol=1.5e-1, atol=1.5e-1)

    jax.block_until_ready((ya, yb))
    print("KERNEL_OK")
</pallas_src>

<mosaic_0001>
module attributes {stable_mosaic.version = 11 : i64} {
  func.func @_conv3x3_s1_kernel(%arg0: i32, %arg1: memref<1x16x16x4xbf16, #tpu.memory_space<vmem>>, %arg2: memref<3x12x4xbf16, #tpu.memory_space<vmem>>, %arg3: memref<1x256x4xbf16, #tpu.memory_space<vmem>>, %arg4: memref<1x1x4xf32, #tpu.memory_space<vmem>>, %arg5: memref<1x1x4xf32, #tpu.memory_space<vmem>>, %arg6: memref<18x18x4xbf16, #tpu.memory_space<vmem>>) attributes {dimension_semantics = [#tpu.dimension_semantics<parallel>], iteration_bounds = array<i64: 2>, scalar_prefetch = 0 : i64, scratch_operands = 1 : i64, tpu.core_type = #tpu.core_type<tc>, window_params = [{transform_indices = @transform_0, window_bounds = array<i64: 1, 16, 16, 4>}, {pipeline_mode = #tpu.pipeline_mode<synchronous>, transform_indices = @transform_1, window_bounds = array<i64: 3, 12, 4>}, {transform_indices = @transform_2, window_bounds = array<i64: 1, 256, 4>}, {transform_indices = @transform_3, window_bounds = array<i64: 1, 1, 4>}, {transform_indices = @transform_4, window_bounds = array<i64: 1, 1, 4>}]} {
    %cst = arith.constant 0.000000e+00 : bf16
    %0 = vector.broadcast %cst : bf16 to vector<18x18x4xbf16>
    %c0 = arith.constant 0 : index
    %c0_0 = arith.constant 0 : index
    %c0_1 = arith.constant 0 : index
    %1 = vector.load %arg6[%c0, %c0_0, %c0_1] : memref<18x18x4xbf16, #tpu.memory_space<vmem>>, vector<18x18x4xbf16>
    tpu.vector_store %arg6[%c0, %c0_0, %c0_1], %0 {strides = array<i32>} : memref<18x18x4xbf16, #tpu.memory_space<vmem>>, vector<18x18x4xbf16>,
    %c0_2 = arith.constant 0 : index
    %c0_3 = arith.constant 0 : index
    %c0_4 = arith.constant 0 : index
    %c0_5 = arith.constant 0 : index
    %2 = vector.load %arg1[%c0_2, %c0_3, %c0_4, %c0_5] : memref<1x16x16x4xbf16, #tpu.memory_space<vmem>>, vector<1x16x16x4xbf16>
    %3 = vector.shape_cast %2 : vector<1x16x16x4xbf16> to vector<16x16x4xbf16>
    %c1 = arith.constant 1 : index
    %c1_6 = arith.constant 1 : index
    %c0_7 = arith.constant 0 : index
    %4 = vector.load %arg6[%c1, %c1_6, %c0_7] : memref<18x18x4xbf16, #tpu.memory_space<vmem>>, vector<16x16x4xbf16>
    tpu.vector_store %arg6[%c1, %c1_6, %c0_7], %3 {strides = array<i32>} : memref<18x18x4xbf16, #tpu.memory_space<vmem>>, vector<16x16x4xbf16>,
    %cst_8 = arith.constant 0.000000e+00 : f32
    %5 = vector.broadcast %cst_8 : f32 to vector<256x4xf32>
    %c0_9 = arith.constant 0 : index
    %c0_10 = arith.constant 0 : index
    %c0_11 = arith.constant 0 : index
    %6 = vector.load %arg6[%c0_9, %c0_10, %c0_11] : memref<18x18x4xbf16, #tpu.memory_space<vmem>>, vector<16x16x4xbf16>
    %c0_12 = arith.constant 0 : index
    %c1_13 = arith.constant 1 : index
    %c0_14 = arith.constant 0 : index
    %7 = vector.load %arg6[%c0_12, %c1_13, %c0_14] : memref<18x18x4xbf16, #tpu.memory_space<vmem>>, vector<16x16x4xbf16>
    %c0_15 = arith.constant 0 : index
    %c2 = arith.constant 2 : index
    %c0_16 = arith.constant 0 : index
    %8 = vector.load %arg6[%c0_15, %c2, %c0_16] : memref<18x18x4xbf16, #tpu.memory_space<vmem>>, vector<16x16x4xbf16>
    %9 = tpu.concatenate %6, %7, %8 in 2 : vector<16x16x4xbf16>, vector<16x16x4xbf16>, vector<16x16x4xbf16> -> vector<16x16x12xbf16>
    %10 = vector.shape_cast %9 : vector<16x16x12xbf16> to vector<256x12xbf16>
    %c0_17 = arith.constant 0 : index
    %c0_18 = arith.constant 0 : index
    %c0_19 = arith.constant 0 : index
    %11 = vector.load %arg2[%c0_17, %c0_18, %c0_19] : memref<3x12x4xbf16, #tpu.memory_space<vmem>>, vector<1x12x4xbf16>
    %12 = vector.shape_cast %11 : vector<1x12x4xbf16> to vector<12x4xbf16>
    %cst_20 = arith.constant dense<0.000000e+00> : vector<256x4xf32>
    %13 = tpu.matmul %10, %12, %cst_20 {dimension_numbers = #tpu.dot_dimension_numbers<[1], [0], [0], [1], [0, 0, 1, 1], [], []>} : vector<256x12xbf16>, vector<12x4xbf16>, vector<256x4xf32> -> vector<256x4xf32>
    %14 = arith.addf %5, %13 : vector<256x4xf32>
    %c1_21 = arith.constant 1 : index
    %c0_22 = arith.constant 0 : index
    %c0_23 = arith.constant 0 : index
    %15 = vector.load %arg6[%c1_21, %c0_22, %c0_23] : memref<18x18x4xbf16, #tpu.memory_space<vmem>>, vector<16x16x4xbf16>
    %c1_24 = arith.constant 1 : index
    %c1_25 = arith.constant 1 : index
    %c0_26 = arith.constant 0 : index
    %16 = vector.load %arg6[%c1_24, %c1_25, %c0_26] : memref<18x18x4xbf16, #tpu.memory_space<vmem>>, vector<16x16x4xbf16>
    %c1_27 = arith.constant 1 : index
    %c2_28 = arith.constant 2 : index
    %c0_29 = arith.constant 0 : index
    %17 = vector.load %arg6[%c1_27, %c2_28, %c0_29] : memref<18x18x4xbf16, #tpu.memory_space<vmem>>, vector<16x16x4xbf16>
    %18 = tpu.concatenate %15, %16, %17 in 2 : vector<16x16x4xbf16>, vector<16x16x4xbf16>, vector<16x16x4xbf16> -> vector<16x16x12xbf16>
    %19 = vector.shape_cast %18 : vector<16x16x12xbf16> to vector<256x12xbf16>
    %c1_30 = arith.constant 1 : index
    %c0_31 = arith.constant 0 : index
    %c0_32 = arith.constant 0 : index
    %20 = vector.load %arg2[%c1_30, %c0_31, %c0_32] : memref<3x12x4xbf16, #tpu.memory_space<vmem>>, vector<1x12x4xbf16>
    %21 = vector.shape_cast %20 : vector<1x12x4xbf16> to vector<12x4xbf16>
    %cst_33 = arith.constant dense<0.000000e+00> : vector<256x4xf32>
    %22 = tpu.matmul %19, %21, %cst_33 {dimension_numbers = #tpu.dot_dimension_numbers<[1], [0], [0], [1], [0, 0, 1, 1], [], []>} : vector<256x12xbf16>, vector<12x4xbf16>, vector<256x4xf32> -> vector<256x4xf32>
    %23 = arith.addf %14, %22 : vector<256x4xf32>
    %c2_34 = arith.constant 2 : index
    %c0_35 = arith.constant 0 : index
    %c0_36 = arith.constant 0 : index
    %24 = vector.load %arg6[%c2_34, %c0_35, %c0_36] : memref<18x18x4xbf16, #tpu.memory_space<vmem>>, vector<16x16x4xbf16>
    %c2_37 = arith.constant 2 : index
    %c1_38 = arith.constant 1 : index
    %c0_39 = arith.constant 0 : index
    %25 = vector.load %arg6[%c2_37, %c1_38, %c0_39] : memref<18x18x4xbf16, #tpu.memory_space<vmem>>, vector<16x16x4xbf16>
    %c2_40 = arith.constant 2 : index
    %c2_41 = arith.constant 2 : index
    %c0_42 = arith.constant 0 : index
    %26 = vector.load %arg6[%c2_40, %c2_41, %c0_42] : memref<18x18x4xbf16, #tpu.memory_space<vmem>>, vector<16x16x4xbf16>
    %27 = tpu.concatenate %24, %25, %26 in 2 : vector<16x16x4xbf16>, vector<16x16x4xbf16>, vector<16x16x4xbf16> -> vector<16x16x12xbf16>
    %28 = vector.shape_cast %27 : vector<16x16x12xbf16> to vector<256x12xbf16>
    %c2_43 = arith.constant 2 : index
    %c0_44 = arith.constant 0 : index
    %c0_45 = arith.constant 0 : index
    %29 = vector.load %arg2[%c2_43, %c0_44, %c0_45] : memref<3x12x4xbf16, #tpu.memory_space<vmem>>, vector<1x12x4xbf16>
    %30 = vector.shape_cast %29 : vector<1x12x4xbf16> to vector<12x4xbf16>
    %cst_46 = arith.constant dense<0.000000e+00> : vector<256x4xf32>
    %31 = tpu.matmul %28, %30, %cst_46 {dimension_numbers = #tpu.dot_dimension_numbers<[1], [0], [0], [1], [0, 0, 1, 1], [], []>} : vector<256x12xbf16>, vector<12x4xbf16>, vector<256x4xf32> -> vector<256x4xf32>
    %32 = arith.addf %23, %31 : vector<256x4xf32>
    %33 = arith.truncf %32 : vector<256x4xf32> to vector<256x4xbf16>
    %c0_47 = arith.constant 0 : index
    %c0_48 = arith.constant 0 : index
    %c0_49 = arith.constant 0 : index
    %34 = vector.load %arg3[%c0_47, %c0_48, %c0_49] : memref<1x256x4xbf16, #tpu.memory_space<vmem>>, vector<1x256x4xbf16>
    %35 = vector.shape_cast %34 : vector<1x256x4xbf16> to vector<256x4xbf16>
    %36 = vector.shape_cast %33 : vector<256x4xbf16> to vector<1x256x4xbf16>
    tpu.vector_store %arg3[%c0_47, %c0_48, %c0_49], %36 {strides = array<i32>} : memref<1x256x4xbf16, #tpu.memory_space<vmem>>, vector<1x256x4xbf16>,
    %cst_50 = arith.constant dense<0.000000e+00> : vector<4xf32>
    %37 = vector.multi_reduction <add>, %32, %cst_50 [0] : vector<256x4xf32> to vector<4xf32>
    %38 = vector.shape_cast %37 : vector<4xf32> to vector<1x4xf32>
    %c0_51 = arith.constant 0 : index
    %c0_52 = arith.constant 0 : index
    %c0_53 = arith.constant 0 : index
    %39 = vector.load %arg4[%c0_51, %c0_52, %c0_53] : memref<1x1x4xf32, #tpu.memory_space<vmem>>, vector<1x1x4xf32>
    %40 = vector.shape_cast %39 : vector<1x1x4xf32> to vector<1x4xf32>
    %41 = vector.shape_cast %38 : vector<1x4xf32> to vector<1x1x4xf32>
    tpu.vector_store %arg4[%c0_51, %c0_52, %c0_53], %41 {strides = array<i32>} : memref<1x1x4xf32, #tpu.memory_space<vmem>>, vector<1x1x4xf32>,
    %42 = arith.mulf %32, %32 : vector<256x4xf32>
    %cst_54 = arith.constant dense<0.000000e+00> : vector<4xf32>
    %43 = vector.multi_reduction <add>, %42, %cst_54 [0] : vector<256x4xf32> to vector<4xf32>
    %44 = vector.shape_cast %43 : vector<4xf32> to vector<1x4xf32>
    %c0_55 = arith.constant 0 : index
    %c0_56 = arith.constant 0 : index
    %c0_57 = arith.constant 0 : index
    %45 = vector.load %arg5[%c0_55, %c0_56, %c0_57] : memref<1x1x4xf32, #tpu.memory_space<vmem>>, vector<1x1x4xf32>
    %46 = vector.shape_cast %45 : vector<1x1x4xf32> to vector<1x4xf32>
    %47 = vector.shape_cast %44 : vector<1x4xf32> to vector<1x1x4xf32>
    tpu.vector_store %arg5[%c0_55, %c0_56, %c0_57], %47 {strides = array<i32>} : memref<1x1x4xf32, #tpu.memory_space<vmem>>, vector<1x1x4xf32>,
    return
  }
  func.func @transform_0(%arg0: i32) -> (i32, i32, i32, i32) {
    %c0_i32 = arith.constant 0 : i32
    %c0_i32_0 = arith.constant 0 : i32
    %c0_i32_1 = arith.constant 0 : i32
    %c0_i32_2 = arith.constant 0 : i32
    return %arg0, %c0_i32, %c0_i32_0, %c0_i32_1 : i32, i32, i32, i32
  }
  func.func @transform_1(%arg0: i32) -> (i32, i32, i32) {
    %c0_i32 = arith.constant 0 : i32
    %c0_i32_0 = arith.constant 0 : i32
    %c0_i32_1 = arith.constant 0 : i32
    %c0_i32_2 = arith.constant 0 : i32
    return %c0_i32, %c0_i32_0, %c0_i32_1 : i32, i32, i32
  }
  func.func @transform_2(%arg0: i32) -> (i32, i32, i32) {
    %c0_i32 = arith.constant 0 : i32
    %c0_i32_0 = arith.constant 0 : i32
    %c0_i32_1 = arith.constant 0 : i32
    return %arg0, %c0_i32, %c0_i32_0 : i32, i32, i32
  }
  func.func @transform_3(%arg0: i32) -> (i32, i32, i32) {
    %c0_i32 = arith.constant 0 : i32
    %c0_i32_0 = arith.constant 0 : i32
    %c0_i32_1 = arith.constant 0 : i32
    return %arg0, %c0_i32, %c0_i32_0 : i32, i32, i32
  }
  func.func @transform_4(%arg0: i32) -> (i32, i32, i32) {
    %c0_i32 = arith.constant 0 : i32
    %c0_i32_0 = arith.constant 0 : i32
    %c0_i32_1 = arith.constant 0 : i32
    return %arg0, %c0_i32, %c0_i32_0 : i32, i32, i32
  }
}

module attributes {stable_mosaic.version = 11 : i64} {
  func.func @_fuse_id_kernel(%arg0: i32, %arg1: memref<1x256x4xbf16, #tpu.memory_space<vmem>>, %arg2: memref<1x256x4xf32, #tpu.memory_space<vmem>>, %arg3: memref<1x4xf32, #tpu.memory_space<vmem>>, %arg4: memref<1x4xf32, #tpu.memory_space<vmem>>, %arg5: memref<1x256x4xf32, #tpu.memory_space<vmem>>) attributes {dimension_semantics = [#tpu.dimension_semantics<parallel>], iteration_bounds = array<i64: 2>, scalar_prefetch = 0 : i64, scratch_operands = 0 : i64, tpu.core_type = #tpu.core_type<tc>, window_params = [{transform_indices = @transform_0, window_bounds = array<i64: 1, 256, 4>}, {transform_indices = @transform_1, window_bounds = array<i64: 1, 256, 4>}, {pipeline_mode = #tpu.pipeline_mode<synchronous>, transform_indices = @transform_2, window_bounds = array<i64: 1, 4>}, {pipeline_mode = #tpu.pipeline_mode<synchronous>, transform_indices = @transform_3, window_bounds = array<i64: 1, 4>}, {transform_indices = @transform_4, window_bounds = array<i64: 1, 256, 4>}]} {
    %c0 = arith.constant 0 : index
    %c0_0 = arith.constant 0 : index
    %c0_1 = arith.constant 0 : index
    %0 = vector.load %arg1[%c0, %c0_0, %c0_1] : memref<1x256x4xbf16, #tpu.memory_space<vmem>>, vector<1x256x4xbf16>
    %1 = vector.shape_cast %0 : vector<1x256x4xbf16> to vector<256x4xbf16>
    %2 = arith.extf %1 : vector<256x4xbf16> to vector<256x4xf32>
    %c0_2 = arith.constant 0 : index
    %c0_3 = arith.constant 0 : index
    %3 = vector.load %arg3[%c0_2, %c0_3] : memref<1x4xf32, #tpu.memory_space<vmem>>, vector<1x4xf32>
    %4 = vector.broadcast %3 : vector<1x4xf32> to vector<256x4xf32>
    %5 = arith.mulf %2, %4 : vector<256x4xf32>
    %c0_4 = arith.constant 0 : index
    %c0_5 = arith.constant 0 : index
    %6 = vector.load %arg4[%c0_4, %c0_5] : memref<1x4xf32, #tpu.memory_space<vmem>>, vector<1x4xf32>
    %7 = vector.broadcast %6 : vector<1x4xf32> to vector<256x4xf32>
    %8 = arith.addf %5, %7 : vector<256x4xf32>
    %c0_6 = arith.constant 0 : index
    %c0_7 = arith.constant 0 : index
    %c0_8 = arith.constant 0 : index
    %9 = vector.load %arg2[%c0_6, %c0_7, %c0_8] : memref<1x256x4xf32, #tpu.memory_space<vmem>>, vector<1x256x4xf32>
    %10 = vector.shape_cast %9 : vector<1x256x4xf32> to vector<256x4xf32>
    %11 = arith.addf %8, %10 : vector<256x4xf32>
    %cst = arith.constant 0.000000e+00 : f32
    %12 = vector.broadcast %cst : f32 to vector<256x4xf32>
    %13 = arith.maximumf %11, %12 : vector<256x4xf32>
    %c0_9 = arith.constant 0 : index
    %c0_10 = arith.constant 0 : index
    %c0_11 = arith.constant 0 : index
    %14 = vector.load %arg5[%c0_9, %c0_10, %c0_11] : memref<1x256x4xf32, #tpu.memory_space<vmem>>, vector<1x256x4xf32>
    %15 = vector.shape_cast %14 : vector<1x256x4xf32> to vector<256x4xf32>
    %16 = vector.shape_cast %13 : vector<256x4xf32> to vector<1x256x4xf32>
    tpu.vector_store %arg5[%c0_9, %c0_10, %c0_11], %16 {strides = array<i32>} : memref<1x256x4xf32, #tpu.memory_space<vmem>>, vector<1x256x4xf32>,
    return
  }
  func.func @transform_0(%arg0: i32) -> (i32, i32, i32) {
    %c0_i32 = arith.constant 0 : i32
    %c0_i32_0 = arith.constant 0 : i32
    %c0_i32_1 = arith.constant 0 : i32
    return %arg0, %c0_i32, %c0_i32_0 : i32, i32, i32
  }
  func.func @transform_1(%arg0: i32) -> (i32, i32, i32) {
    %c0_i32 = arith.constant 0 : i32
    %c0_i32_0 = arith.constant 0 : i32
    %c0_i32_1 = arith.constant 0 : i32
    return %arg0, %c0_i32, %c0_i32_0 : i32, i32, i32
  }
  func.func @transform_2(%arg0: i32) -> (i32, i32) {
    %c0_i32 = arith.constant 0 : i32
    %c0_i32_0 = arith.constant 0 : i32
    %c0_i32_1 = arith.constant 0 : i32
    return %c0_i32, %c0_i32_0 : i32, i32
  }
  func.func @transform_3(%arg0: i32) -> (i32, i32) {
    %c0_i32 = arith.constant 0 : i32
    %c0_i32_0 = arith.constant 0 : i32
    %c0_i32_1 = arith.constant 0 : i32
    return %c0_i32, %c0_i32_0 : i32, i32
  }
  func.func @transform_4(%arg0: i32) -> (i32, i32, i32) {
    %c0_i32 = arith.constant 0 : i32
    %c0_i32_0 = arith.constant 0 : i32
    %c0_i32_1 = arith.constant 0 : i32
    return %arg0, %c0_i32, %c0_i32_0 : i32, i32, i32
  }
}

module attributes {stable_mosaic.version = 11 : i64} {
  func.func @_conv3x3_s1_bnrelu_kernel(%arg0: i32, %arg1: memref<1x4xf32, #tpu.memory_space<vmem>>, %arg2: memref<1x4xf32, #tpu.memory_space<vmem>>, %arg3: memref<1x256x4xbf16, #tpu.memory_space<vmem>>, %arg4: memref<3x12x4xbf16, #tpu.memory_space<vmem>>, %arg5: memref<1x256x4xbf16, #tpu.memory_space<vmem>>, %arg6: memref<1x1x4xf32, #tpu.memory_space<vmem>>, %arg7: memref<1x1x4xf32, #tpu.memory_space<vmem>>, %arg8: memref<18x18x4xbf16, #tpu.memory_space<vmem>>) attributes {dimension_semantics = [#tpu.dimension_semantics<parallel>], iteration_bounds = array<i64: 2>, scalar_prefetch = 0 : i64, scratch_operands = 1 : i64, tpu.core_type = #tpu.core_type<tc>, window_params = [{pipeline_mode = #tpu.pipeline_mode<synchronous>, transform_indices = @transform_0, window_bounds = array<i64: 1, 4>}, {pipeline_mode = #tpu.pipeline_mode<synchronous>, transform_indices = @transform_1, window_bounds = array<i64: 1, 4>}, {transform_indices = @transform_2, window_bounds = array<i64: 1, 256, 4>}, {pipeline_mode = #tpu.pipeline_mode<synchronous>, transform_indices = @transform_3, window_bounds = array<i64: 3, 12, 4>}, {transform_indices = @transform_4, window_bounds = array<i64: 1, 256, 4>}, {transform_indices = @transform_5, window_bounds = array<i64: 1, 1, 4>}, {transform_indices = @transform_6, window_bounds = array<i64: 1, 1, 4>}]} {
    %c0 = arith.constant 0 : index
    %c0_0 = arith.constant 0 : index
    %c0_1 = arith.constant 0 : index
    %0 = vector.load %arg3[%c0, %c0_0, %c0_1] : memref<1x256x4xbf16, #tpu.memory_space<vmem>>, vector<1x256x4xbf16>
    %1 = vector.shape_cast %0 : vector<1x256x4xbf16> to vector<256x4xbf16>
    %2 = arith.extf %1 : vector<256x4xbf16> to vector<256x4xf32>
    %c0_2 = arith.constant 0 : index
    %c0_3 = arith.constant 0 : index
    %3 = vector.load %arg1[%c0_2, %c0_3] : memref<1x4xf32, #tpu.memory_space<vmem>>, vector<1x4xf32>
    %4 = vector.broadcast %3 : vector<1x4xf32> to vector<256x4xf32>
    %5 = arith.mulf %2, %4 : vector<256x4xf32>
    %c0_4 = arith.constant 0 : index
    %c0_5 = arith.constant 0 : index
    %6 = vector.load %arg2[%c0_4, %c0_5] : memref<1x4xf32, #tpu.memory_space<vmem>>, vector<1x4xf32>
    %7 = vector.broadcast %6 : vector<1x4xf32> to vector<256x4xf32>
    %8 = arith.addf %5, %7 : vector<256x4xf32>
    %cst = arith.constant 0.000000e+00 : f32
    %9 = vector.broadcast %cst : f32 to vector<256x4xf32>
    %10 = arith.maximumf %8, %9 : vector<256x4xf32>
    %cst_6 = arith.constant 0.000000e+00 : bf16
    %11 = vector.broadcast %cst_6 : bf16 to vector<18x18x4xbf16>
    %c0_7 = arith.constant 0 : index
    %c0_8 = arith.constant 0 : index
    %c0_9 = arith.constant 0 : index
    %12 = vector.load %arg8[%c0_7, %c0_8, %c0_9] : memref<18x18x4xbf16, #tpu.memory_space<vmem>>, vector<18x18x4xbf16>
    tpu.vector_store %arg8[%c0_7, %c0_8, %c0_9], %11 {strides = array<i32>} : memref<18x18x4xbf16, #tpu.memory_space<vmem>>, vector<18x18x4xbf16>,
    %13 = vector.shape_cast %10 : vector<256x4xf32> to vector<16x16x4xf32>
    %14 = arith.truncf %13 : vector<16x16x4xf32> to vector<16x16x4xbf16>
    %c1 = arith.constant 1 : index
    %c1_10 = arith.constant 1 : index
    %c0_11 = arith.constant 0 : index
    %15 = vector.load %arg8[%c1, %c1_10, %c0_11] : memref<18x18x4xbf16, #tpu.memory_space<vmem>>, vector<16x16x4xbf16>
    tpu.vector_store %arg8[%c1, %c1_10, %c0_11], %14 {strides = array<i32>} : memref<18x18x4xbf16, #tpu.memory_space<vmem>>, vector<16x16x4xbf16>,
    %cst_12 = arith.constant 0.000000e+00 : f32
    %16 = vector.broadcast %cst_12 : f32 to vector<256x4xf32>
    %c0_13 = arith.constant 0 : index
    %c0_14 = arith.constant 0 : index
    %c0_15 = arith.constant 0 : index
    %17 = vector.load %arg8[%c0_13, %c0_14, %c0_15] : memref<18x18x4xbf16, #tpu.memory_space<vmem>>, vector<16x16x4xbf16>
    %c0_16 = arith.constant 0 : index
    %c1_17 = arith.constant 1 : index
    %c0_18 = arith.constant 0 : index
    %18 = vector.load %arg8[%c0_16, %c1_17, %c0_18] : memref<18x18x4xbf16, #tpu.memory_space<vmem>>, vector<16x16x4xbf16>
    %c0_19 = arith.constant 0 : index
    %c2 = arith.constant 2 : index
    %c0_20 = arith.constant 0 : index
    %19 = vector.load %arg8[%c0_19, %c2, %c0_20] : memref<18x18x4xbf16, #tpu.memory_space<vmem>>, vector<16x16x4xbf16>
    %20 = tpu.concatenate %17, %18, %19 in 2 : vector<16x16x4xbf16>, vector<16x16x4xbf16>, vector<16x16x4xbf16> -> vector<16x16x12xbf16>
    %21 = vector.shape_cast %20 : vector<16x16x12xbf16> to vector<256x12xbf16>
    %c0_21 = arith.constant 0 : index
    %c0_22 = arith.constant 0 : index
    %c0_23 = arith.constant 0 : index
    %22 = vector.load %arg4[%c0_21, %c0_22, %c0_23] : memref<3x12x4xbf16, #tpu.memory_space<vmem>>, vector<1x12x4xbf16>
    %23 = vector.shape_cast %22 : vector<1x12x4xbf16> to vector<12x4xbf16>
    %cst_24 = arith.constant dense<0.000000e+00> : vector<256x4xf32>
    %24 = tpu.matmul %21, %23, %cst_24 {dimension_numbers = #tpu.dot_dimension_numbers<[1], [0], [0], [1], [0, 0, 1, 1], [], []>} : vector<256x12xbf16>, vector<12x4xbf16>, vector<256x4xf32> -> vector<256x4xf32>
    %25 = arith.addf %16, %24 : vector<256x4xf32>
    %c1_25 = arith.constant 1 : index
    %c0_26 = arith.constant 0 : index
    %c0_27 = arith.constant 0 : index
    %26 = vector.load %arg8[%c1_25, %c0_26, %c0_27] : memref<18x18x4xbf16, #tpu.memory_space<vmem>>, vector<16x16x4xbf16>
    %c1_28 = arith.constant 1 : index
    %c1_29 = arith.constant 1 : index
    %c0_30 = arith.constant 0 : index
    %27 = vector.load %arg8[%c1_28, %c1_29, %c0_30] : memref<18x18x4xbf16, #tpu.memory_space<vmem>>, vector<16x16x4xbf16>
    %c1_31 = arith.constant 1 : index
    %c2_32 = arith.constant 2 : index
    %c0_33 = arith.constant 0 : index
    %28 = vector.load %arg8[%c1_31, %c2_32, %c0_33] : memref<18x18x4xbf16, #tpu.memory_space<vmem>>, vector<16x16x4xbf16>
    %29 = tpu.concatenate %26, %27, %28 in 2 : vector<16x16x4xbf16>, vector<16x16x4xbf16>, vector<16x16x4xbf16> -> vector<16x16x12xbf16>
    %30 = vector.shape_cast %29 : vector<16x16x12xbf16> to vector<256x12xbf16>
    %c1_34 = arith.constant 1 : index
    %c0_35 = arith.constant 0 : index
    %c0_36 = arith.constant 0 : index
    %31 = vector.load %arg4[%c1_34, %c0_35, %c0_36] : memref<3x12x4xbf16, #tpu.memory_space<vmem>>, vector<1x12x4xbf16>
    %32 = vector.shape_cast %31 : vector<1x12x4xbf16> to vector<12x4xbf16>
    %cst_37 = arith.constant dense<0.000000e+00> : vector<256x4xf32>
    %33 = tpu.matmul %30, %32, %cst_37 {dimension_numbers = #tpu.dot_dimension_numbers<[1], [0], [0], [1], [0, 0, 1, 1], [], []>} : vector<256x12xbf16>, vector<12x4xbf16>, vector<256x4xf32> -> vector<256x4xf32>
    %34 = arith.addf %25, %33 : vector<256x4xf32>
    %c2_38 = arith.constant 2 : index
    %c0_39 = arith.constant 0 : index
    %c0_40 = arith.constant 0 : index
    %35 = vector.load %arg8[%c2_38, %c0_39, %c0_40] : memref<18x18x4xbf16, #tpu.memory_space<vmem>>, vector<16x16x4xbf16>
    %c2_41 = arith.constant 2 : index
    %c1_42 = arith.constant 1 : index
    %c0_43 = arith.constant 0 : index
    %36 = vector.load %arg8[%c2_41, %c1_42, %c0_43] : memref<18x18x4xbf16, #tpu.memory_space<vmem>>, vector<16x16x4xbf16>
    %c2_44 = arith.constant 2 : index
    %c2_45 = arith.constant 2 : index
    %c0_46 = arith.constant 0 : index
    %37 = vector.load %arg8[%c2_44, %c2_45, %c0_46] : memref<18x18x4xbf16, #tpu.memory_space<vmem>>, vector<16x16x4xbf16>
    %38 = tpu.concatenate %35, %36, %37 in 2 : vector<16x16x4xbf16>, vector<16x16x4xbf16>, vector<16x16x4xbf16> -> vector<16x16x12xbf16>
    %39 = vector.shape_cast %38 : vector<16x16x12xbf16> to vector<256x12xbf16>
    %c2_47 = arith.constant 2 : index
    %c0_48 = arith.constant 0 : index
    %c0_49 = arith.constant 0 : index
    %40 = vector.load %arg4[%c2_47, %c0_48, %c0_49] : memref<3x12x4xbf16, #tpu.memory_space<vmem>>, vector<1x12x4xbf16>
    %41 = vector.shape_cast %40 : vector<1x12x4xbf16> to vector<12x4xbf16>
    %cst_50 = arith.constant dense<0.000000e+00> : vector<256x4xf32>
    %42 = tpu.matmul %39, %41, %cst_50 {dimension_numbers = #tpu.dot_dimension_numbers<[1], [0], [0], [1], [0, 0, 1, 1], [], []>} : vector<256x12xbf16>, vector<12x4xbf16>, vector<256x4xf32> -> vector<256x4xf32>
    %43 = arith.addf %34, %42 : vector<256x4xf32>
    %44 = arith.truncf %43 : vector<256x4xf32> to vector<256x4xbf16>
    %c0_51 = arith.constant 0 : index
    %c0_52 = arith.constant 0 : index
    %c0_53 = arith.constant 0 : index
    %45 = vector.load %arg5[%c0_51, %c0_52, %c0_53] : memref<1x256x4xbf16, #tpu.memory_space<vmem>>, vector<1x256x4xbf16>
    %46 = vector.shape_cast %45 : vector<1x256x4xbf16> to vector<256x4xbf16>
    %47 = vector.shape_cast %44 : vector<256x4xbf16> to vector<1x256x4xbf16>
    tpu.vector_store %arg5[%c0_51, %c0_52, %c0_53], %47 {strides = array<i32>} : memref<1x256x4xbf16, #tpu.memory_space<vmem>>, vector<1x256x4xbf16>,
    %cst_54 = arith.constant dense<0.000000e+00> : vector<4xf32>
    %48 = vector.multi_reduction <add>, %43, %cst_54 [0] : vector<256x4xf32> to vector<4xf32>
    %49 = vector.shape_cast %48 : vector<4xf32> to vector<1x4xf32>
    %c0_55 = arith.constant 0 : index
    %c0_56 = arith.constant 0 : index
    %c0_57 = arith.constant 0 : index
    %50 = vector.load %arg6[%c0_55, %c0_56, %c0_57] : memref<1x1x4xf32, #tpu.memory_space<vmem>>, vector<1x1x4xf32>
    %51 = vector.shape_cast %50 : vector<1x1x4xf32> to vector<1x4xf32>
    %52 = vector.shape_cast %49 : vector<1x4xf32> to vector<1x1x4xf32>
    tpu.vector_store %arg6[%c0_55, %c0_56, %c0_57], %52 {strides = array<i32>} : memref<1x1x4xf32, #tpu.memory_space<vmem>>, vector<1x1x4xf32>,
    %53 = arith.mulf %43, %43 : vector<256x4xf32>
    %cst_58 = arith.constant dense<0.000000e+00> : vector<4xf32>
    %54 = vector.multi_reduction <add>, %53, %cst_58 [0] : vector<256x4xf32> to vector<4xf32>
    %55 = vector.shape_cast %54 : vector<4xf32> to vector<1x4xf32>
    %c0_59 = arith.constant 0 : index
    %c0_60 = arith.constant 0 : index
    %c0_61 = arith.constant 0 : index
    %56 = vector.load %arg7[%c0_59, %c0_60, %c0_61] : memref<1x1x4xf32, #tpu.memory_space<vmem>>, vector<1x1x4xf32>
    %57 = vector.shape_cast %56 : vector<1x1x4xf32> to vector<1x4xf32>
    %58 = vector.shape_cast %55 : vector<1x4xf32> to vector<1x1x4xf32>
    tpu.vector_store %arg7[%c0_59, %c0_60, %c0_61], %58 {strides = array<i32>} : memref<1x1x4xf32, #tpu.memory_space<vmem>>, vector<1x1x4xf32>,
    return
  }
  func.func @transform_0(%arg0: i32) -> (i32, i32) {
    %c0_i32 = arith.constant 0 : i32
    %c0_i32_0 = arith.constant 0 : i32
    %c0_i32_1 = arith.constant 0 : i32
    return %c0_i32, %c0_i32_0 : i32, i32
  }
  func.func @transform_1(%arg0: i32) -> (i32, i32) {
    %c0_i32 = arith.constant 0 : i32
    %c0_i32_0 = arith.constant 0 : i32
    %c0_i32_1 = arith.constant 0 : i32
    return %c0_i32, %c0_i32_0 : i32, i32
  }
  func.func @transform_2(%arg0: i32) -> (i32, i32, i32) {
    %c0_i32 = arith.constant 0 : i32
    %c0_i32_0 = arith.constant 0 : i32
    %c0_i32_1 = arith.constant 0 : i32
    return %arg0, %c0_i32, %c0_i32_0 : i32, i32, i32
  }
  func.func @transform_3(%arg0: i32) -> (i32, i32, i32) {
    %c0_i32 = arith.constant 0 : i32
    %c0_i32_0 = arith.constant 0 : i32
    %c0_i32_1 = arith.constant 0 : i32
    %c0_i32_2 = arith.constant 0 : i32
    return %c0_i32, %c0_i32_0, %c0_i32_1 : i32, i32, i32
  }
  func.func @transform_4(%arg0: i32) -> (i32, i32, i32) {
    %c0_i32 = arith.constant 0 : i32
    %c0_i32_0 = arith.constant 0 : i32
    %c0_i32_1 = arith.constant 0 : i32
    return %arg0, %c0_i32, %c0_i32_0 : i32, i32, i32
  }
  func.func @transform_5(%arg0: i32) -> (i32, i32, i32) {
    %c0_i32 = arith.constant 0 : i32
    %c0_i32_0 = arith.constant 0 : i32
    %c0_i32_1 = arith.constant 0 : i32
    return %arg0, %c0_i32, %c0_i32_0 : i32, i32, i32
  }
  func.func @transform_6(%arg0: i32) -> (i32, i32, i32) {
    %c0_i32 = arith.constant 0 : i32
    %c0_i32_0 = arith.constant 0 : i32
    %c0_i32_1 = arith.constant 0 : i32
    return %arg0, %c0_i32, %c0_i32_0 : i32, i32, i32
  }
}

</mosaic_0001>

<bundles_post_ra>
// kernel: basic_block.5
= control target key start
LH: loop header
LB: loop body
LE: loop exit
PB: predicated region body
PF: predicated region fallthrough
CT: control target
= control target key end

     0   :  { %s1571_s0 = inlined_call_operand.hbm [shape: bf16[2,256,4], index: 0, kind: input, shape index: {}]   ;;  %s1572_s1 = inlined_call_operand.hbm [shape: f32[2,256,4], index: 1, kind: input, shape index: {}]   ;;  %s1573_s2 = inlined_call_operand.hbm [shape: f32[1,4], index: 2, kind: input, shape index: {}]   ;;  %s1574_s3 = inlined_call_operand.hbm [shape: f32[1,4], index: 3, kind: input, shape index: {}]   ;;  %s1575_s4 = inlined_call_operand.hbm [shape: f32[2,256,4], index: 4, kind: output, shape index: {}]  }
   0x1   :  { %1581 = sst [smem:[#allocation16_spill]] %s1571_s0 }
   0x2   :  { %1582 = sst [smem:[#allocation17_spill]] %s1573_s2 }
   0x3   :  { %9 = vsyncpa [#allocation3], 0 }
   0x4   :  { %11 = vsyncpa [#allocation3 + $0x1], 0 }
   0x5   :  { %12 = vsyncpa [#allocation6], 0 }
   0x6   :  { %14 = vsyncpa [#allocation6 + $0x1], 0 }
   0x7   :  { %15 = vsyncpa [#allocation9], 0 }
   0x8   :  { %16 = vsyncpa [#allocation4], 0 }
   0x9   :  { %18 = vsyncpa [#allocation4 + $0x1], 0  ;;  %s1097_s15 = smov 0   ;;  %s1099_s16 = smov 0  }
   0xa   :  { %s1101_s17 = smov 0   ;;  %s1103_s18 = smov 0  }
   0xb LB: > { %s1118_s19 = sadd.s32 4294967295, %s1059_s18   ;;  %s681_s20 = sadd.s32 4294967294, %s1059_s18   ;;  %s1059_s18 = sphi %s1103_s18, %s1606_s18   ;;  %s1055_s17 = sphi %s1101_s17, %s1605_s17   ;;  %s1051_s16 = sphi %s1099_s16, %s1604_s16   ;;  %s1047_s15 = sphi %s1097_s15, %s1603_s15  }
   0xc   : > { %s1122_s21 = sadd.s32 1, %s1059_s18   ;;  %s31_s22 = sadd.s32 1, %s1055_s17 }
   0xd   : > { %s28_s23 = ssub.s32 %s1059_s18, %s1122_s21  ;;  %p38_p0 = scmp.ne.s32.totalorder %s1055_s17, %s1051_s16 }
   0xe   : > { %p29_p1 = scmp.eq.s32.totalorder %s28_s23, 0  ;;  %p39_p2 = scmp.eq.s32.totalorder %s1059_s18, 0 }
   0xf   : > { %p44_p3 = scmp.ne.s32.totalorder %s1051_s16, %s1047_s15  ;;  %p1576_p4 = scmp.eq.s32.totalorder %s1118_s19, 0 }
  0x10   : > { %s1134_s24 = scalar_select %p29_p1, %s1055_s17, %s31_s22  }
  0x11   : > { %p1136_p5 = por %p39_p2, %p38_p0  ;;  %p1142_p6 = por %p1576_p4, %p44_p3 }
  0x12   : > { %p136_p7 = scmp.eq.s32.totalorder %s1118_s19, 1  ;;  %p142_p8 = scmp.eq.s32.totalorder %s681_s20, 1 }
  0x13   : > { %s1584_s26 = scalar_select %p1142_p6, 1, 0 }
  0x14   : > { %p682_p9 = scmp.ge.s32.totalorder %s1059_s18, 1  ;;  %p149_p10 = scmp.lt.s32.totalorder %s1059_s18, 3 }
  0x15   : > { %p1149_p11 = por %p136_p7, %p38_p0  ;;  %p1153_p12 = por %p142_p8, %p44_p3 }
  0x16   : > { %p1157_p13 = pnand %p682_p9, %p149_p10  ;;  %s1061_s30 = smov [#allocation7]  }
  0x17   : > { %s1585_s27 = scalar_select %p1149_p11, 1, 0 }
  0x18   : > { %s1586_s28 = scalar_select %p1153_p12, 1, 0 }
  0x19   : > { %s1587_s29 = scalar_select %p1157_p13, 1, 0 }
  0x1a   : > { %p801_p2 = pneg %p1157_p13  ;;  %s162_s5 = sshll.u32 %s1061_s30, 4  ;;  %s163_s5 = int_to_ptr.vmem [resolvable:$true] %s162_s5 }
  0x1b   : > { %p821_p4 = scmp.lt.s32.totalorder %s1059_s18, 2  ;;  %p1588_p0 = scmp.eq.s32.totalorder %s1118_s19, 0 }
  0x1c   : > { %s1062_s8 = smov [#allocation8]   ;;  %s1591_s2 = sld [smem:[#allocation17_spill]] }
  0x1d   : > { %p1167_p7 = pnand %p801_p2, %p1588_p0  ;;  %p1173_p3 = pnand %p821_p4, %p1136_p5 }
  0x1e   : > { %s173_s9 = sshll.u32 %s1062_s8, 4  ;;  %s1177_s9 = int_to_ptr.vmem [resolvable:$true] %s173_s9 }
  0x1f   : > { %s1590_s7 = scalar_select %p1173_p3, 1, 0 }
  0x20   : > { %p867_p9 = pneg %p1167_p7 }
  0x22   : > { %s865_s12 = scalar_lea.hbm %s1591_s2, 16 }
  0x23   : > { %p866_p8 = scmp.ne.s32.totalorder %s1591_s2, %s865_s12  ;;  %p872_p10 = scmp.lt.u32.totalorder %s865_s12, %s1591_s2 }
  0x25   : > { %p868_p4 = pnand %p867_p9, %p866_p8 }
  0x27   : > { %p869_p5 = pneg %p868_p4 }
  0x29   : > { %p874_p2 = pnand %p872_p10, %p869_p5 }
  0x2b   : > { %877 = shalt.err (!%p874_p2)
}
  0x2c   : > { %s878_s23 = scalar_lea.vmem %s163_s5, 16  ;;  %s885_s25 = scalar_lea.vmem %s163_s5, 32 }
  0x2d   : > { %p879_p0 = scmp.ne.s32.totalorder %s163_s5, %s878_s23  ;;  %p886_p11 = scmp.lt.s32.totalorder %s163_s5, %s163_s5 }
  0x2e   : > { %p887_p6 = scmp.lt.s32.totalorder %s885_s25, %s878_s23 }
  0x2f   : > { %p881_p1 = pnand %p879_p0, %p867_p9 }
  0x30   : > { %p888_p13 = por %p887_p6, %p886_p11 }
  0x31   : > { %p882_p12 = pneg %p881_p1 }
  0x33   : > { %p889_p3 = pnand %p888_p13, %p882_p12 }
  0x35   : > { %892 = shalt.err (!%p889_p3)
}
  0x36   : > { %804 = dma.hbm_to_vmem [thread:$0]  (!%p1167_p7), %s1591_s2, 16, %s163_s5, [#allocation6]  }
  0x37   : > { %s1202_s10 = sand.u32 1, %s1055_s17   ;;  %s893_s13 = scalar_lea.hbm %s1574_s3, 16 }
  0x38   : > { %p894_p6 = scmp.ne.s32.totalorder %s1574_s3, %s893_s13  ;;  %p900_p13 = scmp.lt.u32.totalorder %s893_s13, %s1574_s3 }
  0x3a   : > { %p896_p11 = pnand %p894_p6, %p867_p9 }
  0x3c   : > { %p897_p12 = pneg %p896_p11 }
  0x3e   : > { %p902_p1 = pnand %p900_p13, %p897_p12 }
  0x40   : > { %905 = shalt.err (!%p902_p1)
}
  0x41   : > { %s906_s5 = scalar_lea.vmem %s1177_s9, 16  ;;  %s913_s25 = scalar_lea.vmem %s1177_s9, 32 }
  0x42   : > { %p907_p3 = scmp.ne.s32.totalorder %s1177_s9, %s906_s5  ;;  %p914_p5 = scmp.lt.s32.totalorder %s1177_s9, %s1177_s9 }
  0x43   : > { %p915_p10 = scmp.lt.s32.totalorder %s913_s25, %s906_s5 }
  0x44   : > { %p909_p8 = pnand %p907_p3, %p867_p9 }
  0x45   : > { %p916_p2 = por %p915_p10, %p914_p5 }
  0x46   : > { %p910_p4 = pneg %p909_p8 }
  0x48   : > { %p917_p0 = pnand %p916_p2, %p910_p4 }
  0x4a   : > { %920 = shalt.err (!%p917_p0)
}
  0x4b   : > { %807 = dma.hbm_to_vmem [thread:$0]  (!%p1167_p7), %s1574_s3, 16, %s1177_s9, [#allocation9]  }
  0x4c   : > { %s686_s11 = sshll.u32 %s1202_s10, 7  ;;  %s705_s12 = sshll.u32 %s1059_s18, 11 }
  0x4d   : > { %s1592_s0 = sld [smem:[#allocation16_spill]]  ;;  %s188_s6 = scalar_lea.vmem [#allocation2], %s686_s11 }
  0x4e   : > { %s195_s22 = sshll.u32 %s188_s6, 4  ;;  %s205_s23 = sand.u32 1, %s1059_s18   ;;  %s1237_s22 = int_to_ptr.vmem [resolvable:$true] %s195_s22 }
  0x4f   : > { %s185_s5 = scalar_lea.sflag [#allocation3], %s1202_s10  ;;  %p1593_p7 = scmp.ne.s32.totalorder %s1590_s7, 0 }
  0x51   : > { %p923_p6 = pneg %p1593_p7 }
  0x53   : > { %s1235_s20 = scalar_lea.hbm %s1592_s0, %s705_s12  ;;  %s926_s8 = scalar_lea.hbm %s1592_s0, 4096 }
  0x54   : > { %s921_s25 = scalar_lea.hbm %s1235_s20, 2048  ;;  %p927_p13 = scmp.lt.u32.totalorder %s1235_s20, %s1592_s0 }
  0x55   : > { %p922_p9 = scmp.ne.s32.totalorder %s1235_s20, %s921_s25  ;;  %p928_p1 = scmp.lt.u32.totalorder %s926_s8, %s921_s25 }
  0x56   : > { %p930_p8 = scmp.lt.u32.totalorder %s921_s25, %s1235_s20 }
  0x57   : > { %p924_p11 = pnand %p923_p6, %p922_p9  ;;  %p929_p3 = por %p928_p1, %p927_p13 }
  0x59   : > { %p925_p12 = pneg %p924_p11  ;;  %p931_p4 = por %p930_p8, %p929_p3 }
  0x5b   : > { %p932_p5 = pnand %p931_p4, %p925_p12 }
  0x5d   : > { %935 = shalt.err (!%p932_p5)
}
  0x5e   : > { %s936_s11 = scalar_lea.vmem %s1237_s22, 2048  ;;  %s1063_s14 = smov [#allocation2]  }
  0x5f   : > { %p937_p10 = scmp.ne.s32.totalorder %s1237_s22, %s936_s11  ;;  %s941_s6 = sshll.u32 %s1063_s14, 4  ;;  %s942_s6 = int_to_ptr.vmem [resolvable:$false] %s941_s6 }
  0x60   : > { %s943_s9 = scalar_lea.vmem %s942_s6, 4096  ;;  %p944_p9 = scmp.lt.s32.totalorder %s1237_s22, %s942_s6 }
  0x61   : > { %p939_p2 = pnand %p937_p10, %p923_p6  ;;  %p945_p11 = scmp.lt.s32.totalorder %s943_s9, %s936_s11 }
  0x63   : > { %p940_p0 = pneg %p939_p2  ;;  %p946_p13 = por %p945_p11, %p944_p9 }
  0x65   : > { %p947_p1 = pnand %p946_p13, %p940_p0 }
  0x67   : > { %950 = shalt.err (!%p947_p1)
}
  0x68   : > { %s1064_s25 = smov 64   ;;  %s1065_s30 = smov 4  }
  0x69   : > { %811 = dma.hbm_to_vmem [thread:$0]  (!%p1593_p7), %s1235_s20, 2048, %s1237_s22, %s185_s5, %s1064_s25, %s1064_s25, %s1065_s30  }
  0x6a   : > { %s689_s8 = sshll.u32 %s1202_s10, 8  ;;  %s706_s12 = sshll.u32 %s1059_s18, 12 }
  0x6b   : > { %s1273_s14 = scalar_lea.hbm %s1572_s1, %s706_s12  ;;  %s209_s6 = scalar_lea.vmem [#allocation5], %s689_s8 }
  0x6c   : > { %s216_s9 = sshll.u32 %s209_s6, 4  ;;  %s1279_s0 = scalar_lea.sflag [#allocation6], %s205_s23  ;;  %s1275_s9 = int_to_ptr.vmem [resolvable:$true] %s216_s9 }
  0x6d   : > { %s951_s2 = scalar_lea.hbm %s1273_s14, 4096  ;;  %s956_s22 = scalar_lea.hbm %s1572_s1, 8192 }
  0x6e   : > { %p952_p12 = scmp.ne.s32.totalorder %s1273_s14, %s951_s2  ;;  %p957_p4 = scmp.lt.u32.totalorder %s1273_s14, %s1572_s1 }
  0x6f   : > { %p958_p5 = scmp.lt.u32.totalorder %s956_s22, %s951_s2  ;;  %p960_p2 = scmp.lt.u32.totalorder %s951_s2, %s1273_s14 }
  0x70   : > { %p954_p3 = pnand %p952_p12, %p923_p6 }
  0x71   : > { %p959_p10 = por %p958_p5, %p957_p4 }
  0x72   : > { %p955_p8 = pneg %p954_p3 }
  0x73   : > { %p961_p0 = por %p960_p2, %p959_p10 }
  0x75   : > { %p962_p9 = pnand %p961_p0, %p955_p8 }
  0x77   : > { %965 = shalt.err (!%p962_p9)
}
  0x78   : > { %s966_s23 = scalar_lea.vmem %s1275_s9, 4096  ;;  %s1066_s30 = smov [#allocation5]  }
  0x79   : > { %p967_p11 = scmp.ne.s32.totalorder %s1275_s9, %s966_s23  ;;  %s971_s8 = sshll.u32 %s1066_s30, 4  ;;  %s972_s8 = int_to_ptr.vmem [resolvable:$false] %s971_s8 }
  0x7a   : > { %s973_s12 = scalar_lea.vmem %s972_s8, 8192  ;;  %p974_p12 = scmp.lt.s32.totalorder %s1275_s9, %s972_s8 }
  0x7b   : > { %p969_p13 = pnand %p967_p11, %p923_p6  ;;  %p975_p3 = scmp.lt.s32.totalorder %s973_s12, %s966_s23 }
  0x7d   : > { %p970_p1 = pneg %p969_p13  ;;  %p976_p4 = por %p975_p3, %p974_p12 }
  0x7f   : > { %p977_p5 = pnand %p976_p4, %p970_p1 }
  0x81   : > { %980 = shalt.err (!%p977_p5)
}
  0x82   : > { %s1067_s2 = smov 128   ;;  %s1068_s13 = smov 8  }
  0x83   : > { %814 = dma.hbm_to_vmem [thread:$0]  (!%p1593_p7), %s1273_s14, 4096, %s1275_s9, %s1279_s0, %s1067_s2, %s1067_s2, %s1068_s13  }
  0x84   : > { %p1594_p6 = scmp.ne.s32.totalorder %s1587_s29, 0 }
  0x85   : > { %s1308_s11 = sand.u32 (!%p1594_p6), 1, %s1051_s16   ;;  %p1595_p8 = scmp.ne.s32.totalorder (!%p1594_p6), %s1584_s26, 0 }
  0x86   : > { %228 = sbr.rel (%p1594_p6) target bundleno = 210 (0xd2), region = 36  ;;  %s693_s6 = sshll.u32 (!%p1594_p6), %s1308_s11, 7 }
  0x87   : > { %s231_s10 = scalar_lea.sflag (!%p1594_p6), [#allocation3], %s1308_s11  ;;  %s1312_s20 = scalar_lea.vmem (!%p1594_p6), [#allocation2], %s693_s6 }
  0x8d   : > { %1026 = dma.done.wait (%p1595_p8), %s231_s10, 2048  }
  0x8e   : > { %1028 = vsyncadd (%p1595_p8), %s231_s10, 4294965248  ;;  %s239_s0 = sand.u32 1, %s1118_s19   ;;  %s694_s29 = sshll.u32 %s1308_s11, 8 }
  0x8f   : > { %s240_s7 = scalar_lea.sflag [#allocation6], %s239_s0  ;;  %s1322_s14 = scalar_lea.vmem [#allocation5], %s694_s29 }
  0x90   : > { %1030 = dma.done.wait (%p1595_p8), %s240_s7, 4096  }
  0x91   : > { %1032 = vsyncadd (%p1595_p8), %s240_s7, 4294963200  ;;  %p1596_p7 = scmp.eq.s32.totalorder %s1118_s19, 0 }
  0x93   : > { %1034 = dma.done.wait (%p1596_p7), [#allocation6], 16   ;;  %p1597_p10 = pmov %p1596_p7 }
  0x94   : > { %p1598_p2 = pmov %p1596_p7 }
  0x95   : > { %1036 = vsyncadd (%p1597_p10), [#allocation6], 4294967280 }
  0x96   : > { %1038 = dma.done.wait (%p1598_p2), [#allocation9], 16   ;;  %p1599_p0 = pmov %p1598_p2 }
  0x97   : > { %v709_v0 = vld [vmem:[%s1312_s20] sm:$0xff]   ;;  %v772_v4 = vld [vmem:[%s1312_s20 + $0x8] sm:$0xff]   ;;  %vm519_vm0 = vcmask 31744   ;;  %v773_v8 = vld [vmem:[%s1312_s20 + $0x10] sm:$0xff]   ;;  %s1373_s26 = scalar_lea.vmem [#allocation10], %s694_s29  ;;  %s707_s9 = sshll.u32 %s1118_s19, 12 }
  0x98   : > { %1040 = vsyncadd (%p1599_p0), [#allocation9], 4294967280  ;;  %v1337_v1 = vld [vmem:[#allocation7] ss:$0 sm:$0xff]  ;;  %v710_v2 = vunpack.c.l.bf16 %v709_v0  ;;  %v711_v3 = vunpack.c.h.bf16 %v709_v0  ;;  %v1340_v5 = vld [vmem:[#allocation8] ss:$0 sm:$0xff]  ;;  %v714_v6 = vunpack.c.l.bf16 %v772_v4  ;;  %v715_v7 = vunpack.c.h.bf16 %v772_v4  ;;  %s1513_s25 = scalar_lea.hbm %s1575_s4, %s707_s9 }
  0x99   : > { %v718_v11 = vunpack.c.l.bf16 %v773_v8  ;;  %v719_v12 = vunpack.c.h.bf16 %v773_v8  ;;  %v774_v13 = vld [vmem:[%s1312_s20 + $0x18] sm:$0xff]   ;;  %v423_v14 = vld [vmem:[%s1322_s14] sm:$0xff]  ;;  %v424_v15 = vld [vmem:[%s1322_s14 + $0x8] sm:$0xff]  ;;  %s566_s22 = sshll.u32 %s1373_s26, 4  ;;  %s553_s23 = scalar_lea.sflag [#allocation4], %s1308_s11  ;;  %s1515_s22 = int_to_ptr.vmem [resolvable:$true] %s566_s22 }
  0x9a   : > { %v352_v9 = vmul.f32 %v710_v2, %v1337_v1  ;;  %v353_v10 = vmul.f32 %v711_v3, %v1337_v1  ;;  %v354_v16 = vmul.f32 %v714_v6, %v1337_v1  ;;  %v355_v17 = vmul.f32 %v715_v7, %v1337_v1  ;;  %v425_v22 = vld [vmem:[%s1322_s14 + $0x10] sm:$0xff]  ;;  %v426_v23 = vld [vmem:[%s1322_s14 + $0x18] sm:$0xff]  ;;  %v427_v28 = vld [vmem:[%s1322_s14 + $0x20] sm:$0xff]  ;;  %s981_s30 = scalar_lea.vmem %s1515_s22, 4096  ;;  %p1600_p11 = scmp.ne.s32.totalorder %s1585_s27, 0 }
  0x9b   : > { %v722_v18 = vunpack.c.l.bf16 %v774_v13  ;;  %v723_v19 = vunpack.c.h.bf16 %v774_v13  ;;  %v356_v24 = vmul.f32 %v718_v11, %v1337_v1  ;;  %v357_v25 = vmul.f32 %v719_v12, %v1337_v1  ;;  %v428_v29 = vld [vmem:[%s1322_s14 + $0x28] sm:$0xff]  ;;  %v429_v36 = vld [vmem:[%s1322_s14 + $0x30] sm:$0xff]  ;;  %v430_v37 = vld [vmem:[%s1322_s14 + $0x38] sm:$0xff]  ;;  %p982_p9 = scmp.ne.s32.totalorder %s1515_s22, %s981_s30  ;;  %s1069_s8 = smov [#allocation10]  }
  0x9c   : > { %v391_v20 = vadd.f32 %v1340_v5, %v352_v9  ;;  %v392_v21 = vadd.f32 %v1340_v5, %v353_v10  ;;  %v393_v26 = vadd.f32 %v1340_v5, %v354_v16  ;;  %v394_v27 = vadd.f32 %v1340_v5, %v355_v17  ;;  %v775_v42 = vld [vmem:[%s1312_s20 + $0x20] sm:$0xff]   ;;  %v776_v47 = vld [vmem:[%s1312_s20 + $0x28] sm:$0xff]   ;;  %v777_v52 = vld [vmem:[%s1312_s20 + $0x30] sm:$0xff]   ;;  %s985_s12 = sshll.u32 %s1069_s8, 4  ;;  %s986_s12 = int_to_ptr.vmem [resolvable:$false] %s985_s12 }
  0x9d   : > { %v358_v30 = vmul.f32 %v722_v18, %v1337_v1  ;;  %v359_v31 = vmul.f32 %v723_v19, %v1337_v1  ;;  %v395_v34 = vadd.f32 %v1340_v5, %v356_v24  ;;  %v396_v35 = vadd.f32 %v1340_v5, %v357_v25  ;;  %v778_v57 = vld [vmem:[%s1312_s20 + $0x38] sm:$0xff]   ;;  %v431_v3 = vld [vmem:[%s1322_s14 + $0x40] sm:$0xff]  ;;  %v432_v4 = vld [vmem:[%s1322_s14 + $0x48] sm:$0xff]  ;;  %p983_p13 = pnand %p982_p9, %p1600_p11  ;;  %s987_s2 = scalar_lea.vmem %s986_s12, 8192 }
  0x9e   : > { %v455_v32 = vadd.f32 %v423_v14, %v391_v20  ;;  %v456_v33 = vadd.f32 %v424_v15, %v392_v21  ;;  %v457_v38 = vadd.f32 %v425_v22, %v393_v26  ;;  %v458_v39 = vadd.f32 %v426_v23, %v394_v27  ;;  %v433_v12 = vld [vmem:[%s1322_s14 + $0x50] sm:$0xff]  ;;  %v434_v13 = vld [vmem:[%s1322_s14 + $0x58] sm:$0xff]  ;;  %v435_v18 = vld [vmem:[%s1322_s14 + $0x60] sm:$0xff]  ;;  %p988_p12 = scmp.lt.s32.totalorder %s1515_s22, %s986_s12  ;;  %p989_p3 = scmp.lt.s32.totalorder %s987_s2, %s981_s30 }
  0x9f   : > { %v397_v40 = vadd.f32 %v1340_v5, %v358_v30  ;;  %v398_v41 = vadd.f32 %v1340_v5, %v359_v31  ;;  %v459_v45 = vadd.f32 %v427_v28, %v395_v34  ;;  %v460_v46 = vadd.f32 %v428_v29, %v396_v35  ;;  %v436_v19 = vld [vmem:[%s1322_s14 + $0x68] sm:$0xff]  ;;  %v437_v26 = vld [vmem:[%s1322_s14 + $0x70] sm:$0xff]  ;;  %v438_v27 = vld [vmem:[%s1322_s14 + $0x78] sm:$0xff]  ;;  %p984_p1 = pneg %p983_p13 }
  0xa0   : > { %v487_v43 = vmax.f32 %v455_v32, 0.0  ;;  %v488_v44 = vmax.f32 %v456_v33, 0.0  ;;  %v489_v48 = vmax.f32 %v457_v38, 0.0  ;;  %v490_v49 = vmax.f32 %v458_v39, 0.0  ;;  %v779_v32 = vld [vmem:[%s1312_s20 + $0x40] sm:$0xff]   ;;  %p990_p4 = por %p989_p3, %p988_p12 }
  0xa1   : > { %v461_v50 = vadd.f32 %v429_v36, %v397_v40  ;;  %v462_v51 = vadd.f32 %v430_v37, %v398_v41  ;;  %v491_v53 = vmax.f32 %v459_v45, 0.0  ;;  %v492_v54 = vmax.f32 %v460_v46, 0.0  ;;  %v780_v37 = vld [vmem:[%s1312_s20 + $0x48] sm:$0xff]  }
  0xa2   : > { %520 = vst.msk [vmem:[%s1373_s26] sm:$0xff] %vm519_vm0, %v487_v43  ;;  %521 = vst.msk [vmem:[%s1373_s26 + $0x8] sm:$0xff] %vm519_vm0, %v488_v44  ;;  %v726_v55 = vunpack.c.l.bf16 %v775_v42  ;;  %v727_v56 = vunpack.c.h.bf16 %v775_v42  ;;  %v730_v60 = vunpack.c.l.bf16 %v776_v47  ;;  %v731_v61 = vunpack.c.h.bf16 %v776_v47  ;;  %v781_v42 = vld [vmem:[%s1312_s20 + $0x50] sm:$0xff]   ;;  %v782_v47 = vld [vmem:[%s1312_s20 + $0x58] sm:$0xff]   ;;  %p991_p5 = pnand %p990_p4, %p984_p1 }
  0xa3   : > { %522 = vst.msk [vmem:[%s1373_s26 + $0x10] sm:$0xff] %vm519_vm0, %v489_v48  ;;  %523 = vst.msk [vmem:[%s1373_s26 + $0x18] sm:$0xff] %vm519_vm0, %v490_v49  ;;  %v493_v58 = vmax.f32 %v461_v50, 0.0  ;;  %v494_v59 = vmax.f32 %v462_v51, 0.0  ;;  %v734_v0 = vunpack.c.l.bf16 %v777_v52  ;;  %v735_v2 = vunpack.c.h.bf16 %v777_v52 }
  0xa4   : > { %524 = vst.msk [vmem:[%s1373_s26 + $0x20] sm:$0xff] %vm519_vm0, %v491_v53  ;;  %525 = vst.msk [vmem:[%s1373_s26 + $0x28] sm:$0xff] %vm519_vm0, %v492_v54  ;;  %v360_v62 = vmul.f32 %v726_v55, %v1337_v1  ;;  %v361_v63 = vmul.f32 %v727_v56, %v1337_v1  ;;  %v362_v6 = vmul.f32 %v730_v60, %v1337_v1  ;;  %v738_v8 = vunpack.c.l.bf16 %v778_v57  ;;  %v439_v56 = vld [vmem:[%s1322_s14 + $0x80] sm:$0xff] }
  0xa5   : > { %526 = vst.msk [vmem:[%s1373_s26 + $0x30] sm:$0xff] %vm519_vm0, %v493_v58  ;;  %527 = vst.msk [vmem:[%s1373_s26 + $0x38] sm:$0xff] %vm519_vm0, %v494_v59  ;;  %v363_v7 = vmul.f32 %v731_v61, %v1337_v1  ;;  %v739_v9 = vunpack.c.h.bf16 %v778_v57  ;;  %v364_v14 = vmul.f32 %v734_v0, %v1337_v1  ;;  %v365_v15 = vmul.f32 %v735_v2, %v1337_v1  ;;  %v440_v57 = vld [vmem:[%s1322_s14 + $0x88] sm:$0xff]  ;;  %v441_v0 = vld [vmem:[%s1322_s14 + $0x90] sm:$0xff] }
  0xa6   : > { %v399_v10 = vadd.f32 %v1340_v5, %v360_v62  ;;  %v400_v11 = vadd.f32 %v1340_v5, %v361_v63  ;;  %v401_v16 = vadd.f32 %v1340_v5, %v362_v6  ;;  %v366_v20 = vmul.f32 %v738_v8, %v1337_v1  ;;  %v442_v2 = vld [vmem:[%s1322_s14 + $0x98] sm:$0xff]  ;;  %v443_v8 = vld [vmem:[%s1322_s14 + $0xa0] sm:$0xff] }
  0xa7   : > { %v402_v17 = vadd.f32 %v1340_v5, %v363_v7  ;;  %v367_v21 = vmul.f32 %v739_v9, %v1337_v1  ;;  %v403_v24 = vadd.f32 %v1340_v5, %v364_v14  ;;  %v404_v25 = vadd.f32 %v1340_v5, %v365_v15  ;;  %v444_v9 = vld [vmem:[%s1322_s14 + $0xa8] sm:$0xff] }
  0xa8   : > { %v463_v22 = vadd.f32 %v431_v3, %v399_v10  ;;  %v464_v23 = vadd.f32 %v432_v4, %v400_v11  ;;  %v465_v28 = vadd.f32 %v433_v12, %v401_v16  ;;  %v405_v30 = vadd.f32 %v1340_v5, %v366_v20  ;;  %v445_v16 = vld [vmem:[%s1322_s14 + $0xb0] sm:$0xff] }
  0xa9   : > { %v466_v29 = vadd.f32 %v434_v13, %v402_v17  ;;  %v406_v31 = vadd.f32 %v1340_v5, %v367_v21  ;;  %v467_v35 = vadd.f32 %v435_v18, %v403_v24  ;;  %v468_v36 = vadd.f32 %v436_v19, %v404_v25  ;;  %v446_v17 = vld [vmem:[%s1322_s14 + $0xb8] sm:$0xff] }
  0xaa   : > { %v495_v33 = vmax.f32 %v463_v22, 0.0  ;;  %v496_v34 = vmax.f32 %v464_v23, 0.0  ;;  %v497_v38 = vmax.f32 %v465_v28, 0.0  ;;  %v469_v40 = vadd.f32 %v437_v26, %v405_v30  ;;  %v783_v22 = vld [vmem:[%s1312_s20 + $0x60] sm:$0xff]  }
  0xab   : > { %v498_v39 = vmax.f32 %v466_v29, 0.0  ;;  %v470_v41 = vadd.f32 %v438_v27, %v406_v31  ;;  %v499_v43 = vmax.f32 %v467_v35, 0.0  ;;  %v500_v44 = vmax.f32 %v468_v36, 0.0  ;;  %v784_v27 = vld [vmem:[%s1312_s20 + $0x68] sm:$0xff]  }
  0xac   : > { %528 = vst.msk [vmem:[%s1373_s26 + $0x40] sm:$0xff] %vm519_vm0, %v495_v33  ;;  %529 = vst.msk [vmem:[%s1373_s26 + $0x48] sm:$0xff] %vm519_vm0, %v496_v34  ;;  %v742_v45 = vunpack.c.l.bf16 %v779_v32  ;;  %v743_v46 = vunpack.c.h.bf16 %v779_v32  ;;  %v501_v48 = vmax.f32 %v469_v40, 0.0  ;;  %v746_v50 = vunpack.c.l.bf16 %v780_v37  ;;  %v785_v32 = vld [vmem:[%s1312_s20 + $0x70] sm:$0xff]  }
  0xad   : > { %530 = vst.msk [vmem:[%s1373_s26 + $0x50] sm:$0xff] %vm519_vm0, %v497_v38  ;;  %531 = vst.msk [vmem:[%s1373_s26 + $0x58] sm:$0xff] %vm519_vm0, %v498_v39  ;;  %v502_v49 = vmax.f32 %v470_v41, 0.0  ;;  %v747_v51 = vunpack.c.h.bf16 %v780_v37  ;;  %v750_v54 = vunpack.c.l.bf16 %v781_v42  ;;  %v751_v55 = vunpack.c.h.bf16 %v781_v42  ;;  %v786_v37 = vld [vmem:[%s1312_s20 + $0x78] sm:$0xff]  }
  0xae   : > { %532 = vst.msk [vmem:[%s1373_s26 + $0x60] sm:$0xff] %vm519_vm0, %v499_v43  ;;  %533 = vst.msk [vmem:[%s1373_s26 + $0x68] sm:$0xff] %vm519_vm0, %v500_v44  ;;  %v368_v52 = vmul.f32 %v742_v45, %v1337_v1  ;;  %v369_v53 = vmul.f32 %v743_v46, %v1337_v1  ;;  %v370_v58 = vmul.f32 %v746_v50, %v1337_v1  ;;  %v754_v60 = vunpack.c.l.bf16 %v782_v47  ;;  %v447_v46 = vld [vmem:[%s1322_s14 + $0xc0] sm:$0xff] }
  0xaf   : > { %534 = vst.msk [vmem:[%s1373_s26 + $0x70] sm:$0xff] %vm519_vm0, %v501_v48  ;;  %535 = vst.msk [vmem:[%s1373_s26 + $0x78] sm:$0xff] %vm519_vm0, %v502_v49  ;;  %v371_v59 = vmul.f32 %v747_v51, %v1337_v1  ;;  %v755_v61 = vunpack.c.h.bf16 %v782_v47  ;;  %v372_v3 = vmul.f32 %v750_v54, %v1337_v1  ;;  %v373_v4 = vmul.f32 %v751_v55, %v1337_v1  ;;  %v448_v47 = vld [vmem:[%s1322_s14 + $0xc8] sm:$0xff]  ;;  %v449_v54 = vld [vmem:[%s1322_s14 + $0xd0] sm:$0xff] }
  0xb0   : > { %v407_v62 = vadd.f32 %v1340_v5, %v368_v52  ;;  %v408_v63 = vadd.f32 %v1340_v5, %v369_v53  ;;  %v409_v6 = vadd.f32 %v1340_v5, %v370_v58  ;;  %v374_v10 = vmul.f32 %v754_v60, %v1337_v1  ;;  %v450_v55 = vld [vmem:[%s1322_s14 + $0xd8] sm:$0xff]  ;;  %v451_v60 = vld [vmem:[%s1322_s14 + $0xe0] sm:$0xff] }
  0xb1   : > { %v410_v7 = vadd.f32 %v1340_v5, %v371_v59  ;;  %v375_v11 = vmul.f32 %v755_v61, %v1337_v1  ;;  %v411_v14 = vadd.f32 %v1340_v5, %v372_v3  ;;  %v412_v15 = vadd.f32 %v1340_v5, %v373_v4  ;;  %v452_v61 = vld [vmem:[%s1322_s14 + $0xe8] sm:$0xff] }
  0xb2   : > { %v471_v12 = vadd.f32 %v439_v56, %v407_v62  ;;  %v472_v13 = vadd.f32 %v440_v57, %v408_v63  ;;  %v473_v18 = vadd.f32 %v441_v0, %v409_v6  ;;  %v413_v20 = vadd.f32 %v1340_v5, %v374_v10  ;;  %v453_v6 = vld [vmem:[%s1322_s14 + $0xf0] sm:$0xff] }
  0xb3   : > { %v474_v19 = vadd.f32 %v442_v2, %v410_v7  ;;  %v414_v21 = vadd.f32 %v1340_v5, %v375_v11  ;;  %v475_v25 = vadd.f32 %v443_v8, %v411_v14  ;;  %v476_v26 = vadd.f32 %v444_v9, %v412_v15  ;;  %v454_v7 = vld [vmem:[%s1322_s14 + $0xf8] sm:$0xff] }
  0xb4   : > { %v503_v23 = vmax.f32 %v471_v12, 0.0  ;;  %v504_v24 = vmax.f32 %v472_v13, 0.0  ;;  %v505_v28 = vmax.f32 %v473_v18, 0.0  ;;  %v477_v30 = vadd.f32 %v445_v16, %v413_v20 }
  0xb5   : > { %v506_v29 = vmax.f32 %v474_v19, 0.0  ;;  %v478_v31 = vadd.f32 %v446_v17, %v414_v21  ;;  %v507_v33 = vmax.f32 %v475_v25, 0.0  ;;  %v508_v34 = vmax.f32 %v476_v26, 0.0 }
  0xb6   : > { %536 = vst.msk [vmem:[%s1373_s26 + $0x80] sm:$0xff] %vm519_vm0, %v503_v23  ;;  %537 = vst.msk [vmem:[%s1373_s26 + $0x88] sm:$0xff] %vm519_vm0, %v504_v24  ;;  %v758_v35 = vunpack.c.l.bf16 %v783_v22  ;;  %v759_v36 = vunpack.c.h.bf16 %v783_v22  ;;  %v509_v38 = vmax.f32 %v477_v30, 0.0  ;;  %v762_v40 = vunpack.c.l.bf16 %v784_v27 }
  0xb7   : > { %538 = vst.msk [vmem:[%s1373_s26 + $0x90] sm:$0xff] %vm519_vm0, %v505_v28  ;;  %539 = vst.msk [vmem:[%s1373_s26 + $0x98] sm:$0xff] %vm519_vm0, %v506_v29  ;;  %v510_v39 = vmax.f32 %v478_v31, 0.0  ;;  %v763_v41 = vunpack.c.h.bf16 %v784_v27  ;;  %v766_v44 = vunpack.c.l.bf16 %v785_v32  ;;  %v767_v45 = vunpack.c.h.bf16 %v785_v32 }
  0xb8   : > { %540 = vst.msk [vmem:[%s1373_s26 + $0xa0] sm:$0xff] %vm519_vm0, %v507_v33  ;;  %541 = vst.msk [vmem:[%s1373_s26 + $0xa8] sm:$0xff] %vm519_vm0, %v508_v34  ;;  %v376_v42 = vmul.f32 %v758_v35, %v1337_v1  ;;  %v377_v43 = vmul.f32 %v759_v36, %v1337_v1  ;;  %v378_v48 = vmul.f32 %v762_v40, %v1337_v1  ;;  %v770_v50 = vunpack.c.l.bf16 %v786_v37 }
  0xb9   : > { %542 = vst.msk [vmem:[%s1373_s26 + $0xb0] sm:$0xff] %vm519_vm0, %v509_v38  ;;  %543 = vst.msk [vmem:[%s1373_s26 + $0xb8] sm:$0xff] %vm519_vm0, %v510_v39  ;;  %v379_v49 = vmul.f32 %v763_v41, %v1337_v1  ;;  %v771_v51 = vunpack.c.h.bf16 %v786_v37  ;;  %v380_v56 = vmul.f32 %v766_v44, %v1337_v1  ;;  %v381_v57 = vmul.f32 %v767_v45, %v1337_v1 }
  0xba   : > { %v415_v52 = vadd.f32 %v1340_v5, %v376_v42  ;;  %v416_v53 = vadd.f32 %v1340_v5, %v377_v43  ;;  %v417_v58 = vadd.f32 %v1340_v5, %v378_v48  ;;  %v382_v62 = vmul.f32 %v770_v50, %v1337_v1 }
  0xbb   : > { %v418_v59 = vadd.f32 %v1340_v5, %v379_v49  ;;  %v383_v63 = vmul.f32 %v771_v51, %v1337_v1  ;;  %v419_v3 = vadd.f32 %v1340_v5, %v380_v56  ;;  %v420_v4 = vadd.f32 %v1340_v5, %v381_v57 }
  0xbc   : > { %v479_v0 = vadd.f32 %v447_v46, %v415_v52  ;;  %v480_v2 = vadd.f32 %v448_v47, %v416_v53  ;;  %v481_v8 = vadd.f32 %v449_v54, %v417_v58  ;;  %v421_v10 = vadd.f32 %v1340_v5, %v382_v62 }
  0xbd   : > { %v482_v9 = vadd.f32 %v450_v55, %v418_v59  ;;  %v422_v11 = vadd.f32 %v1340_v5, %v383_v63  ;;  %v483_v13 = vadd.f32 %v451_v60, %v419_v3  ;;  %v484_v14 = vadd.f32 %v452_v61, %v420_v4 }
  0xbe   : > { %v511_v1 = vmax.f32 %v479_v0, 0.0  ;;  %v512_v12 = vmax.f32 %v480_v2, 0.0  ;;  %v513_v15 = vmax.f32 %v481_v8, 0.0  ;;  %v485_v17 = vadd.f32 %v453_v6, %v421_v10 }
  0xbf   : > { %v514_v16 = vmax.f32 %v482_v9, 0.0  ;;  %v486_v18 = vadd.f32 %v454_v7, %v422_v11  ;;  %v515_v5 = vmax.f32 %v483_v13, 0.0  ;;  %v516_v19 = vmax.f32 %v484_v14, 0.0 }
  0xc0   : > { %544 = vst.msk [vmem:[%s1373_s26 + $0xc0] sm:$0xff] %vm519_vm0, %v511_v1  ;;  %545 = vst.msk [vmem:[%s1373_s26 + $0xc8] sm:$0xff] %vm519_vm0, %v512_v12  ;;  %v517_v20 = vmax.f32 %v485_v17, 0.0 }
  0xc1   : > { %546 = vst.msk [vmem:[%s1373_s26 + $0xd0] sm:$0xff] %vm519_vm0, %v513_v15  ;;  %547 = vst.msk [vmem:[%s1373_s26 + $0xd8] sm:$0xff] %vm519_vm0, %v514_v16  ;;  %v518_v21 = vmax.f32 %v486_v18, 0.0 }
  0xc2   : > { %548 = vst.msk [vmem:[%s1373_s26 + $0xe0] sm:$0xff] %vm519_vm0, %v515_v5  ;;  %549 = vst.msk [vmem:[%s1373_s26 + $0xe8] sm:$0xff] %vm519_vm0, %v516_v19 }
  0xc3   : > { %550 = vst.msk [vmem:[%s1373_s26 + $0xf0] sm:$0xff] %vm519_vm0, %v517_v20  ;;  %551 = vst.msk [vmem:[%s1373_s26 + $0xf8] sm:$0xff] %vm519_vm0, %v518_v21 }
  0xc4   : > { %994 = shalt.err (!%p991_p5)
}
  0xc5   : > { %s995_s13 = scalar_lea.hbm %s1513_s25, 4096  ;;  %s999_s20 = scalar_lea.hbm %s1575_s4, 8192 }
  0xc6   : > { %p996_p6 = scmp.ne.s32.totalorder %s1513_s25, %s995_s13  ;;  %p1000_p10 = scmp.lt.u32.totalorder %s1513_s25, %s1575_s4 }
  0xc7   : > { %p1001_p2 = scmp.lt.u32.totalorder %s999_s20, %s995_s13  ;;  %p1003_p9 = scmp.lt.u32.totalorder %s995_s13, %s1513_s25 }
  0xc8   : > { %p997_p8 = pnand %p996_p6, %p1600_p11 }
  0xc9   : > { %p1002_p0 = por %p1001_p2, %p1000_p10 }
  0xca   : > { %p998_p7 = pneg %p997_p8 }
  0xcb   : > { %p1004_p13 = por %p1003_p9, %p1002_p0 }
  0xcd   : > { %p1005_p1 = pnand %p1004_p13, %p998_p7 }
  0xcf   : > { %1008 = shalt.err (!%p1005_p1)
}
  0xd0   : > { %s1070_s7 = smov 128   ;;  %s1071_s14 = smov 8  }
  0xd1   : > { %799 = dma.vmem_to_hbm [thread:$0]  (%p1600_p11), %s1515_s22, 4096, %s1513_s25, %s553_s23, %s1070_s7, %s1070_s7, %s1071_s14  }
  0xd2 PF: > { %s581_s26 = sand.u32 1, %s1047_s15   ;;  %p1601_p12 = scmp.ne.s32.totalorder %s1586_s28, 0 }
  0xd3   : > { %p1602_p3 = scmp.ge.s32.totalorder %s1059_s18, 2  ;;  %s582_s9 = scalar_lea.sflag [#allocation4], %s581_s26 }
  0xd5   : > { %p816_p4 = pnand %p1602_p3, %p1601_p12 }
  0xd7   : > { %1042 = dma.done.wait (!%p816_p4), %s582_s9, 4096  }
  0xd8   : > { %1044 = vsyncadd (!%p816_p4), %s582_s9, 4294963200  ;;  %p21_p5 = scmp.ge.s32.totalorder %s1122_s21, 4   ;;  %s1603_s15 = smov %s1051_s16 }
  0xd9   : > { %s1604_s16 = smov %s1055_s17  ;;  %s1605_s17 = smov %s1134_s24 }
  0xda   : > { %s1606_s18 = smov %s1122_s21  ;;  %23 = sbr.rel (!%p21_p5) target bundleno = 11 (0xb), region = 102 }
  0xe1   :  { %587 = vsyncpa [#allocation3], 1 }
  0xe2   :  { %589 = vsyncpa [#allocation3 + $0x1], 1 }
  0xe3   :  { %590 = vsyncpa [#allocation6], 1 }
  0xe4   :  { %592 = vsyncpa [#allocation6 + $0x1], 1 }
  0xe5   :  { %593 = vsyncpa [#allocation9], 1 }
  0xe6   :  { %594 = vsyncpa [#allocation4], 1 }
  0xe7   :  { %596 = vsyncpa [#allocation4 + $0x1], 1 }

// kernel: basic_block.3
= control target key start
LH: loop header
LB: loop body
LE: loop exit
PB: predicated region body
PF: predicated region fallthrough
CT: control target
= control target key end

     0   :  { %10 = vsyncpa [#allocation4], 0  ;;  %s6267_s0 = inlined_call_operand.hbm [shape: bf16[2,16,16,4], index: 0, kind: input, shape index: {}]   ;;  %s6268_s1 = inlined_call_operand.hbm [shape: bf16[3,12,4], index: 1, kind: input, shape index: {}]   ;;  %s6269_s2 = inlined_call_operand.hbm [shape: bf16[2,256,4], index: 2, kind: output, shape index: {0}]   ;;  %s6270_s3 = inlined_call_operand.hbm [shape: f32[2,1,4], index: 3, kind: output, shape index: {1}]   ;;  %s6271_s4 = inlined_call_operand.hbm [shape: f32[2,1,4], index: 4, kind: output, shape index: {2}]  }
   0x1   :  { %12 = vsyncpa [#allocation4 + $0x1], 0 }
   0x2   :  { %13 = vsyncpa [#allocation7], 0 }
   0x3   :  { %14 = vsyncpa [#allocation5], 0 }
   0x4   :  { %16 = vsyncpa [#allocation5 + $0x1], 0 }
   0x5   :  { %17 = vsyncpa [#allocation10], 0 }
   0x6   :  { %19 = vsyncpa [#allocation10 + $0x1], 0  ;;  %s4708_s15 = smov 0   ;;  %s4710_s16 = smov 0  }
   0x7   :  { %s4712_s17 = smov 0   ;;  %s4714_s18 = smov 0  }
   0x8 LB: > { %s4729_s19 = sadd.s32 4294967295, %s4670_s18   ;;  %s3767_s20 = sadd.s32 4294967294, %s4670_s18   ;;  %s4670_s18 = sphi %s4714_s18, %s6323_s18   ;;  %s4666_s17 = sphi %s4712_s17, %s6322_s17   ;;  %s4662_s16 = sphi %s4710_s16, %s6321_s16   ;;  %s4658_s15 = sphi %s4708_s15, %s6320_s15  }
   0x9   : > { %p45_p0 = scmp.ne.s32.totalorder %s4662_s16, %s4658_s15  ;;  %p6272_p1 = scmp.eq.s32.totalorder %s4729_s19, 0 }
   0xa   : > { %p96_p3 = scmp.eq.s32.totalorder %s3767_s20, 1  ;;  %p3768_p5 = scmp.ge.s32.totalorder %s4670_s18, 1 }
   0xb   : > { %p4740_p4 = por %p6272_p1, %p45_p0  ;;  %p155_p7 = scmp.lt.s32.totalorder %s4670_s18, 3 }
   0xc   : > { %p4745_p6 = por %p96_p3, %p45_p0  ;;  %s4672_s24 = smov [#allocation6]  }
   0xd   : > { %s6283_s21 = scalar_select %p4740_p4, 1, 0 }
   0xe   : > { %s6284_s22 = scalar_select %p4745_p6, 1, 0 }
   0xf   : > { %p4750_p8 = pnand %p3768_p5, %p155_p7  ;;  %s167_s25 = sshll.u32 %s4672_s24, 4  ;;  %s4754_s25 = int_to_ptr.vmem [resolvable:$true] %s167_s25 }
  0x10   : > { %s4766_s27 = sadd.s32 1, %s4670_s18   ;;  %s32_s28 = sadd.s32 1, %s4666_s17 }
  0x11   : > { %s6285_s23 = scalar_select %p4750_p8, 1, 0 }
  0x12   : > { %p4281_p9 = pneg %p4750_p8  ;;  %s29_s29 = ssub.s32 %s4670_s18, %s4766_s27 }
  0x13   : > { %s4482_s6 = scalar_lea.hbm %s6268_s1, 384 }
  0x14   : > { %p4761_p11 = pnand %p4281_p9, %p6272_p1  ;;  %p4483_p12 = scmp.ne.s32.totalorder %s6268_s1, %s4482_s6 }
  0x15   : > { %p4489_p5 = scmp.lt.u32.totalorder %s4482_s6, %s6268_s1 }
  0x16   : > { %p4484_p13 = pneg %p4761_p11 }
  0x18   : > { %p4485_p0 = pnand %p4484_p13, %p4483_p12 }
  0x1a   : > { %p4486_p3 = pneg %p4485_p0 }
  0x1c   : > { %p4491_p7 = pnand %p4489_p5, %p4486_p3 }
  0x1e   : > { %4494 = shalt.err (!%p4491_p7)
}
  0x1f   : > { %s4495_s11 = scalar_lea.vmem %s4754_s25, 384  ;;  %p4503_p2 = scmp.lt.s32.totalorder %s4754_s25, %s4754_s25 }
  0x20   : > { %p4496_p9 = scmp.ne.s32.totalorder %s4754_s25, %s4495_s11  ;;  %p4504_p6 = scmp.lt.s32.totalorder %s4495_s11, %s4495_s11 }
  0x22   : > { %p4498_p10 = pnand %p4496_p9, %p4484_p13  ;;  %p4505_p4 = por %p4504_p6, %p4503_p2 }
  0x24   : > { %p4499_p1 = pneg %p4498_p10 }
  0x26   : > { %p4506_p8 = pnand %p4505_p4, %p4499_p1 }
  0x28   : > { %4509 = shalt.err (!%p4506_p8)
}
  0x29   : > { %s4673_s12 = smov 64   ;;  %s4674_s13 = smov 4  }
  0x2a   : > { %4284 = dma.hbm_to_vmem [thread:$0]  (!%p4761_p11), %s6268_s1, 384, %s4754_s25, [#allocation7], %s4673_s12, %s4673_s12, %s4674_s13  }
  0x2b   : > { %p30_p1 = scmp.eq.s32.totalorder %s29_s29, 0  ;;  %p39_p2 = scmp.ne.s32.totalorder %s4666_s17, %s4662_s16 }
  0x2c   : > { %p40_p4 = scmp.eq.s32.totalorder %s4670_s18, 0  ;;  %p4300_p6 = scmp.lt.s32.totalorder %s4670_s18, 2 }
  0x2d   : > { %s4800_s30 = scalar_select %p30_p1, %s4666_s17, %s32_s28  }
  0x2e   : > { %p41_p8 = por %p40_p4, %p39_p2  ;;  %p6287_p10 = scmp.eq.s32.totalorder %s4729_s19, 1 }
  0x2f   : > { %s181_s26 = sand.u32 1, %s4666_s17   ;;  %s4012_s6 = sshll.u32 %s4670_s18, 11 }
  0x30   : > { %p4804_p12 = por %p6287_p10, %p39_p2  ;;  %s3771_s7 = sshll.u32 %s181_s26, 7 }
  0x31   : > { %s4813_s10 = scalar_lea.hbm %s6267_s0, %s4012_s6  ;;  %s185_s25 = scalar_lea.vmem [#allocation3], %s3771_s7 }
  0x32   : > { %s192_s28 = sshll.u32 %s185_s25, 4  ;;  %p4815_p11 = pnand %p4300_p6, %p41_p8  ;;  %s4819_s28 = int_to_ptr.vmem [resolvable:$true] %s192_s28 }
  0x33   : > { %s4821_s11 = scalar_lea.sflag [#allocation4], %s181_s26  ;;  %s4510_s14 = scalar_lea.hbm %s4813_s10, 2048 }
  0x34   : > { %p4511_p13 = scmp.ne.s32.totalorder %s4813_s10, %s4510_s14  ;;  %p4512_p0 = pneg %p4815_p11 }
  0x35   : > { %s4515_s7 = scalar_lea.hbm %s6267_s0, 4096  ;;  %p4516_p7 = scmp.lt.u32.totalorder %s4813_s10, %s6267_s0 }
  0x36   : > { %p4513_p3 = pnand %p4512_p0, %p4511_p13  ;;  %p4517_p9 = scmp.lt.u32.totalorder %s4515_s7, %s4510_s14 }
  0x37   : > { %p4519_p2 = scmp.lt.u32.totalorder %s4510_s14, %s4813_s10 }
  0x38   : > { %p4514_p5 = pneg %p4513_p3  ;;  %p4518_p1 = por %p4517_p9, %p4516_p7 }
  0x3a   : > { %p4520_p4 = por %p4519_p2, %p4518_p1 }
  0x3c   : > { %p4521_p6 = pnand %p4520_p4, %p4514_p5 }
  0x3e   : > { %4524 = shalt.err (!%p4521_p6)
}
  0x3f   : > { %s4525_s26 = scalar_lea.vmem %s4819_s28, 2048  ;;  %s4675_s25 = smov [#allocation3]  }
  0x40   : > { %p4526_p8 = scmp.ne.s32.totalorder %s4819_s28, %s4525_s26  ;;  %s4530_s24 = sshll.u32 %s4675_s25, 4  ;;  %s4531_s24 = int_to_ptr.vmem [resolvable:$false] %s4530_s24 }
  0x41   : > { %s4532_s6 = scalar_lea.vmem %s4531_s24, 4096  ;;  %p4533_p3 = scmp.lt.s32.totalorder %s4819_s28, %s4531_s24 }
  0x42   : > { %p4528_p10 = pnand %p4526_p8, %p4512_p0  ;;  %p4534_p7 = scmp.lt.s32.totalorder %s4532_s6, %s4525_s26 }
  0x44   : > { %p4529_p13 = pneg %p4528_p10  ;;  %p4535_p9 = por %p4534_p7, %p4533_p3 }
  0x46   : > { %p4536_p1 = pnand %p4535_p9, %p4529_p13 }
  0x48   : > { %4539 = shalt.err (!%p4536_p1)
}
  0x49   : > { %4288 = dma.hbm_to_vmem [thread:$0]  (!%p4815_p11), %s4813_s10, 2048, %s4819_s28, %s4821_s11, %s4673_s12, %s4673_s12, %s4674_s13  }
  0x4a   : > { %p6290_p0 = scmp.ne.s32.totalorder %s6285_s23, 0 }
  0x4c   : > { %204 = sbr.rel (%p6290_p0) target bundleno = 751 (0x2ef), region = 28 }
  0x53   : > { %s4855_s14 = sand.u32 1, %s4662_s16   ;;  %p6291_p5 = scmp.ne.s32.totalorder %s6283_s21, 0 }
  0x54   : > { %s3775_s7 = sshll.u32 %s4855_s14, 7  ;;  %s207_s8 = scalar_lea.sflag [#allocation4], %s4855_s14 }
  0x55   : > { %s4861_s29 = scalar_lea.vmem [#allocation3], %s3775_s7 }
  0x56   : > { %4641 = dma.done.wait (%p6291_p5), %s207_s8, 2048  }
  0x57   : > { %4643 = vsyncadd (%p6291_p5), %s207_s8, 4294965248  ;;  %p6292_p11 = scmp.eq.s32.totalorder %s4729_s19, 0 }
  0x59   : > { %4645 = dma.done.wait (%p6292_p11), [#allocation7], 384   ;;  %p6293_p2 = pmov %p6292_p11 }
  0x5a   : > { %vm248_vm0 = vcmask 27648   ;;  %vm251_vm1 = vcmask 24576   ;;  %v4676_v0 = vmov 0   ;;  %vm1242_vm2 = vcmask 1046528   ;;  %v304_v1 = vld [vmem:[%s4861_s29] sm:$0xf] }
  0x5b   : > { %4647 = vsyncadd (%p6293_p2), [#allocation7], 4294966912  ;;  %249 = vst.msk [vmem:[#allocation2] sm:$0xf] %vm248_vm0, %v4676_v0  ;;  %vm969_vm3 = vsmask.f32 7424 }
  0x5c   : > { %250 = vst.msk [vmem:[#allocation2 + $0x4] sm:$0xf] %vm248_vm0, %v4676_v0  ;;  %253 = vst.msk [vmem:[#allocation2 + $0xc] sm:$0xf] %vm248_vm0, %v4676_v0  ;;  %vm336_vm4 = vsmask.f32 256 }
  0x5d   : > { %252 = vst.msk [vmem:[#allocation2 + $0x8] sm:$0x1] %vm251_vm1, %v4676_v0  ;;  %255 = vst.msk [vmem:[#allocation2 + $0x14] sm:$0x1] %vm251_vm1, %v4676_v0  ;;  %vm337_vm5 = vsmask.f32 4368 }
  0x5e   : > { %254 = vst.msk [vmem:[#allocation2 + $0x10] sm:$0xf] %vm248_vm0, %v4676_v0  ;;  %256 = vst.msk [vmem:[#allocation2 + $0x18] sm:$0xf] %vm248_vm0, %v4676_v0  ;;  %vm661_vm6 = vsmask.f32 7938 }
  0x5f   : > { %257 = vst.msk [vmem:[#allocation2 + $0x1c] sm:$0xf] %vm248_vm0, %v4676_v0  ;;  %259 = vst.msk [vmem:[#allocation2 + $0x24] sm:$0xf] %vm248_vm0, %v4676_v0  ;;  %v305_v2 = vld [vmem:[%s4861_s29 + $0x4] sm:$0xf] }
  0x60   : > { %258 = vst.msk [vmem:[#allocation2 + $0x20] sm:$0x1] %vm251_vm1, %v4676_v0  ;;  %261 = vst.msk [vmem:[#allocation2 + $0x2c] sm:$0x1] %vm251_vm1, %v4676_v0  ;;  %v306_v3 = vld [vmem:[%s4861_s29 + $0x8] sm:$0xf] }
  0x61   : > { %260 = vst.msk [vmem:[#allocation2 + $0x28] sm:$0xf] %vm248_vm0, %v4676_v0  ;;  %262 = vst.msk [vmem:[#allocation2 + $0x30] sm:$0xf] %vm248_vm0, %v4676_v0  ;;  %v340_v9 = vshrl.u32 %v304_v1, 16  ;;  %v343_v11 = vshll.u32 %v304_v1, 16 }
  0x62   : > { %263 = vst.msk [vmem:[#allocation2 + $0x34] sm:$0xf] %vm248_vm0, %v4676_v0  ;;  %265 = vst.msk [vmem:[#allocation2 + $0x3c] sm:$0xf] %vm248_vm0, %v4676_v0  ;;  %v777_v4 = vld [vmem:[#allocation2] sm:$0xf] }
  0x63   : > { %264 = vst.msk [vmem:[#allocation2 + $0x38] sm:$0x1] %vm251_vm1, %v4676_v0  ;;  %267 = vst.msk [vmem:[#allocation2 + $0x44] sm:$0x1] %vm251_vm1, %v4676_v0  ;;  %v778_v5 = vld [vmem:[#allocation2 + $0x4] sm:$0xf] }
  0x64   : > { %266 = vst.msk [vmem:[#allocation2 + $0x40] sm:$0xf] %vm248_vm0, %v4676_v0  ;;  %268 = vst.msk [vmem:[#allocation2 + $0x48] sm:$0xf] %vm248_vm0, %v4676_v0  ;;  %v4928_v6 = vcombine.low %v777_v4, %v778_v5  ;;  %v825_v8 = vld [vmem:[#allocation2] sm:$0xe] }
  0x65   : > { %269 = vst.msk [vmem:[#allocation2 + $0x4c] sm:$0xf] %vm248_vm0, %v4676_v0  ;;  %271 = vst.msk [vmem:[#allocation2 + $0x54] sm:$0xf] %vm248_vm0, %v4676_v0  ;;  %v3810_v10 = vcombine.low %v825_v8, %v778_v5  ;;  %v348_v12 = vshrl.u32 %v305_v2, 16  ;;  %v351_v13 = vshll.u32 %v305_v2, 16 }
  0x66   : > { %270 = vst.msk [vmem:[#allocation2 + $0x50] sm:$0x1] %vm251_vm1, %v4676_v0  ;;  %273 = vst.msk [vmem:[#allocation2 + $0x5c] sm:$0x1] %vm251_vm1, %v4676_v0  ;;  %v971_v14 = vshrl.u32 %v4928_v6, 16  ;;  %v973_v15 = vshll.u32 %v4928_v6, 16 }
  0x67   : > { %272 = vst.msk [vmem:[#allocation2 + $0x58] sm:$0xf] %vm248_vm0, %v4676_v0  ;;  %274 = vst.msk [vmem:[#allocation2 + $0x60] sm:$0xf] %vm248_vm0, %v4676_v0  ;;  %v1243_v18 = vrot.slane %v3810_v10, 1  ;;  %v342_v20 = vrot.slane %v340_v9, 7 }
  0x68   : > { %275 = vst.msk [vmem:[#allocation2 + $0x64] sm:$0xf] %vm248_vm0, %v4676_v0  ;;  %277 = vst.msk [vmem:[#allocation2 + $0x6c] sm:$0xf] %vm248_vm0, %v4676_v0  ;;  %v350_v21 = vrot.slane %v348_v12, 7  ;;  %v357_v23 = vshrl.u32 %v306_v3, 16 }
  0x69   : > { %276 = vst.msk [vmem:[#allocation2 + $0x68] sm:$0x1] %vm251_vm1, %v4676_v0  ;;  %279 = vst.msk [vmem:[#allocation2 + $0x74] sm:$0x1] %vm251_vm1, %v4676_v0  ;;  %v307_v22 = vld [vmem:[%s4861_s29 + $0xc] sm:$0xf]  ;;  %v345_v31 = vor.u32 %v343_v11, %v342_v20 }
  0x6a   : > { %278 = vst.msk [vmem:[#allocation2 + $0x70] sm:$0xf] %vm248_vm0, %v4676_v0  ;;  %280 = vst.msk [vmem:[#allocation2 + $0x78] sm:$0xf] %vm248_vm0, %v4676_v0  ;;  %v975_v24 = vrot.slane %v973_v15, 1  ;;  %v360_v28 = vshll.u32 %v306_v3, 16  ;;  %v353_v33 = vor.u32 %v351_v13, %v350_v21 }
  0x6b   : > { %281 = vst.msk [vmem:[#allocation2 + $0x7c] sm:$0xf] %vm248_vm0, %v4676_v0  ;;  %283 = vst.msk [vmem:[#allocation2 + $0x84] sm:$0xf] %vm248_vm0, %v4676_v0  ;;  %v663_v27 = vld [vmem:[#allocation2 + $0xc] sm:$0xf] }
  0x6c   : > { %282 = vst.msk [vmem:[#allocation2 + $0x80] sm:$0x1] %vm251_vm1, %v4676_v0  ;;  %285 = vst.msk [vmem:[#allocation2 + $0x8c] sm:$0x1] %vm251_vm1, %v4676_v0  ;;  %v365_v29 = vshrl.u32 %v307_v22, 16  ;;  %v346_v32 = vrot.slane %v342_v20, 4  ;;  %v976_v37 = vor.u32 %v975_v24, %v971_v14 }
  0x6d   : > { %284 = vst.msk [vmem:[#allocation2 + $0x88] sm:$0xf] %vm248_vm0, %v4676_v0  ;;  %286 = vst.msk [vmem:[#allocation2 + $0x90] sm:$0xf] %vm248_vm0, %v4676_v0  ;;  %v669_v35 = vld [vmem:[#allocation2 + $0x14] sm:$0x1] }
  0x6e   : > { %287 = vst.msk [vmem:[#allocation2 + $0x94] sm:$0xf] %vm248_vm0, %v4676_v0  ;;  %289 = vst.msk [vmem:[#allocation2 + $0x9c] sm:$0xf] %vm248_vm0, %v4676_v0  ;;  %v308_v36 = vld [vmem:[%s4861_s29 + $0x10] sm:$0xf] }
  0x6f   : > { %288 = vst.msk [vmem:[#allocation2 + $0x98] sm:$0x1] %vm251_vm1, %v4676_v0  ;;  %291 = vst.msk [vmem:[#allocation2 + $0xa4] sm:$0x1] %vm251_vm1, %v4676_v0  ;;  %s4677_s21 = smov 8   ;;  %v355_v38 = vrot.slane %v350_v21, 4 }
  0x70   : > { %290 = vst.msk [vmem:[#allocation2 + $0xa0] sm:$0xf] %vm248_vm0, %v4676_v0  ;;  %292 = vst.msk [vmem:[#allocation2 + $0xa8] sm:$0xf] %vm248_vm0, %v4676_v0  ;;  %v359_v39 = vrot.slane %v357_v23, 7  ;;  %v367_v40 = vrot.slane %v365_v29, 7 }
  0x71   : > { %293 = vst.msk [vmem:[#allocation2 + $0xac] sm:$0xf] %vm248_vm0, %v4676_v0  ;;  %295 = vst.msk [vmem:[#allocation2 + $0xb4] sm:$0xf] %vm248_vm0, %v4676_v0  ;;  %v368_v43 = vshll.u32 %v307_v22, 16  ;;  %v374_v46 = vshrl.u32 %v308_v36, 16 }
  0x72   : > { %294 = vst.msk [vmem:[#allocation2 + $0xb0] sm:$0x1] %vm251_vm1, %v4676_v0  ;;  %297 = vst.msk [vmem:[#allocation2 + $0xbc] sm:$0x1] %vm251_vm1, %v4676_v0  ;;  %v672_v44 = vld [vmem:[#allocation2 + $0x18] sm:$0xf]  ;;  %v362_v49 = vor.u32 %v360_v28, %v359_v39 }
  0x73   : > { %296 = vst.msk [vmem:[#allocation2 + $0xb8] sm:$0xf] %vm248_vm0, %v4676_v0  ;;  %298 = vst.msk [vmem:[#allocation2 + $0xc0] sm:$0xf] %vm248_vm0, %v4676_v0  ;;  %v309_v45 = vld [vmem:[%s4861_s29 + $0x14] sm:$0xf]  ;;  %v370_v53 = vor.u32 %v368_v43, %v367_v40 }
  0x74   : > { %299 = vst.msk [vmem:[#allocation2 + $0xc4] sm:$0xf] %vm248_vm0, %v4676_v0  ;;  %301 = vst.msk [vmem:[#allocation2 + $0xcc] sm:$0xf] %vm248_vm0, %v4676_v0  ;;  %v363_v50 = vrot.slane %v359_v39, 4  ;;  %s4678_s23 = smov 4  }
  0x75   : > { %300 = vst.msk [vmem:[#allocation2 + $0xc8] sm:$0x1] %vm251_vm1, %v4676_v0  ;;  %303 = vst.msk [vmem:[#allocation2 + $0xd4] sm:$0x1] %vm251_vm1, %v4676_v0  ;;  %v676_v51 = vld [vmem:[#allocation2 + $0x20] sm:$0x1] }
  0x76   : > { %302 = vst.msk [vmem:[#allocation2 + $0xd0] sm:$0xf] %vm248_vm0, %v4676_v0  ;;  %v4343_v7 = vld [vmem:[#allocation2 + $0x8] ss:$0 sps:$4 sm:$0x11]   ;;  %vm4934_vm7 = vmor %vm336_vm4, %vm337_vm5  ;;  %v372_v54 = vrot.slane %v367_v40, 4 }
  0x77   : > { %v978_v16 = vshll.u32 %v4343_v7, 16  ;;  %v1244_v17 = vrot.slane %v4343_v7, 1  ;;  %vm4941_vm8 = vmand %vm248_vm0, %vm661_vm6  ;;  %v354_v41 = vsel %vm4934_vm7, %v346_v32, %v353_v33  ;;  %v310_v52 = vld [vmem:[%s4861_s29 + $0x18] sm:$0xf]  ;;  %v376_v55 = vrot.slane %v374_v46, 7  ;;  %s6005_s12 = scalar_lea.vmem [#allocation8], %s3775_s7 }
  0x78   : > { %vm4948_vm9 = vmand %vm251_vm1, %vm336_vm4  ;;  %v664_v42 = vsel %vm4941_vm8, %v345_v31, %v663_v27  ;;  %666 = vst.msk [vmem:[#allocation2 + $0x10] sm:$0xf] %vm248_vm0, %v354_v41  ;;  %v377_v56 = vshll.u32 %v308_v36, 16  ;;  %v673_v57 = vsel %vm4941_vm8, %v362_v49, %v672_v44  ;;  %v382_v58 = vshrl.u32 %v309_v45, 16  ;;  %v679_v60 = vld [vmem:[#allocation2 + $0x24] sm:$0xf] }
  0x79   : > { %v980_v25 = vrot.slane %v978_v16, 1  ;;  %v1245_v30 = vsel %vm1242_vm2, %v1243_v18, %v1244_v17  ;;  %665 = vst [vmem:[#allocation2 + $0xc] sm:$0xf] %v664_v42  ;;  %v670_v48 = vsel %vm4948_vm9, %v355_v38, %v669_v35  ;;  %v385_v59 = vshll.u32 %v309_v45, 16  ;;  %674 = vst [vmem:[#allocation2 + $0x18] sm:$0xf] %v673_v57 }
  0x7a   : > { %1291 = vrot.lane.b32.xlu1 %v1245_v30, %s4677_s21  ;;  %671 = vst [vmem:[#allocation2 + $0x14] sm:$0x1] %v670_v48  ;;  %v391_v61 = vshrl.u32 %v310_v52, 16  ;;  %v371_v62 = vsel %vm4934_vm7, %v363_v50, %v370_v53  ;;  %v677_v63 = vsel %vm4948_vm9, %v372_v54, %v676_v51  ;;  %v379_v0 = vor.u32 %v377_v56, %v376_v55  ;;  %v683_v7 = vld [vmem:[#allocation2 + $0x2c] sm:$0x1]  ;;  %s4045_s13 = sshll.u32 %s4729_s19, 11 }
  0x7b   : > { %v981_v47 = vsel %vm969_vm3, %v976_v37, %v980_v25  ;;  %675 = vst.msk [vmem:[#allocation2 + $0x1c] sm:$0xf] %vm248_vm0, %v371_v62  ;;  %678 = vst [vmem:[#allocation2 + $0x20] sm:$0x1] %v677_v63  ;;  %v380_v1 = vrot.slane %v376_v55, 4  ;;  %v384_v2 = vrot.slane %v382_v58, 7  ;;  %s6135_s9 = scalar_lea.hbm %s6269_s2, %s4045_s13 }
  0x7c   : > { %1162 = vrot.lane.b32.xlu0 %v981_v47, %s4678_s23  ;;  %v4972_v3 = vrot.slane %v391_v61, 7  ;;  %v394_v4 = vshll.u32 %v310_v52, 16  ;;  %v680_v5 = vsel %vm4941_vm8, %v379_v0, %v679_v60  ;;  %v4977_v10 = vld [vmem:[%s4861_s29 + $0x1c] sm:$0xf]  ;;  %v686_v12 = vld [vmem:[#allocation2 + $0x30] sm:$0xf] }
  0x7d   : > { %v387_v8 = vor.u32 %v385_v59, %v384_v2  ;;  %v389_v9 = vrot.slane %v384_v2, 4  ;;  %681 = vst [vmem:[#allocation2 + $0x24] sm:$0xf] %v680_v5  ;;  %v4990_v24 = vld [vmem:[%s4861_s29 + $0x20] sm:$0xf]  ;;  %v399_v29 = vshrl.u32 %v4977_v10, 16 }
  0x7e   : > { %v396_v11 = vor.u32 %v394_v4, %v4972_v3  ;;  %v402_v33 = vshll.u32 %v4977_v10, 16  ;;  %v408_v39 = vshrl.u32 %v4990_v24, 16  ;;  %v397_v4 = vrot.slane %v4972_v3, 4  ;;  %s3605_s10 = sshll.u32 %s6005_s12, 4  ;;  %s3584_s26 = scalar_lea.sflag [#allocation5], %s4855_s14  ;;  %s6141_s10 = int_to_ptr.vmem [resolvable:$true] %s3605_s10 }
  0x7f   : > { %v1392_v14 = vld [vmem:[#allocation2 + $0x10] sm:$0xf]  ;;  %v388_v18 = vsel %vm4934_vm7, %v380_v1, %v387_v8  ;;  %v684_v20 = vsel %vm4948_vm9, %v389_v9, %v683_v7  ;;  %vm1323_vm10 = vcmask 31744   ;;  %vm1356_vm11 = vcmask 64512   ;;  %s4540_s25 = scalar_lea.vmem %s6141_s10, 2048  ;;  %s4679_s24 = smov [#allocation8]  }
  0x80   : > { %v1391_v13 = vld [vmem:[#allocation2 + $0xc] sm:$0xf]  ;;  %v780_v22 = vld [vmem:[#allocation2 + $0x10] sm:$0xf]  ;;  %682 = vst.msk [vmem:[#allocation2 + $0x28] sm:$0xf] %vm248_vm0, %v388_v18  ;;  %v687_v23 = vsel %vm4941_vm8, %v396_v11, %v686_v12  ;;  %p4541_p4 = scmp.ne.s32.totalorder %s6141_s10, %s4540_s25 }
  0x81   : > { %v1439_v15 = vld [vmem:[#allocation2 + $0xc] sm:$0xe]  ;;  %v4345_v16 = vld [vmem:[#allocation2 + $0x14] ss:$0 sps:$4 sm:$0x11]   ;;  %v4984_v21 = vcombine.low %v1391_v13, %v1392_v14  ;;  %vm2007_vm12 = vcmask 97280  }
  0x82   : > { %v3858_v17 = vcombine.low %v1439_v15, %v1392_v14  ;;  %685 = vst [vmem:[#allocation2 + $0x2c] sm:$0x1] %v684_v20  ;;  %v1856_v27 = vrot.slane %v4345_v16, 1  ;;  %v826_v28 = vld [vmem:[#allocation2 + $0xc] sm:$0xe]  ;;  %v1591_v57 = vshll.u32 %v4345_v16, 16  ;;  %p4542_p6 = pnand %p4541_p4, %p4804_p12 }
  0x83   : > { %688 = vst [vmem:[#allocation2 + $0x30] sm:$0xf] %v687_v23  ;;  %v4993_v30 = vld [vmem:[#allocation2 + $0x14] ss:$0 sps:$4 sm:$0x11]   ;;  %v3811_v31 = vcombine.low %v826_v28, %v780_v22  ;;  %v1584_v38 = vshrl.u32 %v4984_v21, 16 }
  0x84   : > { %v1855_v25 = vrot.slane %v3858_v17, 1  ;;  %v1394_v32 = vld [vmem:[#allocation2 + $0x1c] sm:$0xf]  ;;  %v1393_v36 = vld [vmem:[#allocation2 + $0x18] sm:$0xf]  ;;  %v1247_v41 = vrot.slane %v4993_v30, 1  ;;  %p4543_p8 = pneg %p4542_p6 }
  0x85   : > { %v1440_v37 = vld [vmem:[#allocation2 + $0x18] sm:$0xe]  ;;  %v1246_v40 = vrot.slane %v3811_v31, 1  ;;  %v4351_v42 = vld [vmem:[#allocation2 + $0x20] ss:$0 sps:$4 sm:$0x11]   ;;  %v5004_v58 = vcombine.low %v1393_v36, %v1394_v32 }
  0x86   : > { %v1857_v35 = vsel %vm1242_vm2, %v1855_v25, %v1856_v27  ;;  %v3859_v43 = vcombine.low %v1440_v37, %v1394_v32  ;;  %v1586_v44 = vshll.u32 %v4984_v21, 16  ;;  %v828_v45 = vld [vmem:[#allocation2 + $0x24] sm:$0xe]  ;;  %v781_v46 = vld [vmem:[#allocation2 + $0x18] sm:$0xf]  ;;  %v1859_v51 = vrot.slane %v4351_v42, 1 }
  0x87   : > { %1903 = vrot.lane.b32.xlu1 %v1857_v35, %s4677_s21  ;;  %v782_v47 = vld [vmem:[#allocation2 + $0x1c] sm:$0xf]  ;;  %v779_v48 = vld [vmem:[#allocation2 + $0xc] sm:$0xf]  ;;  %v1248_v49 = vsel %vm1242_vm2, %v1246_v40, %v1247_v41  ;;  %v783_v52 = vld [vmem:[#allocation2 + $0x24] sm:$0xf] }
  0x88   : > { %v1858_v50 = vrot.slane %v3859_v43, 1  ;;  %v827_v53 = vld [vmem:[#allocation2 + $0x18] sm:$0xe]  ;;  %1293 = vrot.lane.b32.xlu0 %v1248_v49, %s4677_s21  ;;  %v784_v54 = vld [vmem:[#allocation2 + $0x28] sm:$0xf]  ;;  %v1588_v56 = vrot.slane %v1586_v44, 1  ;;  %v5012_v8 = vcombine.low %v781_v46, %v782_v47  ;;  %v5014_v11 = vcombine.low %v779_v48, %v780_v22 }
  0x89   : > { %v3812_v55 = vcombine.low %v827_v53, %v782_v47  ;;  %v5007_v60 = vld [vmem:[#allocation2 + $0x2c] ss:$0 sps:$4 sm:$0x11]   ;;  %v3813_v61 = vcombine.low %v828_v45, %v784_v54  ;;  %v4357_v62 = vld [vmem:[#allocation2 + $0x20] ss:$0 sps:$4 sm:$0x11]   ;;  %v5016_v12 = vcombine.low %v783_v52, %v784_v54 }
  0x8a   : > { %v1860_v59 = vsel %vm1242_vm2, %v1858_v50, %v1859_v51  ;;  %v1589_v0 = vor.u32 %v1588_v56, %v1584_v38  ;;  %v1593_v1 = vrot.slane %v1591_v57, 1  ;;  %v1396_v2 = vld [vmem:[#allocation2 + $0x28] sm:$0xf]  ;;  %v1253_v7 = vrot.slane %v5007_v60, 1  ;;  %v1441_v14 = vld [vmem:[#allocation2 + $0x24] sm:$0xe] }
  0x8b   : > { %1905 = vrot.lane.b32.xlu1 %v1860_v59, %s4677_s21  ;;  %v1249_v63 = vrot.slane %v3812_v55, 1  ;;  %v1252_v5 = vrot.slane %v3813_v61, 1  ;;  %v1250_v9 = vrot.slane %v4357_v62, 1  ;;  %v5019_v15 = vld [vmem:[#allocation2 + $0x2c] ss:$0 sps:$4 sm:$0x11]   ;;  %v3860_v20 = vcombine.low %v1441_v14, %v1396_v2 }
  0x8c   : > { %v1594_v13 = vsel %vm969_vm3, %v1589_v0, %v1593_v1  ;;  %v1596_v16 = vshrl.u32 %v5004_v58, 16  ;;  %v1395_v18 = vld [vmem:[#allocation2 + $0x24] sm:$0xf]  ;;  %v1598_v23 = vshll.u32 %v5004_v58, 16  ;;  %v1862_v22 = vrot.slane %v5019_v15, 1  ;;  %s4544_s6 = sshll.u32 %s4679_s24, 4  ;;  %s4545_s6 = int_to_ptr.vmem [resolvable:$false] %s4544_s6 }
  0x8d   : > { %v1254_v17 = vsel %vm1242_vm2, %v1252_v5, %v1253_v7  ;;  %v1251_v3 = vsel %vm1242_vm2, %v1249_v63, %v1250_v9  ;;  %v1603_v25 = vshll.u32 %v4351_v42, 16  ;;  %v401_v27 = vrot.slane %v399_v29, 7  ;;  %v690_v35 = vld [vmem:[#allocation2 + $0x38] sm:$0x1]  ;;  %v313_v52 = vld [vmem:[%s4861_s29 + $0x24] sm:$0xf]  ;;  %p4547_p10 = scmp.lt.s32.totalorder %s6141_s10, %s4545_s6 }
  0x8e   : > { %1297 = vrot.lane.b32.xlu0 %v1254_v17, %s4677_s21  ;;  %v995_v28 = vshrl.u32 %v5012_v8, 16  ;;  %v1861_v31 = vrot.slane %v3860_v20, 1  ;;  %v1600_v32 = vrot.slane %v1598_v23, 1  ;;  %v997_v36 = vshll.u32 %v5012_v8, 16  ;;  %v693_v59 = vld [vmem:[#allocation2 + $0x3c] sm:$0xf] }
  0x8f   : > { %1295 = vrot.lane.b32.xlu1 %v1251_v3, %s4677_s21  ;;  %v1002_v37 = vshll.u32 %v4357_v62, 16  ;;  %v5030_v38 = vcombine.low %v1395_v18, %v1396_v2  ;;  %v1605_v40 = vrot.slane %v1603_v25, 1  ;;  %v404_v41 = vor.u32 %v402_v33, %v401_v27  ;;  %v314_v61 = vld [vmem:[%s4861_s29 + $0x28] sm:$0xf]  ;;  %v5057_v1 = vld [vmem:[%s4861_s29 + $0x2c] sm:$0xf] }
  0x90   : > { %v406_v43 = vrot.slane %v401_v27, 4  ;;  %v1863_v44 = vsel %vm1242_vm2, %v1861_v31, %v1862_v22  ;;  %v1601_v42 = vor.u32 %v1600_v32, %v1596_v16  ;;  %v999_v29 = vrot.slane %v997_v36, 1  ;;  %v1442_v2 = vld [vmem:[#allocation2 + $0x30] sm:$0xe]  ;;  %s4546_s7 = scalar_lea.vmem %s4545_s6, 4096 }
  0x91   : > { %v1004_v45 = vrot.slane %v1002_v37, 1  ;;  %v405_v46 = vsel %vm4934_vm7, %v397_v4, %v404_v41  ;;  %v985_v10 = vshll.u32 %v5014_v11, 16  ;;  %v990_v33 = vshll.u32 %v4993_v30, 16  ;;  %p4548_p13 = scmp.lt.s32.totalorder %s4546_s7, %s4540_s25 }
  0x92   : > { %1775 = vrot.lane.b32.xlu0 %v1594_v13, %s4678_s23  ;;  %v691_v47 = vsel %vm4948_vm9, %v406_v43, %v690_v35  ;;  %v1606_v48 = vsel %vm969_vm3, %v1601_v42, %v1605_v40  ;;  %689 = vst.msk [vmem:[#allocation2 + $0x34] sm:$0xf] %vm248_vm0, %v405_v46  ;;  %v1000_v49 = vor.u32 %v999_v29, %v995_v28  ;;  %v1007_v50 = vshrl.u32 %v5016_v12, 16  ;;  %v697_v13 = vld [vmem:[#allocation2 + $0x44] sm:$0x1] }
  0x93   : > { %1907 = vrot.lane.b32.xlu1 %v1863_v44, %s4677_s21  ;;  %692 = vst [vmem:[#allocation2 + $0x38] sm:$0x1] %v691_v47  ;;  %v1009_v51 = vshll.u32 %v5016_v12, 16  ;;  %v1014_v53 = vshll.u32 %v5007_v60, 16  ;;  %v411_v54 = vshll.u32 %v4990_v24, 16  ;;  %v983_v55 = vshrl.u32 %v5014_v11, 16  ;;  %p4549_p3 = por %p4548_p13, %p4547_p10 }
  0x94   : > { %v987_v56 = vrot.slane %v985_v10, 1  ;;  %v1610_v57 = vshll.u32 %v5030_v38, 16  ;;  %v992_v62 = vrot.slane %v990_v33, 1  ;;  %v410_v63 = vrot.slane %v408_v39, 7  ;;  %v1397_v60 = vld [vmem:[#allocation2 + $0x30] sm:$0xf] }
  0x95   : > { %v1011_v30 = vrot.slane %v1009_v51, 1  ;;  %v416_v0 = vshrl.u32 %v313_v52, 16  ;;  %v1005_v4 = vsel %vm969_vm3, %v1000_v49, %v1004_v45  ;;  %v1016_v7 = vrot.slane %v1014_v53, 1  ;;  %v785_v39 = vld [vmem:[#allocation2 + $0x30] sm:$0xf]  ;;  %p4550_p7 = pnand %p4549_p3, %p4543_p8 }
  0x96   : > { %1777 = vrot.lane.b32.xlu0 %v1606_v48, %s4678_s23  ;;  %v419_v9 = vshll.u32 %v313_v52, 16  ;;  %v1608_v14 = vshrl.u32 %v5030_v38, 16  ;;  %v413_v16 = vor.u32 %v411_v54, %v410_v63  ;;  %v414_v17 = vrot.slane %v410_v63, 4  ;;  %v316_v63 = vld [vmem:[%s4861_s29 + $0x30] sm:$0xf] }
  0x97   : > { %v1012_v5 = vor.u32 %v1011_v30, %v1007_v50  ;;  %v418_v3 = vrot.slane %v416_v0, 7  ;;  %v988_v18 = vor.u32 %v987_v56, %v983_v55  ;;  %v1612_v20 = vrot.slane %v1610_v57, 1  ;;  %v829_v55 = vld [vmem:[#allocation2 + $0x30] sm:$0xe]  ;;  %v700_v56 = vld [vmem:[#allocation2 + $0x48] sm:$0xf] }
  0x98   : > { %v1615_v24 = vshll.u32 %v5019_v15, 16  ;;  %v425_v23 = vshrl.u32 %v314_v61, 16  ;;  %v694_v28 = vsel %vm4941_vm8, %v413_v16, %v693_v59  ;;  %v428_v31 = vshll.u32 %v314_v61, 16 }
  0x99   : > { %v1398_v22 = vld [vmem:[#allocation2 + $0x34] sm:$0xf]  ;;  %v421_v25 = vor.u32 %v419_v9, %v418_v3  ;;  %v423_v27 = vrot.slane %v418_v3, 4  ;;  %v1017_v37 = vsel %vm969_vm3, %v1012_v5, %v1016_v7  ;;  %695 = vst [vmem:[#allocation2 + $0x3c] sm:$0xf] %v694_v28  ;;  %v433_v15 = vshrl.u32 %v5057_v1, 16 }
  0x9a   : > { %1166 = vrot.lane.b32.xlu0 %v1005_v4, %s4678_s23  ;;  %v5065_v32 = vcombine.low %v1397_v60, %v1398_v22  ;;  %v4363_v35 = vld [vmem:[#allocation2 + $0x38] ss:$0 sps:$4 sm:$0x11]   ;;  %v3861_v36 = vcombine.low %v1442_v2, %v1398_v22  ;;  %v786_v40 = vld [vmem:[#allocation2 + $0x34] sm:$0xf]  ;;  %v5077_v29 = vrot.slane %v425_v23, 7  ;;  %v1613_v52 = vor.u32 %v1612_v20, %v1608_v14 }
  0x9b   : > { %v422_v41 = vsel %vm4934_vm7, %v414_v17, %v421_v25  ;;  %v698_v43 = vsel %vm4948_vm9, %v423_v27, %v697_v13  ;;  %v5073_v44 = vcombine.low %v785_v39, %v786_v40  ;;  %v5075_v42 = vld [vmem:[#allocation2 + $0x38] ss:$0 sps:$4 sm:$0x11]   ;;  %v1865_v46 = vrot.slane %v4363_v35, 1  ;;  %v704_v5 = vld [vmem:[#allocation2 + $0x50] sm:$0x1] }
  0x9c   : > { %v1864_v45 = vrot.slane %v3861_v36, 1  ;;  %v1620_v47 = vshrl.u32 %v5065_v32, 16  ;;  %v1622_v10 = vshll.u32 %v5065_v32, 16  ;;  %696 = vst.msk [vmem:[#allocation2 + $0x40] sm:$0xf] %vm248_vm0, %v422_v41  ;;  %v1627_v33 = vshll.u32 %v4363_v35, 16 }
  0x9d   : > { %699 = vst [vmem:[#allocation2 + $0x44] sm:$0x1] %v698_v43  ;;  %v1019_v48 = vshrl.u32 %v5073_v44, 16  ;;  %v1021_v49 = vshll.u32 %v5073_v44, 16  ;;  %v1026_v50 = vshll.u32 %v5075_v42, 16  ;;  %v1617_v53 = vrot.slane %v1615_v24, 1 }
  0x9e   : > { %1168 = vrot.lane.b32.xlu0 %v1017_v37, %s4678_s23  ;;  %v1866_v51 = vsel %vm1242_vm2, %v1864_v45, %v1865_v46  ;;  %v1624_v54 = vrot.slane %v1622_v10, 1  ;;  %v1629_v30 = vrot.slane %v1627_v33, 1  ;;  %v430_v61 = vor.u32 %v428_v31, %v5077_v29 }
  0x9f   : > { %1909 = vrot.lane.b32.xlu1 %v1866_v51, %s4677_s21  ;;  %v1023_v57 = vrot.slane %v1021_v49, 1  ;;  %v1028_v59 = vrot.slane %v1026_v50, 1  ;;  %v993_v0 = vsel %vm969_vm3, %v988_v18, %v992_v62  ;;  %v431_v2 = vrot.slane %v5077_v29, 4  ;;  %v707_v50 = vld [vmem:[#allocation2 + $0x54] sm:$0xf] }
  0xa0   : > { %v1625_v60 = vor.u32 %v1624_v54, %v1620_v47  ;;  %v435_v4 = vrot.slane %v433_v15, 7  ;;  %v1399_v7 = vld [vmem:[#allocation2 + $0x3c] sm:$0xf]  ;;  %v3814_v13 = vcombine.low %v829_v55, %v786_v40  ;;  %v701_v17 = vsel %vm4941_vm8, %v430_v61, %v700_v56  ;;  %v317_v47 = vld [vmem:[%s4861_s29 + $0x34] sm:$0xf] }
  0xa1   : > { %v1024_v9 = vor.u32 %v1023_v57, %v1019_v48  ;;  %v787_v14 = vld [vmem:[#allocation2 + $0x3c] sm:$0xf]  ;;  %v436_v20 = vshll.u32 %v5057_v1, 16  ;;  %702 = vst [vmem:[#allocation2 + $0x48] sm:$0xf] %v701_v17  ;;  %v442_v18 = vshrl.u32 %v316_v63, 16  ;;  %v1618_v39 = vsel %vm969_vm3, %v1613_v52, %v1617_v53 }
  0xa2   : > { %v1443_v16 = vld [vmem:[#allocation2 + $0x3c] sm:$0xe]  ;;  %v1630_v3 = vsel %vm969_vm3, %v1625_v60, %v1629_v30  ;;  %v440_v24 = vrot.slane %v435_v4, 4  ;;  %v1255_v36 = vrot.slane %v3814_v13, 1  ;;  %v445_v41 = vshll.u32 %v316_v63, 16 }
  0xa3   : > { %v830_v62 = vld [vmem:[#allocation2 + $0x3c] sm:$0xe]  ;;  %1164 = vrot.lane.b32.xlu1 %v993_v0, %s4678_s23  ;;  %1781 = vrot.lane.b32.xlu0 %v1630_v3, %s4678_s23  ;;  %v1400_v23 = vld [vmem:[#allocation2 + $0x40] sm:$0xf]  ;;  %v1029_v22 = vsel %vm969_vm3, %v1024_v9, %v1028_v59  ;;  %v438_v35 = vor.u32 %v436_v20, %v435_v4  ;;  %v5108_v15 = vrot.slane %v442_v18, 7  ;;  %v1256_v10 = vrot.slane %v5075_v42, 1 }
  0xa4   : > { %v788_v25 = vld [vmem:[#allocation2 + $0x40] sm:$0xf]  ;;  %v5100_v27 = vcombine.low %v1399_v7, %v1400_v23  ;;  %v4366_v28 = vld [vmem:[#allocation2 + $0x44] ss:$0 sps:$4 sm:$0x11]   ;;  %v3862_v1 = vcombine.low %v1443_v16, %v1400_v23  ;;  %v705_v40 = vsel %vm4948_vm9, %v440_v24, %v704_v5  ;;  %v450_v0 = vshrl.u32 %v317_v47, 16 }
  0xa5   : > { %v5102_v31 = vcombine.low %v787_v14, %v788_v25  ;;  %v5104_v37 = vld [vmem:[#allocation2 + $0x44] ss:$0 sps:$4 sm:$0x11]   ;;  %v1639_v45 = vshll.u32 %v4366_v28, 16  ;;  %706 = vst [vmem:[#allocation2 + $0x50] sm:$0x1] %v705_v40  ;;  %v3815_v46 = vcombine.low %v830_v62, %v788_v25  ;;  %v439_v54 = vsel %vm4934_vm7, %v431_v2, %v438_v35 }
  0xa6   : > { %v1632_v43 = vshrl.u32 %v5100_v27, 16  ;;  %v1634_v29 = vshll.u32 %v5100_v27, 16  ;;  %v1038_v49 = vshll.u32 %v5104_v37, 16  ;;  %v1867_v53 = vrot.slane %v3862_v1, 1  ;;  %v318_v55 = vld [vmem:[%s4861_s29 + $0x38] sm:$0xf] }
  0xa7   : > { %1779 = vrot.lane.b32.xlu1 %v1618_v39, %s4678_s23  ;;  %1170 = vrot.lane.b32.xlu0 %v1029_v22, %s4678_s23  ;;  %v1031_v33 = vshrl.u32 %v5102_v31, 16  ;;  %v1033_v48 = vshll.u32 %v5102_v31, 16  ;;  %v1641_v52 = vrot.slane %v1639_v45, 1  ;;  %v1868_v57 = vrot.slane %v4366_v28, 1  ;;  %703 = vst.msk [vmem:[#allocation2 + $0x4c] sm:$0xf] %vm248_vm0, %v439_v54 }
  0xa8   : > { %v1636_v51 = vrot.slane %v1634_v29, 1  ;;  %v1040_v30 = vrot.slane %v1038_v49, 1  ;;  %v447_v42 = vor.u32 %v445_v41, %v5108_v15  ;;  %v5124_v61 = vrot.slane %v3815_v46, 1  ;;  %v711_v2 = vld [vmem:[#allocation2 + $0x5c] sm:$0x1] }
  0xa9   : > { %v1035_v56 = vrot.slane %v1033_v48, 1  ;;  %v448_v63 = vrot.slane %v5108_v15, 4  ;;  %v453_v4 = vshll.u32 %v317_v47, 16  ;;  %v459_v7 = vshrl.u32 %v318_v55, 16  ;;  %v2407_v9 = vld [vmem:[#allocation2 + $0x18] sm:$0xf] }
  0xaa   : > { %v1637_v59 = vor.u32 %v1636_v51, %v1632_v43  ;;  %v708_v5 = vsel %vm4941_vm8, %v447_v42, %v707_v50  ;;  %v5129_v13 = vld [vmem:[#allocation2 + $0x1c] sm:$0xf]  ;;  %v1401_v16 = vld [vmem:[#allocation2 + $0x48] sm:$0xf]  ;;  %v452_v3 = vrot.slane %v450_v0, 7  ;;  %v462_v24 = vshll.u32 %v318_v55, 16 }
  0xab   : > { %v1036_v60 = vor.u32 %v1035_v56, %v1031_v33  ;;  %v1444_v17 = vld [vmem:[#allocation2 + $0x48] sm:$0xe]  ;;  %709 = vst [vmem:[#allocation2 + $0x54] sm:$0xf] %v708_v5  ;;  %v1257_v62 = vsel %vm1242_vm2, %v1255_v36, %v1256_v10  ;;  %v319_v23 = vld [vmem:[%s4861_s29 + $0x3c] sm:$0xf]  ;;  %v1869_v25 = vsel %vm1242_vm2, %v1867_v53, %v1868_v57  ;;  %v5141_v40 = vcombine.low %v2407_v9, %v5129_v13 }
  0xac   : > { %v1642_v14 = vsel %vm969_vm3, %v1637_v59, %v1641_v52  ;;  %v789_v20 = vld [vmem:[#allocation2 + $0x48] sm:$0xf]  ;;  %v4374_v39 = vld [vmem:[#allocation2 + $0x50] ss:$0 sps:$4 sm:$0x11]   ;;  %v5136_v22 = vrot.slane %v459_v7, 7  ;;  %v455_v28 = vor.u32 %v453_v4, %v452_v3 }
  0xad   : > { %1783 = vrot.lane.b32.xlu1 %v1642_v14, %s4678_s23  ;;  %v1041_v18 = vsel %vm969_vm3, %v1036_v60, %v1040_v30  ;;  %v457_v1 = vrot.slane %v452_v3, 4  ;;  %v4379_v35 = vld [vmem:[#allocation2 + $0x50] ss:$0 sps:$4 sm:$0x11]   ;;  %v1651_v15 = vshll.u32 %v4374_v39, 16  ;;  %v1871_v41 = vrot.slane %v4374_v39, 1 }
  0xae   : > { %1172 = vrot.lane.b32.xlu0 %v1041_v18, %s4678_s23  ;;  %v1259_v36 = vrot.slane %v5104_v37, 1  ;;  %v831_v43 = vld [vmem:[#allocation2 + $0x48] sm:$0xe]  ;;  %v464_v29 = vor.u32 %v462_v24, %v5136_v22  ;;  %v1402_v45 = vld [vmem:[#allocation2 + $0x4c] sm:$0xf]  ;;  %v456_v46 = vsel %vm4934_vm7, %v448_v63, %v455_v28  ;;  %v1050_v33 = vshll.u32 %v4379_v35, 16 }
  0xaf   : > { %v712_v47 = vsel %vm4948_vm9, %v457_v1, %v711_v2  ;;  %v790_v10 = vld [vmem:[#allocation2 + $0x4c] sm:$0xf]  ;;  %v465_v48 = vrot.slane %v5136_v22, 4  ;;  %v5151_v49 = vcombine.low %v1401_v16, %v1402_v45  ;;  %v3863_v37 = vcombine.low %v1444_v17, %v1402_v45  ;;  %710 = vst.msk [vmem:[#allocation2 + $0x58] sm:$0xf] %vm248_vm0, %v456_v46 }
  0xb0   : > { %713 = vst [vmem:[#allocation2 + $0x5c] sm:$0x1] %v712_v47  ;;  %v5154_v50 = vcombine.low %v789_v20, %v790_v10  ;;  %v1262_v51 = vrot.slane %v4379_v35, 1  ;;  %v714_v52 = vld [vmem:[#allocation2 + $0x60] sm:$0xf]  ;;  %v1653_v53 = vrot.slane %v1651_v15, 1  ;;  %v3816_v55 = vcombine.low %v831_v43, %v790_v10 }
  0xb1   : > { %1299 = vrot.lane.b32.xlu1 %v1257_v62, %s4677_s21  ;;  %v5156_v54 = vrot.slane %v1050_v33, 1  ;;  %v467_v56 = vshrl.u32 %v319_v23, 16  ;;  %v5159_v30 = vld [vmem:[%s4861_s29 + $0x40] sm:$0xf]  ;;  %v1644_v57 = vshrl.u32 %v5151_v49, 16  ;;  %v1646_v42 = vshll.u32 %v5151_v49, 16 }
  0xb2   : > { %v1870_v59 = vrot.slane %v3863_v37, 1  ;;  %v470_v63 = vshll.u32 %v319_v23, 16  ;;  %v5163_v0 = vld [vmem:[#allocation2 + $0x18] sm:$0xe]  ;;  %v2409_v60 = vld [vmem:[#allocation2 + $0x24] sm:$0xf]  ;;  %v715_v16 = vsel %vm4941_vm8, %v464_v29, %v714_v52  ;;  %v1260_v3 = vsel %vm1242_vm2, %v5124_v61, %v1259_v36 }
  0xb3   : > { %v5165_v4 = vld [vmem:[#allocation2 + $0x28] sm:$0xf]  ;;  %v5167_v5 = vld [vmem:[#allocation2 + $0x24] sm:$0xe]  ;;  %v1403_v2 = vld [vmem:[#allocation2 + $0x54] sm:$0xf] }
  0xb4   : > { %v1043_v7 = vshrl.u32 %v5154_v50, 16  ;;  %v1045_v9 = vshll.u32 %v5154_v50, 16  ;;  %v1261_v14 = vrot.slane %v3816_v55, 1  ;;  %v1648_v17 = vrot.slane %v1646_v42, 1  ;;  %v791_v20 = vld [vmem:[#allocation2 + $0x54] sm:$0xf] }
  0xb5   : > { %1911 = vrot.lane.b32.xlu1 %v1869_v25, %s4677_s21  ;;  %v1445_v24 = vld [vmem:[#allocation2 + $0x54] sm:$0xe]  ;;  %v469_v62 = vrot.slane %v467_v56, 7  ;;  %716 = vst [vmem:[#allocation2 + $0x60] sm:$0xf] %v715_v16  ;;  %v1872_v18 = vsel %vm1242_vm2, %v1870_v59, %v1871_v41  ;;  %v2600_v23 = vshrl.u32 %v5141_v40, 16  ;;  %v3940_v41 = vcombine.low %v5163_v0, %v5129_v13 }
  0xb6   : > { %v1047_v39 = vrot.slane %v1045_v9, 1  ;;  %v2602_v22 = vshll.u32 %v5141_v40, 16  ;;  %v1649_v28 = vor.u32 %v1648_v17, %v1644_v57  ;;  %v718_v15 = vld [vmem:[#allocation2 + $0x68] sm:$0x1]  ;;  %v832_v25 = vld [vmem:[#allocation2 + $0x54] sm:$0xe]  ;;  %v5183_v29 = vsel %vm1242_vm2, %v1261_v14, %v1262_v51 }
  0xb7   : > { %v472_v1 = vor.u32 %v470_v63, %v469_v62  ;;  %v474_v35 = vrot.slane %v469_v62, 4  ;;  %v5179_v43 = vld [vmem:[#allocation2 + $0x20] ss:$0 sps:$4 sm:$0x11]   ;;  %v476_v61 = vshrl.u32 %v5159_v30, 16  ;;  %v5188_v46 = vcombine.low %v2409_v60, %v5165_v4 }
  0xb8   : > { %v1404_v36 = vld [vmem:[#allocation2 + $0x58] sm:$0xf]  ;;  %v3941_v47 = vcombine.low %v5167_v5, %v5165_v4  ;;  %v2411_v10 = vld [vmem:[#allocation2 + $0x30] sm:$0xf]  ;;  %v1654_v33 = vsel %vm969_vm3, %v1649_v28, %v1653_v53  ;;  %v1048_v56 = vor.u32 %v1047_v39, %v1043_v7  ;;  %v5205_v63 = vld [vmem:[#allocation2 + $0x34] sm:$0xf] }
  0xb9   : > { %v792_v45 = vld [vmem:[#allocation2 + $0x58] sm:$0xf]  ;;  %1913 = vrot.lane.b32.xlu1 %v1872_v18, %s4677_s21  ;;  %v5194_v37 = vcombine.low %v1403_v2, %v1404_v36  ;;  %v4377_v52 = vld [vmem:[#allocation2 + $0x5c] ss:$0 sps:$4 sm:$0x11]   ;;  %v3864_v55 = vcombine.low %v1445_v24, %v1404_v36  ;;  %1785 = vrot.lane.b32.xlu0 %v1654_v33, %s4678_s23  ;;  %v473_v42 = vsel %vm4934_vm7, %v465_v48, %v472_v1  ;;  %v2607_v62 = vshll.u32 %v5179_v43, 16 }
  0xba   : > { %v5196_v51 = vcombine.low %v791_v20, %v792_v45  ;;  %v5199_v57 = vld [vmem:[#allocation2 + $0x5c] ss:$0 sps:$4 sm:$0x11]   ;;  %v719_v59 = vsel %vm4948_vm9, %v474_v35, %v718_v15  ;;  %v3817_v53 = vcombine.low %v832_v25, %v792_v45  ;;  %v1663_v9 = vshll.u32 %v4377_v52, 16  ;;  %717 = vst.msk [vmem:[#allocation2 + $0x64] sm:$0xf] %vm248_vm0, %v473_v42 }
  0xbb   : > { %v1656_v60 = vshrl.u32 %v5194_v37, 16  ;;  %v1658_v2 = vshll.u32 %v5194_v37, 16  ;;  %720 = vst [vmem:[#allocation2 + $0x68] sm:$0x1] %v719_v59  ;;  %v1062_v7 = vshll.u32 %v5199_v57, 16  ;;  %v1873_v16 = vrot.slane %v3864_v55, 1 }
  0xbc   : > { %v1055_v14 = vshrl.u32 %v5196_v51, 16  ;;  %v1057_v48 = vshll.u32 %v5196_v51, 16  ;;  %v1874_v17 = vrot.slane %v4377_v52, 1  ;;  %v1665_v24 = vrot.slane %v1663_v9, 1  ;;  %v321_v18 = vld [vmem:[%s4861_s29 + $0x44] sm:$0xf] }
  0xbd   : > { %v1660_v20 = vrot.slane %v1658_v2, 1  ;;  %v5216_v39 = vcombine.low %v2411_v10, %v5205_v63  ;;  %1301 = vrot.lane.b32.xlu0 %v1260_v3, %s4677_s21  ;;  %v1053_v28 = vsel %vm969_vm3, %v1048_v56, %v5156_v54  ;;  %v1064_v35 = vrot.slane %v1062_v7, 1  ;;  %v322_v25 = vld [vmem:[%s4861_s29 + $0x48] sm:$0xf]  ;;  %v721_v10 = vld [vmem:[#allocation2 + $0x6c] sm:$0xf] }
  0xbe   : > { %v1059_v1 = vrot.slane %v1057_v48, 1  ;;  %v5221_v15 = vrot.slane %v3817_v53, 1  ;;  %v1875_v45 = vsel %vm1242_vm2, %v1873_v16, %v1874_v17  ;;  %v1405_v33 = vld [vmem:[#allocation2 + $0x60] sm:$0xf]  ;;  %v478_v55 = vrot.slane %v476_v61, 7 }
  0xbf   : > { %v1661_v36 = vor.u32 %v1660_v20, %v1656_v60  ;;  %v1446_v59 = vld [vmem:[#allocation2 + $0x60] sm:$0xe]  ;;  %v2604_v3 = vrot.slane %v2602_v22, 1  ;;  %v479_v2 = vshll.u32 %v5159_v30, 16  ;;  %v484_v54 = vshrl.u32 %v321_v18, 16 }
  0xc0   : > { %v1060_v42 = vor.u32 %v1059_v1, %v1055_v14  ;;  %v5228_v53 = vrot.slane %v2607_v62, 1  ;;  %v487_v9 = vshll.u32 %v321_v18, 16  ;;  %v725_v48 = vld [vmem:[#allocation2 + $0x74] sm:$0x1]  ;;  %v323_v60 = vld [vmem:[%s4861_s29 + $0x4c] sm:$0xf] }
  0xc1   : > { %v1666_v56 = vsel %vm969_vm3, %v1661_v36, %v1665_v24  ;;  %v493_v7 = vshrl.u32 %v322_v25, 16  ;;  %1174 = vrot.lane.b32.xlu0 %v1053_v28, %s4678_s23  ;;  %v1406_v14 = vld [vmem:[#allocation2 + $0x64] sm:$0xf]  ;;  %v481_v16 = vor.u32 %v479_v2, %v478_v55  ;;  %v482_v22 = vrot.slane %v478_v55, 4  ;;  %v728_v55 = vld [vmem:[#allocation2 + $0x78] sm:$0xf] }
  0xc2   : > { %1787 = vrot.lane.b32.xlu1 %v1666_v56, %s4678_s23  ;;  %v1065_v61 = vsel %vm969_vm3, %v1060_v42, %v1064_v35  ;;  %v486_v17 = vrot.slane %v484_v54, 7  ;;  %v5234_v30 = vcombine.low %v1405_v33, %v1406_v14  ;;  %v4385_v20 = vld [vmem:[#allocation2 + $0x68] ss:$0 sps:$4 sm:$0x11]   ;;  %v3865_v24 = vcombine.low %v1446_v59, %v1406_v14  ;;  %v732_v14 = vld [vmem:[#allocation2 + $0x80] sm:$0x1] }
  0xc3   : > { %v495_v62 = vrot.slane %v493_v7, 7  ;;  %v496_v1 = vshll.u32 %v322_v25, 16  ;;  %v722_v52 = vsel %vm4941_vm8, %v481_v16, %v721_v10  ;;  %v501_v56 = vshrl.u32 %v323_v60, 16  ;;  %v4395_v54 = vld [vmem:[#allocation2 + $0x2c] ss:$0 sps:$4 sm:$0x11]  }
  0xc4   : > { %v489_v18 = vor.u32 %v487_v9, %v486_v17  ;;  %v491_v36 = vrot.slane %v486_v17, 4  ;;  %v1668_v28 = vshrl.u32 %v5234_v30, 16  ;;  %v1670_v35 = vshll.u32 %v5234_v30, 16  ;;  %723 = vst [vmem:[#allocation2 + $0x6c] sm:$0xf] %v722_v52 }
  0xc5   : > { %v1675_v42 = vshll.u32 %v4385_v20, 16  ;;  %v1876_v2 = vrot.slane %v3865_v24, 1  ;;  %1176 = vrot.lane.b32.xlu0 %v1065_v61, %s4678_s23  ;;  %v1877_v25 = vrot.slane %v4385_v20, 1  ;;  %v498_v59 = vor.u32 %v496_v1, %v495_v62  ;;  %v5253_v17 = vld [vmem:[#allocation2 + $0x38] ss:$0 sps:$4 sm:$0x11]  }
  0xc6   : > { %1303 = vrot.lane.b32.xlu1 %v5183_v29, %s4677_s21  ;;  %v490_v33 = vsel %vm4934_vm7, %v482_v22, %v489_v18  ;;  %v726_v10 = vsel %vm4948_vm9, %v491_v36, %v725_v48  ;;  %v1672_v9 = vrot.slane %v1670_v35, 1  ;;  %v2605_v52 = vor.u32 %v2604_v3, %v2600_v23  ;;  %v324_v36 = vld [vmem:[%s4861_s29 + $0x50] sm:$0xf]  ;;  %v793_v34 = vld [vmem:[#allocation2 + $0x60] sm:$0xf] }
  0xc7   : > { %v1677_v7 = vrot.slane %v1675_v42, 1  ;;  %724 = vst.msk [vmem:[#allocation2 + $0x70] sm:$0xf] %vm248_vm0, %v490_v33  ;;  %727 = vst [vmem:[#allocation2 + $0x74] sm:$0x1] %v726_v10  ;;  %v503_v29 = vrot.slane %v501_v56, 7  ;;  %v1878_v61 = vsel %vm1242_vm2, %v1876_v2, %v1877_v25  ;;  %v729_v48 = vsel %vm4941_vm8, %v498_v59, %v728_v55 }
  0xc8   : > { %v499_v16 = vrot.slane %v495_v62, 4  ;;  %v504_v22 = vshll.u32 %v323_v60, 16  ;;  %v1673_v20 = vor.u32 %v1672_v9, %v1668_v28  ;;  %730 = vst [vmem:[#allocation2 + $0x78] sm:$0xf] %v729_v48  ;;  %v2871_v23 = vrot.slane %v3940_v41, 1 }
  0xc9   : > { %v508_v24 = vrot.slane %v503_v29, 4  ;;  %v2872_v3 = vrot.slane %v5179_v43, 1  ;;  %v2614_v60 = vshll.u32 %v5188_v46, 16  ;;  %v2619_v62 = vshll.u32 %v4395_v54, 16  ;;  %v325_v43 = vld [vmem:[%s4861_s29 + $0x54] sm:$0xf] }
  0xca   : > { %1915 = vrot.lane.b32.xlu1 %v1875_v45, %s4677_s21  ;;  %v506_v1 = vor.u32 %v504_v22, %v503_v29  ;;  %v2874_v18 = vrot.slane %v3941_v47, 1  ;;  %v1678_v56 = vsel %vm969_vm3, %v1673_v20, %v1677_v7  ;;  %v2612_v13 = vshrl.u32 %v5188_v46, 16  ;;  %v5270_v41 = vld [vmem:[#allocation2 + $0x30] sm:$0xe]  ;;  %v2413_v33 = vld [vmem:[#allocation2 + $0x3c] sm:$0xf] }
  0xcb   : > { %v733_v28 = vsel %vm4948_vm9, %v508_v24, %v732_v14  ;;  %v2875_v0 = vrot.slane %v4395_v54, 1  ;;  %1789 = vrot.lane.b32.xlu0 %v1678_v56, %s4678_s23  ;;  %v6300_v45 = vrot.slane %v5199_v57, 1  ;;  %v2610_v5 = vsel %vm969_vm3, %v2605_v52, %v5228_v53  ;;  %v1407_v47 = vld [vmem:[#allocation2 + $0x6c] sm:$0xf]  ;;  %v735_v22 = vld [vmem:[#allocation2 + $0x84] sm:$0xf] }
  0xcc   : > { %v1447_v35 = vld [vmem:[#allocation2 + $0x6c] sm:$0xe]  ;;  %v507_v42 = vsel %vm4934_vm7, %v499_v16, %v506_v1  ;;  %734 = vst [vmem:[#allocation2 + $0x80] sm:$0x1] %v733_v28  ;;  %v2616_v2 = vrot.slane %v2614_v60, 1  ;;  %v5283_v55 = vsel %vm1242_vm2, %v2871_v23, %v2872_v3  ;;  %v2621_v25 = vrot.slane %v2619_v62, 1 }
  0xcd   : > { %v1266_v4 = vsel %vm1242_vm2, %v5221_v15, %v6300_v45  ;;  %731 = vst.msk [vmem:[#allocation2 + $0x7c] sm:$0xf] %vm248_vm0, %v507_v42  ;;  %v2626_v57 = vshll.u32 %v5216_v39, 16  ;;  %v2631_v15 = vshll.u32 %v5253_v17, 16  ;;  %v5289_v10 = vsel %vm1242_vm2, %v2874_v18, %v2875_v0  ;;  %v5296_v48 = vld [vmem:[#allocation2 + $0x40] sm:$0xf] }
  0xce   : > { %1917 = vrot.lane.b32.xlu1 %v1878_v61, %s4677_s21  ;;  %v1408_v53 = vld [vmem:[#allocation2 + $0x70] sm:$0xf]  ;;  %v510_v59 = vshrl.u32 %v324_v36, 16  ;;  %v513_v54 = vshll.u32 %v324_v36, 16  ;;  %v3942_v9 = vcombine.low %v5270_v41, %v5205_v63  ;;  %v2617_v14 = vor.u32 %v2616_v2, %v2612_v13  ;;  %v5304_v36 = vld [vmem:[#allocation2 + $0x3c] sm:$0xe] }
  0xcf   : > { %v5293_v7 = vcombine.low %v1407_v47, %v1408_v53  ;;  %v4390_v52 = vld [vmem:[#allocation2 + $0x74] ss:$0 sps:$4 sm:$0x11]   ;;  %v3866_v29 = vcombine.low %v1447_v35, %v1408_v53  ;;  %v2624_v16 = vshrl.u32 %v5216_v39, 16  ;;  %1305 = vrot.lane.b32.xlu0 %v1266_v4, %s4677_s21  ;;  %v2628_v61 = vrot.slane %v2626_v57, 1 }
  0xd0   : > { %v5299_v20 = vrot.slane %v2631_v15, 1  ;;  %v512_v24 = vrot.slane %v510_v59, 7  ;;  %v518_v23 = vshrl.u32 %v325_v43, 16  ;;  %v326_v3 = vld [vmem:[%s4861_s29 + $0x58] sm:$0xf]  ;;  %v1687_v62 = vshll.u32 %v4390_v52, 16 }
  0xd1   : > { %v1680_v1 = vshrl.u32 %v5293_v7, 16  ;;  %v1682_v60 = vshll.u32 %v5293_v7, 16  ;;  %v1879_v18 = vrot.slane %v3866_v29, 1  ;;  %v1880_v56 = vrot.slane %v4390_v52, 1  ;;  %v1409_v28 = vld [vmem:[#allocation2 + $0x78] sm:$0xf] }
  0xd2   : > { %2791 = vrot.lane.b32.xlu1 %v2610_v5, %s4678_s23  ;;  %v1448_v13 = vld [vmem:[#allocation2 + $0x78] sm:$0xe]  ;;  %v515_v0 = vor.u32 %v513_v54, %v512_v24  ;;  %v516_v45 = vrot.slane %v512_v24, 4  ;;  %v5308_v4 = vcombine.low %v2413_v33, %v5296_v48  ;;  %v1689_v35 = vrot.slane %v1687_v62, 1  ;;  %v327_v62 = vld [vmem:[%s4861_s29 + $0x5c] sm:$0xf] }
  0xd3   : > { %v1684_v47 = vrot.slane %v1682_v60, 1  ;;  %v520_v42 = vrot.slane %v518_v23, 7  ;;  %v521_v2 = vshll.u32 %v325_v43, 16  ;;  %v1881_v57 = vsel %vm1242_vm2, %v1879_v18, %v1880_v56  ;;  %v4393_v53 = vld [vmem:[#allocation2 + $0x80] ss:$0 sps:$4 sm:$0x11]  }
  0xd4   : > { %6301 = vst [vmem:[#allocation16_spill] sm:$0xff] %v5308_v4  ;;  %v1410_v15 = vld [vmem:[#allocation2 + $0x7c] sm:$0xf]  ;;  %v5312_v59 = vsel %vm969_vm3, %v2617_v14, %v2621_v25  ;;  %v736_v5 = vsel %vm4941_vm8, %v515_v0, %v735_v22  ;;  %v527_v54 = vshrl.u32 %v326_v3, 16  ;;  %v739_v23 = vld [vmem:[#allocation2 + $0x8c] sm:$0x1]  ;;  %v3943_v25 = vcombine.low %v5304_v36, %v5296_v48 }
  0xd5   : > { %v1685_v52 = vor.u32 %v1684_v47, %v1680_v1  ;;  %v5316_v29 = vcombine.low %v1409_v28, %v1410_v15  ;;  %v3867_v33 = vcombine.low %v1448_v13, %v1410_v15  ;;  %v523_v24 = vor.u32 %v521_v2, %v520_v42  ;;  %737 = vst [vmem:[#allocation2 + $0x84] sm:$0xf] %v736_v5  ;;  %v4406_v28 = vld [vmem:[#allocation2 + $0x44] ss:$0 sps:$4 sm:$0x11]  }
  0xd6   : > { %1919 = vrot.lane.b32.xlu1 %v1881_v57, %s4677_s21  ;;  %v1699_v43 = vshll.u32 %v4393_v53, 16  ;;  %v525_v60 = vrot.slane %v520_v42, 4  ;;  %v529_v18 = vrot.slane %v527_v54, 7  ;;  %v2629_v56 = vor.u32 %v2628_v61, %v2624_v16  ;;  %v742_v2 = vld [vmem:[#allocation2 + $0x90] sm:$0xf] }
  0xd7   : > { %v1690_v14 = vsel %vm969_vm3, %v1685_v52, %v1689_v35  ;;  %v1692_v22 = vshrl.u32 %v5316_v29, 16  ;;  %v1694_v1 = vshll.u32 %v5316_v29, 16  ;;  %v1883_v13 = vrot.slane %v4393_v53, 1  ;;  %v2415_v16 = vld [vmem:[#allocation2 + $0x48] sm:$0xf] }
  0xd8   : > { %1791 = vrot.lane.b32.xlu0 %v1690_v14, %s4678_s23  ;;  %v524_v0 = vsel %vm4934_vm7, %v516_v45, %v523_v24  ;;  %v740_v47 = vsel %vm4948_vm9, %v525_v60, %v739_v23  ;;  %v530_v42 = vshll.u32 %v326_v3, 16  ;;  %v1701_v36 = vrot.slane %v1699_v43, 1  ;;  %v746_v53 = vld [vmem:[#allocation2 + $0x98] sm:$0x1]  ;;  %v5336_v5 = vld [vmem:[#allocation2 + $0x4c] sm:$0xf] }
  0xd9   : > { %v1696_v48 = vrot.slane %v1694_v1, 1  ;;  %v1882_v35 = vrot.slane %v3867_v33, 1  ;;  %738 = vst.msk [vmem:[#allocation2 + $0x88] sm:$0xf] %vm248_vm0, %v524_v0  ;;  %741 = vst [vmem:[#allocation2 + $0x8c] sm:$0x1] %v740_v47  ;;  %v5354_v47 = vcombine.low %v2415_v16, %v5336_v5 }
  0xda   : > { %v535_v57 = vshrl.u32 %v327_v62, 16  ;;  %2919 = vrot.lane.b32.xlu1 %v5283_v55, %s4677_s21  ;;  %v532_v61 = vor.u32 %v530_v42, %v529_v18  ;;  %v533_v15 = vrot.slane %v529_v18, 4  ;;  %v538_v45 = vshll.u32 %v327_v62, 16  ;;  %v5340_v23 = vld [vmem:[#allocation2 + $0x50] ss:$0 sps:$4 sm:$0x11]  }
  0xdb   : > { %v2877_v3 = vrot.slane %v3942_v9, 1  ;;  %v1697_v54 = vor.u32 %v1696_v48, %v1692_v22  ;;  %v2878_v33 = vrot.slane %v5253_v17, 1  ;;  %v2638_v24 = vshll.u32 %v5308_v4, 16  ;;  %v328_v18 = vld [vmem:[%s4861_s29 + $0x60] sm:$0xf]  ;;  %6302 = vst [vmem:[#allocation17_spill] sm:$0xff] %v5354_v47 }
  0xdc   : > { %v537_v52 = vrot.slane %v535_v57, 7  ;;  %v743_v55 = vsel %vm4941_vm8, %v532_v61, %v742_v2  ;;  %v2636_v43 = vshrl.u32 %v5308_v4, 16  ;;  %v2643_v60 = vshll.u32 %v4406_v28, 16  ;;  %v1411_v1 = vld [vmem:[#allocation2 + $0x84] sm:$0xf] }
  0xdd   : > { %v2880_v62 = vrot.slane %v3943_v25, 1  ;;  %v1702_v63 = vsel %vm969_vm3, %v1697_v54, %v1701_v36  ;;  %744 = vst [vmem:[#allocation2 + $0x90] sm:$0xf] %v743_v55  ;;  %v2640_v14 = vrot.slane %v2638_v24, 1  ;;  %v1884_v17 = vsel %vm1242_vm2, %v1882_v35, %v1883_v13  ;;  %v1449_v25 = vld [vmem:[#allocation2 + $0x84] sm:$0xe] }
  0xde   : > { %v540_v41 = vor.u32 %v538_v45, %v537_v52  ;;  %v542_v9 = vrot.slane %v537_v52, 4  ;;  %1793 = vrot.lane.b32.xlu0 %v1702_v63, %s4678_s23  ;;  %2921 = vrot.lane.b32.xlu1 %v5289_v10, %s4677_s21  ;;  %v2634_v22 = vsel %vm969_vm3, %v2629_v56, %v5299_v20  ;;  %v2881_v0 = vrot.slane %v4406_v28, 1  ;;  %v329_v10 = vld [vmem:[%s4861_s29 + $0x64] sm:$0xf]  ;;  %v5364_v36 = vld [vmem:[#allocation2 + $0x48] sm:$0xe] }
  0xdf   : > { %v5361_v48 = vsel %vm1242_vm2, %v2877_v3, %v2878_v33  ;;  %v544_v13 = vshrl.u32 %v328_v18, 16  ;;  %v5367_v56 = vor.u32 %v2640_v14, %v2636_v43  ;;  %v5369_v28 = vrot.slane %v2643_v60, 1  ;;  %v749_v3 = vld [vmem:[#allocation2 + $0x9c] sm:$0xf]  ;;  %v330_v24 = vld [vmem:[%s4861_s29 + $0x68] sm:$0xf] }
  0xe0   : > { %v541_v42 = vsel %vm4934_vm7, %v533_v15, %v540_v41  ;;  %v747_v2 = vsel %vm4948_vm9, %v542_v9, %v746_v53  ;;  %v1412_v20 = vld [vmem:[#allocation2 + $0x88] sm:$0xf]  ;;  %v5372_v35 = vsel %vm1242_vm2, %v2880_v62, %v2881_v0  ;;  %v2655_v57 = vshll.u32 %v5340_v23, 16  ;;  %v4401_v61 = vld [vmem:[#allocation2 + $0x8c] ss:$0 sps:$4 sm:$0x11]  }
  0xe1   : > { %745 = vst.msk [vmem:[#allocation2 + $0x94] sm:$0xf] %vm248_vm0, %v541_v42  ;;  %748 = vst [vmem:[#allocation2 + $0x98] sm:$0x1] %v747_v2  ;;  %v5375_v16 = vcombine.low %v1411_v1, %v1412_v20  ;;  %v3868_v15 = vcombine.low %v1449_v25, %v1412_v20  ;;  %v2648_v45 = vshrl.u32 %v5354_v47, 16  ;;  %v2650_v53 = vshll.u32 %v5354_v47, 16 }
  0xe2   : > { %2793 = vrot.lane.b32.xlu0 %v5312_v59, %s4678_s23  ;;  %2795 = vrot.lane.b32.xlu1 %v2634_v22, %s4678_s23  ;;  %v546_v54 = vrot.slane %v544_v13, 7  ;;  %v547_v52 = vshll.u32 %v328_v18, 16  ;;  %v552_v33 = vshrl.u32 %v329_v10, 16  ;;  %v3944_v55 = vcombine.low %v5364_v36, %v5336_v5  ;;  %v331_v41 = vld [vmem:[%s4861_s29 + $0x6c] sm:$0xf] }
  0xe3   : > { %6303 = vst [vmem:[#allocation18_spill] sm:$0xff] %v5375_v16  ;;  %v1704_v43 = vshrl.u32 %v5375_v16, 16  ;;  %v1706_v60 = vshll.u32 %v5375_v16, 16  ;;  %v1711_v62 = vshll.u32 %v4401_v61, 16  ;;  %v1885_v63 = vrot.slane %v3868_v15, 1 }
  0xe4   : > { %v1886_v9 = vrot.slane %v4401_v61, 1  ;;  %v1413_v14 = vld [vmem:[#allocation2 + $0x90] sm:$0xf]  ;;  %v5388_v1 = vrot.slane %v2655_v57, 1  ;;  %v549_v59 = vor.u32 %v547_v52, %v546_v54  ;;  %v550_v22 = vrot.slane %v546_v54, 4 }
  0xe5   : > { %v1708_v25 = vrot.slane %v1706_v60, 1  ;;  %v1713_v18 = vrot.slane %v1711_v62, 1  ;;  %v1450_v0 = vld [vmem:[#allocation2 + $0x90] sm:$0xe]  ;;  %v554_v42 = vrot.slane %v552_v33, 7  ;;  %v555_v2 = vshll.u32 %v329_v10, 16 }
  0xe6   : > { %1921 = vrot.lane.b32.xlu0 %v1884_v17, %s4677_s21  ;;  %v1887_v5 = vsel %vm1242_vm2, %v1885_v63, %v1886_v9  ;;  %v2652_v13 = vrot.slane %v2650_v53, 1  ;;  %v750_v36 = vsel %vm4941_vm8, %v549_v59, %v749_v3  ;;  %v753_v20 = vld [vmem:[#allocation2 + $0xa4] sm:$0x1]  ;;  %v561_v61 = vshrl.u32 %v330_v24, 16  ;;  %v756_v53 = vld [vmem:[#allocation2 + $0xa8] sm:$0xf] }
  0xe7   : > { %v1709_v15 = vor.u32 %v1708_v25, %v1704_v43  ;;  %1923 = vrot.lane.b32.xlu1 %v1887_v5, %s4677_s21  ;;  %v557_v54 = vor.u32 %v555_v2, %v554_v42  ;;  %v559_v52 = vrot.slane %v554_v42, 4  ;;  %751 = vst [vmem:[#allocation2 + $0x9c] sm:$0xf] %v750_v36  ;;  %v564_v60 = vshll.u32 %v330_v24, 16  ;;  %v2417_v25 = vld [vmem:[#allocation2 + $0x54] sm:$0xf] }
  0xe8   : > { %v1414_v57 = vld [vmem:[#allocation2 + $0x94] sm:$0xf]  ;;  %v4404_v10 = vld [vmem:[#allocation2 + $0x98] ss:$0 sps:$4 sm:$0x11]   ;;  %v563_v62 = vrot.slane %v561_v61, 7  ;;  %v2653_v2 = vor.u32 %v2652_v13, %v2648_v45 }
  0xe9   : > { %v5395_v33 = vcombine.low %v1413_v14, %v1414_v57  ;;  %v3869_v17 = vcombine.low %v1450_v0, %v1414_v57  ;;  %v569_v63 = vshrl.u32 %v331_v41, 16  ;;  %v1714_v9 = vsel %vm969_vm3, %v1709_v15, %v1713_v18  ;;  %v2418_v42 = vld [vmem:[#allocation2 + $0x58] sm:$0xf]  ;;  %v760_v18 = vld [vmem:[#allocation2 + $0xb0] sm:$0x1] }
  0xea   : > { %v558_v3 = vsel %vm4934_vm7, %v550_v22, %v557_v54  ;;  %v754_v43 = vsel %vm4948_vm9, %v559_v52, %v753_v20  ;;  %v572_v59 = vshll.u32 %v331_v41, 16  ;;  %1795 = vrot.lane.b32.xlu0 %v1714_v9, %s4678_s23  ;;  %v1723_v0 = vshll.u32 %v4404_v10, 16  ;;  %v5408_v20 = vld [vmem:[#allocation2 + $0x5c] ss:$0 sps:$4 sm:$0x11]  }
  0xeb   : > { %6304 = vst [vmem:[#allocation19_spill] sm:$0xff] %v5395_v33  ;;  %v1716_v24 = vshrl.u32 %v5395_v33, 16  ;;  %v1718_v14 = vshll.u32 %v5395_v33, 16  ;;  %752 = vst.msk [vmem:[#allocation2 + $0xa0] sm:$0xf] %vm248_vm0, %v558_v3  ;;  %2923 = vrot.lane.b32.xlu1 %v5361_v48, %s4677_s21  ;;  %v1888_v22 = vrot.slane %v3869_v17, 1  ;;  %v566_v5 = vor.u32 %v564_v60, %v563_v62 }
  0xec   : > { %755 = vst [vmem:[#allocation2 + $0xa4] sm:$0x1] %v754_v43  ;;  %v567_v41 = vrot.slane %v563_v62, 4  ;;  %v571_v36 = vrot.slane %v569_v63, 7  ;;  %v1725_v15 = vrot.slane %v1723_v0, 1  ;;  %v1889_v57 = vrot.slane %v4404_v10, 1 }
  0xed   : > { %v1720_v61 = vrot.slane %v1718_v14, 1  ;;  %v2883_v54 = vrot.slane %v3944_v55, 1  ;;  %v2460_v52 = vld [vmem:[#allocation2 + $0x54] sm:$0xe]  ;;  %v757_v9 = vsel %vm4941_vm8, %v566_v5, %v756_v53  ;;  %v2884_v3 = vrot.slane %v5340_v23, 1 }
  0xee   : > { %v574_v45 = vor.u32 %v572_v59, %v571_v36  ;;  %v576_v13 = vrot.slane %v571_v36, 4  ;;  %v2419_v48 = vld [vmem:[#allocation2 + $0x60] sm:$0xf]  ;;  %v1415_v60 = vld [vmem:[#allocation2 + $0x9c] sm:$0xf]  ;;  %v5413_v62 = vcombine.low %v2417_v25, %v2418_v42  ;;  %v2667_v23 = vshll.u32 %v5408_v20, 16 }
  0xef   : > { %v1721_v17 = vor.u32 %v1720_v61, %v1716_v24  ;;  %758 = vst [vmem:[#allocation2 + $0xa8] sm:$0xf] %v757_v9  ;;  %v5415_v63 = vld [vmem:[#allocation2 + $0x64] sm:$0xf]  ;;  %v332_v43 = vld [vmem:[%s4861_s29 + $0x70] sm:$0xf]  ;;  %2925 = vrot.lane.b32.xlu1 %v5372_v35, %s4677_s21  ;;  %v3945_v59 = vcombine.low %v2460_v52, %v2418_v42  ;;  %v2646_v25 = vsel %vm969_vm3, %v5367_v56, %v5369_v28  ;;  %v1163_v52 = vpop.permute.xlu0 %1162 }
  0xf0   : > { %6305 = vst [vmem:[#allocation20_spill] sm:$0xff] %v5413_v62  ;;  %v1451_v55 = vld [vmem:[#allocation2 + $0x9c] sm:$0xe]  ;;  %v575_v10 = vsel %vm4934_vm7, %v567_v41, %v574_v45  ;;  %v761_v53 = vsel %vm4948_vm9, %v576_v13, %v760_v18  ;;  %v2658_v35 = vsel %vm969_vm3, %v2653_v2, %v5388_v1  ;;  %v5432_v14 = vld [vmem:[#allocation2 + $0x68] ss:$0 sps:$4 sm:$0x11]   ;;  %v1890_v0 = vsel %vm1242_vm2, %v1888_v22, %v1889_v57  ;;  %v5452_v45 = vpop.permute.xlu1 %1291 }
  0xf1   : > { %v1726_v24 = vsel %vm969_vm3, %v1721_v17, %v1725_v15  ;;  %759 = vst.msk [vmem:[#allocation2 + $0xac] sm:$0xf] %vm248_vm0, %v575_v10  ;;  %762 = vst [vmem:[#allocation2 + $0xb0] sm:$0x1] %v761_v53  ;;  %v5437_v18 = vsel %vm1242_vm2, %v2883_v54, %v2884_v3  ;;  %v2662_v5 = vshll.u32 %v5413_v62, 16  ;;  %v5441_v56 = vcombine.low %v2419_v48, %v5415_v63 }
  0xf2   : > { %1797 = vrot.lane.b32.xlu0 %v1726_v24, %s4678_s23  ;;  %v1416_v42 = vld [vmem:[#allocation2 + $0xa0] sm:$0xf]  ;;  %v2887_v41 = vrot.slane %v5408_v20, 1  ;;  %v333_v36 = vld [vmem:[%s4861_s29 + $0x74] sm:$0xf]  ;;  %v578_v61 = vshrl.u32 %v332_v43, 16 }
  0xf3   : > { %6306 = vst [vmem:[#allocation21_spill] sm:$0xff] %v5441_v56  ;;  %v5443_v28 = vcombine.low %v1415_v60, %v1416_v42  ;;  %v4412_v1 = vld [vmem:[#allocation2 + $0xa4] ss:$0 sps:$4 sm:$0x11]   ;;  %v3870_v2 = vcombine.low %v1451_v55, %v1416_v42  ;;  %2799 = vrot.lane.b32.xlu1 %v2658_v35, %s4678_s23  ;;  %v2660_v22 = vshrl.u32 %v5413_v62, 16  ;;  %v5449_v15 = vrot.slane %v2667_v23, 1 }
  0xf4   : > { %v2886_v57 = vrot.slane %v3945_v59, 1  ;;  %v2674_v54 = vshll.u32 %v5441_v56, 16  ;;  %v5454_v13 = vld [vmem:[#allocation2 + $0x60] sm:$0xe]  ;;  %v1735_v3 = vshll.u32 %v4412_v1, 16  ;;  %v1892_v17 = vrot.slane %v4412_v1, 1 }
  0xf5   : > { %6307 = vst [vmem:[#allocation22_spill] sm:$0xff] %v5443_v28  ;;  %v1728_v9 = vshrl.u32 %v5443_v28, 16  ;;  %v1730_v20 = vshll.u32 %v5443_v28, 16  ;;  %v1891_v48 = vrot.slane %v3870_v2, 1  ;;  %v2664_v55 = vrot.slane %v2662_v5, 1 }
  0xf6   : > { %2797 = vrot.lane.b32.xlu0 %v2646_v25, %s4678_s23  ;;  %v1417_v60 = vld [vmem:[#allocation2 + $0xa8] sm:$0xf]  ;;  %v2672_v10 = vshrl.u32 %v5441_v56, 16  ;;  %v2679_v53 = vshll.u32 %v5432_v14, 16  ;;  %v1737_v59 = vrot.slane %v1735_v3, 1  ;;  %v580_v24 = vrot.slane %v578_v61, 7 }
  0xf7   : > { %v1732_v23 = vrot.slane %v1730_v20, 1  ;;  %v581_v35 = vshll.u32 %v332_v43, 16  ;;  %v1893_v42 = vsel %vm1242_vm2, %v1891_v48, %v1892_v17  ;;  %v2676_v28 = vrot.slane %v2674_v54, 1  ;;  %v763_v47 = vld [vmem:[#allocation2 + $0xb4] sm:$0xf] }
  0xf8   : > { %v5462_v62 = vld [vmem:[#allocation2 + $0xac] sm:$0xf]  ;;  %v586_v2 = vshrl.u32 %v333_v36, 16  ;;  %1927 = vrot.lane.b32.xlu1 %v1893_v42, %s4677_s21  ;;  %v5470_v20 = vld [vmem:[#allocation2 + $0xb0] ss:$0 sps:$4 sm:$0x11]   ;;  %v2888_v43 = vsel %vm1242_vm2, %v2886_v57, %v2887_v41  ;;  %v6308_v19 = vcombine.low %v5454_v13, %v5415_v63 }
  0xf9   : > { %v1733_v5 = vor.u32 %v1732_v23, %v1728_v9  ;;  %v5468_v1 = vcombine.low %v1417_v60, %v5462_v62  ;;  %v583_v61 = vor.u32 %v581_v35, %v580_v24  ;;  %v767_v3 = vld [vmem:[#allocation2 + $0xbc] sm:$0x1]  ;;  %v2681_v54 = vrot.slane %v2679_v53, 1  ;;  %v334_v25 = vld [vmem:[%s4861_s29 + $0x78] sm:$0xf]  ;;  %v5475_v9 = vpop.permute.xlu1 %1903 }
  0xfa   : > { %1925 = vrot.lane.b32.xlu0 %v1890_v0, %s4677_s21  ;;  %v584_v48 = vrot.slane %v580_v24, 4  ;;  %v588_v17 = vrot.slane %v586_v2, 7  ;;  %v589_v56 = vshll.u32 %v333_v36, 16  ;;  %v5477_v23 = vpop.permute.xlu0 %1293  ;;  %v1747_v57 = vshll.u32 %v5470_v20, 16  ;;  %v1452_v35 = vld [vmem:[#allocation2 + $0xa8] sm:$0xe] }
  0xfb   : > { %v1738_v60 = vsel %vm969_vm3, %v1733_v5, %v1737_v59  ;;  %v1740_v42 = vshrl.u32 %v5468_v1, 16  ;;  %v1742_v41 = vshll.u32 %v5468_v1, 16  ;;  %v2665_v0 = vor.u32 %v2664_v55, %v2660_v22  ;;  %v335_v2 = vld [vmem:[%s4861_s29 + $0x7c] sm:$0xf]  ;;  %v2421_v36 = vld [vmem:[#allocation2 + $0x6c] sm:$0xf] }
  0xfc   : > { %v2677_v53 = vor.u32 %v2676_v28, %v2672_v10  ;;  %v591_v33 = vor.u32 %v589_v56, %v588_v17  ;;  %v593_v24 = vrot.slane %v588_v17, 4  ;;  %v1749_v16 = vrot.slane %v1747_v57, 1  ;;  %2927 = vrot.lane.b32.xlu1 %v5437_v18, %s4677_s21  ;;  %v5488_v5 = vld [vmem:[#allocation2 + $0x70] sm:$0xf] }
  0xfd   : > { %v1744_v4 = vrot.slane %v1742_v41, 1  ;;  %v764_v59 = vsel %vm4941_vm8, %v583_v61, %v763_v47  ;;  %v3871_v22 = vcombine.low %v1452_v35, %v5462_v62  ;;  %v1325_v18 = vsel %vm1323_vm10, %v4928_v6, %v1163_v52  ;;  %v770_v52 = vld [vmem:[#allocation2 + $0xc0] sm:$0xf]  ;;  %v774_v35 = vld [vmem:[#allocation2 + $0xc8] sm:$0x1] }
  0xfe   : > { %1799 = vrot.lane.b32.xlu0 %v1738_v60, %s4678_s23  ;;  %v592_v56 = vsel %vm4934_vm7, %v584_v48, %v591_v33  ;;  %765 = vst [vmem:[#allocation2 + $0xb4] sm:$0xf] %v764_v59  ;;  %v768_v28 = vsel %vm4948_vm9, %v593_v24, %v767_v3  ;;  %v595_v47 = vshrl.u32 %v334_v25, 16  ;;  %v598_v10 = vshll.u32 %v334_v25, 16  ;;  %v5502_v33 = vpop.permute.xlu1 %1905  ;;  %v5518_v59 = vld [vmem:[#allocation2 + $0x7c] sm:$0xf] }
  0xff   : > { %v1745_v55 = vor.u32 %v1744_v4, %v1740_v42  ;;  %766 = vst.msk [vmem:[#allocation2 + $0xb8] sm:$0xf] %vm248_vm0, %v592_v56  ;;  %769 = vst [vmem:[#allocation2 + $0xbc] sm:$0x1] %v768_v28  ;;  %v603_v61 = vshrl.u32 %v335_v2, 16  ;;  %v606_v17 = vshll.u32 %v335_v2, 16  ;;  %v5500_v62 = vcombine.low %v2421_v36, %v5488_v5 }
 0x100   : > { %v5504_v48 = vpop.permute.xlu0 %1297  ;;  %2929 = vrot.lane.b32.xlu1 %v2888_v43, %s4677_s21  ;;  %v597_v6 = vrot.slane %v595_v47, 7  ;;  %v1358_v25 = vsel %vm1356_vm11, %v1325_v18, %v5452_v45  ;;  %v2670_v60 = vsel %vm969_vm3, %v2665_v0, %v5449_v15  ;;  %v1894_v42 = vrot.slane %v3871_v22, 1  ;;  %v2423_v45 = vld [vmem:[#allocation2 + $0x78] sm:$0xf]  ;;  %v2462_v18 = vld [vmem:[#allocation2 + $0x6c] sm:$0xe] }
 0x101   : > { %v1750_v3 = vsel %vm969_vm3, %v1745_v55, %v1749_v16  ;;  %v605_v4 = vrot.slane %v603_v61, 7  ;;  %v1895_v41 = vrot.slane %v5470_v20, 1  ;;  %v2682_v57 = vsel %vm969_vm3, %v2677_v53, %v2681_v54  ;;  %4133 = vmatprep.mubr.msk.bf16.mxu0 %vm2007_vm12, %v1358_v25  ;;  %v5516_v16 = vld [vmem:[#allocation2 + $0x74] ss:$0 sps:$4 sm:$0x11]  }
 0x102   : > { %1801 = vrot.lane.b32.xlu0 %v1750_v3, %s4678_s23  ;;  %v600_v43 = vor.u32 %v598_v10, %v597_v6  ;;  %v601_v24 = vrot.slane %v597_v6, 4  ;;  %v2686_v56 = vshll.u32 %v5500_v62, 16  ;;  %v5521_v0 = vld [vmem:[#allocation2 + $0x80] ss:$0 sps:$4 sm:$0x11]   ;;  %v2889_v10 = vrot.slane %v6308_v19, 1  ;;  %v5536_v61 = vpop.permute.xlu1 %1295 }
 0x103   : > { %v608_v2 = vor.u32 %v606_v17, %v605_v4  ;;  %v610_v36 = vrot.slane %v605_v4, 4  ;;  %v1896_v55 = vsel %vm1242_vm2, %v1894_v42, %v1895_v41  ;;  %v5539_v26 = vcombine.low %v2423_v45, %v5518_v59  ;;  %v5549_v42 = vld [vmem:[#allocation2 + $0x64] sm:$0xf] }
 0x104   : > { %v1776_v15 = vpop.permute.xlu0 %1775  ;;  %2803 = vrot.lane.b32.xlu1 %v2682_v57, %s4678_s23  ;;  %v771_v22 = vsel %vm4941_vm8, %v600_v43, %v770_v52  ;;  %v2890_v4 = vrot.slane %v5432_v14, 1  ;;  %v2684_v52 = vshrl.u32 %v5500_v62, 16  ;;  %v2688_v25 = vrot.slane %v2686_v56, 1  ;;  %v4435_v14 = vld [vmem:[#allocation6 + $0x8] sm:$0x3f]  }
 0x105   : > { %v1419_v20 = vld [vmem:[#allocation2 + $0xb4] sm:$0xf]  ;;  %v609_v53 = vsel %vm4934_vm7, %v601_v24, %v608_v2  ;;  %v775_v28 = vsel %vm4948_vm9, %v610_v36, %v774_v35  ;;  %772 = vst [vmem:[#allocation2 + $0xc0] sm:$0xf] %v771_v22  ;;  %6309 = vst [vmem:[#allocation23_spill] sm:$0xff] %v5539_v26  ;;  %v1936_v63 = vsel %vm1323_vm10, %v4984_v21, %v1776_v15  ;;  %v2698_v13 = vshll.u32 %v5539_v26, 16 }
 0x106   : > { %v1453_v54 = vld [vmem:[#allocation2 + $0xb4] sm:$0xe]  ;;  %2801 = vrot.lane.b32.xlu0 %v2670_v60, %s4678_s23  ;;  %v1420_v47 = vld [vmem:[#allocation2 + $0xb8] sm:$0xf]  ;;  %773 = vst.msk [vmem:[#allocation2 + $0xc4] sm:$0xf] %vm248_vm0, %v609_v53  ;;  %v3947_v36 = vcombine.low %v2462_v18, %v5488_v5 }
 0x107   : > { %776 = vst [vmem:[#allocation2 + $0xc8] sm:$0x1] %v775_v28  ;;  %v5541_v17 = vcombine.low %v1419_v20, %v1420_v47  ;;  %v4423_v3 = vld [vmem:[#allocation2 + $0xbc] ss:$0 sps:$4 sm:$0x11]   ;;  %v3872_v6 = vcombine.low %v1453_v54, %v1420_v47  ;;  %v2691_v60 = vshll.u32 %v5516_v16, 16  ;;  %v5560_v54 = vcombine.low %v793_v34, %v5549_v42 }
 0x108   : > { %v1778_v41 = vpop.permute.xlu0 %1777  ;;  %v1759_v43 = vshll.u32 %v4423_v3, 16  ;;  %v1898_v2 = vrot.slane %v4423_v3, 1  ;;  %v2703_v45 = vshll.u32 %v5521_v0, 16  ;;  %v5556_v21 = vld [vmem:[#allocation6] sm:$0x3f]   ;;  %v2696_v20 = vshrl.u32 %v5539_v26, 16 }
 0x109   : > { %v1752_v57 = vshrl.u32 %v5541_v17, 16  ;;  %v1754_v35 = vshll.u32 %v5541_v17, 16  ;;  %v1897_v24 = vrot.slane %v3872_v6, 1  ;;  %v2700_v22 = vrot.slane %v2698_v13, 1  ;;  %v833_v5 = vld [vmem:[#allocation2 + $0x60] sm:$0xe] }
 0x10a   : > { %1929 = vrot.lane.b32.xlu0 %v1896_v55, %s4677_s21  ;;  %v1761_v15 = vrot.slane %v1759_v43, 1  ;;  %vm2040_vm13 = vcmask 1045504   ;;  %v1968_v28 = vsel %vm1356_vm11, %v1936_v63, %v5475_v9  ;;  %v5565_v55 = vpop.permute.xlu1 %1907  ;;  %v2891_v13 = vsel %vm1242_vm2, %v2889_v10, %v2890_v4  ;;  %v5577_v63 = vld [vmem:[#allocation2 + $0x68] ss:$0 sps:$4 sm:$0x11]  }
 0x10b   : > { %v1756_v56 = vrot.slane %v1754_v35, 1  ;;  %v1899_v53 = vsel %vm1242_vm2, %v1897_v24, %v1898_v2  ;;  %4265 = vmatprep.subr.msk.bf16.mxu1 %vm2040_vm13, %v4435_v14  ;;  %v2892_v35 = vrot.slane %v3947_v36, 1  ;;  %v2893_v9 = vrot.slane %v5516_v16, 1  ;;  %4099 = vmatprep.mubr.msk.bf16.mxu1 %vm2007_vm12, %v1968_v28  ;;  %v2463_v26 = vld [vmem:[#allocation2 + $0x78] sm:$0xe] }
 0x10c   : > { %1931 = vrot.lane.b32.xlu1 %v1899_v53, %s4677_s21  ;;  %v1421_v47 = vld [vmem:[#allocation2 + $0xc0] sm:$0xf]  ;;  %v5569_v3 = vpop.permute.xlu0 %1166  ;;  %4266 = vmatprep.subr.msk.bf16.mxu0 %vm2040_vm13, %v5556_v21  ;;  %v2689_v24 = vor.u32 %v2688_v25, %v2684_v52  ;;  %v2693_v2 = vrot.slane %v2691_v60, 1  ;;  %v5584_v53 = vld [vmem:[#allocation2 + $0x70] sm:$0xf]  ;;  %v1069_v28 = vshll.u32 %v5560_v54, 16  ;;  %v2701_v52 = vor.u32 %v2700_v22, %v2696_v20 }
 0x10d   : > { %v1757_v18 = vor.u32 %v1756_v56, %v1752_v57  ;;  %v1422_v19 = vld [vmem:[#allocation2 + $0xc4] sm:$0xf]  ;;  %v795_v57 = vld [vmem:[#allocation2 + $0x6c] sm:$0xf]  ;;  %v2042_v56 = vsel %vm2040_vm13, %v4435_v14, 0  ;;  %v2705_v25 = vrot.slane %v2703_v45, 1  ;;  %v1938_v60 = vsel %vm1323_vm10, %v5004_v58, %v1778_v41 }
 0x10e   : > { %v5571_v34 = vcombine.low %v1421_v47, %v1422_v19  ;;  %v5573_v6 = vld [vmem:[#allocation2 + $0xc8] ss:$0 sps:$4 sm:$0x11]   ;;  %v1454_v36 = vld [vmem:[#allocation2 + $0xc0] sm:$0xe]  ;;  %4098 = vmatpush3.bf16.msra.mxu1 %v2042_v56  ;;  %v3818_v14 = vcombine.low %v833_v5, %v5549_v42  ;;  %v2894_v47 = vsel %vm1242_vm2, %v2892_v35, %v2893_v9  ;;  %v5602_v45 = vcombine.low %v795_v57, %v5584_v53 }
 0x10f   : > { %v1762_v43 = vsel %vm969_vm3, %v1757_v18, %v1761_v15  ;;  %v1771_v4 = vshll.u32 %v5573_v6, 16  ;;  %4267 = vmatprep.subr.msk.bf16.mxu1 %vm2040_vm13, %v5556_v21  ;;  %v3873_v56 = vcombine.low %v1454_v36, %v1422_v19  ;;  %v5604_v20 = vld [vmem:[#allocation2 + $0x74] ss:$0 sps:$4 sm:$0x11]   ;;  %v1071_v41 = vrot.slane %v1069_v28, 1 }
 0x110   : > { %1803 = vrot.lane.b32.xlu0 %v1762_v43, %s4678_s23  ;;  %v1764_v16 = vshrl.u32 %v5571_v34, 16  ;;  %v1766_v10 = vshll.u32 %v5571_v34, 16  ;;  %2931 = vrot.lane.b32.xlu1 %v2891_v13, %s4677_s21  ;;  %v1067_v13 = vshrl.u32 %v5560_v54, 16  ;;  %v5606_v58 = vpop.permute.xlu0 %1168  ;;  %v1074_v22 = vshll.u32 %v5577_v63, 16  ;;  %v2425_v35 = vld [vmem:[#allocation2 + $0x84] sm:$0xf] }
 0x111   : > { %v1773_v18 = vrot.slane %v1771_v4, 1  ;;  %v5598_v43 = vpop.permute.xlu1 %1909  ;;  %v1970_v5 = vsel %vm1356_vm11, %v1938_v60, %v5502_v33  ;;  %v2694_v9 = vsel %vm969_vm3, %v2689_v24, %v2693_v2  ;;  %v2706_v19 = vsel %vm969_vm3, %v2701_v52, %v2705_v25  ;;  %v2464_v60 = vld [vmem:[#allocation2 + $0x84] sm:$0xe] }
 0x112   : > { %v1768_v15 = vrot.slane %v1766_v10, 1  ;;  %v1267_v57 = vrot.slane %v3818_v14, 1  ;;  %4100 = vmatmul.mubr.msk.bf16.vlgmr.msra.gmra.mrb[0].mxu1 %vm2007_vm12, %v1970_v5  ;;  %v2426_v10 = vld [vmem:[#allocation2 + $0x88] sm:$0xf]  ;;  %v3948_v36 = vcombine.low %v2463_v26, %v5518_v59  ;;  %v2243_v33 = vsel %vm2040_vm13, %v5556_v21, 0 }
 0x113   : > { %v1900_v24 = vrot.slane %v3873_v56, 1  ;;  %v1901_v2 = vrot.slane %v5573_v6, 1  ;;  %v1081_v52 = vshll.u32 %v5602_v45, 16  ;;  %4132 = vmatpush3.bf16.msra.mxu0 %v2243_v33  ;;  %v1072_v14 = vor.u32 %v1071_v41, %v1067_v13  ;;  %v2427_v21 = vld [vmem:[#allocation2 + $0x90] sm:$0xf]  ;;  %4200 = vmatpush3.bf16.msra.mxu1 %v2243_v33 }
 0x114   : > { %v1769_v42 = vor.u32 %v1768_v15, %v1764_v16  ;;  %2933 = vrot.lane.b32.xlu1 %v2894_v47, %s4677_s21  ;;  %v1268_v16 = vrot.slane %v5577_v63, 1  ;;  %v1076_v63 = vrot.slane %v1074_v22, 1  ;;  %v1329_v59 = vsel %vm1323_vm10, %v5012_v8, %v5569_v3  ;;  %v5633_v56 = vld [vmem:[#allocation2 + $0x94] sm:$0xf] }
 0x115   : > { %v1165_v28 = vpop.permute.xlu1 %1164  ;;  %v5628_v26 = vcombine.low %v2425_v35, %v2426_v10  ;;  %v1079_v6 = vshrl.u32 %v5602_v45, 16  ;;  %v1086_v15 = vshll.u32 %v5604_v20, 16  ;;  %v1782_v47 = vpop.permute.xlu0 %1781  ;;  %v2895_v13 = vrot.slane %v3948_v36, 1  ;;  %v5639_v41 = vld [vmem:[#allocation2 + $0x98] ss:$0 sps:$4 sm:$0x11]  }
 0x116   : > { %v1774_v4 = vsel %vm969_vm3, %v1769_v42, %v1773_v18  ;;  %v1327_v25 = vsel %vm1323_vm10, %v5014_v11, %v1165_v28  ;;  %v3949_v18 = vcombine.low %v2464_v60, %v2426_v10  ;;  %v1269_v11 = vsel %vm1242_vm2, %v1267_v57, %v1268_v16  ;;  %v4441_v35 = vld [vmem:[#allocation2 + $0x8c] ss:$0 sps:$4 sm:$0x11]   ;;  %v797_v57 = vld [vmem:[#allocation2 + $0x78] sm:$0xf] }
 0x117   : > { %1805 = vrot.lane.b32.xlu0 %v1774_v4, %s4678_s23  ;;  %v2896_v42 = vrot.slane %v5521_v0, 1  ;;  %v1360_v8 = vsel %vm1356_vm11, %v1327_v25, %v5477_v23  ;;  %v1902_v22 = vsel %vm1242_vm2, %v1900_v24, %v1901_v2  ;;  %v1083_v5 = vrot.slane %v1081_v52, 1  ;;  %v798_v16 = vld [vmem:[#allocation2 + $0x7c] sm:$0xf]  ;;  %v834_v60 = vld [vmem:[#allocation2 + $0x6c] sm:$0xe] }
 0x118   : > { %2807 = vrot.lane.b32.xlu1 %v2706_v19, %s4678_s23  ;;  %4134 = vmatmul.mubr.msk.bf16.vlgmr.msra.gmra.mrb[0].mxu0 %vm2007_vm12, %v1360_v8  ;;  %v1362_v0 = vsel %vm1356_vm11, %v1329_v59, %v5536_v61  ;;  %v1077_v23 = vsel %vm969_vm3, %v1072_v14, %v1076_v63  ;;  %v2710_v10 = vshll.u32 %v5628_v26, 16  ;;  %v5654_v4 = vcombine.low %v2427_v21, %v5633_v56  ;;  %v835_v63 = vld [vmem:[#allocation2 + $0x78] sm:$0xe]  ;;  %v799_v59 = vld [vmem:[#allocation2 + $0x84] sm:$0xf] }
 0x119   : > { %v1780_v3 = vpop.permute.xlu1 %1779  ;;  %4137 = vmatprep.mubr.msk.bf16.mxu0 %vm2007_vm12, %v1362_v0  ;;  %v2898_v36 = vrot.slane %v3949_v18, 1  ;;  %v2899_v33 = vrot.slane %v4441_v35, 1  ;;  %v2897_v28 = vsel %vm1242_vm2, %v2895_v13, %v2896_v42  ;;  %v1084_v52 = vor.u32 %v1083_v5, %v1079_v6  ;;  %v5674_v6 = vld [vmem:[#allocation2 + $0x88] sm:$0xf]  ;;  %v1171_v13 = vpop.permute.xlu0 %1170  ;;  %v2429_v0 = vld [vmem:[#allocation2 + $0x9c] sm:$0xf] }
 0x11a   : > { %v1940_v19 = vsel %vm1323_vm10, %v5030_v38, %v1780_v3  ;;  %v1088_v38 = vrot.slane %v1086_v15, 1  ;;  %v2720_v24 = vshrl.u32 %v5654_v4, 16  ;;  %v2722_v2 = vshll.u32 %v5654_v4, 16 }
 0x11b   : > { %2805 = vrot.lane.b32.xlu0 %v2694_v9, %s4678_s23  ;;  %v1942_v9 = vsel %vm1323_vm10, %v5065_v32, %v1782_v47  ;;  %v1972_v61 = vsel %vm1356_vm11, %v1940_v19, %v5565_v55  ;;  %v2727_v32 = vshll.u32 %v5639_v41, 16  ;;  %v1331_v25 = vsel %vm1323_vm10, %v5016_v12, %v5606_v58  ;;  %v4448_v58 = vld [vmem:[#allocation2 + $0x80] ss:$0 sps:$4 sm:$0x11]  }
 0x11c   : > { %1307 = vrot.lane.b32.xlu1 %v1269_v11, %s4677_s21  ;;  %4103 = vmatprep.mubr.msk.bf16.mxu1 %vm2007_vm12, %v1972_v61  ;;  %v5668_v14 = vcombine.low %v797_v57, %v798_v16  ;;  %v1974_v55 = vsel %vm1356_vm11, %v1942_v9, %v5598_v43  ;;  %v2708_v21 = vshrl.u32 %v5628_v26, 16  ;;  %v2712_v15 = vrot.slane %v2710_v10, 1 }
 0x11d   : > { %v2715_v18 = vshll.u32 %v4441_v35, 16  ;;  %v2724_v47 = vrot.slane %v2722_v2, 1  ;;  %4104 = vmatmul.mubr.msk.bf16.gmra.mrb[4].mxu1 %vm2007_vm12, %v1974_v55  ;;  %v2900_v12 = vsel %vm1242_vm2, %v2898_v36, %v2899_v33  ;;  %v2729_v43 = vrot.slane %v2727_v32, 1  ;;  %v2430_v36 = vld [vmem:[#allocation2 + $0xa0] sm:$0xf] }
 0x11e   : > { %v3820_v8 = vcombine.low %v835_v63, %v798_v16  ;;  %v1364_v3 = vsel %vm1356_vm11, %v1331_v25, %v5504_v48  ;;  %v3819_v5 = vcombine.low %v834_v60, %v5584_v53  ;;  %v1093_v35 = vshll.u32 %v5668_v14, 16  ;;  %v5690_v16 = vld [vmem:[#allocation2 + $0x8c] ss:$0 sps:$4 sm:$0x11]   ;;  %v2466_v53 = vld [vmem:[#allocation2 + $0x9c] sm:$0xe] }
 0x11f   : > { %1933 = vrot.lane.b32.xlu0 %v1902_v22, %s4677_s21  ;;  %v1784_v11 = vpop.permute.xlu1 %1783  ;;  %v2725_v42 = vor.u32 %v2724_v47, %v2720_v24  ;;  %v2465_v22 = vld [vmem:[#allocation2 + $0x90] sm:$0xe]  ;;  %v5684_v19 = vcombine.low %v799_v59, %v5674_v6  ;;  %v1089_v57 = vsel %vm969_vm3, %v1084_v52, %v1088_v38  ;;  %v2713_v10 = vor.u32 %v2712_v15, %v2708_v21  ;;  %v2431_v60 = vld [vmem:[#allocation2 + $0xa8] sm:$0xf] }
 0x120   : > { %2935 = vrot.lane.b32.xlu1 %v2897_v28, %s4677_s21  ;;  %4138 = vmatmul.mubr.msk.bf16.gmra.mrb[4].mxu0 %vm2007_vm12, %v1364_v3  ;;  %v2717_v9 = vrot.slane %v2715_v18, 1  ;;  %v1333_v48 = vsel %vm1323_vm10, %v5073_v44, %v1171_v13  ;;  %v1271_v33 = vrot.slane %v5604_v20, 1  ;;  %v3950_v28 = vcombine.low %v2465_v22, %v5633_v56  ;;  %v5698_v44 = vld [vmem:[#allocation2 + $0xac] sm:$0xf]  ;;  %v1173_v63 = vpop.permute.xlu0 %1172 }
 0x121   : > { %v2730_v38 = vsel %vm969_vm3, %v2725_v42, %v2729_v43  ;;  %v1098_v24 = vshll.u32 %v4448_v58, 16  ;;  %v1273_v2 = vrot.slane %v3820_v8, 1  ;;  %v1274_v32 = vrot.slane %v4448_v58, 1 }
 0x122   : > { %v1270_v52 = vrot.slane %v3819_v5, 1  ;;  %v1091_v25 = vshrl.u32 %v5668_v14, 16  ;;  %v1095_v20 = vrot.slane %v1093_v35, 1  ;;  %v1105_v55 = vshll.u32 %v5684_v19, 16 }
 0x123   : > { %1178 = vrot.lane.b32.xlu0 %v1077_v23, %s4678_s23  ;;  %v1300_v23 = vpop.permute.xlu1 %1299  ;;  %v2718_v56 = vsel %vm969_vm3, %v2713_v10, %v2717_v9  ;;  %v1944_v59 = vsel %vm1323_vm10, %v5100_v27, %v1784_v11  ;;  %v2902_v21 = vrot.slane %v5639_v41, 1  ;;  %v5707_v15 = vcombine.low %v2429_v0, %v2430_v36  ;;  %v5717_v41 = vld [vmem:[#allocation2 + $0xb0] ss:$0 sps:$4 sm:$0x11]  }
 0x124   : > { %2937 = vrot.lane.b32.xlu1 %v2900_v12, %s4677_s21  ;;  %v1366_v61 = vsel %vm1356_vm11, %v1333_v48, %v1300_v23  ;;  %v2901_v47 = vrot.slane %v3950_v28, 1  ;;  %v4454_v12 = vld [vmem:[#allocation2 + $0xa4] ss:$0 sps:$4 sm:$0x11]   ;;  %v3951_v13 = vcombine.low %v2466_v53, %v2430_v36  ;;  %v5712_v42 = vcombine.low %v2431_v60, %v5698_v44  ;;  %v801_v36 = vld [vmem:[#allocation2 + $0x90] sm:$0xf] }
 0x125   : > { %4141 = vmatprep.mubr.msk.bf16.mxu0 %vm2007_vm12, %v1366_v61  ;;  %v1100_v43 = vrot.slane %v1098_v24, 1  ;;  %v1275_v8 = vsel %vm1242_vm2, %v1273_v2, %v1274_v32  ;;  %v1110_v27 = vshll.u32 %v5690_v16, 16  ;;  %v1096_v11 = vor.u32 %v1095_v20, %v1091_v25  ;;  %v802_v53 = vld [vmem:[#allocation2 + $0x94] sm:$0xf]  ;;  %v836_v28 = vld [vmem:[#allocation2 + $0x84] sm:$0xe] }
 0x126   : > { %v1103_v3 = vshrl.u32 %v5684_v19, 16  ;;  %v1107_v22 = vrot.slane %v1105_v55, 1  ;;  %v2746_v5 = vshll.u32 %v5712_v42, 16  ;;  %v1272_v35 = vsel %vm1242_vm2, %v1270_v52, %v1271_v33  ;;  %v837_v24 = vld [vmem:[#allocation2 + $0x90] sm:$0xe] }
 0x127   : > { %1180 = vrot.lane.b32.xlu0 %v1089_v57, %s4678_s23  ;;  %v1912_v18 = vpop.permute.xlu1 %1911  ;;  %v2734_v0 = vshll.u32 %v5707_v15, 16  ;;  %v2903_v10 = vsel %vm1242_vm2, %v2901_v47, %v2902_v21  ;;  %v2904_v48 = vrot.slane %v3951_v13, 1  ;;  %v2905_v23 = vrot.slane %v4454_v12, 1  ;;  %v803_v20 = vld [vmem:[#allocation2 + $0x9c] sm:$0xf] }
 0x128   : > { %2811 = vrot.lane.b32.xlu1 %v2730_v38, %s4678_s23  ;;  %v1976_v58 = vsel %vm1356_vm11, %v1944_v59, %v1912_v18  ;;  %v2744_v60 = vshrl.u32 %v5712_v42, 16  ;;  %v2748_v38 = vrot.slane %v2746_v5, 1  ;;  %v2751_v33 = vshll.u32 %v5717_v41, 16  ;;  %v5743_v13 = vld [vmem:[#allocation6 + $0x10] sm:$0x3f]  }
 0x129   : > { %4107 = vmatprep.mubr.msk.bf16.mxu1 %vm2007_vm12, %v1976_v58  ;;  %v1101_v2 = vsel %vm969_vm3, %v1096_v11, %v1100_v43  ;;  %v1108_v32 = vor.u32 %v1107_v22, %v1103_v3  ;;  %v1112_v52 = vrot.slane %v1110_v27, 1  ;;  %v2732_v55 = vshrl.u32 %v5707_v15, 16  ;;  %v5741_v58 = vld [vmem:[#allocation2 + $0xa0] sm:$0xf]  ;;  %v2467_v3 = vld [vmem:[#allocation2 + $0xa8] sm:$0xe]  ;;  %4268 = vmatprep.subr.msk.bf16.mxu0 %vm2040_vm13, %v5743_v13 }
 0x12a   : > { %v5734_v59 = vcombine.low %v801_v36, %v802_v53  ;;  %v1335_v21 = vsel %vm1323_vm10, %v5102_v31, %v1173_v63  ;;  %v2906_v18 = vsel %vm1242_vm2, %v2904_v48, %v2905_v23  ;;  %v4460_v27 = vld [vmem:[#allocation2 + $0x98] ss:$0 sps:$4 sm:$0x11]   ;;  %v3822_v11 = vcombine.low %v837_v24, %v802_v53  ;;  %v2435_v22 = vld [vmem:[#allocation2 + $0xc0] sm:$0xf] }
 0x12b   : > { %2809 = vrot.lane.b32.xlu0 %v2718_v56, %s4678_s23  ;;  %v1914_v57 = vpop.permute.xlu1 %1913  ;;  %v1786_v9 = vpop.permute.xlu0 %1785  ;;  %v2736_v56 = vrot.slane %v2734_v0, 1  ;;  %v1113_v31 = vsel %vm969_vm3, %v1108_v32, %v1112_v52  ;;  %v3821_v63 = vcombine.low %v836_v28, %v5674_v6  ;;  %v5750_v5 = vld [vmem:[#allocation2 + $0xc4] sm:$0xf]  ;;  %v2434_v48 = vld [vmem:[#allocation2 + $0xb8] sm:$0xf]  ;;  %v3952_v36 = vcombine.low %v2467_v3, %v5698_v44 }
 0x12c   : > { %1311 = vrot.lane.b32.xlu1 %v1275_v8, %s4677_s21  ;;  %v1946_v61 = vsel %vm1323_vm10, %v5151_v49, %v1786_v9  ;;  %v2739_v49 = vshll.u32 %v4454_v12, 16  ;;  %v2749_v8 = vor.u32 %v2748_v38, %v2744_v60  ;;  %v2753_v12 = vrot.slane %v2751_v33, 1  ;;  %v2433_v9 = vld [vmem:[#allocation2 + $0xb4] sm:$0xf] }
 0x12d   : > { %v1978_v25 = vsel %vm1356_vm11, %v1946_v61, %v1914_v57  ;;  %v1117_v57 = vshll.u32 %v5734_v59, 16  ;;  %v1279_v61 = vrot.slane %v3822_v11, 1  ;;  %v1280_v28 = vrot.slane %v4460_v27, 1  ;;  %v2468_v60 = vld [vmem:[#allocation2 + $0xb4] sm:$0xe] }
 0x12e   : > { %4108 = vmatmul.mubr.msk.bf16.gmra.mrb[8].mxu1 %vm2007_vm12, %v1978_v25  ;;  %v2741_v0 = vrot.slane %v2739_v49, 1  ;;  %v2754_v53 = vsel %vm969_vm3, %v2749_v8, %v2753_v12  ;;  %v5762_v38 = vcombine.low %v2435_v22, %v5750_v5  ;;  %v1276_v33 = vrot.slane %v3821_v63, 1  ;;  %v5779_v12 = vld [vmem:[#allocation2 + $0xc8] ss:$0 sps:$4 sm:$0x11]  }
 0x12f   : > { %1309 = vrot.lane.b32.xlu0 %v1272_v35, %s4677_s21  ;;  %v1302_v47 = vpop.permute.xlu0 %1301  ;;  %v2737_v35 = vor.u32 %v2736_v56, %v2732_v55  ;;  %v1277_v24 = vrot.slane %v5690_v16, 1  ;;  %v5766_v32 = vcombine.low %v2433_v9, %v2434_v48  ;;  %v1115_v44 = vshrl.u32 %v5734_v59, 16 }
 0x130   : > { %2939 = vrot.lane.b32.xlu1 %v2903_v10, %s4677_s21  ;;  %v1368_v43 = vsel %vm1356_vm11, %v1335_v21, %v1302_v47  ;;  %v5754_v10 = vcombine.low %v803_v20, %v5741_v58  ;;  %v1119_v25 = vrot.slane %v1117_v57, 1  ;;  %v5770_v20 = vld [vmem:[#allocation2 + $0xa4] ss:$0 sps:$4 sm:$0x11]   ;;  %v2907_v16 = vrot.slane %v3952_v36, 1 }
 0x131   : > { %4142 = vmatmul.mubr.msk.bf16.gmra.mrb[8].mxu0 %vm2007_vm12, %v1368_v43  ;;  %v2742_v52 = vsel %vm969_vm3, %v2737_v35, %v2741_v0  ;;  %v3953_v47 = vcombine.low %v2468_v60, %v2434_v48  ;;  %v1281_v43 = vsel %vm1242_vm2, %v1279_v61, %v1280_v28  ;;  %v1278_v11 = vsel %vm1242_vm2, %v1276_v33, %v1277_v24  ;;  %v805_v36 = vld [vmem:[#allocation2 + $0xa8] sm:$0xf]  ;;  %v838_v28 = vld [vmem:[#allocation2 + $0x9c] sm:$0xe] }
 0x132   : > { %v1129_v55 = vshll.u32 %v5754_v10, 16  ;;  %v1127_v63 = vshrl.u32 %v5754_v10, 16  ;;  %v1134_v35 = vshll.u32 %v5770_v20, 16  ;;  %v2768_v60 = vshrl.u32 %v5762_v38, 16 }
 0x133   : > { %1182 = vrot.lane.b32.xlu0 %v1101_v2, %s4678_s23  ;;  %v1175_v23 = vpop.permute.xlu0 %1174  ;;  %v1122_v2 = vshll.u32 %v4460_v27, 16  ;;  %v2770_v27 = vshll.u32 %v5762_v38, 16  ;;  %v2910_v48 = vrot.slane %v3953_v47, 1  ;;  %v2775_v24 = vshll.u32 %v5779_v12, 16 }
 0x134   : > { %2941 = vrot.lane.b32.xlu1 %v2906_v18, %s4677_s21  ;;  %v1788_v6 = vpop.permute.xlu1 %1787  ;;  %v1337_v56 = vsel %vm1323_vm10, %v5154_v50, %v1175_v23  ;;  %v2908_v18 = vrot.slane %v5717_v41, 1  ;;  %v4466_v50 = vld [vmem:[#allocation2 + $0xbc] ss:$0 sps:$4 sm:$0x11]   ;;  %v1120_v41 = vor.u32 %v1119_v25, %v1115_v44  ;;  %v1131_v22 = vrot.slane %v1129_v55, 1 }
 0x135   : > { %v1124_v3 = vrot.slane %v1122_v2, 1  ;;  %v1948_v0 = vsel %vm1323_vm10, %v5194_v37, %v1788_v6  ;;  %v2911_v23 = vrot.slane %v4466_v50, 1  ;;  %v2772_v33 = vrot.slane %v2770_v27, 1  ;;  %v839_v44 = vld [vmem:[#allocation2 + $0xa8] sm:$0xe] }
 0x136   : > { %v2909_v57 = vsel %vm1242_vm2, %v2907_v16, %v2908_v18  ;;  %v2756_v37 = vshrl.u32 %v5766_v32, 16  ;;  %v2763_v2 = vshll.u32 %v4466_v50, 16  ;;  %v1132_v55 = vor.u32 %v1131_v22, %v1127_v63  ;;  %v5806_v27 = vld [vmem:[#allocation2 + $0xb8] sm:$0xf] }
 0x137   : > { %1184 = vrot.lane.b32.xlu0 %v1113_v31, %s4678_s23  ;;  %v1177_v21 = vpop.permute.xlu0 %1176  ;;  %v2758_v31 = vshll.u32 %v5766_v32, 16  ;;  %v1125_v25 = vsel %vm969_vm3, %v1120_v41, %v1124_v3  ;;  %v2912_v18 = vsel %vm1242_vm2, %v2910_v48, %v2911_v23  ;;  %v3823_v47 = vcombine.low %v838_v28, %v5741_v58  ;;  %v2469_v58 = vld [vmem:[#allocation2 + $0xc0] sm:$0xe]  ;;  %v5824_v28 = vld [vmem:[#allocation2 + $0xbc] ss:$0 sps:$4 sm:$0x11]  }
 0x138   : > { %2815 = vrot.lane.b32.xlu1 %v2754_v53, %s4678_s23  ;;  %v1304_v49 = vpop.permute.xlu1 %1303  ;;  %v806_v53 = vld [vmem:[#allocation2 + $0xac] sm:$0xf]  ;;  %v2773_v3 = vor.u32 %v2772_v33, %v2768_v60  ;;  %v2777_v50 = vrot.slane %v2775_v24, 1  ;;  %v1339_v63 = vsel %vm1323_vm10, %v5196_v51, %v1177_v21  ;;  %v2765_v22 = vrot.slane %v2763_v2, 1 }
 0x139   : > { %v1370_v8 = vsel %vm1356_vm11, %v1337_v56, %v1304_v49  ;;  %v2760_v6 = vrot.slane %v2758_v31, 1  ;;  %v1136_v56 = vrot.slane %v1134_v35, 1  ;;  %v5799_v49 = vcombine.low %v805_v36, %v806_v53  ;;  %v4472_v31 = vld [vmem:[#allocation2 + $0xb0] ss:$0 sps:$4 sm:$0x11]  }
 0x13a   : > { %4145 = vmatprep.mubr.msk.bf16.mxu0 %vm2007_vm12, %v1370_v8  ;;  %v807_v8 = vld [vmem:[#allocation2 + $0xb4] sm:$0xf]  ;;  %v3824_v41 = vcombine.low %v839_v44, %v806_v53  ;;  %v2437_v21 = vld [vmem:[#allocation2 + $0xcc] sm:$0xf]  ;;  %v2438_v36 = vld [vmem:[#allocation2 + $0xd0] sm:$0xf]  ;;  %v2778_v53 = vsel %vm969_vm3, %v2773_v3, %v2777_v50  ;;  %v3954_v60 = vcombine.low %v2469_v58, %v5750_v5 }
 0x13b   : > { %2813 = vrot.lane.b32.xlu0 %v2742_v52, %s4678_s23  ;;  %v1141_v48 = vshll.u32 %v5799_v49, 16  ;;  %v5819_v23 = vcombine.low %v807_v8, %v5806_v27  ;;  %v1282_v24 = vrot.slane %v3823_v47, 1  ;;  %v2470_v2 = vld [vmem:[#allocation2 + $0xcc] sm:$0xe]  ;;  %v1158_v3 = vshll.u32 %v5824_v28, 16 }
 0x13c   : > { %1315 = vrot.lane.b32.xlu1 %v1281_v43, %s4677_s21  ;;  %v1916_v9 = vpop.permute.xlu1 %1915  ;;  %v3955_v47 = vcombine.low %v2470_v2, %v2438_v36 }
 0x13d   : > { %v1980_v61 = vsel %vm1356_vm11, %v1948_v0, %v1916_v9  ;;  %v1790_v52 = vpop.permute.xlu0 %1789  ;;  %v3056_v0 = vsel %vm2040_vm13, %v5743_v13, 0  ;;  %v1285_v13 = vrot.slane %v3824_v41, 1  ;;  %v1143_v44 = vrot.slane %v1141_v48, 1 }
 0x13e   : > { %4111 = vmatprep.mubr.msk.bf16.mxu1 %vm2007_vm12, %v1980_v61  ;;  %v1950_v16 = vsel %vm1323_vm10, %v5234_v30, %v1790_v52  ;;  %v2761_v30 = vor.u32 %v2760_v6, %v2756_v37  ;;  %4166 = vmatpush3.bf16.msra.mxu0 %v3056_v0  ;;  %v1286_v61 = vrot.slane %v4472_v31, 1  ;;  %v1283_v37 = vrot.slane %v5770_v20, 1 }
 0x13f   : > { %1313 = vrot.lane.b32.xlu0 %v1278_v11, %s4677_s21  ;;  %v1146_v6 = vshll.u32 %v4472_v31, 16  ;;  %v1139_v52 = vshrl.u32 %v5799_v49, 16 }
 0x140   : > { %2943 = vrot.lane.b32.xlu1 %v2909_v57, %s4677_s21  ;;  %v1918_v43 = vpop.permute.xlu1 %1917  ;;  %v1137_v57 = vsel %vm969_vm3, %v1132_v55, %v1136_v56  ;;  %v2766_v33 = vsel %vm969_vm3, %v2761_v30, %v2765_v22  ;;  %v5832_v55 = vcombine.low %v2437_v21, %v2438_v36  ;;  %v1287_v5 = vsel %vm1242_vm2, %v1285_v13, %v1286_v61  ;;  %v840_v13 = vld [vmem:[#allocation2 + $0xb4] sm:$0xe] }
 0x141   : > { %v1982_v11 = vsel %vm1356_vm11, %v1950_v16, %v1918_v43  ;;  %v1306_v35 = vpop.permute.xlu0 %1305  ;;  %v2913_v16 = vrot.slane %v3954_v60, 1  ;;  %v1284_v20 = vsel %vm1242_vm2, %v1282_v24, %v1283_v37  ;;  %v1148_v43 = vrot.slane %v1146_v6, 1 }
 0x142   : > { %4112 = vmatmul.mubr.msk.bf16.gmra.mrb[12].mxu1 %vm2007_vm12, %v1982_v11  ;;  %v1372_v9 = vsel %vm1356_vm11, %v1339_v63, %v1306_v35  ;;  %v1151_v11 = vshrl.u32 %v5819_v23, 16  ;;  %v1144_v50 = vor.u32 %v1143_v44, %v1139_v52  ;;  %v4478_v63 = vld [vmem:[#allocation2 + $0xd4] ss:$0 sps:$4 sm:$0x11]   ;;  %v2782_v30 = vshll.u32 %v5832_v55, 16 }
 0x143   : > { %1186 = vrot.lane.b32.xlu0 %v1125_v25, %s4678_s23  ;;  %4146 = vmatmul.mubr.msk.bf16.gmra.mrb[12].mxu0 %vm2007_vm12, %v1372_v9  ;;  %v1153_v25 = vshll.u32 %v5819_v23, 16  ;;  %v1160_v9 = vrot.slane %v1158_v3, 1  ;;  %v2780_v48 = vshrl.u32 %v5832_v55, 16  ;;  %v2787_v36 = vshll.u32 %v4478_v63, 16 }
 0x144   : > { %2945 = vrot.lane.b32.xlu1 %v2912_v18, %s4677_s21  ;;  %v2792_v51 = vpop.permute.xlu1 %2791  ;;  %v2914_v18 = vrot.slane %v5779_v12, 1  ;;  %v2784_v21 = vrot.slane %v2782_v30, 1  ;;  %v3825_v6 = vcombine.low %v840_v13, %v5806_v27 }
 0x145   : > { %v1155_v41 = vrot.slane %v1153_v25, 1  ;;  %v2952_v12 = vsel %vm1323_vm10, %v5141_v40, %v2792_v51  ;;  %v1149_v40 = vsel %vm969_vm3, %v1144_v50, %v1148_v43  ;;  %v2789_v37 = vrot.slane %v2787_v36, 1  ;;  %v6314_v36 = vld [vmem:[#allocation22_spill] sm:$0xff] }
 0x146   : > { %v2915_v58 = vsel %vm1242_vm2, %v2913_v16, %v2914_v18  ;;  %v2785_v24 = vor.u32 %v2784_v21, %v2780_v48  ;;  %v1289_v16 = vrot.slane %v5824_v28, 1  ;;  %v6310_v28 = vld [vmem:[#allocation18_spill] sm:$0xff] }
 0x147   : > { %1188 = vrot.lane.b32.xlu0 %v1137_v57, %s4678_s23  ;;  %v2916_v57 = vrot.slane %v3955_v47, 1  ;;  %v1156_v51 = vor.u32 %v1155_v41, %v1151_v11 }
 0x148   : > { %2819 = vrot.lane.b32.xlu1 %v2778_v53, %s4678_s23  ;;  %v1920_v56 = vpop.permute.xlu1 %1919 }
 0x14a   : > { %v1792_v8 = vpop.permute.xlu0 %1791 }
 0x14b   : > { %2817 = vrot.lane.b32.xlu0 %v2766_v33, %s4678_s23  ;;  %v1952_v31 = vsel %vm1323_vm10, %v5293_v7, %v1792_v8  ;;  %v2917_v7 = vrot.slane %v4478_v63, 1  ;;  %v1161_v33 = vsel %vm969_vm3, %v1156_v51, %v1160_v9  ;;  %v6313_v9 = vld [vmem:[#allocation17_spill] sm:$0xff] }
 0x14c   : > { %1319 = vrot.lane.b32.xlu1 %v1287_v5, %s4677_s21  ;;  %v1984_v22 = vsel %vm1356_vm11, %v1952_v31, %v1920_v56  ;;  %v2920_v35 = vpop.permute.xlu1 %2919  ;;  %v2790_v56 = vsel %vm969_vm3, %v2785_v24, %v2789_v37  ;;  %v1288_v5 = vrot.slane %v3825_v6, 1  ;;  %v6315_v24 = vld [vmem:[#allocation20_spill] sm:$0xff] }
 0x14d   : > { %4115 = vmatprep.mubr.msk.bf16.mxu1 %vm2007_vm12, %v1984_v22  ;;  %v2984_v0 = vsel %vm1356_vm11, %v2952_v12, %v2920_v35  ;;  %v2918_v60 = vsel %vm1242_vm2, %v2916_v57, %v2917_v7  ;;  %v6311_v12 = vld [vmem:[#allocation16_spill] sm:$0xff] }
 0x14e   : > { %4167 = vmatprep.mubr.msk.bf16.mxu0 %vm2007_vm12, %v2984_v0 }
 0x14f   : > { %1317 = vrot.lane.b32.xlu0 %v1284_v20, %s4677_s21 }
 0x150   : > { %v1794_v53 = vpop.permute.xlu0 %1793  ;;  %2947 = vrot.lane.b32.xlu1 %v2915_v58, %s4677_s21  ;;  %v2922_v61 = vpop.permute.xlu1 %2921  ;;  %v6312_v58 = vld [vmem:[#allocation19_spill] sm:$0xff] }
 0x151   : > { %v1954_v27 = vsel %vm1323_vm10, %v5316_v29, %v1794_v53 }
 0x153   : > { %1190 = vrot.lane.b32.xlu0 %v1149_v40, %s4678_s23 }
 0x154   : > { %v2794_v2 = vpop.permute.xlu0 %2793  ;;  %2949 = vrot.lane.b32.xlu1 %v2918_v60, %s4677_s21  ;;  %v2796_v52 = vpop.permute.xlu1 %2795 }
 0x155   : > { %v2954_v44 = vsel %vm1323_vm10, %v5188_v46, %v2794_v2  ;;  %v1290_v46 = vsel %vm1242_vm2, %v1288_v5, %v1289_v16  ;;  %v2956_v8 = vsel %vm1323_vm10, %v5216_v39, %v2796_v52  ;;  %v6316_v16 = vld [vmem:[#allocation21_spill] sm:$0xff] }
 0x156   : > { %v2986_v25 = vsel %vm1356_vm11, %v2954_v44, %v2922_v61 }
 0x157   : > { %1192 = vrot.lane.b32.xlu0 %v1161_v33, %s4678_s23  ;;  %4168 = vmatmul.mubr.msk.bf16.vlgmr.msra.gmra.mrb[0].mxu0 %vm2007_vm12, %v2986_v25 }
 0x158   : > { %v1922_v18 = vpop.permute.xlu0 %1921 }
 0x159   : > { %v1986_v47 = vsel %vm1356_vm11, %v1954_v27, %v1922_v18  ;;  %v1924_v20 = vpop.permute.xlu1 %1923 }
 0x15a   : > { %4116 = vmatmul.mubr.msk.bf16.gmra.mrb[16].mxu1 %vm2007_vm12, %v1986_v47 }
 0x15b   : > { %2821 = vrot.lane.b32.xlu0 %v2790_v56, %s4678_s23 }
 0x15c   : > { %v1796_v43 = vpop.permute.xlu0 %1795 }
 0x15d   : > { %v1956_v11 = vsel %vm1323_vm10, %v6310_v28, %v1796_v43  ;;  %v2924_v3 = vpop.permute.xlu1 %2923 }
 0x15e   : > { %v1988_v29 = vsel %vm1356_vm11, %v1956_v11, %v1924_v20  ;;  %v2988_v50 = vsel %vm1356_vm11, %v2956_v8, %v2924_v3 }
 0x15f   : > { %1321 = vrot.lane.b32.xlu0 %v1290_v46, %s4677_s21  ;;  %4119 = vmatprep.mubr.msk.bf16.mxu1 %vm2007_vm12, %v1988_v29 }
 0x160   : > { %4171 = vmatprep.mubr.msk.bf16.mxu0 %vm2007_vm12, %v2988_v50 }
 0x161   : > { %v2926_v31 = vpop.permute.xlu1 %2925 }
 0x164   : > { %v1798_v41 = vpop.permute.xlu0 %1797 }
 0x165   : > { %v2800_v63 = vpop.permute.xlu1 %2799  ;;  %v1958_v0 = vsel %vm1323_vm10, %v6312_v58, %v1798_v41  ;;  %v6317_v41 = vld [vmem:[#allocation23_spill] sm:$0xff] }
 0x166   : > { %v2960_v48 = vsel %vm1323_vm10, %v6313_v9, %v2800_v63 }
 0x168   : > { %v2798_v30 = vpop.permute.xlu0 %2797 }
 0x169   : > { %v2958_v39 = vsel %vm1323_vm10, %v6311_v12, %v2798_v30 }
 0x16a   : > { %v2990_v22 = vsel %vm1356_vm11, %v2958_v39, %v2926_v31  ;;  %v1928_v35 = vpop.permute.xlu1 %1927 }
 0x16b   : > { %4172 = vmatmul.mubr.msk.bf16.gmra.mrb[4].mxu0 %vm2007_vm12, %v2990_v22 }
 0x16c   : > { %v1926_v57 = vpop.permute.xlu0 %1925 }
 0x16d   : > { %v1990_v7 = vsel %vm1356_vm11, %v1958_v0, %v1926_v57 }
 0x16e   : > { %4120 = vmatmul.mubr.msk.bf16.gmra.mrb[20].mxu1 %vm2007_vm12, %v1990_v7  ;;  %v2928_v40 = vpop.permute.xlu1 %2927 }
 0x16f   : > { %v2992_v21 = vsel %vm1356_vm11, %v2960_v48, %v2928_v40 }
 0x170   : > { %v1800_v51 = vpop.permute.xlu0 %1799  ;;  %4175 = vmatprep.mubr.msk.bf16.mxu0 %vm2007_vm12, %v2992_v21 }
 0x171   : > { %v1960_v53 = vsel %vm1323_vm10, %v6314_v36, %v1800_v51 }
 0x172   : > { %v1992_v13 = vsel %vm1356_vm11, %v1960_v53, %v1928_v35  ;;  %v2930_v61 = vpop.permute.xlu1 %2929 }
 0x173   : > { %4123 = vmatprep.mubr.msk.bf16.mxu1 %vm2007_vm12, %v1992_v13 }
 0x174   : > { %v1802_v60 = vpop.permute.xlu0 %1801 }
 0x175   : > { %v1962_v52 = vsel %vm1323_vm10, %v5468_v1, %v1802_v60 }
 0x176   : > { %v2804_v6 = vpop.permute.xlu1 %2803 }
 0x177   : > { %v2964_v27 = vsel %vm1323_vm10, %v6316_v16, %v2804_v6 }
 0x178   : > { %v2802_v33 = vpop.permute.xlu0 %2801 }
 0x179   : > { %v2962_v37 = vsel %vm1323_vm10, %v6315_v24, %v2802_v33 }
 0x17a   : > { %v2994_v2 = vsel %vm1356_vm11, %v2962_v37, %v2930_v61 }
 0x17b   : > { %4176 = vmatmul.mubr.msk.bf16.gmra.mrb[8].mxu0 %vm2007_vm12, %v2994_v2 }
 0x17c   : > { %v1930_v44 = vpop.permute.xlu0 %1929 }
 0x17d   : > { %v1994_v25 = vsel %vm1356_vm11, %v1962_v52, %v1930_v44 }
 0x17e   : > { %4124 = vmatmul.mubr.msk.bf16.gmra.mrb[24].mxu1 %vm2007_vm12, %v1994_v25  ;;  %v1932_v56 = vpop.permute.xlu1 %1931 }
 0x182   : > { %v1804_v5 = vpop.permute.xlu0 %1803  ;;  %v2932_v47 = vpop.permute.xlu1 %2931 }
 0x183   : > { %v1964_v18 = vsel %vm1323_vm10, %v5541_v17, %v1804_v5  ;;  %v2996_v46 = vsel %vm1356_vm11, %v2964_v27, %v2932_v47 }
 0x184   : > { %v1996_v20 = vsel %vm1356_vm11, %v1964_v18, %v1932_v56  ;;  %4179 = vmatprep.mubr.msk.bf16.mxu0 %vm2007_vm12, %v2996_v46 }
 0x185   : > { %4127 = vmatprep.mubr.msk.bf16.mxu1 %vm2007_vm12, %v1996_v20 }
 0x186   : > { %v2934_v1 = vpop.permute.xlu1 %2933 }
 0x189   : > { %v1806_v43 = vpop.permute.xlu0 %1805 }
 0x18a   : > { %v2808_v8 = vpop.permute.xlu1 %2807  ;;  %v1966_v17 = vsel %vm1323_vm10, %v5571_v34, %v1806_v43 }
 0x18b   : > { %v2968_v63 = vsel %vm1323_vm10, %v6317_v41, %v2808_v8 }
 0x18d   : > { %v2806_v28 = vpop.permute.xlu0 %2805 }
 0x18e   : > { %v2966_v11 = vsel %vm1323_vm10, %v5500_v62, %v2806_v28  ;;  %v1308_v29 = vpop.permute.xlu1 %1307 }
 0x18f   : > { %v2998_v3 = vsel %vm1356_vm11, %v2966_v11, %v2934_v1 }
 0x190   : > { %4180 = vmatmul.mubr.msk.bf16.gmra.mrb[12].mxu0 %vm2007_vm12, %v2998_v3 }
 0x191   : > { %v1934_v50 = vpop.permute.xlu0 %1933 }
 0x192   : > { %v1998_v31 = vsel %vm1356_vm11, %v1966_v17, %v1934_v50  ;;  %v2936_v30 = vpop.permute.xlu1 %2935 }
 0x193   : > { %4128 = vmatmul.mubr.msk.bf16.gmra.mrb[28].mxu1 %vm2007_vm12, %v1998_v31  ;;  %v3000_v12 = vsel %vm1356_vm11, %v2968_v63, %v2936_v30 }
 0x194   : > { %4183 = vmatprep.mubr.msk.bf16.mxu0 %vm2007_vm12, %v3000_v12 }
 0x195   : > { %v1179_v62 = vpop.permute.xlu0 %1178 }
 0x196   : > { %v1341_v39 = vsel %vm1323_vm10, %v5560_v54, %v1179_v62  ;;  %v2938_v34 = vpop.permute.xlu1 %2937 }
 0x197   : > { %v1374_v22 = vsel %vm1356_vm11, %v1341_v39, %v1308_v29 }
 0x198   : > { %4149 = vmatprep.mubr.msk.bf16.mxu1 %vm2007_vm12, %v1374_v22 }
 0x199   : > { %v1181_v35 = vpop.permute.xlu0 %1180 }
 0x19a   : > { %v2812_v58 = vpop.permute.xlu1 %2811  ;;  %v1343_v48 = vsel %vm1323_vm10, %v5602_v45, %v1181_v35 }
 0x19b   : > { %v2972_v51 = vsel %vm1323_vm10, %v5654_v4, %v2812_v58 }
 0x19d   : > { %v2810_v0 = vpop.permute.xlu0 %2809 }
 0x19e   : > { %v2970_v57 = vsel %vm1323_vm10, %v5628_v26, %v2810_v0  ;;  %v1312_v9 = vpop.permute.xlu1 %1311 }
 0x19f   : > { %v3002_v7 = vsel %vm1356_vm11, %v2970_v57, %v2938_v34 }
 0x1a0   : > { %4184 = vmatmul.mubr.msk.bf16.gmra.mrb[16].mxu0 %vm2007_vm12, %v3002_v7 }
 0x1a1   : > { %v1310_v54 = vpop.permute.xlu0 %1309 }
 0x1a2   : > { %v1376_v40 = vsel %vm1356_vm11, %v1343_v48, %v1310_v54  ;;  %v2940_v21 = vpop.permute.xlu1 %2939 }
 0x1a3   : > { %4150 = vmatmul.mubr.msk.bf16.vlgmr.msra.gmra.mrb[16].mxu1 %vm2007_vm12, %v1376_v40  ;;  %v3004_v36 = vsel %vm1356_vm11, %v2972_v51, %v2940_v21 }
 0x1a4   : > { %4187 = vmatprep.mubr.msk.bf16.mxu0 %vm2007_vm12, %v3004_v36 }
 0x1a5   : > { %v1183_v26 = vpop.permute.xlu0 %1182 }
 0x1a6   : > { %v1345_v53 = vsel %vm1323_vm10, %v5668_v14, %v1183_v26  ;;  %v2942_v45 = vpop.permute.xlu1 %2941 }
 0x1a7   : > { %v1378_v13 = vsel %vm1356_vm11, %v1345_v53, %v1312_v9 }
 0x1a8   : > { %4153 = vmatprep.mubr.msk.bf16.mxu1 %vm2007_vm12, %v1378_v13 }
 0x1a9   : > { %v1185_v61 = vpop.permute.xlu0 %1184 }
 0x1aa   : > { %v2816_v60 = vpop.permute.xlu1 %2815  ;;  %v1347_v6 = vsel %vm1323_vm10, %v5684_v19, %v1185_v61 }
 0x1ab   : > { %v2976_v52 = vsel %vm1323_vm10, %v5712_v42, %v2816_v60 }
 0x1ad   : > { %v2814_v33 = vpop.permute.xlu0 %2813 }
 0x1ae   : > { %v2974_v4 = vsel %vm1323_vm10, %v5707_v15, %v2814_v33  ;;  %v1316_v37 = vpop.permute.xlu1 %1315 }
 0x1af   : > { %v3006_v24 = vsel %vm1356_vm11, %v2974_v4, %v2942_v45 }
 0x1b0   : > { %4188 = vmatmul.mubr.msk.bf16.gmra.mrb[20].mxu0 %vm2007_vm12, %v3006_v24 }
 0x1b1   : > { %v1314_v14 = vpop.permute.xlu0 %1313 }
 0x1b2   : > { %v1380_v2 = vsel %vm1356_vm11, %v1347_v6, %v1314_v14  ;;  %v2944_v44 = vpop.permute.xlu1 %2943 }
 0x1b3   : > { %4154 = vmatmul.mubr.msk.bf16.gmra.mrb[20].mxu1 %vm2007_vm12, %v1380_v2  ;;  %v3008_v25 = vsel %vm1356_vm11, %v2976_v52, %v2944_v44 }
 0x1b4   : > { %4191 = vmatprep.mubr.msk.bf16.mxu0 %vm2007_vm12, %v3008_v25 }
 0x1b5   : > { %v1187_v15 = vpop.permute.xlu0 %1186 }
 0x1b6   : > { %v1349_v56 = vsel %vm1323_vm10, %v5734_v59, %v1187_v15  ;;  %v2946_v19 = vpop.permute.xlu1 %2945 }
 0x1b7   : > { %v1382_v5 = vsel %vm1356_vm11, %v1349_v56, %v1316_v37 }
 0x1b8   : > { %4157 = vmatprep.mubr.msk.bf16.mxu1 %vm2007_vm12, %v1382_v5 }
 0x1b9   : > { %v1189_v16 = vpop.permute.xlu0 %1188 }
 0x1ba   : > { %v2820_v27 = vpop.permute.xlu1 %2819  ;;  %v1351_v46 = vsel %vm1323_vm10, %v5754_v10, %v1189_v16 }
 0x1bb   : > { %v2980_v43 = vsel %vm1323_vm10, %v5762_v38, %v2820_v27 }
 0x1bd   : > { %v2818_v18 = vpop.permute.xlu0 %2817 }
 0x1be   : > { %v2978_v42 = vsel %vm1323_vm10, %v5766_v32, %v2818_v18  ;;  %v1320_v20 = vpop.permute.xlu1 %1319 }
 0x1bf   : > { %v3010_v47 = vsel %vm1356_vm11, %v2978_v42, %v2946_v19 }
 0x1c0   : > { %4192 = vmatmul.mubr.msk.bf16.gmra.mrb[24].mxu0 %vm2007_vm12, %v3010_v47 }
 0x1c1   : > { %v1318_v59 = vpop.permute.xlu0 %1317 }
 0x1c2   : > { %v1384_v1 = vsel %vm1356_vm11, %v1351_v46, %v1318_v59  ;;  %v2948_v8 = vpop.permute.xlu1 %2947 }
 0x1c3   : > { %4158 = vmatmul.mubr.msk.bf16.gmra.mrb[24].mxu1 %vm2007_vm12, %v1384_v1  ;;  %v3012_v28 = vsel %vm1356_vm11, %v2980_v43, %v2948_v8 }
 0x1c4   : > { %4195 = vmatprep.mubr.msk.bf16.mxu0 %vm2007_vm12, %v3012_v28 }
 0x1c5   : > { %v1191_v32 = vpop.permute.xlu0 %1190 }
 0x1c6   : > { %v1353_v11 = vsel %vm1323_vm10, %v5799_v49, %v1191_v32  ;;  %v2950_v29 = vpop.permute.xlu1 %2949 }
 0x1c7   : > { %v1386_v3 = vsel %vm1356_vm11, %v1353_v11, %v1320_v20 }
 0x1c8   : > { %4161 = vmatprep.mubr.msk.bf16.mxu1 %vm2007_vm12, %v1386_v3 }
 0x1c9   : > { %v1193_v10 = vpop.permute.xlu0 %1192 }
 0x1ca   : > { %v1355_v31 = vsel %vm1323_vm10, %v5819_v23, %v1193_v10 }
 0x1cd   : > { %v2822_v17 = vpop.permute.xlu0 %2821 }
 0x1ce   : > { %v2982_v50 = vsel %vm1323_vm10, %v5832_v55, %v2822_v17 }
 0x1cf   : > { %v3014_v38 = vsel %vm1356_vm11, %v2982_v50, %v2950_v29 }
 0x1d0   : > { %4196 = vmatmul.mubr.msk.bf16.gmra.mrb[28].mxu0 %vm2007_vm12, %v3014_v38 }
 0x1d1   : > { %v1322_v41 = vpop.permute.xlu0 %1321 }
 0x1d2   : > { %v1388_v49 = vsel %vm1356_vm11, %v1355_v31, %v1322_v41 }
 0x1d3   : > { %4162 = vmatmul.mubr.msk.bf16.gmra.mrb[28].mxu1 %vm2007_vm12, %v1388_v49 }
 0x1e5   : > { %v4101_v63 = vpop.f32.mrb[0].mxu1 }
 0x1e6   : > { %v2078_v30 = vpop.f32.mrb[1].mxu1 }
 0x1e7   : > { %v4102_v12 = vpop.f32.mrb[2].mxu1 }
 0x1e8   : > { %v2081_v62 = vpop.f32.mrb[3].mxu1 }
 0x1f0   : > { %v4105_v39 = vpop.f32.mrb[4].mxu1 }
 0x1f1   : > { %v2094_v22 = vpop.f32.mrb[5].mxu1 }
 0x1f2   : > { %v4106_v34 = vpop.f32.mrb[6].mxu1 }
 0x1f3   : > { %v2097_v55 = vpop.f32.mrb[7].mxu1 }
 0x201   : > { %v5987_v35 = vpop.f32.mrb[8].mxu1 }
 0x202   : > { %v5989_v58 = vpop.f32.mrb[9].mxu1 }
 0x203   : > { %v5991_v0 = vpop.f32.mrb[10].mxu1 }
 0x204   : > { %v5993_v23 = vpop.f32.mrb[11].mxu1 }
 0x215   : > { %v5995_v57 = vpop.f32.mrb[12].mxu1 }
 0x216   : > { %v5997_v7 = vpop.f32.mrb[13].mxu1 }
 0x217   : > { %v5999_v9 = vpop.f32.mrb[14].mxu1 }
 0x218   : > { %v6001_v48 = vpop.f32.mrb[15].mxu1 }
 0x22a   : > { %v4169_v54 = vpop.f32.mrb[0].mxu0 }
 0x22b   : > { %v4201_v40 = vadd.f32 %v4169_v54, %v4101_v63  ;;  %v3092_v51 = vpop.f32.mrb[1].mxu0 }
 0x22c   : > { %v4202_v21 = vadd.f32 %v3092_v51, %v2078_v30  ;;  %v4170_v36 = vpop.f32.mrb[2].mxu0 }
 0x22d   : > { %v4015_v26 = vpack.c.bf16 %v4201_v40, %v4201_v40  ;;  %v4203_v53 = vadd.f32 %v4170_v36, %v4102_v12  ;;  %v3095_v13 = vpop.f32.mrb[3].mxu0  ;;  %v3483_v33 = vmul.f32 %v4201_v40, %v4201_v40  ;;  %v3414_v52 = vsel %vm1323_vm10, %v4201_v40, 0.0 }
 0x22e   : > { %v4013_v45 = vpack.c.bf16 %v4202_v21, %v4202_v21  ;;  %v3481_v61 = vmul.f32 %v4202_v21, %v4202_v21  ;;  %v4204_v60 = vadd.f32 %v3095_v13, %v2081_v62  ;;  %v3411_v24 = vsel %vm1323_vm10, %v4202_v21, 0.0 }
 0x22f   : > { %3381 = vst.msk [vmem:[%s6005_s12 + $0x8] sm:$0xf] %vm248_vm0, %v4015_v26  ;;  %v4016_v4 = vpack.c.bf16 %v4203_v53, %v4203_v53  ;;  %v3484_v25 = vmul.f32 %v4203_v53, %v4203_v53  ;;  %v3516_v19 = vsel %vm1323_vm10, %v3483_v33, 0.0  ;;  %v3416_v16 = vsel %vm1323_vm10, %v4203_v53, 0.0 }
 0x230   : > { %3379 = vst.msk [vmem:[%s6005_s12] sm:$0xf] %vm248_vm0, %v4013_v45  ;;  %v4014_v37 = vpack.c.bf16 %v4204_v60, %v4204_v60  ;;  %v3412_v6 = vsel %vm1323_vm10, %v4204_v60, 0.0  ;;  %v3482_v14 = vmul.f32 %v4204_v60, %v4204_v60  ;;  %v3513_v44 = vsel %vm1323_vm10, %v3481_v61, 0.0 }
 0x231   : > { %3382 = vst.msk [vmem:[%s6005_s12 + $0xc] sm:$0xf] %vm248_vm0, %v4016_v4  ;;  %v3413_v2 = vadd.f32 %v3412_v6, %v3411_v24  ;;  %v3518_v42 = vsel %vm1323_vm10, %v3484_v25, 0.0 }
 0x232   : > { %3380 = vst.msk [vmem:[%s6005_s12 + $0x4] sm:$0xf] %vm248_vm0, %v4014_v37  ;;  %v3514_v15 = vsel %vm1323_vm10, %v3482_v14, 0.0 }
 0x233   : > { %v3415_v56 = vadd.f32 %v3414_v52, %v3413_v2  ;;  %v3515_v5 = vadd.f32 %v3514_v15, %v3513_v44 }
 0x235   : > { %v3517_v27 = vadd.f32 %v3516_v19, %v3515_v5  ;;  %v3417_v18 = vadd.f32 %v3416_v16, %v3415_v56 }
 0x237   : > { %v3519_v47 = vadd.f32 %v3518_v42, %v3517_v27 }
 0x23e   : > { %v4173_v20 = vpop.f32.mrb[4].mxu0 }
 0x23f   : > { %v4205_v46 = vadd.f32 %v4173_v20, %v4105_v39  ;;  %v3108_v59 = vpop.f32.mrb[5].mxu0 }
 0x240   : > { %v4206_v1 = vadd.f32 %v3108_v59, %v2094_v22  ;;  %v4174_v43 = vpop.f32.mrb[6].mxu0 }
 0x241   : > { %v4019_v8 = vpack.c.bf16 %v4205_v46, %v4205_v46  ;;  %v4207_v28 = vadd.f32 %v4174_v43, %v4106_v34  ;;  %v3111_v32 = vpop.f32.mrb[7].mxu0  ;;  %v3487_v49 = vmul.f32 %v4205_v46, %v4205_v46  ;;  %v3422_v62 = vsel %vm1323_vm10, %v4205_v46, 0.0 }
 0x242   : > { %v4017_v11 = vpack.c.bf16 %v4206_v1, %v4206_v1  ;;  %v3418_v3 = vsel %vm1323_vm10, %v4206_v1, 0.0  ;;  %v3485_v10 = vmul.f32 %v4206_v1, %v4206_v1  ;;  %v4208_v29 = vadd.f32 %v3111_v32, %v2097_v55 }
 0x243   : > { %3385 = vst.msk [vmem:[%s6005_s12 + $0x18] sm:$0xf] %vm248_vm0, %v4019_v8  ;;  %v3419_v17 = vadd.f32 %v3418_v3, %v3417_v18  ;;  %v4020_v50 = vpack.c.bf16 %v4207_v28, %v4207_v28  ;;  %v3488_v39 = vmul.f32 %v4207_v28, %v4207_v28  ;;  %v3424_v55 = vsel %vm1323_vm10, %v4207_v28, 0.0 }
 0x244   : > { %3383 = vst.msk [vmem:[%s6005_s12 + $0x10] sm:$0xf] %vm248_vm0, %v4017_v11  ;;  %v3520_v38 = vsel %vm1323_vm10, %v3485_v10, 0.0  ;;  %v4018_v31 = vpack.c.bf16 %v4208_v29, %v4208_v29  ;;  %v3420_v41 = vsel %vm1323_vm10, %v4208_v29, 0.0  ;;  %v3486_v12 = vmul.f32 %v4208_v29, %v4208_v29 }
 0x245   : > { %v3521_v63 = vadd.f32 %v3520_v38, %v3519_v47  ;;  %3386 = vst.msk [vmem:[%s6005_s12 + $0x1c] sm:$0xf] %vm248_vm0, %v4020_v50  ;;  %v3421_v30 = vadd.f32 %v3420_v41, %v3419_v17  ;;  %v3524_v40 = vsel %vm1323_vm10, %v3487_v49, 0.0  ;;  %v3526_v36 = vsel %vm1323_vm10, %v3488_v39, 0.0 }
 0x246   : > { %3384 = vst.msk [vmem:[%s6005_s12 + $0x14] sm:$0xf] %vm248_vm0, %v4018_v31  ;;  %v3522_v34 = vsel %vm1323_vm10, %v3486_v12, 0.0 }
 0x247   : > { %v3423_v22 = vadd.f32 %v3422_v62, %v3421_v30  ;;  %v3523_v54 = vadd.f32 %v3522_v34, %v3521_v63 }
 0x249   : > { %v3425_v51 = vadd.f32 %v3424_v55, %v3423_v22  ;;  %v3525_v21 = vadd.f32 %v3524_v40, %v3523_v54 }
 0x24b   : > { %v3527_v26 = vadd.f32 %v3526_v36, %v3525_v21 }
 0x24e   : > { %v4177_v53 = vpop.f32.mrb[8].mxu0 }
 0x24f   : > { %v4209_v13 = vadd.f32 %v4177_v53, %v5987_v35  ;;  %v3124_v45 = vpop.f32.mrb[9].mxu0 }
 0x250   : > { %v4210_v61 = vadd.f32 %v3124_v45, %v5989_v58  ;;  %v4178_v60 = vpop.f32.mrb[10].mxu0 }
 0x251   : > { %v4023_v33 = vpack.c.bf16 %v4209_v13, %v4209_v13  ;;  %v4211_v4 = vadd.f32 %v4178_v60, %v5991_v0  ;;  %v3127_v24 = vpop.f32.mrb[11].mxu0  ;;  %v3491_v0 = vmul.f32 %v4209_v13, %v4209_v13  ;;  %v3430_v19 = vsel %vm1323_vm10, %v4209_v13, 0.0 }
 0x252   : > { %v4021_v37 = vpack.c.bf16 %v4210_v61, %v4210_v61  ;;  %v3426_v6 = vsel %vm1323_vm10, %v4210_v61, 0.0  ;;  %v3489_v14 = vmul.f32 %v4210_v61, %v4210_v61  ;;  %v4212_v2 = vadd.f32 %v3127_v24, %v5993_v23 }
 0x253   : > { %3389 = vst.msk [vmem:[%s6005_s12 + $0x28] sm:$0xf] %vm248_vm0, %v4023_v33  ;;  %v3427_v52 = vadd.f32 %v3426_v6, %v3425_v51  ;;  %v4024_v35 = vpack.c.bf16 %v4211_v4, %v4211_v4  ;;  %v3492_v23 = vmul.f32 %v4211_v4, %v4211_v4  ;;  %v3432_v18 = vsel %vm1323_vm10, %v4211_v4, 0.0 }
 0x254   : > { %3387 = vst.msk [vmem:[%s6005_s12 + $0x20] sm:$0xf] %vm248_vm0, %v4021_v37  ;;  %v3528_v58 = vsel %vm1323_vm10, %v3489_v14, 0.0  ;;  %v4022_v44 = vpack.c.bf16 %v4212_v2, %v4212_v2  ;;  %v3428_v25 = vsel %vm1323_vm10, %v4212_v2, 0.0  ;;  %v3490_v5 = vmul.f32 %v4212_v2, %v4212_v2 }
 0x255   : > { %v3529_v15 = vadd.f32 %v3528_v58, %v3527_v26  ;;  %3390 = vst.msk [vmem:[%s6005_s12 + $0x2c] sm:$0xf] %vm248_vm0, %v4024_v35  ;;  %v3429_v56 = vadd.f32 %v3428_v25, %v3427_v52  ;;  %v3532_v47 = vsel %vm1323_vm10, %v3491_v0, 0.0  ;;  %v3534_v59 = vsel %vm1323_vm10, %v3492_v23, 0.0 }
 0x256   : > { %3388 = vst.msk [vmem:[%s6005_s12 + $0x24] sm:$0xf] %vm248_vm0, %v4022_v44  ;;  %v3530_v27 = vsel %vm1323_vm10, %v3490_v5, 0.0 }
 0x257   : > { %v3431_v16 = vadd.f32 %v3430_v19, %v3429_v56  ;;  %v3531_v42 = vadd.f32 %v3530_v27, %v3529_v15 }
 0x259   : > { %v3433_v20 = vadd.f32 %v3432_v18, %v3431_v16  ;;  %v3533_v46 = vadd.f32 %v3532_v47, %v3531_v42 }
 0x25b   : > { %v3535_v1 = vadd.f32 %v3534_v59, %v3533_v46 }
 0x263   : > { %v4181_v43 = vpop.f32.mrb[12].mxu0 }
 0x264   : > { %v4213_v8 = vadd.f32 %v4181_v43, %v5995_v57  ;;  %v3140_v28 = vpop.f32.mrb[13].mxu0 }
 0x265   : > { %v4214_v32 = vadd.f32 %v3140_v28, %v5997_v7  ;;  %v4182_v11 = vpop.f32.mrb[14].mxu0 }
 0x266   : > { %v4027_v3 = vpack.c.bf16 %v4213_v8, %v4213_v8  ;;  %v4215_v10 = vadd.f32 %v4182_v11, %v5999_v9  ;;  %v3143_v29 = vpop.f32.mrb[15].mxu0  ;;  %v3495_v9 = vmul.f32 %v4213_v8, %v4213_v8  ;;  %v3438_v39 = vsel %vm1323_vm10, %v4213_v8, 0.0 }
 0x267   : > { %v4025_v17 = vpack.c.bf16 %v4214_v32, %v4214_v32  ;;  %v3434_v50 = vsel %vm1323_vm10, %v4214_v32, 0.0  ;;  %v3493_v38 = vmul.f32 %v4214_v32, %v4214_v32  ;;  %v4216_v31 = vadd.f32 %v3143_v29, %v6001_v48 }
 0x268   : > { %3393 = vst.msk [vmem:[%s6005_s12 + $0x38] sm:$0xf] %vm248_vm0, %v4027_v3  ;;  %v3435_v41 = vadd.f32 %v3434_v50, %v3433_v20  ;;  %v4028_v57 = vpack.c.bf16 %v4215_v10, %v4215_v10  ;;  %v3496_v48 = vmul.f32 %v4215_v10, %v4215_v10  ;;  %v3440_v55 = vsel %vm1323_vm10, %v4215_v10, 0.0 }
 0x269   : > { %3391 = vst.msk [vmem:[%s6005_s12 + $0x30] sm:$0xf] %vm248_vm0, %v4025_v17  ;;  %v3536_v7 = vsel %vm1323_vm10, %v3493_v38, 0.0  ;;  %v4026_v49 = vpack.c.bf16 %v4216_v31, %v4216_v31  ;;  %v3436_v63 = vsel %vm1323_vm10, %v4216_v31, 0.0  ;;  %v3494_v62 = vmul.f32 %v4216_v31, %v4216_v31 }
 0x26a   : > { %v3537_v30 = vadd.f32 %v3536_v7, %v3535_v1  ;;  %3394 = vst.msk [vmem:[%s6005_s12 + $0x3c] sm:$0xf] %vm248_vm0, %v4028_v57  ;;  %v3437_v12 = vadd.f32 %v3436_v63, %v3435_v41  ;;  %v3540_v40 = vsel %vm1323_vm10, %v3495_v9, 0.0  ;;  %v3542_v36 = vsel %vm1323_vm10, %v3496_v48, 0.0 }
 0x26b   : > { %3392 = vst.msk [vmem:[%s6005_s12 + $0x34] sm:$0xf] %vm248_vm0, %v4026_v49  ;;  %v3538_v34 = vsel %vm1323_vm10, %v3494_v62, 0.0 }
 0x26c   : > { %v3439_v22 = vadd.f32 %v3438_v39, %v3437_v12  ;;  %v3539_v54 = vadd.f32 %v3538_v34, %v3537_v30 }
 0x26e   : > { %v3441_v51 = vadd.f32 %v3440_v55, %v3439_v22  ;;  %v3541_v21 = vadd.f32 %v3540_v40, %v3539_v54 }
 0x270   : > { %v3543_v26 = vadd.f32 %v3542_v36, %v3541_v21 }
 0x273   : > { %v4185_v53 = vpop.f32.mrb[16].mxu0 }
 0x274   : > { %v3156_v13 = vpop.f32.mrb[17].mxu0 }
 0x275   : > { %v4186_v45 = vpop.f32.mrb[18].mxu0 }
 0x276   : > { %v4151_v61 = vpop.f32.mrb[16].mxu1  ;;  %v3159_v60 = vpop.f32.mrb[19].mxu0 }
 0x277   : > { %v4217_v33 = vadd.f32 %v4185_v53, %v4151_v61  ;;  %v2343_v4 = vpop.f32.mrb[17].mxu1 }
 0x278   : > { %v4218_v24 = vadd.f32 %v3156_v13, %v2343_v4  ;;  %v4152_v37 = vpop.f32.mrb[18].mxu1 }
 0x279   : > { %v4031_v6 = vpack.c.bf16 %v4217_v33, %v4217_v33  ;;  %v4219_v14 = vadd.f32 %v4186_v45, %v4152_v37  ;;  %v2346_v2 = vpop.f32.mrb[19].mxu1  ;;  %v3499_v19 = vmul.f32 %v4217_v33, %v4217_v33  ;;  %v3446_v18 = vsel %vm1323_vm10, %v4217_v33, 0.0 }
 0x27a   : > { %v4029_v52 = vpack.c.bf16 %v4218_v24, %v4218_v24  ;;  %v3442_v35 = vsel %vm1323_vm10, %v4218_v24, 0.0  ;;  %v3497_v58 = vmul.f32 %v4218_v24, %v4218_v24  ;;  %v4220_v44 = vadd.f32 %v3159_v60, %v2346_v2 }
 0x27b   : > { %3397 = vst.msk [vmem:[%s6005_s12 + $0x48] sm:$0xf] %vm248_vm0, %v4031_v6  ;;  %v3443_v25 = vadd.f32 %v3442_v35, %v3441_v51  ;;  %v4032_v0 = vpack.c.bf16 %v4219_v14, %v4219_v14  ;;  %v3500_v42 = vmul.f32 %v4219_v14, %v4219_v14  ;;  %v3448_v46 = vsel %vm1323_vm10, %v4219_v14, 0.0 }
 0x27c   : > { %3395 = vst.msk [vmem:[%s6005_s12 + $0x40] sm:$0xf] %vm248_vm0, %v4029_v52  ;;  %v3544_v15 = vsel %vm1323_vm10, %v3497_v58, 0.0  ;;  %v4030_v56 = vpack.c.bf16 %v4220_v44, %v4220_v44  ;;  %v3444_v5 = vsel %vm1323_vm10, %v4220_v44, 0.0  ;;  %v3498_v27 = vmul.f32 %v4220_v44, %v4220_v44 }
 0x27d   : > { %v3545_v23 = vadd.f32 %v3544_v15, %v3543_v26  ;;  %3398 = vst.msk [vmem:[%s6005_s12 + $0x4c] sm:$0xf] %vm248_vm0, %v4032_v0  ;;  %v3445_v16 = vadd.f32 %v3444_v5, %v3443_v25  ;;  %v3548_v1 = vsel %vm1323_vm10, %v3499_v19, 0.0  ;;  %v3550_v28 = vsel %vm1323_vm10, %v3500_v42, 0.0 }
 0x27e   : > { %3396 = vst.msk [vmem:[%s6005_s12 + $0x44] sm:$0xf] %vm248_vm0, %v4030_v56  ;;  %v3546_v20 = vsel %vm1323_vm10, %v3498_v27, 0.0 }
 0x27f   : > { %v3447_v47 = vadd.f32 %v3446_v18, %v3445_v16  ;;  %v3547_v59 = vadd.f32 %v3546_v20, %v3545_v23 }
 0x281   : > { %v3449_v43 = vadd.f32 %v3448_v46, %v3447_v47  ;;  %v3549_v8 = vadd.f32 %v3548_v1, %v3547_v59 }
 0x283   : > { %v4189_v32 = vpop.f32.mrb[20].mxu0  ;;  %v3551_v3 = vadd.f32 %v3550_v28, %v3549_v8 }
 0x284   : > { %v3172_v11 = vpop.f32.mrb[21].mxu0 }
 0x285   : > { %v4190_v10 = vpop.f32.mrb[22].mxu0 }
 0x286   : > { %v4155_v29 = vpop.f32.mrb[20].mxu1  ;;  %v3175_v17 = vpop.f32.mrb[23].mxu0 }
 0x287   : > { %v4221_v50 = vadd.f32 %v4189_v32, %v4155_v29  ;;  %v2359_v38 = vpop.f32.mrb[21].mxu1 }
 0x288   : > { %v4222_v31 = vadd.f32 %v3172_v11, %v2359_v38  ;;  %v4156_v41 = vpop.f32.mrb[22].mxu1 }
 0x289   : > { %v4035_v57 = vpack.c.bf16 %v4221_v50, %v4221_v50  ;;  %v4223_v7 = vadd.f32 %v4190_v10, %v4156_v41  ;;  %v2362_v49 = vpop.f32.mrb[23].mxu1  ;;  %v3503_v55 = vmul.f32 %v4221_v50, %v4221_v50  ;;  %v3454_v21 = vsel %vm1323_vm10, %v4221_v50, 0.0 }
 0x28a   : > { %v4033_v63 = vpack.c.bf16 %v4222_v31, %v4222_v31  ;;  %v3450_v9 = vsel %vm1323_vm10, %v4222_v31, 0.0  ;;  %v3501_v30 = vmul.f32 %v4222_v31, %v4222_v31  ;;  %v4224_v12 = vadd.f32 %v3175_v17, %v2362_v49 }
 0x28b   : > { %3401 = vst.msk [vmem:[%s6005_s12 + $0x58] sm:$0xf] %vm248_vm0, %v4035_v57  ;;  %v3451_v62 = vadd.f32 %v3450_v9, %v3449_v43  ;;  %v4036_v39 = vpack.c.bf16 %v4223_v7, %v4223_v7  ;;  %v3504_v36 = vmul.f32 %v4223_v7, %v4223_v7  ;;  %v3456_v13 = vsel %vm1323_vm10, %v4223_v7, 0.0 }
 0x28c   : > { %3399 = vst.msk [vmem:[%s6005_s12 + $0x50] sm:$0xf] %vm248_vm0, %v4033_v63  ;;  %v3552_v48 = vsel %vm1323_vm10, %v3501_v30, 0.0  ;;  %v4034_v22 = vpack.c.bf16 %v4224_v12, %v4224_v12  ;;  %v3452_v34 = vsel %vm1323_vm10, %v4224_v12, 0.0  ;;  %v3502_v51 = vmul.f32 %v4224_v12, %v4224_v12 }
 0x28d   : > { %v3553_v54 = vadd.f32 %v3552_v48, %v3551_v3  ;;  %3402 = vst.msk [vmem:[%s6005_s12 + $0x5c] sm:$0xf] %vm248_vm0, %v4036_v39  ;;  %v3453_v40 = vadd.f32 %v3452_v34, %v3451_v62  ;;  %v3556_v61 = vsel %vm1323_vm10, %v3503_v55, 0.0  ;;  %v3558_v4 = vsel %vm1323_vm10, %v3504_v36, 0.0 }
 0x28e   : > { %3400 = vst.msk [vmem:[%s6005_s12 + $0x54] sm:$0xf] %vm248_vm0, %v4034_v22  ;;  %v3554_v53 = vsel %vm1323_vm10, %v3502_v51, 0.0 }
 0x28f   : > { %v3455_v26 = vadd.f32 %v3454_v21, %v3453_v40  ;;  %v3555_v45 = vadd.f32 %v3554_v53, %v3553_v54 }
 0x291   : > { %v3457_v60 = vadd.f32 %v3456_v13, %v3455_v26  ;;  %v3557_v33 = vadd.f32 %v3556_v61, %v3555_v45 }
 0x293   : > { %v4193_v24 = vpop.f32.mrb[24].mxu0  ;;  %v3559_v6 = vadd.f32 %v3558_v4, %v3557_v33 }
 0x294   : > { %v3188_v37 = vpop.f32.mrb[25].mxu0 }
 0x295   : > { %v4194_v14 = vpop.f32.mrb[26].mxu0 }
 0x296   : > { %v4159_v2 = vpop.f32.mrb[24].mxu1  ;;  %v3191_v52 = vpop.f32.mrb[27].mxu0 }
 0x297   : > { %v4225_v35 = vadd.f32 %v4193_v24, %v4159_v2  ;;  %v2375_v58 = vpop.f32.mrb[25].mxu1 }
 0x298   : > { %v4226_v44 = vadd.f32 %v3188_v37, %v2375_v58  ;;  %v4160_v25 = vpop.f32.mrb[26].mxu1 }
 0x299   : > { %v4039_v0 = vpack.c.bf16 %v4225_v35, %v4225_v35  ;;  %v4227_v15 = vadd.f32 %v4194_v14, %v4160_v25  ;;  %v2378_v56 = vpop.f32.mrb[27].mxu1  ;;  %v3507_v46 = vmul.f32 %v4225_v35, %v4225_v35  ;;  %v3462_v8 = vsel %vm1323_vm10, %v4225_v35, 0.0 }
 0x29a   : > { %v4037_v5 = vpack.c.bf16 %v4226_v44, %v4226_v44  ;;  %v3458_v19 = vsel %vm1323_vm10, %v4226_v44, 0.0  ;;  %v3505_v23 = vmul.f32 %v4226_v44, %v4226_v44  ;;  %v4228_v16 = vadd.f32 %v3191_v52, %v2378_v56 }
 0x29b   : > { %3405 = vst.msk [vmem:[%s6005_s12 + $0x68] sm:$0xf] %vm248_vm0, %v4039_v0  ;;  %v3459_v27 = vadd.f32 %v3458_v19, %v3457_v60  ;;  %v4040_v18 = vpack.c.bf16 %v4227_v15, %v4227_v15  ;;  %v3508_v28 = vmul.f32 %v4227_v15, %v4227_v15  ;;  %v3464_v3 = vsel %vm1323_vm10, %v4227_v15, 0.0 }
 0x29c   : > { %3403 = vst.msk [vmem:[%s6005_s12 + $0x60] sm:$0xf] %vm248_vm0, %v4037_v5  ;;  %v3560_v42 = vsel %vm1323_vm10, %v3505_v23, 0.0  ;;  %v4038_v47 = vpack.c.bf16 %v4228_v16, %v4228_v16  ;;  %v3460_v20 = vsel %vm1323_vm10, %v4228_v16, 0.0  ;;  %v3506_v43 = vmul.f32 %v4228_v16, %v4228_v16 }
 0x29d   : > { %v3561_v59 = vadd.f32 %v3560_v42, %v3559_v6  ;;  %3406 = vst.msk [vmem:[%s6005_s12 + $0x6c] sm:$0xf] %vm248_vm0, %v4040_v18  ;;  %v3461_v1 = vadd.f32 %v3460_v20, %v3459_v27  ;;  %v3564_v29 = vsel %vm1323_vm10, %v3507_v46, 0.0  ;;  %v3566_v38 = vsel %vm1323_vm10, %v3508_v28, 0.0 }
 0x29e   : > { %3404 = vst.msk [vmem:[%s6005_s12 + $0x64] sm:$0xf] %vm248_vm0, %v4038_v47  ;;  %v3562_v11 = vsel %vm1323_vm10, %v3506_v43, 0.0 }
 0x29f   : > { %v3463_v32 = vadd.f32 %v3462_v8, %v3461_v1  ;;  %v3563_v10 = vadd.f32 %v3562_v11, %v3561_v59 }
 0x2a1   : > { %v3465_v17 = vadd.f32 %v3464_v3, %v3463_v32  ;;  %v3565_v50 = vadd.f32 %v3564_v29, %v3563_v10 }
 0x2a3   : > { %v4197_v31 = vpop.f32.mrb[28].mxu0  ;;  %v3567_v57 = vadd.f32 %v3566_v38, %v3565_v50 }
 0x2a4   : > { %v3204_v41 = vpop.f32.mrb[29].mxu0 }
 0x2a5   : > { %v4198_v7 = vpop.f32.mrb[30].mxu0 }
 0x2a6   : > { %v4163_v49 = vpop.f32.mrb[28].mxu1  ;;  %v3207_v63 = vpop.f32.mrb[31].mxu0 }
 0x2a7   : > { %v4229_v9 = vadd.f32 %v4197_v31, %v4163_v49  ;;  %v2391_v30 = vpop.f32.mrb[29].mxu1 }
 0x2a8   : > { %v4230_v12 = vadd.f32 %v3204_v41, %v2391_v30  ;;  %v4164_v62 = vpop.f32.mrb[30].mxu1 }
 0x2a9   : > { %v4043_v39 = vpack.c.bf16 %v4229_v9, %v4229_v9  ;;  %v4231_v48 = vadd.f32 %v4198_v7, %v4164_v62  ;;  %v2394_v22 = vpop.f32.mrb[31].mxu1  ;;  %v3511_v13 = vmul.f32 %v4229_v9, %v4229_v9  ;;  %v3470_v33 = vsel %vm1323_vm10, %v4229_v9, 0.0 }
 0x2aa   : > { %v4041_v34 = vpack.c.bf16 %v4230_v12, %v4230_v12  ;;  %v3466_v55 = vsel %vm1323_vm10, %v4230_v12, 0.0  ;;  %v3509_v54 = vmul.f32 %v4230_v12, %v4230_v12  ;;  %v4232_v40 = vadd.f32 %v3207_v63, %v2394_v22 }
 0x2ab   : > { %3409 = vst.msk [vmem:[%s6005_s12 + $0x78] sm:$0xf] %vm248_vm0, %v4043_v39  ;;  %v3467_v51 = vadd.f32 %v3466_v55, %v3465_v17  ;;  %v4044_v21 = vpack.c.bf16 %v4231_v48, %v4231_v48  ;;  %v3512_v4 = vmul.f32 %v4231_v48, %v4231_v48 }
 0x2ac   : > { %3407 = vst.msk [vmem:[%s6005_s12 + $0x70] sm:$0xf] %vm248_vm0, %v4041_v34  ;;  %v3568_v36 = vsel %vm1323_vm10, %v3509_v54, 0.0  ;;  %v4042_v26 = vpack.c.bf16 %v4232_v40, %v4232_v40  ;;  %v3468_v53 = vsel %vm1323_vm10, %v4232_v40, 0.0  ;;  %v3510_v60 = vmul.f32 %v4232_v40, %v4232_v40 }
 0x2ad   : > { %v3569_v45 = vadd.f32 %v3568_v36, %v3567_v57  ;;  %3410 = vst.msk [vmem:[%s6005_s12 + $0x7c] sm:$0xf] %vm248_vm0, %v4044_v21  ;;  %v3469_v61 = vadd.f32 %v3468_v53, %v3467_v51 }
 0x2ae   : > { %3408 = vst.msk [vmem:[%s6005_s12 + $0x74] sm:$0xf] %vm248_vm0, %v4042_v26  ;;  %v3570_v37 = vsel %vm1323_vm10, %v3510_v60, 0.0 }
 0x2af   : > { %v3471_v24 = vadd.f32 %v3470_v33, %v3469_v61 }
 0x2b0   : > { %4553 = shalt.err (!%p4550_p7)
}
 0x2b1   : > { %s4554_s8 = scalar_lea.hbm %s6135_s9, 2048  ;;  %s4558_s12 = scalar_lea.hbm %s6269_s2, 4096 }
 0x2b2   : > { %p4555_p9 = scmp.ne.s32.totalorder %s6135_s9, %s4554_s8  ;;  %p4559_p5 = scmp.lt.u32.totalorder %s6135_s9, %s6269_s2 }
 0x2b3   : > { %p4560_p11 = scmp.lt.u32.totalorder %s4558_s12, %s4554_s8  ;;  %p4562_p4 = scmp.lt.u32.totalorder %s4554_s8, %s6135_s9 }
 0x2b4   : > { %p4556_p1 = pnand %p4555_p9, %p4804_p12 }
 0x2b5   : > { %p4561_p2 = por %p4560_p11, %p4559_p5 }
 0x2b6   : > { %p4557_p0 = pneg %p4556_p1 }
 0x2b7   : > { %p4563_p6 = por %p4562_p4, %p4561_p2 }
 0x2b9   : > { %p4564_p8 = pnand %p4563_p6, %p4557_p0 }
 0x2bb   : > { %4567 = shalt.err (!%p4564_p8)
}
 0x2bc   : > { %s4680_s11 = smov 64   ;;  %v3472_v6 = vsel %vm1323_vm10, %v4231_v48, 0.0  ;;  %v3571_v14 = vadd.f32 %v3570_v37, %v3569_v45  ;;  %v3572_v2 = vsel %vm1323_vm10, %v3511_v13, 0.0  ;;  %v3574_v58 = vsel %vm1323_vm10, %v3512_v4, 0.0  ;;  %s246_s25 = scalar_lea.vmem [#allocation11], %s4855_s14 }
 0x2bd   : > { %4275 = dma.vmem_to_hbm [thread:$0]  (%p4804_p12), %s6141_s10, 2048, %s6135_s9, %s3584_s26, %s4680_s11, %s4680_s11, %s4678_s23   ;;  %v3473_v52 = vadd.f32 %v3472_v6, %v3471_v24 }
 0x2be   : > { %v3573_v35 = vadd.f32 %v3572_v2, %v3571_v14  ;;  %s3588_s23 = sand.u32 1, %s4729_s19   ;;  %s4008_s10 = sshll.u32 %s4729_s19, 4 }
 0x2bf   : > { %v3474_v44 = vrot.slane %v3473_v52, 4  ;;  %s240_s9 = scalar_lea.vmem [#allocation9], %s4855_s14  ;;  %s3634_s24 = sshll.u32 %s246_s25, 4  ;;  %s6196_s24 = int_to_ptr.vmem [resolvable:$true] %s3634_s24 }
 0x2c0   : > { %v3575_v25 = vadd.f32 %v3574_v58, %v3573_v35  ;;  %s3621_s26 = sshll.u32 %s240_s9, 4  ;;  %s6186_s8 = scalar_lea.hbm %s6270_s3, %s4008_s10  ;;  %s6188_s26 = int_to_ptr.vmem [resolvable:$true] %s3621_s26 }
 0x2c1   : > { %v3475_v0 = vadd.f32 %v3474_v44, %v3473_v52  ;;  %s6194_s21 = scalar_lea.hbm %s6271_s4, %s4008_s10  ;;  %s6198_s12 = scalar_lea.sflag [#allocation10], %s3588_s23 }
 0x2c2   : > { %v3576_v15 = vrot.slane %v3575_v25, 4  ;;  %s4568_s13 = scalar_lea.vmem %s6188_s26, 16  ;;  %s4681_s28 = smov [#allocation9]  }
 0x2c3   : > { %v3476_v56 = vrot.slane %v3475_v0, 2  ;;  %p4569_p10 = scmp.ne.s32.totalorder %s6188_s26, %s4568_s13  ;;  %s4572_s11 = sshll.u32 %s4681_s28, 4  ;;  %s4573_s11 = int_to_ptr.vmem [resolvable:$false] %s4572_s11 }
 0x2c4   : > { %v3577_v5 = vadd.f32 %v3576_v15, %v3575_v25  ;;  %s4574_s6 = scalar_lea.vmem %s4573_s11, 32  ;;  %p4575_p7 = scmp.lt.s32.totalorder %s6188_s26, %s4573_s11 }
 0x2c5   : > { %v3477_v19 = vadd.f32 %v3476_v56, %v3475_v0  ;;  %p4570_p13 = pnand %p4569_p10, %p4804_p12  ;;  %p4576_p9 = scmp.lt.s32.totalorder %s4574_s6, %s4568_s13 }
 0x2c6   : > { %v3578_v23 = vrot.slane %v3577_v5, 2 }
 0x2c7   : > { %v3478_v16 = vrot.slane %v3477_v19, 1  ;;  %p4571_p3 = pneg %p4570_p13  ;;  %p4577_p1 = por %p4576_p9, %p4575_p7 }
 0x2c8   : > { %v3579_v27 = vadd.f32 %v3578_v23, %v3577_v5 }
 0x2c9   : > { %v3479_v18 = vadd.f32 %v3478_v16, %v3477_v19  ;;  %p4578_p0 = pnand %p4577_p1, %p4571_p3 }
 0x2ca   : > { %v3580_v42 = vrot.slane %v3579_v27, 1 }
 0x2cb   : > { %3480 = vst.msk [vmem:[%s240_s9] sm:$0x1] %vm251_vm1, %v3479_v18 }
 0x2cc   : > { %4581 = shalt.err (!%p4578_p0)
}
 0x2cd   : > { %s4582_s23 = scalar_lea.hbm %s6186_s8, 16  ;;  %s4586_s7 = scalar_lea.hbm %s6270_s3, 32 }
 0x2ce   : > { %p4583_p5 = scmp.ne.s32.totalorder %s6186_s8, %s4582_s23  ;;  %p4587_p4 = scmp.lt.u32.totalorder %s6186_s8, %s6270_s3 }
 0x2cf   : > { %p4588_p6 = scmp.lt.u32.totalorder %s4586_s7, %s4582_s23  ;;  %p4590_p10 = scmp.lt.u32.totalorder %s4582_s23, %s6186_s8 }
 0x2d0   : > { %p4584_p11 = pnand %p4583_p5, %p4804_p12 }
 0x2d1   : > { %p4589_p8 = por %p4588_p6, %p4587_p4 }
 0x2d2   : > { %p4585_p2 = pneg %p4584_p11 }
 0x2d3   : > { %p4591_p13 = por %p4590_p10, %p4589_p8 }
 0x2d5   : > { %p4592_p3 = pnand %p4591_p13, %p4585_p2 }
 0x2d7   : > { %4595 = shalt.err (!%p4592_p3)
}
 0x2d8   : > { %4276 = dma.vmem_to_hbm [thread:$0]  (%p4804_p12), %s6188_s26, 16, %s6186_s8, %s6198_s12   ;;  %v3581_v47 = vadd.f32 %v3580_v42, %v3579_v27 }
 0x2d9   : > { %s4596_s13 = scalar_lea.vmem %s6196_s24, 16  ;;  %s4682_s28 = smov [#allocation11]  }
 0x2da   : > { %3582 = vst.msk [vmem:[%s246_s25] sm:$0x1] %vm251_vm1, %v3581_v47  ;;  %p4597_p7 = scmp.ne.s32.totalorder %s6196_s24, %s4596_s13  ;;  %s4600_s11 = sshll.u32 %s4682_s28, 4  ;;  %s4601_s11 = int_to_ptr.vmem [resolvable:$false] %s4600_s11 }
 0x2db   : > { %s4602_s6 = scalar_lea.vmem %s4601_s11, 32  ;;  %p4603_p0 = scmp.lt.s32.totalorder %s6196_s24, %s4601_s11 }
 0x2dc   : > { %p4598_p9 = pnand %p4597_p7, %p4804_p12  ;;  %p4604_p5 = scmp.lt.s32.totalorder %s4602_s6, %s4596_s13 }
 0x2de   : > { %p4599_p1 = pneg %p4598_p9  ;;  %p4605_p11 = por %p4604_p5, %p4603_p0 }
 0x2e0   : > { %p4606_p2 = pnand %p4605_p11, %p4599_p1 }
 0x2e2   : > { %4609 = shalt.err (!%p4606_p2)
}
 0x2e3   : > { %s4610_s14 = scalar_lea.hbm %s6194_s21, 16  ;;  %s4614_s8 = scalar_lea.hbm %s6271_s4, 32 }
 0x2e4   : > { %p4611_p4 = scmp.ne.s32.totalorder %s6194_s21, %s4610_s14  ;;  %p4615_p10 = scmp.lt.u32.totalorder %s6194_s21, %s6271_s4 }
 0x2e5   : > { %p4616_p13 = scmp.lt.u32.totalorder %s4614_s8, %s4610_s14  ;;  %p4618_p7 = scmp.lt.u32.totalorder %s4610_s14, %s6194_s21 }
 0x2e6   : > { %p4612_p6 = pnand %p4611_p4, %p4804_p12 }
 0x2e7   : > { %p4617_p3 = por %p4616_p13, %p4615_p10 }
 0x2e8   : > { %p4613_p8 = pneg %p4612_p6 }
 0x2e9   : > { %p4619_p9 = por %p4618_p7, %p4617_p3 }
 0x2eb   : > { %p4620_p1 = pnand %p4619_p9, %p4613_p8 }
 0x2ed   : > { %4623 = shalt.err (!%p4620_p1)
}
 0x2ee   : > { %4277 = dma.vmem_to_hbm [thread:$0]  (%p4804_p12), %s6196_s24, 16, %s6194_s21, %s6198_s12  }
 0x2ef PF: > { %s3646_s9 = sand.u32 1, %s4658_s15   ;;  %p6318_p0 = scmp.ne.s32.totalorder %s6284_s22, 0 }
 0x2f0   : > { %p6319_p5 = scmp.ge.s32.totalorder %s4670_s18, 2  ;;  %s3647_s7 = scalar_lea.sflag [#allocation5], %s3646_s9 }
 0x2f2   : > { %p4290_p11 = pnand %p6319_p5, %p6318_p0 }
 0x2f4   : > { %4649 = dma.done.wait (!%p4290_p11), %s3647_s7, 2048  }
 0x2f5   : > { %4651 = vsyncadd (!%p4290_p11), %s3647_s7, 4294965248  ;;  %s3655_s19 = sand.u32 1, %s3767_s20  }
 0x2f6   : > { %s3656_s29 = scalar_lea.sflag [#allocation10], %s3655_s19 }
 0x2f7   : > { %4653 = dma.done.wait (!%p4290_p11), %s3656_s29, 32  }
 0x2f8   : > { %4655 = vsyncadd (!%p4290_p11), %s3656_s29, 4294967264  ;;  %p22_p12 = scmp.ge.s32.totalorder %s4766_s27, 4   ;;  %s6320_s15 = smov %s4662_s16 }
 0x2f9   : > { %s6321_s16 = smov %s4666_s17  ;;  %s6322_s17 = smov %s4800_s30 }
 0x2fa   : > { %s6323_s18 = smov %s4766_s27  ;;  %24 = sbr.rel (!%p22_p12) target bundleno = 8 (0x8), region = 113 }
 0x301   :  { %3668 = vsyncpa [#allocation4], 1 }
 0x302   :  { %3670 = vsyncpa [#allocation4 + $0x1], 1 }
 0x303   :  { %3671 = vsyncpa [#allocation7], 1 }
 0x304   :  { %3672 = vsyncpa [#allocation5], 1 }
 0x305   :  { %3674 = vsyncpa [#allocation5 + $0x1], 1 }
 0x306   :  { %3675 = vsyncpa [#allocation10], 1 }
 0x307   :  { %3677 = vsyncpa [#allocation10 + $0x1], 1 }

// kernel: basic_block.4
= control target key start
LH: loop header
LB: loop body
LE: loop exit
PB: predicated region body
PF: predicated region fallthrough
CT: control target
= control target key end

     0   :  { %s7048_s0 = inlined_call_operand.hbm [shape: f32[1,4], index: 0, kind: input, shape index: {}]   ;;  %s7049_s1 = inlined_call_operand.hbm [shape: f32[1,4], index: 1, kind: input, shape index: {}]   ;;  %s7050_s2 = inlined_call_operand.hbm [shape: bf16[2,256,4], index: 2, kind: input, shape index: {}]   ;;  %s7051_s3 = inlined_call_operand.hbm [shape: bf16[3,12,4], index: 3, kind: input, shape index: {}]   ;;  %s7052_s4 = inlined_call_operand.hbm [shape: bf16[2,256,4], index: 4, kind: output, shape index: {0}]   ;;  %s7053_s5 = inlined_call_operand.hbm [shape: f32[2,1,4], index: 5, kind: output, shape index: {1}]   ;;  %s7054_s6 = inlined_call_operand.hbm [shape: f32[2,1,4], index: 6, kind: output, shape index: {2}]  }
   0x1   :  { %7083 = sst [smem:[#allocation43_spill]] %s7048_s0 }
   0x2   :  { %7084 = sst [smem:[#allocation44_spill]] %s7049_s1 }
   0x3   :  { %12 = vsyncpa [#allocation4], 0 }
   0x4   :  { %13 = vsyncpa [#allocation7], 0 }
   0x5   :  { %14 = vsyncpa [#allocation5], 0 }
   0x6   :  { %16 = vsyncpa [#allocation5 + $0x1], 0 }
   0x7   :  { %17 = vsyncpa [#allocation12], 0 }
   0x8   :  { %19 = vsyncpa [#allocation12 + $0x1], 0  ;;  %s5281_s21 = smov 0   ;;  %s5283_s22 = smov 0  }
   0x9   :  { %s5285_s23 = smov 0   ;;  %s5287_s24 = smov 0  }
   0xa LB: > { %s5302_s25 = sadd.s32 4294967295, %s5231_s24   ;;  %s7060_s26 = sadd.s32 4294967294, %s5231_s24   ;;  %s5231_s24 = sphi %s5287_s24, %s7165_s24   ;;  %s5227_s23 = sphi %s5285_s23, %s7164_s23   ;;  %s5223_s22 = sphi %s5283_s22, %s7163_s22   ;;  %s5219_s21 = sphi %s5281_s21, %s7162_s21  }
   0xb   : > { %s5306_s27 = sadd.s32 1, %s5231_s24   ;;  %s74_s28 = sadd.s32 1, %s5227_s23 }
   0xc   : > { %s71_s29 = ssub.s32 %s5231_s24, %s5306_s27  ;;  %p81_p0 = scmp.ne.s32.totalorder %s5227_s23, %s5223_s22 }
   0xd   : > { %p72_p1 = scmp.eq.s32.totalorder %s71_s29, 0  ;;  %p82_p2 = scmp.eq.s32.totalorder %s5231_s24, 0 }
   0xe   : > { %p87_p3 = scmp.ne.s32.totalorder %s5223_s22, %s5219_s21  ;;  %p7055_p4 = scmp.eq.s32.totalorder %s5302_s25, 0 }
   0xf   : > { %s5318_s30 = scalar_select %p72_p1, %s5227_s23, %s74_s28  }
  0x10   : > { %p5320_p5 = por %p82_p2, %p81_p0  ;;  %p5326_p6 = por %p7055_p4, %p87_p3 }
  0x11   : > { %7085 = sst [smem:[#allocation20_spill]] %s5318_s30  ;;  %p132_p7 = scmp.eq.s32.totalorder %s5302_s25, 1 }
  0x12   : > { %s7087_s8 = scalar_select %p5326_p6, 1, 0 }
  0x13   : > { %p138_p8 = scmp.eq.s32.totalorder %s7060_s26, 1  ;;  %p4100_p9 = scmp.ge.s32.totalorder %s5231_s24, 1 }
  0x14   : > { %p197_p10 = scmp.lt.s32.totalorder %s5231_s24, 3  ;;  %p5335_p11 = por %p132_p7, %p81_p0 }
  0x15   : > { %p5339_p12 = por %p138_p8, %p87_p3  ;;  %s5233_s12 = smov [#allocation3]  }
  0x16   : > { %s7088_s9 = scalar_select %p5335_p11, 1, 0 }
  0x17   : > { %s7089_s10 = scalar_select %p5339_p12, 1, 0 }
  0x18   : > { %p5343_p13 = pnand %p4100_p9, %p197_p10  ;;  %s210_s13 = sshll.u32 %s5233_s12, 4  ;;  %s211_s13 = int_to_ptr.vmem [resolvable:$true] %s210_s13 }
  0x19   : > { %p4797_p4 = scmp.lt.s32.totalorder %s5231_s24, 2  ;;  %p7091_p0 = scmp.eq.s32.totalorder %s5302_s25, 0 }
  0x1a   : > { %s7090_s11 = scalar_select %p5343_p13, 1, 0 }
  0x1b   : > { %p4770_p2 = pneg %p5343_p13  ;;  %p5359_p3 = pnand %p4797_p4, %p5320_p5 }
  0x1c   : > { %s5234_s16 = smov [#allocation6]   ;;  %s7094_s0 = sld [smem:[#allocation43_spill]] }
  0x1d   : > { %p5353_p7 = pnand %p4770_p2, %p7091_p0  ;;  %s221_s17 = sshll.u32 %s5234_s16, 4  ;;  %s5363_s17 = int_to_ptr.vmem [resolvable:$true] %s221_s17 }
  0x1e   : > { %s7093_s15 = scalar_select %p5359_p3, 1, 0 }
  0x1f   : > { %p5373_p9 = pneg %p5353_p7 }
  0x22   : > { %s4979_s20 = scalar_lea.hbm %s7094_s0, 16 }
  0x23   : > { %p4980_p8 = scmp.ne.s32.totalorder %s7094_s0, %s4979_s20  ;;  %p4986_p10 = scmp.lt.u32.totalorder %s4979_s20, %s7094_s0 }
  0x25   : > { %p4982_p4 = pnand %p5373_p9, %p4980_p8 }
  0x27   : > { %p4983_p5 = pneg %p4982_p4 }
  0x29   : > { %p4988_p2 = pnand %p4986_p10, %p4983_p5 }
  0x2b   : > { %4991 = shalt.err (!%p4988_p2)
}
  0x2c   : > { %s4992_s18 = scalar_lea.vmem %s211_s13, 16  ;;  %s4999_s19 = scalar_lea.vmem %s211_s13, 32 }
  0x2d   : > { %p4993_p0 = scmp.ne.s32.totalorder %s211_s13, %s4992_s18  ;;  %p5000_p11 = scmp.lt.s32.totalorder %s211_s13, %s211_s13 }
  0x2e   : > { %p5001_p6 = scmp.lt.s32.totalorder %s4999_s19, %s4992_s18 }
  0x2f   : > { %p4995_p1 = pnand %p4993_p0, %p5373_p9 }
  0x30   : > { %p5002_p13 = por %p5001_p6, %p5000_p11 }
  0x31   : > { %p4996_p12 = pneg %p4995_p1 }
  0x33   : > { %p5003_p3 = pnand %p5002_p13, %p4996_p12 }
  0x35   : > { %5006 = shalt.err (!%p5003_p3)
}
  0x36   : > { %4773 = dma.hbm_to_vmem [thread:$0]  (!%p5353_p7), %s7094_s0, 16, %s211_s13, [#allocation4]  }
  0x37   : > { %s7096_s1 = sld [smem:[#allocation44_spill]] }
  0x3d   : > { %s5007_s16 = scalar_lea.hbm %s7096_s1, 16 }
  0x3e   : > { %p5008_p1 = scmp.ne.s32.totalorder %s7096_s1, %s5007_s16  ;;  %p5014_p11 = scmp.lt.u32.totalorder %s5007_s16, %s7096_s1 }
  0x40   : > { %p5010_p8 = pnand %p5008_p1, %p5373_p9 }
  0x42   : > { %p5011_p6 = pneg %p5010_p8 }
  0x44   : > { %p5016_p12 = pnand %p5014_p11, %p5011_p6 }
  0x46   : > { %5019 = shalt.err (!%p5016_p12)
}
  0x47   : > { %s5020_s13 = scalar_lea.vmem %s5363_s17, 16  ;;  %s5027_s26 = scalar_lea.vmem %s5363_s17, 32 }
  0x48   : > { %p5021_p13 = scmp.ne.s32.totalorder %s5363_s17, %s5020_s13  ;;  %p5028_p5 = scmp.lt.s32.totalorder %s5363_s17, %s5363_s17 }
  0x49   : > { %p5029_p10 = scmp.lt.s32.totalorder %s5027_s26, %s5020_s13 }
  0x4a   : > { %p5023_p3 = pnand %p5021_p13, %p5373_p9 }
  0x4b   : > { %p5030_p2 = por %p5029_p10, %p5028_p5 }
  0x4c   : > { %p5024_p4 = pneg %p5023_p3 }
  0x4e   : > { %p5031_p0 = pnand %p5030_p2, %p5024_p4 }
  0x50   : > { %5034 = shalt.err (!%p5031_p0)
}
  0x51   : > { %4776 = dma.hbm_to_vmem [thread:$0]  (!%p5353_p7), %s7096_s1, 16, %s5363_s17, [#allocation7]  }
  0x52   : > { %s5235_s29 = smov [#allocation9]   ;;  %s5035_s18 = scalar_lea.hbm %s7051_s3, 384 }
  0x53   : > { %s231_s20 = sshll.u32 %s5235_s29, 4  ;;  %p5036_p1 = scmp.ne.s32.totalorder %s7051_s3, %s5035_s18  ;;  %s232_s20 = int_to_ptr.vmem [resolvable:$true] %s231_s20 }
  0x54   : > { %p5042_p11 = scmp.lt.u32.totalorder %s5035_s18, %s7051_s3 }
  0x55   : > { %p5038_p8 = pnand %p5036_p1, %p5373_p9 }
  0x57   : > { %p5039_p6 = pneg %p5038_p8 }
  0x59   : > { %p5044_p12 = pnand %p5042_p11, %p5039_p6 }
  0x5b   : > { %5047 = shalt.err (!%p5044_p12)
}
  0x5c   : > { %s5048_s17 = scalar_lea.vmem %s232_s20, 384  ;;  %p5056_p5 = scmp.lt.s32.totalorder %s232_s20, %s232_s20 }
  0x5d   : > { %p5049_p13 = scmp.ne.s32.totalorder %s232_s20, %s5048_s17  ;;  %p5057_p10 = scmp.lt.s32.totalorder %s5048_s17, %s5048_s17 }
  0x5f   : > { %p5051_p3 = pnand %p5049_p13, %p5373_p9  ;;  %p5058_p2 = por %p5057_p10, %p5056_p5 }
  0x61   : > { %p5052_p4 = pneg %p5051_p3 }
  0x63   : > { %p5059_p0 = pnand %p5058_p2, %p5052_p4 }
  0x65   : > { %5062 = shalt.err (!%p5059_p0)
}
  0x66   : > { %s5236_s30 = smov 64   ;;  %s5237_s0 = smov 4  }
  0x67   : > { %4779 = dma.hbm_to_vmem [thread:$0]  (!%p5353_p7), %s7051_s3, 384, %s232_s20, [#allocation7], %s5236_s30, %s5236_s30, %s5237_s0  }
  0x68   : > { %s245_s29 = sand.u32 1, %s5231_s24   ;;  %s247_s12 = sand.u32 1, %s5227_s23  }
  0x69   : > { %s4105_s16 = sshll.u32 %s247_s12, 7  ;;  %s4382_s18 = sshll.u32 %s5231_s24, 11 }
  0x6a   : > { %s5440_s26 = scalar_lea.hbm %s7050_s2, %s4382_s18  ;;  %s249_s14 = scalar_lea.vmem [#allocation8], %s4105_s16 }
  0x6b   : > { %s256_s17 = sshll.u32 %s249_s14, 4  ;;  %s5444_s1 = scalar_lea.sflag [#allocation4], %s245_s29  ;;  %s5442_s17 = int_to_ptr.vmem [resolvable:$true] %s256_s17 }
  0x6c   : > { %s5063_s20 = scalar_lea.hbm %s5440_s26, 2048  ;;  %p7097_p9 = scmp.ne.s32.totalorder %s7093_s15, 0 }
  0x6d   : > { %p5064_p7 = scmp.ne.s32.totalorder %s5440_s26, %s5063_s20  ;;  %s5068_s12 = scalar_lea.hbm %s7050_s2, 4096 }
  0x6e   : > { %p5065_p1 = pneg %p7097_p9  ;;  %p5069_p11 = scmp.lt.u32.totalorder %s5440_s26, %s7050_s2 }
  0x6f   : > { %p5070_p12 = scmp.lt.u32.totalorder %s5068_s12, %s5063_s20  ;;  %p5072_p3 = scmp.lt.u32.totalorder %s5063_s20, %s5440_s26 }
  0x70   : > { %p5066_p8 = pnand %p5065_p1, %p5064_p7 }
  0x71   : > { %p5071_p13 = por %p5070_p12, %p5069_p11 }
  0x72   : > { %p5067_p6 = pneg %p5066_p8 }
  0x73   : > { %p5073_p4 = por %p5072_p3, %p5071_p13 }
  0x75   : > { %p5074_p5 = pnand %p5073_p4, %p5067_p6 }
  0x77   : > { %5077 = shalt.err (!%p5074_p5)
}
  0x78   : > { %s5078_s29 = scalar_lea.vmem %s5442_s17, 2048  ;;  %s5238_s16 = smov [#allocation8]  }
  0x79   : > { %p5079_p10 = scmp.ne.s32.totalorder %s5442_s17, %s5078_s29  ;;  %s5083_s13 = sshll.u32 %s5238_s16, 4  ;;  %s5084_s13 = int_to_ptr.vmem [resolvable:$false] %s5083_s13 }
  0x7a   : > { %s5085_s14 = scalar_lea.vmem %s5084_s13, 4096  ;;  %p5086_p7 = scmp.lt.s32.totalorder %s5442_s17, %s5084_s13 }
  0x7b   : > { %p5081_p2 = pnand %p5079_p10, %p5065_p1  ;;  %p5087_p8 = scmp.lt.s32.totalorder %s5085_s14, %s5078_s29 }
  0x7d   : > { %p5082_p0 = pneg %p5081_p2  ;;  %p5088_p11 = por %p5087_p8, %p5086_p7 }
  0x7f   : > { %p5089_p12 = pnand %p5088_p11, %p5082_p0 }
  0x81   : > { %5092 = shalt.err (!%p5089_p12)
}
  0x82   : > { %4783 = dma.hbm_to_vmem [thread:$0]  (!%p7097_p9), %s5440_s26, 2048, %s5442_s17, %s5444_s1, %s5236_s30, %s5236_s30, %s5237_s0  }
  0x83   : > { %p7098_p1 = scmp.ne.s32.totalorder %s7090_s11, 0 }
  0x85   : > { %268 = sbr.rel (%p7098_p1) target bundleno = 846 (0x34e), region = 36 }
  0x8c   : > { %p7099_p6 = scmp.eq.s32.totalorder %s5302_s25, 0 }
  0x8e   : > { %5194 = dma.done.wait (%p7099_p6), [#allocation4], 16   ;;  %p7100_p13 = pmov %p7099_p6 }
  0x8f   : > { %p7101_p3 = pmov %p7099_p6 }
  0x90   : > { %5196 = vsyncadd (%p7100_p13), [#allocation4], 4294967280 }
  0x91   : > { %5198 = dma.done.wait (%p7101_p3), [#allocation7], 16   ;;  %p7102_p4 = pmov %p7101_p3 }
  0x92   : > { %s278_s1 = sand.u32 1, %s5302_s25   ;;  %s5487_s15 = sand.u32 1, %s5223_s22  }
  0x93   : > { %5200 = vsyncadd (%p7102_p4), [#allocation7], 4294967280  ;;  %s4111_s11 = sshll.u32 %s5487_s15, 7  ;;  %s279_s30 = scalar_lea.sflag [#allocation4], %s278_s1 }
  0x94   : > { %s5494_s0 = scalar_lea.vmem [#allocation8], %s4111_s11  ;;  %p7103_p9 = scmp.ne.s32.totalorder %s7087_s8, 0 }
  0x96   : > { %5202 = dma.done.wait (%p7103_p9), %s279_s30, 2048  }
  0x97   : > { %5204 = vsyncadd (%p7103_p9), %s279_s30, 4294965248  ;;  %p7104_p5 = pmov %p7101_p3 }
  0x98   : > { %p7105_p10 = pmov %p7101_p3 }
  0x99   : > { %5206 = dma.done.wait (%p7104_p5), [#allocation7], 384  }
  0x9a   : > { %5208 = vsyncadd (%p7105_p10), [#allocation7], 4294966912  ;;  %vm498_vm0 = vcmask 27648   ;;  %vm501_vm1 = vcmask 24576   ;;  %v5239_v0 = vmov 0   ;;  %vm1556_vm3 = vcmask 1046528  }
  0x9b   : > { %499 = vst.msk [vmem:[#allocation2] sm:$0xf] %vm498_vm0, %v5239_v0  ;;  %500 = vst.msk [vmem:[#allocation2 + $0x4] sm:$0xf] %vm498_vm0, %v5239_v0  ;;  %vm1283_vm2 = vsmask.f32 7424 }
  0x9c   : > { %502 = vst.msk [vmem:[#allocation2 + $0x8] sm:$0x1] %vm501_vm1, %v5239_v0  ;;  %505 = vst.msk [vmem:[#allocation2 + $0x14] sm:$0x1] %vm501_vm1, %v5239_v0  ;;  %v4449_v1 = vld [vmem:[%s5494_s0] sm:$0xff]   ;;  %v4512_v11 = vld [vmem:[%s5494_s0 + $0x8] sm:$0xff]  }
  0x9d   : > { %503 = vst.msk [vmem:[#allocation2 + $0xc] sm:$0xf] %vm498_vm0, %v5239_v0  ;;  %504 = vst.msk [vmem:[#allocation2 + $0x10] sm:$0xf] %vm498_vm0, %v5239_v0  ;;  %v5559_v2 = vld [vmem:[#allocation3] ss:$0 sm:$0xff]  ;;  %v4450_v6 = vunpack.c.l.bf16 %v4449_v1  ;;  %v4451_v7 = vunpack.c.h.bf16 %v4449_v1  ;;  %v4454_v15 = vunpack.c.l.bf16 %v4512_v11  ;;  %v4455_v23 = vunpack.c.h.bf16 %v4512_v11 }
  0x9e   : > { %506 = vst.msk [vmem:[#allocation2 + $0x18] sm:$0xf] %vm498_vm0, %v5239_v0  ;;  %507 = vst.msk [vmem:[#allocation2 + $0x1c] sm:$0xf] %vm498_vm0, %v5239_v0  ;;  %v5561_v3 = vld [vmem:[#allocation6] ss:$0 sm:$0xff] }
  0x9f   : > { %508 = vst.msk [vmem:[#allocation2 + $0x20] sm:$0x1] %vm501_vm1, %v5239_v0  ;;  %511 = vst.msk [vmem:[#allocation2 + $0x2c] sm:$0x1] %vm501_vm1, %v5239_v0  ;;  %vm650_vm4 = vsmask.f32 256  ;;  %v395_v13 = vmul.f32 %v4450_v6, %v5559_v2  ;;  %v396_v14 = vmul.f32 %v4451_v7, %v5559_v2  ;;  %v397_v27 = vmul.f32 %v4454_v15, %v5559_v2 }
  0xa0   : > { %509 = vst.msk [vmem:[#allocation2 + $0x24] sm:$0xf] %vm498_vm0, %v5239_v0  ;;  %510 = vst.msk [vmem:[#allocation2 + $0x28] sm:$0xf] %vm498_vm0, %v5239_v0  ;;  %vm651_vm5 = vsmask.f32 4368  ;;  %v398_v33 = vmul.f32 %v4455_v23, %v5559_v2 }
  0xa1   : > { %512 = vst.msk [vmem:[#allocation2 + $0x30] sm:$0xf] %vm498_vm0, %v5239_v0  ;;  %513 = vst.msk [vmem:[#allocation2 + $0x34] sm:$0xf] %vm498_vm0, %v5239_v0  ;;  %vm975_vm6 = vsmask.f32 7938  ;;  %v434_v21 = vadd.f32 %v5561_v3, %v395_v13  ;;  %v435_v22 = vadd.f32 %v5561_v3, %v396_v14  ;;  %v436_v35 = vadd.f32 %v5561_v3, %v397_v27 }
  0xa2   : > { %514 = vst.msk [vmem:[#allocation2 + $0x38] sm:$0x1] %vm501_vm1, %v5239_v0  ;;  %517 = vst.msk [vmem:[#allocation2 + $0x44] sm:$0x1] %vm501_vm1, %v5239_v0  ;;  %v1091_v4 = vld [vmem:[#allocation2] sm:$0xf]  ;;  %v437_v40 = vadd.f32 %v5561_v3, %v398_v33 }
  0xa3   : > { %515 = vst.msk [vmem:[#allocation2 + $0x3c] sm:$0xf] %vm498_vm0, %v5239_v0  ;;  %516 = vst.msk [vmem:[#allocation2 + $0x40] sm:$0xf] %vm498_vm0, %v5239_v0  ;;  %v1092_v5 = vld [vmem:[#allocation2 + $0x4] sm:$0xf] }
  0xa4   : > { %518 = vst.msk [vmem:[#allocation2 + $0x48] sm:$0xf] %vm498_vm0, %v5239_v0  ;;  %519 = vst.msk [vmem:[#allocation2 + $0x4c] sm:$0xf] %vm498_vm0, %v5239_v0  ;;  %v5563_v8 = vcombine.low %v1091_v4, %v1092_v5  ;;  %v1139_v10 = vld [vmem:[#allocation2] sm:$0xe] }
  0xa5   : > { %520 = vst.msk [vmem:[#allocation2 + $0x50] sm:$0x1] %vm501_vm1, %v5239_v0  ;;  %523 = vst.msk [vmem:[#allocation2 + $0x5c] sm:$0x1] %vm501_vm1, %v5239_v0  ;;  %v4180_v12 = vcombine.low %v1139_v10, %v1092_v5  ;;  %v4513_v24 = vld [vmem:[%s5494_s0 + $0x10] sm:$0xff]   ;;  %v5575_v29 = vld [vmem:[%s5494_s0 + $0x18] sm:$0xff]  }
  0xa6   : > { %521 = vst.msk [vmem:[#allocation2 + $0x54] sm:$0xf] %vm498_vm0, %v5239_v0  ;;  %522 = vst.msk [vmem:[#allocation2 + $0x58] sm:$0xf] %vm498_vm0, %v5239_v0  ;;  %v1285_v16 = vshrl.u32 %v5563_v8, 16  ;;  %v1287_v17 = vshll.u32 %v5563_v8, 16  ;;  %v4458_v28 = vunpack.c.l.bf16 %v4513_v24  ;;  %v4459_v36 = vunpack.c.h.bf16 %v4513_v24 }
  0xa7   : > { %524 = vst.msk [vmem:[#allocation2 + $0x60] sm:$0xf] %vm498_vm0, %v5239_v0  ;;  %525 = vst.msk [vmem:[#allocation2 + $0x64] sm:$0xf] %vm498_vm0, %v5239_v0  ;;  %v1557_v20 = vrot.slane %v4180_v12, 1  ;;  %v466_v31 = vmax.f32 %v434_v21, 0.0  ;;  %v4462_v41 = vunpack.c.l.bf16 %v5575_v29  ;;  %v4463_v59 = vunpack.c.h.bf16 %v5575_v29 }
  0xa8   : > { %526 = vst.msk [vmem:[#allocation2 + $0x68] sm:$0x1] %vm501_vm1, %v5239_v0  ;;  %529 = vst.msk [vmem:[#allocation2 + $0x74] sm:$0x1] %vm501_vm1, %v5239_v0  ;;  %v1289_v25 = vrot.slane %v1287_v17, 1  ;;  %v467_v32 = vmax.f32 %v435_v22, 0.0  ;;  %v399_v37 = vmul.f32 %v4458_v28, %v5559_v2  ;;  %v400_v44 = vmul.f32 %v4459_v36, %v5559_v2 }
  0xa9   : > { %527 = vst.msk [vmem:[#allocation2 + $0x6c] sm:$0xf] %vm498_vm0, %v5239_v0  ;;  %528 = vst.msk [vmem:[#allocation2 + $0x70] sm:$0xf] %vm498_vm0, %v5239_v0  ;;  %s5240_s8 = smov 8   ;;  %v4383_v38 = vpack.c.bf16 %v466_v31, %v466_v31  ;;  %v468_v43 = vmax.f32 %v436_v35, 0.0  ;;  %v401_v60 = vmul.f32 %v4462_v41, %v5559_v2  ;;  %v402_v29 = vmul.f32 %v4463_v59, %v5559_v2 }
  0xaa   : > { %530 = vst.msk [vmem:[#allocation2 + $0x78] sm:$0xf] %vm498_vm0, %v5239_v0  ;;  %531 = vst.msk [vmem:[#allocation2 + $0x7c] sm:$0xf] %vm498_vm0, %v5239_v0  ;;  %v1290_v34 = vor.u32 %v1289_v25, %v1285_v16  ;;  %v4384_v39 = vpack.c.bf16 %v467_v32, %v467_v32  ;;  %v438_v45 = vadd.f32 %v5561_v3, %v399_v37  ;;  %s5241_s26 = smov 4   ;;  %v469_v51 = vmax.f32 %v437_v40, 0.0 }
  0xab   : > { %532 = vst.msk [vmem:[#allocation2 + $0x80] sm:$0x1] %vm501_vm1, %v5239_v0  ;;  %535 = vst.msk [vmem:[#allocation2 + $0x8c] sm:$0x1] %vm501_vm1, %v5239_v0  ;;  %v654_v46 = vshrl.u32 %v4383_v38, 16  ;;  %v657_v47 = vshll.u32 %v4383_v38, 16  ;;  %v4385_v52 = vpack.c.bf16 %v468_v43, %v468_v43  ;;  %v439_v53 = vadd.f32 %v5561_v3, %v400_v44 }
  0xac   : > { %533 = vst.msk [vmem:[#allocation2 + $0x84] sm:$0xf] %vm498_vm0, %v5239_v0  ;;  %534 = vst.msk [vmem:[#allocation2 + $0x88] sm:$0xf] %vm498_vm0, %v5239_v0  ;;  %v662_v48 = vshrl.u32 %v4384_v39, 16  ;;  %v665_v49 = vshll.u32 %v4384_v39, 16  ;;  %v4386_v63 = vpack.c.bf16 %v469_v51, %v469_v51  ;;  %v440_v35 = vadd.f32 %v5561_v3, %v401_v60 }
  0xad   : > { %536 = vst.msk [vmem:[#allocation2 + $0x90] sm:$0xf] %vm498_vm0, %v5239_v0  ;;  %537 = vst.msk [vmem:[#allocation2 + $0x94] sm:$0xf] %vm498_vm0, %v5239_v0  ;;  %v470_v54 = vmax.f32 %v438_v45, 0.0  ;;  %v656_v56 = vrot.slane %v654_v46, 7  ;;  %v441_v36 = vadd.f32 %v5561_v3, %v402_v29 }
  0xae   : > { %538 = vst.msk [vmem:[#allocation2 + $0x98] sm:$0x1] %vm501_vm1, %v5239_v0  ;;  %541 = vst.msk [vmem:[#allocation2 + $0xa4] sm:$0x1] %vm501_vm1, %v5239_v0  ;;  %v664_v57 = vrot.slane %v662_v48, 7  ;;  %v674_v1 = vshll.u32 %v4385_v52, 16 }
  0xaf   : > { %539 = vst.msk [vmem:[#allocation2 + $0x9c] sm:$0xf] %vm498_vm0, %v5239_v0  ;;  %540 = vst.msk [vmem:[#allocation2 + $0xa0] sm:$0xf] %vm498_vm0, %v5239_v0  ;;  %v977_v58 = vld [vmem:[#allocation2 + $0xc] sm:$0xf]  ;;  %v659_v5 = vor.u32 %v657_v47, %v656_v56  ;;  %v4387_v13 = vpack.c.bf16 %v470_v54, %v470_v54 }
  0xb0   : > { %542 = vst.msk [vmem:[#allocation2 + $0xa8] sm:$0xf] %vm498_vm0, %v5239_v0  ;;  %543 = vst.msk [vmem:[#allocation2 + $0xac] sm:$0xf] %vm498_vm0, %v5239_v0  ;;  %v983_v62 = vld [vmem:[#allocation2 + $0x14] sm:$0x1]  ;;  %v667_v7 = vor.u32 %v665_v49, %v664_v57 }
  0xb1   : > { %544 = vst.msk [vmem:[#allocation2 + $0xb0] sm:$0x1] %vm501_vm1, %v5239_v0  ;;  %547 = vst.msk [vmem:[#allocation2 + $0xbc] sm:$0x1] %vm501_vm1, %v5239_v0  ;;  %v471_v4 = vmax.f32 %v439_v53, 0.0  ;;  %v660_v6 = vrot.slane %v656_v56, 4 }
  0xb2   : > { %545 = vst.msk [vmem:[#allocation2 + $0xb4] sm:$0xf] %vm498_vm0, %v5239_v0  ;;  %546 = vst.msk [vmem:[#allocation2 + $0xb8] sm:$0xf] %vm498_vm0, %v5239_v0  ;;  %v679_v11 = vshrl.u32 %v4386_v63, 16  ;;  %v682_v12 = vshll.u32 %v4386_v63, 16 }
  0xb3   : > { %548 = vst.msk [vmem:[#allocation2 + $0xc0] sm:$0xf] %vm498_vm0, %v5239_v0  ;;  %549 = vst.msk [vmem:[#allocation2 + $0xc4] sm:$0xf] %vm498_vm0, %v5239_v0  ;;  %v986_v17 = vld [vmem:[#allocation2 + $0x18] sm:$0xf] }
  0xb4   : > { %550 = vst.msk [vmem:[#allocation2 + $0xc8] sm:$0x1] %vm501_vm1, %v5239_v0  ;;  %553 = vst.msk [vmem:[#allocation2 + $0xd4] sm:$0x1] %vm501_vm1, %v5239_v0  ;;  %v681_v22 = vrot.slane %v679_v11, 7  ;;  %v688_v23 = vshrl.u32 %v4387_v13, 16 }
  0xb5   : > { %551 = vst.msk [vmem:[#allocation2 + $0xcc] sm:$0xf] %vm498_vm0, %v5239_v0  ;;  %552 = vst.msk [vmem:[#allocation2 + $0xd0] sm:$0xf] %vm498_vm0, %v5239_v0  ;;  %v671_v0 = vshrl.u32 %v4385_v52, 16  ;;  %v4515_v24 = vld [vmem:[%s5494_s0 + $0x20] sm:$0xff]  }
  0xb6   : > { %v4844_v9 = vld [vmem:[#allocation2 + $0x8] ss:$0 sps:$4 sm:$0x11]   ;;  %vm5590_vm7 = vmand %vm501_vm1, %vm650_vm4  ;;  %v691_v25 = vshll.u32 %v4387_v13, 16  ;;  %v993_v28 = vld [vmem:[#allocation2 + $0x24] sm:$0xf]  ;;  %v4466_v37 = vunpack.c.l.bf16 %v4515_v24  ;;  %v4467_v49 = vunpack.c.h.bf16 %v4515_v24 }
  0xb7   : > { %v1292_v18 = vshll.u32 %v4844_v9, 16  ;;  %v1558_v19 = vrot.slane %v4844_v9, 1  ;;  %vm5597_vm8 = vmor %vm650_vm4, %vm651_vm5  ;;  %v669_v9 = vrot.slane %v664_v57, 4  ;;  %v673_v10 = vrot.slane %v671_v0, 7  ;;  %v4516_v38 = vld [vmem:[%s5494_s0 + $0x28] sm:$0xff]   ;;  %v4517_v52 = vld [vmem:[%s5494_s0 + $0x30] sm:$0xff]  }
  0xb8   : > { %vm5605_vm9 = vmand %vm498_vm0, %vm975_vm6  ;;  %v668_v14 = vsel %vm5597_vm8, %v660_v6, %v667_v7  ;;  %v686_v31 = vrot.slane %v681_v22, 4  ;;  %v690_v33 = vrot.slane %v688_v23, 7  ;;  %v997_v43 = vld [vmem:[#allocation2 + $0x2c] sm:$0x1]  ;;  %v472_v46 = vmax.f32 %v440_v35, 0.0  ;;  %s6785_s17 = scalar_lea.vmem [#allocation10], %s4111_s11 }
  0xb9   : > { %v1294_v26 = vrot.slane %v1292_v18, 1  ;;  %v1559_v30 = vsel %vm1556_vm3, %v1557_v20, %v1558_v19  ;;  %v978_v15 = vsel %vm5605_vm9, %v659_v5, %v977_v58  ;;  %v984_v16 = vsel %vm5590_vm7, %v669_v9, %v983_v62  ;;  %v990_v18 = vld [vmem:[#allocation2 + $0x20] sm:$0x1]  ;;  %980 = vst.msk [vmem:[#allocation2 + $0x10] sm:$0xf] %vm498_vm0, %v668_v14  ;;  %v5644_v14 = vld [vmem:[%s5494_s0 + $0x38] sm:$0xff]  }
  0xba   : > { %1605 = vrot.lane.b32.xlu1 %v1559_v30, %s5240_s8  ;;  %v4388_v19 = vpack.c.bf16 %v471_v4, %v471_v4  ;;  %979 = vst [vmem:[#allocation2 + $0xc] sm:$0xf] %v978_v15  ;;  %985 = vst [vmem:[#allocation2 + $0x14] sm:$0x1] %v984_v16  ;;  %v676_v20 = vor.u32 %v674_v1, %v673_v10  ;;  %v677_v21 = vrot.slane %v673_v10, 4  ;;  %v473_v48 = vmax.f32 %v441_v36, 0.0 }
  0xbb   : > { %v1295_v42 = vsel %vm1283_vm2, %v1290_v34, %v1294_v26  ;;  %v684_v30 = vor.u32 %v682_v12, %v681_v22  ;;  %v991_v40 = vsel %vm5590_vm7, %v686_v31, %v990_v18  ;;  %v693_v41 = vor.u32 %v691_v25, %v690_v33  ;;  %s4447_s20 = sshll.u32 %s5302_s25, 11  ;;  %s3919_s7 = sshll.u32 %s6785_s17, 4  ;;  %s6921_s7 = int_to_ptr.vmem [resolvable:$true] %s3919_s7 }
  0xbc   : > { %1476 = vrot.lane.b32.xlu0 %v1295_v42, %s5241_s26  ;;  %v696_v26 = vshrl.u32 %v4388_v19, 16  ;;  %v699_v27 = vshll.u32 %v4388_v19, 16  ;;  %v987_v32 = vsel %vm5605_vm9, %v676_v20, %v986_v17  ;;  %v694_v42 = vrot.slane %v690_v33, 4  ;;  %992 = vst [vmem:[#allocation2 + $0x20] sm:$0x1] %v991_v40  ;;  %s6915_s18 = scalar_lea.hbm %s7052_s4, %s4447_s20  ;;  %s3898_s19 = scalar_lea.sflag [#allocation5], %s5487_s15 }
  0xbd   : > { %988 = vst [vmem:[#allocation2 + $0x18] sm:$0xf] %v987_v32  ;;  %v685_v39 = vsel %vm5597_vm8, %v677_v21, %v684_v30  ;;  %v994_v47 = vsel %vm5605_vm9, %v693_v41, %v993_v28  ;;  %v4470_v51 = vunpack.c.l.bf16 %v4516_v38  ;;  %v403_v62 = vmul.f32 %v4466_v37, %v5559_v2  ;;  %s5093_s29 = scalar_lea.vmem %s6921_s7, 2048  ;;  %p7157_p0 = scmp.ne.s32.totalorder %s7088_s9, 0 }
  0xbe   : > { %v698_v34 = vrot.slane %v696_v26, 7  ;;  %989 = vst.msk [vmem:[#allocation2 + $0x1c] sm:$0xf] %vm498_vm0, %v685_v39  ;;  %995 = vst [vmem:[#allocation2 + $0x24] sm:$0xf] %v994_v47  ;;  %v4471_v63 = vunpack.c.h.bf16 %v4516_v38  ;;  %v5637_v4 = vpack.c.bf16 %v472_v46, %v472_v46  ;;  %v404_v5 = vmul.f32 %v4467_v49, %v5559_v2  ;;  %p5094_p2 = scmp.ne.s32.totalorder %s6921_s7, %s5093_s29  ;;  %s5242_s16 = smov [#allocation10]  }
  0xbf   : > { %v405_v6 = vmul.f32 %v4470_v51, %v5559_v2  ;;  %v4474_v7 = vunpack.c.l.bf16 %v4517_v52  ;;  %v5648_v19 = vpack.c.bf16 %v473_v48, %v473_v48  ;;  %v4475_v21 = vunpack.c.h.bf16 %v4517_v52  ;;  %s5097_s13 = sshll.u32 %s5242_s16, 4  ;;  %s5098_s13 = int_to_ptr.vmem [resolvable:$false] %s5097_s13 }
  0xc0   : > { %v701_v44 = vor.u32 %v699_v27, %v698_v34  ;;  %v703_v45 = vrot.slane %v698_v34, 4  ;;  %v1706_v53 = vld [vmem:[#allocation2 + $0x10] sm:$0xf]  ;;  %v406_v20 = vmul.f32 %v4471_v63, %v5559_v2  ;;  %v5657_v31 = vadd.f32 %v5561_v3, %v403_v62  ;;  %p5095_p7 = pnand %p5094_p2, %p7157_p0  ;;  %s5099_s14 = scalar_lea.vmem %s5098_s13, 4096 }
  0xc1   : > { %v1753_v54 = vld [vmem:[#allocation2 + $0xc] sm:$0xe]  ;;  %v4845_v58 = vld [vmem:[#allocation2 + $0x14] ss:$0 sps:$4 sm:$0x11]   ;;  %v407_v26 = vmul.f32 %v4474_v7, %v5559_v2  ;;  %v5660_v32 = vadd.f32 %v5561_v3, %v404_v5  ;;  %v5668_v39 = vadd.f32 %v5561_v3, %v405_v6  ;;  %v5679_v48 = vmul.f32 %v4475_v21, %v5559_v2  ;;  %p5100_p11 = scmp.lt.s32.totalorder %s6921_s7, %s5098_s13  ;;  %p5101_p12 = scmp.lt.s32.totalorder %s5099_s14, %s5093_s29 }
  0xc2   : > { %v702_v56 = vsel %vm5597_vm8, %v694_v42, %v701_v44  ;;  %v998_v57 = vsel %vm5590_vm7, %v703_v45, %v997_v43  ;;  %v4228_v59 = vcombine.low %v1753_v54, %v1706_v53  ;;  %v1705_v60 = vld [vmem:[#allocation2 + $0xc] sm:$0xf]  ;;  %v1094_v0 = vld [vmem:[#allocation2 + $0x10] sm:$0xf]  ;;  %v2170_v10 = vrot.slane %v4845_v58, 1  ;;  %p5096_p8 = pneg %p5095_p7 }
  0xc3   : > { %996 = vst.msk [vmem:[#allocation2 + $0x28] sm:$0xf] %vm498_vm0, %v702_v56  ;;  %999 = vst [vmem:[#allocation2 + $0x2c] sm:$0x1] %v998_v57  ;;  %v1140_v1 = vld [vmem:[#allocation2 + $0xc] sm:$0xe]  ;;  %v5646_v15 = vcombine.low %v1705_v60, %v1706_v53  ;;  %v5672_v43 = vadd.f32 %v5561_v3, %v406_v20  ;;  %v4478_v44 = vunpack.c.l.bf16 %v5644_v14  ;;  %v5682_v49 = vadd.f32 %v5561_v3, %v407_v26  ;;  %p5102_p1 = por %p5101_p12, %p5100_p11 }
  0xc4   : > { %v2169_v9 = vrot.slane %v4228_v59, 1  ;;  %v5641_v11 = vld [vmem:[#allocation2 + $0x14] ss:$0 sps:$4 sm:$0x11]   ;;  %v4181_v12 = vcombine.low %v1140_v1, %v1094_v0  ;;  %v1905_v13 = vshll.u32 %v4845_v58, 16  ;;  %v4479_v57 = vunpack.c.h.bf16 %v5644_v14 }
  0xc5   : > { %v1093_v16 = vld [vmem:[#allocation2 + $0xc] sm:$0xf]  ;;  %v1707_v17 = vld [vmem:[#allocation2 + $0x18] sm:$0xf]  ;;  %v1561_v24 = vrot.slane %v5641_v11, 1  ;;  %v1898_v30 = vshrl.u32 %v5646_v15, 16  ;;  %v5694_v7 = vmul.f32 %v4478_v44, %v5559_v2  ;;  %p5103_p6 = pnand %p5102_p1, %p5096_p8 }
  0xc6   : > { %v1754_v18 = vld [vmem:[#allocation2 + $0x18] sm:$0xe]  ;;  %v2171_v22 = vsel %vm1556_vm3, %v2169_v9, %v2170_v10  ;;  %v1560_v23 = vrot.slane %v4181_v12, 1  ;;  %v1708_v25 = vld [vmem:[#allocation2 + $0x1c] sm:$0xf]  ;;  %v5663_v34 = vcombine.low %v1093_v16, %v1094_v0  ;;  %v1900_v47 = vshll.u32 %v5646_v15, 16 }
  0xc7   : > { %2217 = vrot.lane.b32.xlu1 %v2171_v22, %s5240_s8  ;;  %v4852_v27 = vld [vmem:[#allocation2 + $0x20] ss:$0 sps:$4 sm:$0x11]   ;;  %v4229_v28 = vcombine.low %v1754_v18, %v1708_v25  ;;  %v1095_v29 = vld [vmem:[#allocation2 + $0x18] sm:$0xf]  ;;  %v5665_v35 = vcombine.low %v1707_v17, %v1708_v25  ;;  %v1907_v56 = vrot.slane %v1905_v13, 1 }
  0xc8   : > { %v1562_v33 = vsel %vm1556_vm3, %v1560_v23, %v1561_v24  ;;  %v1097_v36 = vld [vmem:[#allocation2 + $0x24] sm:$0xf]  ;;  %v1096_v38 = vld [vmem:[#allocation2 + $0x1c] sm:$0xf]  ;;  %v2173_v41 = vrot.slane %v4852_v27, 1  ;;  %v1902_v62 = vrot.slane %v1900_v47, 1 }
  0xc9   : > { %v1142_v37 = vld [vmem:[#allocation2 + $0x24] sm:$0xe]  ;;  %1607 = vrot.lane.b32.xlu0 %v1562_v33, %s5240_s8  ;;  %v2172_v40 = vrot.slane %v4229_v28, 1  ;;  %v1141_v52 = vld [vmem:[#allocation2 + $0x18] sm:$0xe]  ;;  %v5685_v53 = vcombine.low %v1095_v29, %v1096_v38  ;;  %v1910_v6 = vshrl.u32 %v5665_v35, 16 }
  0xca   : > { %v1098_v42 = vld [vmem:[#allocation2 + $0x28] sm:$0xf]  ;;  %v5675_v45 = vld [vmem:[#allocation2 + $0x2c] ss:$0 sps:$4 sm:$0x11]   ;;  %v4182_v60 = vcombine.low %v1141_v52, %v1096_v38  ;;  %v1903_v12 = vor.u32 %v1902_v62, %v1898_v30  ;;  %v1912_v20 = vshll.u32 %v5665_v35, 16 }
  0xcb   : > { %v4183_v46 = vcombine.low %v1142_v37, %v1098_v42  ;;  %v2174_v51 = vsel %vm1556_vm3, %v2172_v40, %v2173_v41  ;;  %v4858_v54 = vld [vmem:[#allocation2 + $0x20] ss:$0 sps:$4 sm:$0x11]   ;;  %v1567_v59 = vrot.slane %v5675_v45, 1  ;;  %v1709_v63 = vld [vmem:[#allocation2 + $0x24] sm:$0xf]  ;;  %v5690_v0 = vcombine.low %v1097_v36, %v1098_v42 }
  0xcc   : > { %2219 = vrot.lane.b32.xlu1 %v2174_v51, %s5240_s8  ;;  %v1564_v1 = vrot.slane %v4858_v54, 1  ;;  %v1710_v5 = vld [vmem:[#allocation2 + $0x28] sm:$0xf]  ;;  %v1563_v10 = vrot.slane %v4182_v60, 1  ;;  %v1755_v13 = vld [vmem:[#allocation2 + $0x24] sm:$0xe]  ;;  %v1908_v24 = vsel %vm1283_vm2, %v1903_v12, %v1907_v56 }
  0xcd   : > { %v1566_v58 = vrot.slane %v4183_v46, 1  ;;  %v5697_v16 = vcombine.low %v1709_v63, %v1710_v5  ;;  %v5699_v17 = vld [vmem:[#allocation2 + $0x2c] ss:$0 sps:$4 sm:$0x11]   ;;  %v4230_v18 = vcombine.low %v1755_v13, %v1710_v5  ;;  %v1917_v21 = vshll.u32 %v4852_v27, 16 }
  0xce   : > { %v705_v22 = vshrl.u32 %v5637_v4, 16  ;;  %v1565_v23 = vsel %vm1556_vm3, %v1563_v10, %v1564_v1  ;;  %v2176_v25 = vrot.slane %v5699_v17, 1  ;;  %v708_v26 = vshll.u32 %v5637_v4, 16  ;;  %v1000_v37 = vld [vmem:[#allocation2 + $0x30] sm:$0xf] }
  0xcf   : > { %v1568_v9 = vsel %vm1556_vm3, %v1566_v58, %v1567_v59  ;;  %v2175_v28 = vrot.slane %v4230_v18, 1  ;;  %v1914_v29 = vrot.slane %v1912_v20, 1  ;;  %v1919_v30 = vrot.slane %v1917_v21, 1  ;;  %v1004_v58 = vld [vmem:[#allocation2 + $0x38] sm:$0x1] }
  0xd0   : > { %1611 = vrot.lane.b32.xlu0 %v1568_v9, %s5240_s8  ;;  %1609 = vrot.lane.b32.xlu1 %v1565_v23, %s5240_s8  ;;  %v707_v33 = vrot.slane %v705_v22, 7  ;;  %v713_v36 = vshrl.u32 %v5648_v19, 16  ;;  %v716_v27 = vshll.u32 %v5648_v19, 16  ;;  %v1309_v38 = vshrl.u32 %v5685_v53, 16 }
  0xd1   : > { %v1311_v40 = vshll.u32 %v5685_v53, 16  ;;  %v2177_v41 = vsel %vm1556_vm3, %v2175_v28, %v2176_v25  ;;  %v1915_v4 = vor.u32 %v1914_v29, %v1910_v6  ;;  %v1316_v51 = vshll.u32 %v4858_v54, 16  ;;  %v5743_v29 = vld [vmem:[%s5494_s0 + $0x40] sm:$0xff]  }
  0xd2   : > { %v710_v42 = vor.u32 %v708_v26, %v707_v33  ;;  %v711_v44 = vrot.slane %v707_v33, 4  ;;  %v715_v46 = vrot.slane %v713_v36, 7  ;;  %v1321_v52 = vshrl.u32 %v5690_v0, 16 }
  0xd3   : > { %v1313_v47 = vrot.slane %v1311_v40, 1  ;;  %v1920_v19 = vsel %vm1283_vm2, %v1915_v4, %v1919_v30  ;;  %v1323_v59 = vshll.u32 %v5690_v0, 16  ;;  %v1328_v60 = vshll.u32 %v5675_v45, 16 }
  0xd4   : > { %2089 = vrot.lane.b32.xlu0 %v1908_v24, %s5241_s26  ;;  %2221 = vrot.lane.b32.xlu1 %v2177_v41, %s5240_s8  ;;  %v1001_v56 = vsel %vm5605_vm9, %v710_v42, %v1000_v37  ;;  %v718_v62 = vor.u32 %v716_v27, %v715_v46  ;;  %v720_v63 = vrot.slane %v715_v46, 4  ;;  %v1318_v5 = vrot.slane %v1316_v51, 1 }
  0xd5   : > { %1002 = vst [vmem:[#allocation2 + $0x30] sm:$0xf] %v1001_v56  ;;  %v1314_v1 = vor.u32 %v1313_v47, %v1309_v38  ;;  %v1325_v54 = vrot.slane %v1323_v59, 1  ;;  %v1330_v6 = vrot.slane %v1328_v60, 1  ;;  %v474_v9 = vmax.f32 %v5657_v31, 0.0 }
  0xd6   : > { %v475_v10 = vmax.f32 %v5660_v32, 0.0  ;;  %v719_v12 = vsel %vm5597_vm8, %v711_v44, %v718_v62  ;;  %v1005_v13 = vsel %vm5590_vm7, %v720_v63, %v1004_v58  ;;  %v410_v18 = vmul.f32 %v4479_v57, %v5559_v2  ;;  %v1007_v38 = vld [vmem:[#allocation2 + $0x3c] sm:$0xf] }
  0xd7   : > { %v1319_v45 = vsel %vm1283_vm2, %v1314_v1, %v1318_v5  ;;  %1003 = vst.msk [vmem:[#allocation2 + $0x34] sm:$0xf] %vm498_vm0, %v719_v12  ;;  %1006 = vst [vmem:[#allocation2 + $0x38] sm:$0x1] %v1005_v13  ;;  %v1326_v20 = vor.u32 %v1325_v54, %v1321_v52  ;;  %v4391_v31 = vpack.c.bf16 %v474_v9, %v474_v9  ;;  %v1299_v32 = vshll.u32 %v5663_v34, 16 }
  0xd8   : > { %2091 = vrot.lane.b32.xlu0 %v1920_v19, %s5241_s26  ;;  %v4392_v21 = vpack.c.bf16 %v475_v10, %v475_v10  ;;  %v1297_v22 = vshrl.u32 %v5663_v34, 16  ;;  %v1304_v23 = vshll.u32 %v5641_v11, 16  ;;  %v1922_v24 = vshrl.u32 %v5697_v16, 16  ;;  %v1011_v19 = vld [vmem:[#allocation2 + $0x44] sm:$0x1] }
  0xd9   : > { %v1924_v25 = vshll.u32 %v5697_v16, 16  ;;  %v1331_v14 = vsel %vm1283_vm2, %v1326_v20, %v1330_v6  ;;  %v722_v57 = vshrl.u32 %v4391_v31, 16  ;;  %v1929_v28 = vshll.u32 %v5699_v17, 16 }
  0xda   : > { %v730_v26 = vshrl.u32 %v4392_v21, 16  ;;  %v725_v30 = vshll.u32 %v4391_v31, 16  ;;  %v733_v33 = vshll.u32 %v4392_v21, 16  ;;  %v1301_v36 = vrot.slane %v1299_v32, 1 }
  0xdb   : > { %v1926_v27 = vrot.slane %v1924_v25, 1  ;;  %v5745_v40 = vrot.slane %v1304_v23, 1  ;;  %v5749_v41 = vadd.f32 %v5561_v3, %v5679_v48  ;;  %v5753_v4 = vadd.f32 %v5561_v3, %v5694_v7 }
  0xdc   : > { %1480 = vrot.lane.b32.xlu0 %v1319_v45, %s5241_s26  ;;  %v1711_v37 = vld [vmem:[#allocation2 + $0x30] sm:$0xf]  ;;  %v5756_v17 = vadd.f32 %v5561_v3, %v410_v18  ;;  %v724_v46 = vrot.slane %v722_v57, 7  ;;  %v732_v47 = vrot.slane %v730_v26, 7  ;;  %v4482_v51 = vunpack.c.l.bf16 %v5743_v29 }
  0xdd   : > { %v1756_v11 = vld [vmem:[#allocation2 + $0x30] sm:$0xe]  ;;  %v4483_v52 = vunpack.c.h.bf16 %v5743_v29  ;;  %v5761_v48 = vrot.slane %v1929_v28, 1  ;;  %v476_v56 = vmax.f32 %v5668_v39, 0.0  ;;  %v477_v7 = vmax.f32 %v5672_v43, 0.0 }
  0xde   : > { %v1099_v42 = vld [vmem:[#allocation2 + $0x30] sm:$0xf]  ;;  %v478_v58 = vmax.f32 %v5682_v49, 0.0  ;;  %v1712_v59 = vld [vmem:[#allocation2 + $0x34] sm:$0xf]  ;;  %v727_v62 = vor.u32 %v725_v30, %v724_v46  ;;  %v735_v63 = vor.u32 %v733_v33, %v732_v47  ;;  %v1302_v1 = vor.u32 %v1301_v36, %v1297_v22 }
  0xdf   : > { %v1143_v44 = vld [vmem:[#allocation2 + $0x30] sm:$0xe]  ;;  %v1100_v60 = vld [vmem:[#allocation2 + $0x34] sm:$0xf]  ;;  %v1927_v5 = vor.u32 %v1926_v27, %v1922_v24  ;;  %v5766_v54 = vcombine.low %v1711_v37, %v1712_v59  ;;  %v4231_v9 = vcombine.low %v1756_v11, %v1712_v59  ;;  %v728_v45 = vrot.slane %v724_v46, 4  ;;  %v5789_v46 = vld [vmem:[%s5494_s0 + $0x48] sm:$0xff]  }
  0xe0   : > { %1482 = vrot.lane.b32.xlu0 %v1331_v14, %s5241_s26  ;;  %v4864_v6 = vld [vmem:[#allocation2 + $0x38] ss:$0 sps:$4 sm:$0x11]   ;;  %v5768_v10 = vcombine.low %v1099_v42, %v1100_v60  ;;  %v4184_v12 = vcombine.low %v1143_v44, %v1100_v60  ;;  %v737_v39 = vrot.slane %v732_v47, 4  ;;  %v1008_v43 = vsel %vm5605_vm9, %v727_v62, %v1007_v38  ;;  %v5786_v44 = vld [vmem:[#allocation2 + $0x1c] sm:$0xf] }
  0xe1   : > { %v4867_v13 = vld [vmem:[#allocation2 + $0x38] ss:$0 sps:$4 sm:$0x11]   ;;  %v411_v49 = vmul.f32 %v4482_v51, %v5559_v2  ;;  %v2178_v18 = vrot.slane %v4231_v9, 1  ;;  %v2179_v20 = vrot.slane %v4864_v6, 1  ;;  %v1934_v21 = vshrl.u32 %v5766_v54, 16 }
  0xe2   : > { %v1569_v31 = vrot.slane %v4184_v12, 1  ;;  %1009 = vst [vmem:[#allocation2 + $0x3c] sm:$0xf] %v1008_v43  ;;  %v1570_v32 = vrot.slane %v4867_v13, 1  ;;  %v736_v22 = vsel %vm5597_vm8, %v728_v45, %v735_v63  ;;  %v1012_v23 = vsel %vm5590_vm7, %v737_v39, %v1011_v19  ;;  %v2721_v27 = vld [vmem:[#allocation2 + $0x18] sm:$0xf] }
  0xe3   : > { %v1936_v24 = vshll.u32 %v5766_v54, 16  ;;  %v2180_v25 = vsel %vm1556_vm3, %v2178_v18, %v2179_v20  ;;  %1010 = vst.msk [vmem:[#allocation2 + $0x40] sm:$0xf] %vm498_vm0, %v736_v22  ;;  %1013 = vst [vmem:[#allocation2 + $0x44] sm:$0x1] %v1012_v23  ;;  %v1941_v14 = vshll.u32 %v4864_v6, 16  ;;  %v4393_v36 = vpack.c.bf16 %v476_v56, %v476_v56 }
  0xe4   : > { %v1333_v57 = vshrl.u32 %v5768_v10, 16  ;;  %v1335_v26 = vshll.u32 %v5768_v10, 16  ;;  %2223 = vrot.lane.b32.xlu1 %v2180_v25, %s5240_s8  ;;  %v1571_v28 = vsel %vm1556_vm3, %v1569_v31, %v1570_v32  ;;  %v1340_v33 = vshll.u32 %v4867_v13, 16  ;;  %v1014_v18 = vld [vmem:[#allocation2 + $0x48] sm:$0xf] }
  0xe5   : > { %v1938_v30 = vrot.slane %v1936_v24, 1  ;;  %v1943_v37 = vrot.slane %v1941_v14, 1  ;;  %v4394_v38 = vpack.c.bf16 %v477_v7, %v477_v7  ;;  %v479_v42 = vmax.f32 %v5749_v41, 0.0  ;;  %v1018_v20 = vld [vmem:[#allocation2 + $0x50] sm:$0x1] }
  0xe6   : > { %v1337_v11 = vrot.slane %v1335_v26, 1  ;;  %v1342_v51 = vrot.slane %v1340_v33, 1  ;;  %v739_v19 = vshrl.u32 %v4393_v36, 16  ;;  %v742_v59 = vshll.u32 %v4393_v36, 16 }
  0xe7   : > { %v1939_v47 = vor.u32 %v1938_v30, %v1934_v21  ;;  %v747_v62 = vshrl.u32 %v4394_v38, 16  ;;  %v750_v63 = vshll.u32 %v4394_v38, 16  ;;  %v5791_v6 = vpack.c.bf16 %v478_v58, %v478_v58 }
  0xe8   : > { %v1338_v60 = vor.u32 %v1337_v11, %v1333_v57  ;;  %1613 = vrot.lane.b32.xlu1 %v1571_v28, %s5240_s8  ;;  %v5797_v41 = vsel %vm1283_vm2, %v1302_v1, %v5745_v40  ;;  %v5800_v13 = vcombine.low %v2721_v27, %v5786_v44  ;;  %v4486_v45 = vunpack.c.l.bf16 %v5789_v46 }
  0xe9   : > { %v1713_v56 = vld [vmem:[#allocation2 + $0x3c] sm:$0xf]  ;;  %v1944_v7 = vsel %vm1283_vm2, %v1939_v47, %v1943_v37  ;;  %v5806_v58 = vsel %vm1283_vm2, %v1927_v5, %v5761_v48  ;;  %v741_v39 = vrot.slane %v739_v19, 7  ;;  %v749_v43 = vrot.slane %v747_v62, 7 }
  0xea   : > { %v1757_v9 = vld [vmem:[#allocation2 + $0x3c] sm:$0xe]  ;;  %7112 = vst [vmem:[#allocation21_spill] sm:$0xff] %v5800_v13  ;;  %2095 = vrot.lane.b32.xlu0 %v1944_v7, %s5241_s26  ;;  %v756_v40 = vshrl.u32 %v5791_v6, 16  ;;  %v1714_v1 = vld [vmem:[#allocation2 + $0x40] sm:$0xf]  ;;  %v1343_v21 = vsel %vm1283_vm2, %v1338_v60, %v1342_v51  ;;  %v5810_v22 = vpack.c.bf16 %v479_v42, %v479_v42  ;;  %v412_v23 = vmul.f32 %v4483_v52, %v5559_v2 }
  0xeb   : > { %v1101_v12 = vld [vmem:[#allocation2 + $0x3c] sm:$0xf]  ;;  %v1102_v32 = vld [vmem:[#allocation2 + $0x40] sm:$0xf]  ;;  %v5816_v48 = vadd.f32 %v5561_v3, %v411_v49  ;;  %v5818_v5 = vcombine.low %v1713_v56, %v1714_v1  ;;  %v4232_v25 = vcombine.low %v1757_v9, %v1714_v1  ;;  %v744_v57 = vor.u32 %v742_v59, %v741_v39  ;;  %v1021_v1 = vld [vmem:[#allocation2 + $0x54] sm:$0xf] }
  0xec   : > { %v1144_v31 = vld [vmem:[#allocation2 + $0x3c] sm:$0xe]  ;;  %v4870_v24 = vld [vmem:[#allocation2 + $0x44] ss:$0 sps:$4 sm:$0x11]   ;;  %v5820_v14 = vcombine.low %v1101_v12, %v1102_v32  ;;  %v745_v28 = vrot.slane %v741_v39, 4  ;;  %v752_v30 = vor.u32 %v750_v63, %v749_v43  ;;  %v5837_v56 = vadd.f32 %v5561_v3, %v412_v23 }
  0xed   : > { %v4873_v26 = vld [vmem:[#allocation2 + $0x44] ss:$0 sps:$4 sm:$0x11]   ;;  %v754_v33 = vrot.slane %v749_v43, 4  ;;  %v4185_v36 = vcombine.low %v1144_v31, %v1102_v32  ;;  %v2181_v27 = vrot.slane %v4232_v25, 1  ;;  %v2182_v37 = vrot.slane %v4870_v24, 1 }
  0xee   : > { %1484 = vrot.lane.b32.xlu0 %v1343_v21, %s5241_s26  ;;  %v1345_v29 = vshrl.u32 %v5820_v14, 16  ;;  %v1347_v52 = vshll.u32 %v5820_v14, 16  ;;  %v1352_v49 = vshll.u32 %v4873_v26, 16  ;;  %v753_v11 = vsel %vm5597_vm8, %v745_v28, %v752_v30  ;;  %v5843_v3 = vld [vmem:[#allocation2 + $0x28] sm:$0xf] }
  0xef   : > { %v1015_v38 = vsel %vm5605_vm9, %v744_v57, %v1014_v18  ;;  %v1019_v42 = vsel %vm5590_vm7, %v754_v33, %v1018_v20  ;;  %v2183_v47 = vsel %vm1556_vm3, %v2181_v27, %v2182_v37  ;;  %1017 = vst.msk [vmem:[#allocation2 + $0x4c] sm:$0xf] %vm498_vm0, %v753_v11  ;;  %v1946_v19 = vshrl.u32 %v5818_v5, 16  ;;  %v2723_v57 = vld [vmem:[#allocation2 + $0x24] sm:$0xf] }
  0xf0   : > { %v1349_v51 = vrot.slane %v1347_v52, 1  ;;  %1016 = vst [vmem:[#allocation2 + $0x48] sm:$0xf] %v1015_v38  ;;  %1020 = vst [vmem:[#allocation2 + $0x50] sm:$0x1] %v1019_v42  ;;  %v1948_v59 = vshll.u32 %v5818_v5, 16  ;;  %2225 = vrot.lane.b32.xlu1 %v2183_v47, %s5240_s8 }
  0xf1   : > { %v1354_v60 = vrot.slane %v1352_v49, 1  ;;  %v1953_v62 = vshll.u32 %v4870_v24, 16  ;;  %v1572_v63 = vrot.slane %v4185_v36, 1  ;;  %v758_v12 = vrot.slane %v756_v40, 7  ;;  %v1025_v28 = vld [vmem:[#allocation2 + $0x5c] sm:$0x1] }
  0xf2   : > { %v1350_v9 = vor.u32 %v1349_v51, %v1345_v29  ;;  %v1950_v7 = vrot.slane %v1948_v59, 1  ;;  %v759_v39 = vshll.u32 %v5791_v6, 16  ;;  %v1573_v18 = vrot.slane %v4873_v26, 1 }
  0xf3   : > { %v1955_v43 = vrot.slane %v1953_v62, 1  ;;  %v764_v20 = vshrl.u32 %v5810_v22, 16  ;;  %v767_v31 = vshll.u32 %v5810_v22, 16  ;;  %v762_v25 = vrot.slane %v758_v12, 4 }
  0xf4   : > { %v1355_v21 = vsel %vm1283_vm2, %v1350_v9, %v1354_v60  ;;  %v1951_v32 = vor.u32 %v1950_v7, %v1946_v19  ;;  %v761_v24 = vor.u32 %v759_v39, %v758_v12  ;;  %1478 = vrot.lane.b32.xlu1 %v5797_v41, %s5241_s26  ;;  %v480_v40 = vmax.f32 %v5753_v4, 0.0 }
  0xf5   : > { %1486 = vrot.lane.b32.xlu0 %v1355_v21, %s5241_s26  ;;  %v766_v6 = vrot.slane %v764_v20, 7  ;;  %v481_v23 = vmax.f32 %v5756_v17, 0.0  ;;  %v482_v22 = vmax.f32 %v5816_v48, 0.0  ;;  %v483_v30 = vmax.f32 %v5837_v56, 0.0 }
  0xf6   : > { %v1022_v26 = vsel %vm5605_vm9, %v761_v24, %v1021_v1  ;;  %v2914_v33 = vshrl.u32 %v5800_v13, 16  ;;  %v4487_v36 = vunpack.c.h.bf16 %v5789_v46  ;;  %v1716_v27 = vld [vmem:[#allocation2 + $0x4c] sm:$0xf]  ;;  %v5857_v37 = vsel %vm1556_vm3, %v1572_v63, %v1573_v18 }
  0xf7   : > { %v1715_v41 = vld [vmem:[#allocation2 + $0x48] sm:$0xf]  ;;  %v769_v4 = vor.u32 %v767_v31, %v766_v6  ;;  %1023 = vst [vmem:[#allocation2 + $0x54] sm:$0xf] %v1022_v26  ;;  %v413_v17 = vmul.f32 %v4486_v45, %v5559_v2  ;;  %v5863_v48 = vcombine.low %v2723_v57, %v5843_v3  ;;  %v1956_v49 = vsel %vm1283_vm2, %v1951_v32, %v1955_v43  ;;  %v1104_v19 = vld [vmem:[#allocation2 + $0x4c] sm:$0xf] }
  0xf8   : > { %v5865_v29 = vcombine.low %v1715_v41, %v1716_v27  ;;  %v4875_v52 = vld [vmem:[#allocation2 + $0x50] ss:$0 sps:$4 sm:$0x11]   ;;  %v1758_v11 = vld [vmem:[#allocation2 + $0x48] sm:$0xe]  ;;  %v771_v38 = vrot.slane %v766_v6, 4  ;;  %v4397_v42 = vpack.c.bf16 %v480_v40, %v480_v40  ;;  %2093 = vrot.lane.b32.xlu1 %v5806_v58, %s5241_s26  ;;  %v4398_v45 = vpack.c.bf16 %v481_v23, %v481_v23 }
  0xf9   : > { %7113 = vst [vmem:[#allocation22_spill] sm:$0xff] %v5863_v48  ;;  %v4233_v47 = vcombine.low %v1758_v11, %v1716_v27  ;;  %v1103_v51 = vld [vmem:[#allocation2 + $0x48] sm:$0xf]  ;;  %v770_v46 = vsel %vm5597_vm8, %v762_v25, %v769_v4  ;;  %v5872_v59 = vpack.c.bf16 %v482_v22, %v482_v22  ;;  %v1965_v63 = vshll.u32 %v4875_v52, 16 }
  0xfa   : > { %v1958_v60 = vshrl.u32 %v5865_v29, 16  ;;  %v1960_v62 = vshll.u32 %v5865_v29, 16  ;;  %v2185_v56 = vrot.slane %v4875_v52, 1  ;;  %1024 = vst.msk [vmem:[#allocation2 + $0x58] sm:$0xf] %vm498_vm0, %v770_v46  ;;  %v5877_v58 = vcombine.low %v1103_v51, %v1104_v19 }
  0xfb   : > { %v1145_v9 = vld [vmem:[#allocation2 + $0x48] sm:$0xe]  ;;  %v2184_v7 = vrot.slane %v4233_v47, 1  ;;  %v5879_v12 = vld [vmem:[#allocation2 + $0x50] ss:$0 sps:$4 sm:$0x11]   ;;  %v1026_v39 = vsel %vm5590_vm7, %v771_v38, %v1025_v28  ;;  %v5883_v1 = vpack.c.bf16 %v483_v30, %v483_v30  ;;  %v414_v25 = vmul.f32 %v4487_v36, %v5559_v2 }
  0xfc   : > { %v4186_v43 = vcombine.low %v1145_v9, %v1104_v19  ;;  %v1962_v18 = vrot.slane %v1960_v62, 1  ;;  %v1967_v20 = vrot.slane %v1965_v63, 1  ;;  %1027 = vst [vmem:[#allocation2 + $0x5c] sm:$0x1] %v1026_v39  ;;  %v773_v31 = vshrl.u32 %v4397_v42, 16  ;;  %2097 = vrot.lane.b32.xlu1 %v1956_v49, %s5241_s26 }
  0xfd   : > { %v1359_v21 = vshll.u32 %v5877_v58, 16  ;;  %v1364_v32 = vshll.u32 %v5879_v12, 16  ;;  %v776_v24 = vshll.u32 %v4397_v42, 16  ;;  %v2186_v6 = vsel %vm1556_vm3, %v2184_v7, %v2185_v56  ;;  %v1028_v28 = vld [vmem:[#allocation2 + $0x60] sm:$0xf] }
  0xfe   : > { %v1963_v57 = vor.u32 %v1962_v18, %v1958_v60  ;;  %v1357_v40 = vshrl.u32 %v5877_v58, 16  ;;  %v1717_v23 = vld [vmem:[#allocation2 + $0x54] sm:$0xf]  ;;  %v5891_v26 = vrot.slane %v4186_v43, 1  ;;  %v1576_v41 = vrot.slane %v5879_v12, 1 }
  0xff   : > { %v1105_v22 = vld [vmem:[#allocation2 + $0x54] sm:$0xf]  ;;  %v1361_v30 = vrot.slane %v1359_v21, 1  ;;  %v775_v27 = vrot.slane %v773_v31, 7  ;;  %v781_v4 = vshrl.u32 %v4398_v45, 16  ;;  %v1366_v11 = vrot.slane %v1364_v32, 1 }
 0x100   : > { %v1759_v52 = vld [vmem:[#allocation2 + $0x54] sm:$0xe]  ;;  %v1968_v49 = vsel %vm1283_vm2, %v1963_v57, %v1967_v20  ;;  %v784_v2 = vshll.u32 %v4398_v45, 16  ;;  %v790_v38 = vshrl.u32 %v5872_v59, 16  ;;  %2227 = vrot.lane.b32.xlu1 %v2186_v6, %s5240_s8  ;;  %v5898_v60 = vld [vmem:[#allocation6] ss:$0 sm:$0xff] }
 0x101   : > { %v1146_v36 = vld [vmem:[#allocation2 + $0x54] sm:$0xe]  ;;  %2099 = vrot.lane.b32.xlu0 %v1968_v49, %s5241_s26  ;;  %v1718_v42 = vld [vmem:[#allocation2 + $0x58] sm:$0xf]  ;;  %v778_v51 = vor.u32 %v776_v24, %v775_v27  ;;  %v779_v19 = vrot.slane %v775_v27, 4  ;;  %v783_v46 = vrot.slane %v781_v4, 7  ;;  %v5901_v62 = vadd.f32 %v5898_v60, %v413_v17 }
 0x102   : > { %v1106_v47 = vld [vmem:[#allocation2 + $0x58] sm:$0xf]  ;;  %v1362_v63 = vor.u32 %v1361_v30, %v1357_v40  ;;  %v5903_v56 = vcombine.low %v1717_v23, %v1718_v42  ;;  %v1032_v9 = vld [vmem:[#allocation2 + $0x68] sm:$0x1]  ;;  %v4234_v7 = vcombine.low %v1759_v52, %v1718_v42  ;;  %vm1637_vm10 = vcmask 31744  }
 0x103   : > { %v5905_v45 = vcombine.low %v1105_v22, %v1106_v47  ;;  %v4880_v39 = vld [vmem:[#allocation2 + $0x5c] ss:$0 sps:$4 sm:$0x11]   ;;  %v786_v43 = vor.u32 %v784_v2, %v783_v46  ;;  %v788_v18 = vrot.slane %v783_v46, 4  ;;  %v1029_v20 = vsel %vm5605_vm9, %v778_v51, %v1028_v28  ;;  %v5925_v46 = vld [vmem:[#allocation2 + $0x18] sm:$0xe] }
 0x104   : > { %v4187_v31 = vcombine.low %v1146_v36, %v1106_v47  ;;  %v1970_v21 = vshrl.u32 %v5903_v56, 16  ;;  %v1972_v32 = vshll.u32 %v5903_v56, 16  ;;  %1030 = vst [vmem:[#allocation2 + $0x60] sm:$0xf] %v1029_v20  ;;  %v1977_v57 = vshll.u32 %v4880_v39, 16 }
 0x105   : > { %7114 = vst [vmem:[#allocation23_spill] sm:$0xff] %v5905_v45  ;;  %v1369_v17 = vshrl.u32 %v5905_v45, 16  ;;  %v1371_v24 = vshll.u32 %v5905_v45, 16  ;;  %1615 = vrot.lane.b32.xlu0 %v5857_v37, %s5240_s8  ;;  %v4882_v6 = vld [vmem:[#allocation2 + $0x5c] ss:$0 sps:$4 sm:$0x11]   ;;  %v787_v40 = vsel %vm5597_vm8, %v779_v19, %v786_v43  ;;  %v1033_v23 = vsel %vm5590_vm7, %v788_v18, %v1032_v9 }
 0x106   : > { %v5919_v22 = vld [vmem:[#allocation2 + $0x20] ss:$0 sps:$4 sm:$0x11]   ;;  %v453_v28 = vadd.f32 %v5898_v60, %v414_v25  ;;  %v1367_v30 = vsel %vm1283_vm2, %v1362_v63, %v1366_v11  ;;  %v1974_v27 = vrot.slane %v1972_v32, 1  ;;  %1031 = vst.msk [vmem:[#allocation2 + $0x64] sm:$0xf] %vm498_vm0, %v787_v40 }
 0x107   : > { %v1373_v4 = vrot.slane %v1371_v24, 1  ;;  %1034 = vst [vmem:[#allocation2 + $0x68] sm:$0x1] %v1033_v23  ;;  %v2187_v37 = vrot.slane %v4234_v7, 1  ;;  %v1979_v52 = vrot.slane %v1977_v57, 1  ;;  %v1376_v49 = vshll.u32 %v4882_v6, 16 }
 0x108   : > { %v2188_v2 = vrot.slane %v4880_v39, 1  ;;  %v792_v36 = vrot.slane %v790_v38, 7  ;;  %v1975_v42 = vor.u32 %v1974_v27, %v1970_v21  ;;  %v1578_v51 = vrot.slane %v4187_v31, 1  ;;  %v1035_v43 = vld [vmem:[#allocation2 + $0x6c] sm:$0xf] }
 0x109   : > { %v1374_v47 = vor.u32 %v1373_v4, %v1369_v17  ;;  %v793_v19 = vshll.u32 %v5872_v59, 16  ;;  %1488 = vrot.lane.b32.xlu0 %v1367_v30, %s5241_s26  ;;  %v1378_v25 = vrot.slane %v1376_v49, 1  ;;  %v1579_v11 = vrot.slane %v4882_v6, 1  ;;  %v1039_v57 = vld [vmem:[#allocation2 + $0x74] sm:$0x1] }
 0x10a   : > { %v796_v63 = vrot.slane %v792_v36, 4  ;;  %v798_v9 = vshrl.u32 %v5883_v1, 16  ;;  %v1980_v7 = vsel %vm1283_vm2, %v1975_v42, %v1979_v52  ;;  %v801_v38 = vshll.u32 %v5883_v1, 16  ;;  %v5956_v42 = vld [vmem:[#allocation2 + $0x2c] ss:$0 sps:$4 sm:$0x11]  }
 0x10b   : > { %v795_v18 = vor.u32 %v793_v19, %v792_v36  ;;  %v2916_v39 = vshll.u32 %v5800_v13, 16  ;;  %2101 = vrot.lane.b32.xlu1 %v1980_v7, %s5241_s26  ;;  %v1379_v59 = vsel %vm1283_vm2, %v1374_v47, %v1378_v25  ;;  %v1719_v20 = vld [vmem:[#allocation2 + $0x60] sm:$0xf]  ;;  %v2921_v32 = vshll.u32 %v5919_v22, 16 }
 0x10c   : > { %v1760_v31 = vld [vmem:[#allocation2 + $0x60] sm:$0xe]  ;;  %v800_v21 = vrot.slane %v798_v9, 7  ;;  %v4310_v17 = vcombine.low %v5925_v46, %v5786_v44  ;;  %v1577_v24 = vsel %vm1556_vm3, %v5891_v26, %v1576_v41  ;;  %v484_v6 = vmax.f32 %v5901_v62, 0.0 }
 0x10d   : > { %v1036_v1 = vsel %vm5605_vm9, %v795_v18, %v1035_v43  ;;  %v485_v40 = vmax.f32 %v453_v28, 0.0  ;;  %1490 = vrot.lane.b32.xlu0 %v1379_v59, %s5241_s26  ;;  %v1720_v23 = vld [vmem:[#allocation2 + $0x64] sm:$0xf]  ;;  %v2189_v30 = vsel %vm1556_vm3, %v2187_v37, %v2188_v2  ;;  %v2918_v52 = vrot.slane %v2916_v39, 1 }
 0x10e   : > { %v803_v27 = vor.u32 %v801_v38, %v800_v21  ;;  %v805_v4 = vrot.slane %v800_v21, 4  ;;  %1037 = vst [vmem:[#allocation2 + $0x6c] sm:$0xf] %v1036_v1  ;;  %v5946_v12 = vcombine.low %v1719_v20, %v1720_v23  ;;  %v4884_v49 = vld [vmem:[#allocation2 + $0x68] ss:$0 sps:$4 sm:$0x11]   ;;  %v5949_v26 = vsel %vm1556_vm3, %v1578_v51, %v1579_v11 }
 0x10f   : > { %v4235_v41 = vcombine.low %v1760_v31, %v1720_v23  ;;  %v4401_v36 = vpack.c.bf16 %v484_v6, %v484_v6  ;;  %1617 = vrot.lane.b32.xlu1 %v1577_v24, %s5240_s8  ;;  %v2923_v37 = vrot.slane %v2921_v32, 1  ;;  %v4402_v2 = vpack.c.bf16 %v485_v40, %v485_v40  ;;  %v2770_v11 = vld [vmem:[#allocation2 + $0x24] sm:$0xe]  ;;  %v4521_v20 = vld [vmem:[%s5494_s0 + $0x50] sm:$0xff]   ;;  %v1042_v6 = vld [vmem:[#allocation2 + $0x78] sm:$0xf] }
 0x110   : > { %7115 = vst [vmem:[#allocation24_spill] sm:$0xff] %v5946_v12  ;;  %v804_v62 = vsel %vm5597_vm8, %v796_v63, %v803_v27  ;;  %v1040_v28 = vsel %vm5590_vm7, %v805_v4, %v1039_v57  ;;  %v1982_v47 = vshrl.u32 %v5946_v12, 16  ;;  %v1984_v51 = vshll.u32 %v5946_v12, 16  ;;  %v1046_v40 = vld [vmem:[#allocation2 + $0x80] sm:$0x1] }
 0x111   : > { %v1989_v19 = vshll.u32 %v4884_v49, 16  ;;  %v2190_v25 = vrot.slane %v4235_v41, 1  ;;  %1038 = vst.msk [vmem:[#allocation2 + $0x70] sm:$0xf] %vm498_vm0, %v804_v62  ;;  %1041 = vst [vmem:[#allocation2 + $0x74] sm:$0x1] %v1040_v28  ;;  %v2919_v63 = vor.u32 %v2918_v52, %v2914_v33  ;;  %v4311_v24 = vcombine.low %v2770_v11, %v5843_v3 }
 0x112   : > { %v2191_v9 = vrot.slane %v4884_v49, 1  ;;  %v807_v43 = vshrl.u32 %v4401_v36, 16  ;;  %v810_v7 = vshll.u32 %v4401_v36, 16  ;;  %v1986_v18 = vrot.slane %v1984_v51, 1  ;;  %v1081_v12 = vld [vmem:[#allocation2 + $0xbc] sm:$0x1] }
 0x113   : > { %v1991_v38 = vrot.slane %v1989_v19, 1  ;;  %v815_v39 = vshrl.u32 %v4402_v2, 16  ;;  %v818_v59 = vshll.u32 %v4402_v2, 16  ;;  %2229 = vrot.lane.b32.xlu1 %v2189_v30, %s5240_s8  ;;  %v2928_v21 = vshll.u32 %v5863_v48, 16  ;;  %v2725_v2 = vld [vmem:[#allocation2 + $0x30] sm:$0xf] }
 0x114   : > { %v809_v31 = vrot.slane %v807_v43, 7  ;;  %v2933_v32 = vshll.u32 %v5956_v42, 16  ;;  %v1987_v1 = vor.u32 %v1986_v18, %v1982_v47  ;;  %v2192_v57 = vsel %vm1556_vm3, %v2190_v25, %v2191_v9  ;;  %v5972_v47 = vld [vmem:[#allocation2 + $0x34] sm:$0xf] }
 0x115   : > { %v817_v33 = vrot.slane %v815_v39, 7  ;;  %v2926_v23 = vshrl.u32 %v5863_v48, 16  ;;  %v1721_v27 = vld [vmem:[#allocation2 + $0x6c] sm:$0xf]  ;;  %v2930_v30 = vrot.slane %v2928_v21, 1  ;;  %v4490_v41 = vunpack.c.l.bf16 %v4521_v20 }
 0x116   : > { %v812_v4 = vor.u32 %v810_v7, %v809_v31  ;;  %v813_v52 = vrot.slane %v809_v31, 4  ;;  %v1761_v49 = vld [vmem:[#allocation2 + $0x6c] sm:$0xe]  ;;  %v1992_v36 = vsel %vm1283_vm2, %v1987_v1, %v1991_v38  ;;  %v2924_v62 = vsel %vm1283_vm2, %v2919_v63, %v2923_v37  ;;  %v5989_v38 = vld [vmem:[#allocation2 + $0x38] ss:$0 sps:$4 sm:$0x11]  }
 0x117   : > { %v820_v28 = vor.u32 %v818_v59, %v817_v33  ;;  %v822_v3 = vrot.slane %v817_v33, 4  ;;  %2103 = vrot.lane.b32.xlu0 %v1992_v36, %s5241_s26  ;;  %2231 = vrot.lane.b32.xlu1 %v2192_v57, %s5240_s8  ;;  %v5978_v25 = vrot.slane %v2933_v32, 1  ;;  %v3185_v11 = vrot.slane %v4310_v17, 1  ;;  %v5995_v39 = vld [vmem:[#allocation3] ss:$0 sm:$0xff] }
 0x118   : > { %v1722_v51 = vld [vmem:[#allocation2 + $0x70] sm:$0xf]  ;;  %v1043_v19 = vsel %vm5605_vm9, %v812_v4, %v1042_v6  ;;  %v4491_v37 = vunpack.c.h.bf16 %v4521_v20  ;;  %v4887_v63 = vld [vmem:[#allocation2 + $0x74] ss:$0 sps:$4 sm:$0x11]   ;;  %v5992_v44 = vor.u32 %v2930_v30, %v2926_v23  ;;  %v3186_v46 = vrot.slane %v5919_v22, 1 }
 0x119   : > { %v5983_v9 = vcombine.low %v1721_v27, %v1722_v51  ;;  %v821_v43 = vsel %vm5597_vm8, %v813_v52, %v820_v28  ;;  %1044 = vst [vmem:[#allocation2 + $0x78] sm:$0xf] %v1043_v19  ;;  %v1047_v7 = vsel %vm5590_vm7, %v822_v3, %v1046_v40  ;;  %v4236_v18 = vcombine.low %v1761_v49, %v1722_v51  ;;  %v4522_v20 = vld [vmem:[%s5494_s0 + $0x58] sm:$0xff]  }
 0x11a   : > { %1045 = vst.msk [vmem:[#allocation2 + $0x7c] sm:$0xf] %vm498_vm0, %v821_v43  ;;  %1048 = vst [vmem:[#allocation2 + $0x80] sm:$0x1] %v1047_v7  ;;  %v3188_v17 = vrot.slane %v4311_v24, 1  ;;  %v415_v59 = vmul.f32 %v5995_v39, %v4490_v41  ;;  %v2001_v32 = vshll.u32 %v4887_v63, 16  ;;  %v416_v22 = vmul.f32 %v5995_v39, %v4491_v37 }
 0x11b   : > { %7116 = vst [vmem:[#allocation25_spill] sm:$0xff] %v5983_v9  ;;  %v1994_v31 = vshrl.u32 %v5983_v9, 16  ;;  %v1996_v21 = vshll.u32 %v5983_v9, 16  ;;  %v2193_v1 = vrot.slane %v4236_v18, 1  ;;  %1619 = vrot.lane.b32.xlu0 %v5949_v26, %s5240_s8  ;;  %3105 = vrot.lane.b32.xlu1 %v2924_v62, %s5241_s26  ;;  %v2194_v57 = vrot.slane %v4887_v63, 1 }
 0x11c   : > { %v454_v24 = vadd.f32 %v5898_v60, %v415_v59  ;;  %v6007_v33 = vcombine.low %v2725_v2, %v5972_v47  ;;  %v2003_v40 = vrot.slane %v2001_v32, 1  ;;  %v3189_v23 = vrot.slane %v5956_v42, 1  ;;  %v2727_v37 = vld [vmem:[#allocation2 + $0x3c] sm:$0xf]  ;;  %v6024_v32 = vld [vmem:[#allocation2 + $0x40] sm:$0xf] }
 0x11d   : > { %v1998_v6 = vrot.slane %v1996_v21, 1  ;;  %v4494_v27 = vunpack.c.l.bf16 %v4522_v20  ;;  %v2195_v4 = vsel %vm1556_vm3, %v2193_v1, %v2194_v57  ;;  %v455_v52 = vadd.f32 %v5898_v60, %v416_v22 }
 0x11e   : > { %7117 = vst [vmem:[#allocation26_spill] sm:$0xff] %v6007_v33  ;;  %v486_v26 = vmax.f32 %v454_v24, 0.0  ;;  %v2945_v49 = vshll.u32 %v5989_v38, 16  ;;  %v2938_v41 = vshrl.u32 %v6007_v33, 16  ;;  %v2940_v36 = vshll.u32 %v6007_v33, 16 }
 0x11f   : > { %v1999_v30 = vor.u32 %v1998_v6, %v1994_v31  ;;  %v4495_v62 = vunpack.c.h.bf16 %v4522_v20  ;;  %2233 = vrot.lane.b32.xlu1 %v2195_v4, %s5240_s8  ;;  %v3187_v3 = vsel %vm1556_vm3, %v3185_v11, %v3186_v46  ;;  %v487_v2 = vmax.f32 %v455_v52, 0.0 }
 0x120   : > { %v1723_v28 = vld [vmem:[#allocation2 + $0x78] sm:$0xf]  ;;  %v4403_v51 = vpack.c.bf16 %v486_v26, %v486_v26  ;;  %v417_v19 = vmul.f32 %v5995_v39, %v4494_v27  ;;  %v3190_v7 = vsel %vm1556_vm3, %v3188_v17, %v3189_v23  ;;  %v2942_v18 = vrot.slane %v2940_v36, 1 }
 0x121   : > { %v1762_v42 = vld [vmem:[#allocation2 + $0x78] sm:$0xe]  ;;  %v2004_v63 = vsel %vm1283_vm2, %v1999_v30, %v2003_v40  ;;  %v1724_v43 = vld [vmem:[#allocation2 + $0x7c] sm:$0xf]  ;;  %v418_v59 = vmul.f32 %v5995_v39, %v4495_v62  ;;  %v4404_v46 = vpack.c.bf16 %v487_v2, %v487_v2  ;;  %v2947_v22 = vrot.slane %v2945_v49, 1 }
 0x122   : > { %2105 = vrot.lane.b32.xlu0 %v2004_v63, %s5241_s26  ;;  %v6022_v20 = vcombine.low %v1723_v28, %v1724_v43  ;;  %v4891_v31 = vld [vmem:[#allocation2 + $0x80] ss:$0 sps:$4 sm:$0x11]   ;;  %v4237_v11 = vcombine.low %v1762_v42, %v1724_v43  ;;  %v824_v21 = vshrl.u32 %v4403_v51, 16  ;;  %v827_v1 = vshll.u32 %v4403_v51, 16 }
 0x123   : > { %v2943_v57 = vor.u32 %v2942_v18, %v2938_v41  ;;  %v456_v24 = vadd.f32 %v5898_v60, %v417_v19  ;;  %v2013_v40 = vshll.u32 %v4891_v31, 16  ;;  %3233 = vrot.lane.b32.xlu1 %v3187_v3, %s5240_s8  ;;  %v457_v23 = vadd.f32 %v5898_v60, %v418_v59  ;;  %v6034_v30 = vld [vmem:[#allocation2 + $0x44] ss:$0 sps:$4 sm:$0x11]   ;;  %v1053_v63 = vld [vmem:[#allocation2 + $0x8c] sm:$0x1] }
 0x124   : > { %7118 = vst [vmem:[#allocation27_spill] sm:$0xff] %v6022_v20  ;;  %v2006_v17 = vshrl.u32 %v6022_v20, 16  ;;  %v2008_v6 = vshll.u32 %v6022_v20, 16  ;;  %v826_v27 = vrot.slane %v824_v21, 7  ;;  %v832_v4 = vshrl.u32 %v4404_v46, 16 }
 0x125   : > { %v835_v52 = vshll.u32 %v4404_v46, 16  ;;  %v6032_v26 = vcombine.low %v2727_v37, %v6024_v32  ;;  %v2015_v41 = vrot.slane %v2013_v40, 1  ;;  %v2196_v36 = vrot.slane %v4237_v11, 1  ;;  %v1049_v62 = vld [vmem:[#allocation2 + $0x84] sm:$0xf] }
 0x126   : > { %v2010_v49 = vrot.slane %v2008_v6, 1  ;;  %v488_v28 = vmax.f32 %v456_v24, 0.0  ;;  %v2197_v42 = vrot.slane %v4891_v31, 1  ;;  %v829_v2 = vor.u32 %v827_v1, %v826_v27  ;;  %v2771_v24 = vld [vmem:[#allocation2 + $0x30] sm:$0xe] }
 0x127   : > { %7119 = vst [vmem:[#allocation28_spill] sm:$0xff] %v6032_v26  ;;  %v830_v51 = vrot.slane %v826_v27, 4  ;;  %v834_v19 = vrot.slane %v832_v4, 7  ;;  %3235 = vrot.lane.b32.xlu1 %v3190_v7, %s5240_s8  ;;  %v2948_v43 = vsel %vm1283_vm2, %v2943_v57, %v2947_v22  ;;  %v489_v18 = vmax.f32 %v457_v23, 0.0 }
 0x128   : > { %v2011_v3 = vor.u32 %v2010_v49, %v2006_v17  ;;  %v4405_v37 = vpack.c.bf16 %v488_v28, %v488_v28  ;;  %v1050_v21 = vsel %vm5605_vm9, %v829_v2, %v1049_v62  ;;  %v2952_v11 = vshll.u32 %v6032_v26, 16  ;;  %v2772_v49 = vld [vmem:[#allocation2 + $0x3c] sm:$0xe]  ;;  %v2729_v2 = vld [vmem:[#allocation2 + $0x48] sm:$0xf] }
 0x129   : > { %v837_v59 = vor.u32 %v835_v52, %v834_v19  ;;  %v839_v46 = vrot.slane %v834_v19, 4  ;;  %1051 = vst [vmem:[#allocation2 + $0x84] sm:$0xf] %v1050_v21  ;;  %v4406_v1 = vpack.c.bf16 %v489_v18, %v489_v18  ;;  %v2936_v57 = vsel %vm1283_vm2, %v5992_v44, %v5978_v25  ;;  %v4523_v25 = vld [vmem:[%s5494_s0 + $0x60] sm:$0xff]  }
 0x12a   : > { %v2016_v31 = vsel %vm1283_vm2, %v2011_v3, %v2015_v41  ;;  %v841_v17 = vshrl.u32 %v4405_v37, 16  ;;  %v844_v7 = vshll.u32 %v4405_v37, 16  ;;  %v2957_v40 = vshll.u32 %v6034_v30, 16  ;;  %v1056_v41 = vld [vmem:[#allocation2 + $0x90] sm:$0xf] }
 0x12b   : > { %2107 = vrot.lane.b32.xlu0 %v2016_v31, %s5241_s26  ;;  %v838_v22 = vsel %vm5597_vm8, %v830_v51, %v837_v59  ;;  %v1054_v6 = vsel %vm5590_vm7, %v839_v46, %v1053_v63  ;;  %3109 = vrot.lane.b32.xlu1 %v2948_v43, %s5241_s26  ;;  %v849_v27 = vshrl.u32 %v4406_v1, 16  ;;  %v852_v4 = vshll.u32 %v4406_v1, 16  ;;  %v6058_v43 = vld [vmem:[#allocation2 + $0x4c] sm:$0xf]  ;;  %v4524_v59 = vld [vmem:[%s5494_s0 + $0x68] sm:$0xff]  }
 0x12c   : > { %1052 = vst.msk [vmem:[#allocation2 + $0x88] sm:$0xf] %vm498_vm0, %v838_v22  ;;  %1055 = vst [vmem:[#allocation2 + $0x8c] sm:$0x1] %v1054_v6  ;;  %v843_v23 = vrot.slane %v841_v17, 7  ;;  %v4312_v52 = vcombine.low %v2771_v24, %v5972_v47  ;;  %v2198_v44 = vsel %vm1556_vm3, %v2196_v36, %v2197_v42  ;;  %v2950_v62 = vshrl.u32 %v6032_v26, 16 }
 0x12d   : > { %v2954_v28 = vrot.slane %v2952_v11, 1  ;;  %v851_v3 = vrot.slane %v849_v27, 7  ;;  %v3192_v63 = vrot.slane %v5989_v38, 1  ;;  %v1060_v47 = vld [vmem:[#allocation2 + $0x98] sm:$0x1]  ;;  %v4313_v37 = vcombine.low %v2772_v49, %v6024_v32 }
 0x12e   : > { %v846_v51 = vor.u32 %v844_v7, %v843_v23  ;;  %v847_v19 = vrot.slane %v843_v23, 4  ;;  %v3191_v18 = vrot.slane %v4312_v52, 1  ;;  %v4498_v36 = vunpack.c.l.bf16 %v4523_v25  ;;  %v6067_v31 = vld [vmem:[#allocation2 + $0x50] ss:$0 sps:$4 sm:$0x11]  }
 0x12f   : > { %3107 = vrot.lane.b32.xlu0 %v2936_v57, %s5241_s26  ;;  %v4499_v42 = vunpack.c.h.bf16 %v4523_v25  ;;  %v854_v46 = vor.u32 %v852_v4, %v851_v3  ;;  %v856_v21 = vrot.slane %v851_v3, 4  ;;  %v6065_v24 = vrot.slane %v2957_v40, 1 }
 0x130   : > { %v1057_v11 = vsel %vm5605_vm9, %v846_v51, %v1056_v41  ;;  %v1725_v38 = vld [vmem:[#allocation2 + $0x84] sm:$0xf]  ;;  %v6069_v17 = vor.u32 %v2954_v28, %v2950_v62  ;;  %v419_v7 = vmul.f32 %v5995_v39, %v4498_v36  ;;  %v6074_v57 = vcombine.low %v2729_v2, %v6058_v43 }
 0x131   : > { %1058 = vst [vmem:[#allocation2 + $0x90] sm:$0xf] %v1057_v11  ;;  %v1763_v1 = vld [vmem:[#allocation2 + $0x84] sm:$0xe]  ;;  %v420_v32 = vmul.f32 %v5995_v39, %v4499_v42  ;;  %v855_v22 = vsel %vm5597_vm8, %v847_v19, %v854_v46  ;;  %v1061_v6 = vsel %vm5590_vm7, %v856_v21, %v1060_v47  ;;  %v3195_v40 = vrot.slane %v6034_v30, 1 }
 0x132   : > { %7120 = vst [vmem:[#allocation29_spill] sm:$0xff] %v6074_v57  ;;  %v4502_v23 = vunpack.c.l.bf16 %v4524_v59  ;;  %1059 = vst.msk [vmem:[#allocation2 + $0x94] sm:$0xf] %vm498_vm0, %v855_v22  ;;  %v3193_v4 = vsel %vm1556_vm3, %v3191_v18, %v3192_v63  ;;  %v3194_v52 = vrot.slane %v4313_v37, 1  ;;  %v458_v49 = vadd.f32 %v5898_v60, %v419_v7 }
 0x133   : > { %2235 = vrot.lane.b32.xlu0 %v2198_v44, %s5240_s8  ;;  %v1726_v27 = vld [vmem:[#allocation2 + $0x88] sm:$0xf]  ;;  %1062 = vst [vmem:[#allocation2 + $0x98] sm:$0x1] %v1061_v6  ;;  %v459_v25 = vadd.f32 %v5898_v60, %v420_v32  ;;  %v2969_v30 = vshll.u32 %v6067_v31, 16  ;;  %v4503_v2 = vunpack.c.h.bf16 %v4524_v59  ;;  %v2964_v19 = vshll.u32 %v6074_v57, 16  ;;  %v6096_v32 = vpop.permute.xlu0 %1476 }
 0x134   : > { %v6086_v41 = vcombine.low %v1725_v38, %v1726_v27  ;;  %v4897_v62 = vld [vmem:[#allocation2 + $0x8c] ss:$0 sps:$4 sm:$0x11]   ;;  %v4238_v28 = vcombine.low %v1763_v1, %v1726_v27  ;;  %v490_v51 = vmax.f32 %v458_v49, 0.0  ;;  %v421_v3 = vmul.f32 %v5995_v39, %v4502_v23  ;;  %v2731_v49 = vld [vmem:[#allocation2 + $0x54] sm:$0xf] }
 0x135   : > { %v491_v44 = vmax.f32 %v459_v25, 0.0  ;;  %v2025_v18 = vshll.u32 %v4897_v62, 16  ;;  %v2200_v36 = vrot.slane %v4897_v62, 1  ;;  %v2962_v21 = vshrl.u32 %v6074_v57, 16  ;;  %v6099_v25 = vld [vmem:[#allocation2 + $0x58] sm:$0xf] }
 0x136   : > { %7121 = vst [vmem:[#allocation30_spill] sm:$0xff] %v6086_v41  ;;  %v2018_v63 = vshrl.u32 %v6086_v41, 16  ;;  %v2020_v47 = vshll.u32 %v6086_v41, 16  ;;  %v2199_v37 = vrot.slane %v4238_v28, 1  ;;  %v4407_v42 = vpack.c.bf16 %v490_v51, %v490_v51  ;;  %v1063_v57 = vld [vmem:[#allocation2 + $0x9c] sm:$0xf] }
 0x137   : > { %v4408_v46 = vpack.c.bf16 %v491_v44, %v491_v44  ;;  %v2027_v38 = vrot.slane %v2025_v18, 1  ;;  %v422_v1 = vmul.f32 %v5995_v39, %v4503_v2  ;;  %v460_v7 = vadd.f32 %v5898_v60, %v421_v3 }
 0x138   : > { %v2022_v11 = vrot.slane %v2020_v47, 1  ;;  %v1727_v59 = vld [vmem:[#allocation2 + $0x90] sm:$0xf]  ;;  %v2201_v22 = vsel %vm1556_vm3, %v2199_v37, %v2200_v36  ;;  %v858_v6 = vshrl.u32 %v4407_v42, 16  ;;  %v2966_v27 = vrot.slane %v2964_v19, 1  ;;  %v6103_v47 = vpop.permute.xlu1 %1605 }
 0x139   : > { %v866_v23 = vshrl.u32 %v4408_v46, 16  ;;  %v1728_v28 = vld [vmem:[#allocation2 + $0x94] sm:$0xf]  ;;  %2237 = vrot.lane.b32.xlu1 %v2201_v22, %s5240_s8  ;;  %v861_v51 = vshll.u32 %v4407_v42, 16  ;;  %v869_v44 = vshll.u32 %v4408_v46, 16  ;;  %v461_v2 = vadd.f32 %v5898_v60, %v422_v1 }
 0x13a   : > { %v2023_v62 = vor.u32 %v2022_v11, %v2018_v63  ;;  %v6105_v3 = vcombine.low %v1727_v59, %v1728_v28  ;;  %v6107_v18 = vld [vmem:[#allocation2 + $0x98] ss:$0 sps:$4 sm:$0x11]   ;;  %v3196_v37 = vsel %vm1556_vm3, %v3194_v52, %v3195_v40  ;;  %v860_v19 = vrot.slane %v858_v6, 7  ;;  %v1764_v1 = vld [vmem:[#allocation2 + $0x90] sm:$0xe] }
 0x13b   : > { %v868_v36 = vrot.slane %v866_v23, 7  ;;  %v2971_v11 = vrot.slane %v2969_v30, 1  ;;  %v492_v26 = vmax.f32 %v460_v7, 0.0  ;;  %v493_v22 = vmax.f32 %v461_v2, 0.0  ;;  %v1067_v23 = vld [vmem:[#allocation2 + $0xa4] sm:$0x1] }
 0x13c   : > { %7122 = vst [vmem:[#allocation31_spill] sm:$0xff] %v6105_v3  ;;  %v2028_v63 = vsel %vm1283_vm2, %v2023_v62, %v2027_v38  ;;  %v2030_v42 = vshrl.u32 %v6105_v3, 16  ;;  %v2032_v46 = vshll.u32 %v6105_v3, 16  ;;  %v2037_v59 = vshll.u32 %v6107_v18, 16  ;;  %v6119_v38 = vpop.permute.xlu0 %1607 }
 0x13d   : > { %2109 = vrot.lane.b32.xlu0 %v2028_v63, %s5241_s26  ;;  %v2967_v33 = vor.u32 %v2966_v27, %v2962_v21  ;;  %3237 = vrot.lane.b32.xlu1 %v3193_v4, %s5240_s8  ;;  %v863_v40 = vor.u32 %v861_v51, %v860_v19  ;;  %v864_v52 = vrot.slane %v860_v19, 4  ;;  %v871_v6 = vor.u32 %v869_v44, %v868_v36  ;;  %v6121_v3 = vld [vmem:[#allocation2 + $0x5c] ss:$0 sps:$4 sm:$0x11]   ;;  %v2773_v51 = vld [vmem:[#allocation2 + $0x48] sm:$0xe]  ;;  %v6127_v44 = vpop.permute.xlu1 %2217 }
 0x13e   : > { %v6117_v30 = vcombine.low %v2731_v49, %v6099_v25  ;;  %v2034_v7 = vrot.slane %v2032_v46, 1  ;;  %v2039_v62 = vrot.slane %v2037_v59, 1  ;;  %v873_v2 = vrot.slane %v868_v36, 4  ;;  %v2774_v59 = vld [vmem:[#allocation2 + $0x54] sm:$0xe] }
 0x13f   : > { %v4409_v63 = vpack.c.bf16 %v492_v26, %v492_v26  ;;  %v4239_v41 = vcombine.low %v1764_v1, %v1728_v28  ;;  %v872_v21 = vsel %vm5597_vm8, %v864_v52, %v871_v6  ;;  %v1064_v4 = vsel %vm5605_vm9, %v863_v40, %v1063_v57 }
 0x140   : > { %7123 = vst [vmem:[#allocation32_spill] sm:$0xff] %v6117_v30  ;;  %v4410_v27 = vpack.c.bf16 %v493_v22, %v493_v22  ;;  %v2035_v49 = vor.u32 %v2034_v7, %v2030_v42  ;;  %1065 = vst [vmem:[#allocation2 + $0x9c] sm:$0xf] %v1064_v4  ;;  %v1068_v26 = vsel %vm5590_vm7, %v873_v2, %v1067_v23  ;;  %v2976_v46 = vshll.u32 %v6117_v30, 16  ;;  %v1070_v23 = vld [vmem:[#allocation2 + $0xa8] sm:$0xf] }
 0x141   : > { %1066 = vst.msk [vmem:[#allocation2 + $0xa0] sm:$0xf] %vm498_vm0, %v872_v21  ;;  %v875_v19 = vshrl.u32 %v4409_v63, 16  ;;  %v878_v36 = vshll.u32 %v4409_v63, 16  ;;  %3239 = vrot.lane.b32.xlu1 %v3196_v37, %s5240_s8  ;;  %1069 = vst [vmem:[#allocation2 + $0xa4] sm:$0x1] %v1068_v26  ;;  %v2972_v28 = vsel %vm1283_vm2, %v2967_v33, %v2971_v11  ;;  %v4314_v52 = vcombine.low %v2773_v51, %v6058_v43 }
 0x142   : > { %v883_v57 = vshrl.u32 %v4410_v27, 16  ;;  %v886_v22 = vshll.u32 %v4410_v27, 16  ;;  %v2040_v42 = vsel %vm1283_vm2, %v2035_v49, %v2039_v62  ;;  %v2981_v40 = vshll.u32 %v6121_v3, 16  ;;  %v4525_v7 = vld [vmem:[%s5494_s0 + $0x70] sm:$0xff]   ;;  %v6144_v2 = vpop.permute.xlu0 %1611  ;;  %v2733_v27 = vld [vmem:[#allocation2 + $0x60] sm:$0xf]  ;;  %v6152_v49 = vpop.permute.xlu1 %2219 }
 0x143   : > { %v877_v1 = vrot.slane %v875_v19, 7  ;;  %2111 = vrot.lane.b32.xlu0 %v2040_v42, %s5241_s26  ;;  %v2960_v37 = vsel %vm1283_vm2, %v6069_v17, %v6065_v24  ;;  %v2202_v6 = vrot.slane %v4239_v41, 1  ;;  %v2203_v33 = vrot.slane %v6107_v18, 1  ;;  %v1074_v21 = vld [vmem:[#allocation2 + $0xb0] sm:$0x1] }
 0x144   : > { %v885_v11 = vrot.slane %v883_v57, 7  ;;  %v4315_v43 = vcombine.low %v2774_v59, %v6099_v25  ;;  %v3197_v17 = vrot.slane %v4314_v52, 1  ;;  %v3198_v41 = vrot.slane %v6067_v31, 1  ;;  %v6150_v18 = vld [vmem:[#allocation2 + $0x64] sm:$0xf] }
 0x145   : > { %v880_v62 = vor.u32 %v878_v36, %v877_v1  ;;  %v881_v63 = vrot.slane %v877_v1, 4  ;;  %3113 = vrot.lane.b32.xlu1 %v2972_v28, %s5241_s26  ;;  %v2978_v19 = vrot.slane %v2976_v46, 1  ;;  %v6156_v36 = vrot.slane %v2981_v40, 1  ;;  %v6158_v25 = vld [vmem:[#allocation2 + $0x68] ss:$0 sps:$4 sm:$0x11]  }
 0x146   : > { %v888_v51 = vor.u32 %v886_v22, %v885_v11  ;;  %v890_v24 = vrot.slane %v885_v11, 4  ;;  %v4506_v57 = vunpack.c.l.bf16 %v4525_v7  ;;  %v2204_v28 = vsel %vm1556_vm3, %v2202_v6, %v2203_v33 }
 0x147   : > { %v1071_v26 = vsel %vm5605_vm9, %v880_v62, %v1070_v23  ;;  %3111 = vrot.lane.b32.xlu0 %v2960_v37, %s5241_s26  ;;  %v1729_v22 = vld [vmem:[#allocation2 + $0x9c] sm:$0xf]  ;;  %v4507_v46 = vunpack.c.h.bf16 %v4525_v7  ;;  %v3200_v11 = vrot.slane %v4315_v43, 1  ;;  %v3199_v33 = vsel %vm1556_vm3, %v3197_v17, %v3198_v41 }
 0x148   : > { %v1730_v59 = vld [vmem:[#allocation2 + $0xa0] sm:$0xf]  ;;  %v889_v31 = vsel %vm5597_vm8, %v881_v63, %v888_v51  ;;  %1072 = vst [vmem:[#allocation2 + $0xa8] sm:$0xf] %v1071_v26  ;;  %v1075_v42 = vsel %vm5590_vm7, %v890_v24, %v1074_v21  ;;  %v1765_v1 = vld [vmem:[#allocation2 + $0x9c] sm:$0xe]  ;;  %v423_v6 = vmul.f32 %v5995_v39, %v4506_v57  ;;  %v6173_v62 = vcombine.low %v2733_v27, %v6150_v18  ;;  %v6175_v63 = vpop.permute.xlu0 %2089  ;;  %v6183_v26 = vpop.permute.xlu1 %1609 }
 0x149   : > { %v6166_v40 = vcombine.low %v1729_v22, %v1730_v59  ;;  %v4907_v52 = vld [vmem:[#allocation2 + $0xa4] ss:$0 sps:$4 sm:$0x11]   ;;  %1073 = vst.msk [vmem:[#allocation2 + $0xac] sm:$0xf] %vm498_vm0, %v889_v31  ;;  %v4240_v37 = vcombine.low %v1765_v1, %v1730_v59  ;;  %v424_v23 = vmul.f32 %v5995_v39, %v4507_v46  ;;  %v3201_v17 = vrot.slane %v6121_v3, 1 }
 0x14a   : > { %1076 = vst [vmem:[#allocation2 + $0xb0] sm:$0x1] %v1075_v42  ;;  %7125 = vst [vmem:[#allocation34_spill] sm:$0xff] %v6173_v62  ;;  %v2049_v51 = vshll.u32 %v4907_v52, 16  ;;  %v2206_v43 = vrot.slane %v4907_v52, 1  ;;  %v462_v41 = vadd.f32 %v5898_v60, %v423_v6  ;;  %v2988_v59 = vshll.u32 %v6173_v62, 16 }
 0x14b   : > { %7124 = vst [vmem:[#allocation33_spill] sm:$0xff] %v6166_v40  ;;  %v2042_v7 = vshrl.u32 %v6166_v40, 16  ;;  %v2044_v21 = vshll.u32 %v6166_v40, 16  ;;  %v2205_v24 = vrot.slane %v4240_v37, 1  ;;  %2239 = vrot.lane.b32.xlu0 %v2204_v28, %s5240_s8  ;;  %v463_v27 = vadd.f32 %v5898_v60, %v424_v23  ;;  %v4526_v28 = vld [vmem:[%s5494_s0 + $0x78] sm:$0xff]  }
 0x14c   : > { %v2051_v22 = vrot.slane %v2049_v51, 1  ;;  %v2993_v31 = vshll.u32 %v6158_v25, 16  ;;  %v494_v1 = vmax.f32 %v462_v41, 0.0  ;;  %v1639_v3 = vsel %vm1637_vm10, %v5563_v8, %v6096_v32  ;;  %v1077_v40 = vld [vmem:[#allocation2 + $0xb4] sm:$0xf] }
 0x14d   : > { %v2046_v57 = vrot.slane %v2044_v21, 1  ;;  %v2207_v42 = vsel %vm1556_vm3, %v2205_v24, %v2206_v43  ;;  %v495_v46 = vmax.f32 %v463_v27, 0.0  ;;  %v2986_v6 = vshrl.u32 %v6173_v62, 16  ;;  %v6196_v43 = vpop.permute.xlu0 %2091 }
 0x14e   : > { %2241 = vrot.lane.b32.xlu1 %v2207_v42, %s5240_s8  ;;  %v2990_v23 = vrot.slane %v2988_v59, 1  ;;  %vm1670_vm11 = vcmask 64512   ;;  %v4411_v51 = vpack.c.bf16 %v494_v1, %v494_v1  ;;  %vm2321_vm12 = vcmask 97280  }
 0x14f   : > { %v2047_v52 = vor.u32 %v2046_v57, %v2042_v7  ;;  %v1731_v37 = vld [vmem:[#allocation2 + $0xa8] sm:$0xf]  ;;  %v4412_v4 = vpack.c.bf16 %v495_v46, %v495_v46  ;;  %v1672_v24 = vsel %vm1670_vm11, %v1639_v3, %v6103_v47  ;;  %v7127_v41 = vshrl.u32 %v6117_v30, 16  ;;  %v6207_v3 = vpop.permute.xlu1 %2221 }
 0x150   : > { %v1732_v21 = vld [vmem:[#allocation2 + $0xac] sm:$0xf]  ;;  %4614 = vmatprep.mubr.msk.bf16.mxu0 %vm2321_vm12, %v1672_v24  ;;  %v4510_v57 = vunpack.c.l.bf16 %v4526_v28  ;;  %v1766_v59 = vld [vmem:[#allocation2 + $0xa8] sm:$0xe]  ;;  %v892_v42 = vshrl.u32 %v4411_v51, 16  ;;  %v895_v47 = vshll.u32 %v4411_v51, 16  ;;  %v2252_v55 = vsel %vm1637_vm10, %v5665_v35, %v6196_v43 }
 0x151   : > { %v2052_v8 = vsel %vm1283_vm2, %v2047_v52, %v2051_v22  ;;  %v6199_v32 = vcombine.low %v1731_v37, %v1732_v21  ;;  %v6201_v7 = vld [vmem:[#allocation2 + $0xb0] ss:$0 sps:$4 sm:$0x11]   ;;  %v2979_v27 = vor.u32 %v2978_v19, %v7127_v41  ;;  %v900_v1 = vshrl.u32 %v4412_v4, 16  ;;  %v6215_v45 = vpop.permute.xlu0 %1480  ;;  %v1147_v35 = vld [vmem:[#allocation2 + $0x60] sm:$0xe] }
 0x152   : > { %2113 = vrot.lane.b32.xlu0 %v2052_v8, %s5241_s26  ;;  %v903_v46 = vshll.u32 %v4412_v4, 16  ;;  %v2061_v37 = vshll.u32 %v6201_v7, 16  ;;  %3241 = vrot.lane.b32.xlu1 %v3199_v33, %s5240_s8  ;;  %v3202_v19 = vsel %vm1556_vm3, %v3200_v11, %v3201_v17  ;;  %v894_v24 = vrot.slane %v892_v42, 7  ;;  %v1107_v43 = vld [vmem:[#allocation2 + $0x60] sm:$0xf] }
 0x153   : > { %7126 = vst [vmem:[#allocation35_spill] sm:$0xff] %v6199_v32  ;;  %v2054_v22 = vshrl.u32 %v6199_v32, 16  ;;  %v2056_v52 = vshll.u32 %v6199_v32, 16  ;;  %v902_v41 = vrot.slane %v900_v1, 7  ;;  %v2991_v8 = vor.u32 %v2990_v23, %v2986_v6  ;;  %v2735_v6 = vld [vmem:[#allocation2 + $0x6c] sm:$0xf] }
 0x154   : > { %v2995_v62 = vrot.slane %v2993_v31, 1  ;;  %v2063_v51 = vrot.slane %v2061_v37, 1  ;;  %v4511_v4 = vunpack.c.h.bf16 %v4526_v28  ;;  %v425_v20 = vmul.f32 %v5995_v39, %v4510_v57  ;;  %v6220_v23 = vld [vmem:[#allocation2 + $0x70] sm:$0xf]  ;;  %v2776_v37 = vld [vmem:[#allocation2 + $0x6c] sm:$0xe] }
 0x155   : > { %v2058_v30 = vrot.slane %v2056_v52, 1  ;;  %v4241_v48 = vcombine.low %v1766_v59, %v1732_v21  ;;  %v897_v13 = vor.u32 %v895_v47, %v894_v24  ;;  %v898_v9 = vrot.slane %v894_v24, 4  ;;  %v6242_v1 = vpop.permute.xlu0 %1482  ;;  %v1084_v52 = vld [vmem:[#allocation2 + $0xc0] sm:$0xf] }
 0x156   : > { %v905_v32 = vor.u32 %v903_v46, %v902_v41  ;;  %3243 = vrot.lane.b32.xlu1 %v3202_v19, %s5240_s8  ;;  %v907_v11 = vrot.slane %v902_v41, 4  ;;  %v426_v17 = vmul.f32 %v5995_v39, %v4511_v4  ;;  %v464_v31 = vadd.f32 %v5898_v60, %v425_v20  ;;  %v6227_v59 = vpop.permute.xlu1 %2223  ;;  %v2737_v19 = vld [vmem:[#allocation2 + $0x78] sm:$0xf] }
 0x157   : > { %v2059_v33 = vor.u32 %v2058_v30, %v2054_v22  ;;  %v1078_v21 = vsel %vm5605_vm9, %v897_v13, %v1077_v40  ;;  %v2996_v57 = vsel %vm1283_vm2, %v2991_v8, %v2995_v62  ;;  %v2209_v13 = vrot.slane %v6201_v7, 1 }
 0x158   : > { %v906_v28 = vsel %vm5597_vm8, %v898_v9, %v905_v32  ;;  %1079 = vst [vmem:[#allocation2 + $0xb4] sm:$0xf] %v1078_v21  ;;  %v1082_v39 = vsel %vm5590_vm7, %v907_v11, %v1081_v12  ;;  %v465_v20 = vadd.f32 %v5898_v60, %v426_v17  ;;  %v496_v42 = vmax.f32 %v464_v31, 0.0  ;;  %v2775_v12 = vld [vmem:[#allocation2 + $0x60] sm:$0xe] }
 0x159   : > { %v2064_v30 = vsel %vm1283_vm2, %v2059_v33, %v2063_v51  ;;  %1080 = vst.msk [vmem:[#allocation2 + $0xb8] sm:$0xf] %vm498_vm0, %v906_v28  ;;  %v2208_v9 = vrot.slane %v4241_v48, 1  ;;  %1083 = vst [vmem:[#allocation2 + $0xbc] sm:$0x1] %v1082_v39  ;;  %v6237_v40 = vcombine.low %v2735_v6, %v6220_v23  ;;  %v2984_v62 = vsel %vm1283_vm2, %v2979_v27, %v6156_v36 }
 0x15a   : > { %2115 = vrot.lane.b32.xlu0 %v2064_v30, %s5241_s26  ;;  %3117 = vrot.lane.b32.xlu1 %v2996_v57, %s5241_s26  ;;  %v497_v32 = vmax.f32 %v465_v20, 0.0  ;;  %v4413_v47 = vpack.c.bf16 %v496_v42, %v496_v42  ;;  %v2250_v48 = vsel %vm1637_vm10, %v5646_v15, %v6175_v63  ;;  %v4316_v27 = vcombine.low %v2775_v12, %v6150_v18  ;;  %v6251_v24 = vpop.permute.xlu1 %1613  ;;  %v6254_v33 = vld [vmem:[#allocation2 + $0x7c] sm:$0xf]  ;;  %v1088_v28 = vld [vmem:[#allocation2 + $0xc8] sm:$0x1] }
 0x15b   : > { %7128 = vst [vmem:[#allocation36_spill] sm:$0xff] %v6237_v40  ;;  %v2210_v7 = vsel %vm1556_vm3, %v2208_v9, %v2209_v13  ;;  %v3000_v36 = vshll.u32 %v6237_v40, 16  ;;  %v3204_v4 = vrot.slane %v6158_v25, 1  ;;  %v2282_v17 = vsel %vm1670_vm11, %v2250_v48, %v6127_v44  ;;  %v6260_v57 = vld [vmem:[#allocation2 + $0x74] ss:$0 sps:$4 sm:$0x11]  }
 0x15c   : > { %v4414_v60 = vpack.c.bf16 %v497_v32, %v497_v32  ;;  %v909_v46 = vshrl.u32 %v4413_v47, 16  ;;  %v912_v22 = vshll.u32 %v4413_v47, 16  ;;  %v4317_v30 = vcombine.low %v2776_v37, %v6220_v23  ;;  %4580 = vmatprep.mubr.msk.bf16.mxu1 %vm2321_vm12, %v2282_v17  ;;  %v4930_v44 = vld [vmem:[#allocation9 + $0x8] sm:$0x3f]   ;;  %v6268_v9 = vpop.permute.xlu0 %2095  ;;  %v6270_v13 = vld [vmem:[#allocation9] sm:$0x3f]  }
 0x15d   : > { %v3203_v20 = vrot.slane %v4316_v27, 1  ;;  %v6266_v42 = vcombine.low %v2737_v19, %v6254_v33  ;;  %v6276_v12 = vld [vmem:[#allocation2 + $0x80] ss:$0 sps:$4 sm:$0x11]   ;;  %vm2354_vm13 = vcmask 1045504  }
 0x15e   : > { %3115 = vrot.lane.b32.xlu0 %v2984_v62, %s5241_s26  ;;  %v911_v41 = vrot.slane %v909_v46, 7  ;;  %v917_v8 = vshrl.u32 %v4414_v60, 16  ;;  %v920_v51 = vshll.u32 %v4414_v60, 16  ;;  %v3206_v19 = vrot.slane %v4317_v30, 1  ;;  %4746 = vmatprep.subr.msk.bf16.mxu1 %vm2354_vm13, %v4930_v44 }
 0x15f   : > { %v1733_v15 = vld [vmem:[#allocation2 + $0xb4] sm:$0xf]  ;;  %7130 = vst [vmem:[#allocation38_spill] sm:$0xff] %v6266_v42  ;;  %v3010_v50 = vshrl.u32 %v6266_v42, 16  ;;  %v3017_v17 = vshll.u32 %v6276_v12, 16  ;;  %4747 = vmatprep.subr.msk.bf16.mxu0 %vm2354_vm13, %v6270_v13  ;;  %v2998_v30 = vshrl.u32 %v6237_v40, 16 }
 0x160   : > { %v1734_v63 = vld [vmem:[#allocation2 + $0xb8] sm:$0xf]  ;;  %v1767_v11 = vld [vmem:[#allocation2 + $0xb4] sm:$0xe]  ;;  %v914_v6 = vor.u32 %v912_v22, %v911_v41  ;;  %v915_v25 = vrot.slane %v911_v41, 4  ;;  %v919_v39 = vrot.slane %v917_v8, 7 }
 0x161   : > { %v6258_v31 = vcombine.low %v1733_v15, %v1734_v63  ;;  %v4917_v18 = vld [vmem:[#allocation2 + $0xbc] ss:$0 sps:$4 sm:$0x11]   ;;  %v4242_v21 = vcombine.low %v1767_v11, %v1734_v63  ;;  %v3207_v41 = vrot.slane %v6260_v57, 1  ;;  %v3205_v63 = vsel %vm1556_vm3, %v3203_v20, %v3204_v4  ;;  %v6357_v40 = vld [vmem:[#allocation9 + $0x10] sm:$0x3f]  }
 0x162   : > { %2243 = vrot.lane.b32.xlu0 %v2210_v7, %s5240_s8  ;;  %v2073_v23 = vshll.u32 %v4917_v18, 16  ;;  %v1085_v47 = vsel %vm5605_vm9, %v914_v6, %v1084_v52  ;;  %v922_v60 = vor.u32 %v920_v51, %v919_v39  ;;  %v924_v46 = vrot.slane %v919_v39, 4  ;;  %v6278_v7 = vpop.permute.xlu1 %2225  ;;  %v6299_v6 = vpop.permute.xlu0 %1484 }
 0x163   : > { %7129 = vst [vmem:[#allocation37_spill] sm:$0xff] %v6258_v31  ;;  %v2066_v62 = vshrl.u32 %v6258_v31, 16  ;;  %v2068_v32 = vshll.u32 %v6258_v31, 16  ;;  %1086 = vst [vmem:[#allocation2 + $0xc0] sm:$0xf] %v1085_v47  ;;  %v2211_v22 = vrot.slane %v4242_v21, 1  ;;  %v2284_v20 = vsel %vm1670_vm11, %v2252_v55, %v6152_v49 }
 0x164   : > { %v2212_v48 = vrot.slane %v4917_v18, 1  ;;  %v2075_v37 = vrot.slane %v2073_v23, 1  ;;  %v923_v8 = vsel %vm5597_vm8, %v915_v25, %v922_v60  ;;  %v1089_v61 = vsel %vm5590_vm7, %v924_v46, %v1088_v28  ;;  %v1108_v21 = vld [vmem:[#allocation2 + $0x64] sm:$0xf]  ;;  %v2740_v55 = vld [vmem:[#allocation2 + $0x88] sm:$0xf] }
 0x165   : > { %v2070_v27 = vrot.slane %v2068_v32, 1  ;;  %v3012_v51 = vshll.u32 %v6266_v42, 16  ;;  %1087 = vst.msk [vmem:[#allocation2 + $0xc4] sm:$0xf] %vm498_vm0, %v923_v8  ;;  %1090 = vst [vmem:[#allocation2 + $0xc8] sm:$0x1] %v1089_v61  ;;  %v4188_v47 = vcombine.low %v1147_v35, %v1108_v21  ;;  %v6318_v46 = vcombine.low %v1107_v43, %v1108_v21 }
 0x166   : > { %v2213_v52 = vsel %vm1556_vm3, %v2211_v22, %v2212_v48  ;;  %v2356_v18 = vsel %vm2354_vm13, %v4930_v44, 0  ;;  %v6301_v4 = vpop.permute.xlu1 %1478  ;;  %v3002_v25 = vrot.slane %v3000_v36, 1  ;;  %v3005_v39 = vshll.u32 %v6260_v57, 16  ;;  %v6320_v36 = vld [vmem:[#allocation2 + $0x68] ss:$0 sps:$4 sm:$0x11]  }
 0x167   : > { %v2071_v15 = vor.u32 %v2070_v27, %v2066_v62  ;;  %2245 = vrot.lane.b32.xlu1 %v2213_v52, %s5240_s8  ;;  %v3014_v11 = vrot.slane %v3012_v51, 1  ;;  %4579 = vmatpush3.bf16.msra.mxu1 %v2356_v18  ;;  %v3208_v62 = vsel %vm1556_vm3, %v3206_v19, %v3207_v41  ;;  %v3019_v23 = vrot.slane %v3017_v17, 1  ;;  %7131 = vst [vmem:[#allocation39_spill] sm:$0xff] %v6318_v46  ;;  %v1109_v57 = vld [vmem:[#allocation2 + $0x6c] sm:$0xf]  ;;  %v6324_v49 = vpop.permute.xlu0 %1486 }
 0x168   : > { %4748 = vmatprep.subr.msk.bf16.mxu1 %vm2354_vm13, %v6270_v13  ;;  %v2777_v22 = vld [vmem:[#allocation2 + $0x78] sm:$0xe]  ;;  %v6322_v27 = vld [vmem:[#allocation2 + $0x70] sm:$0xf]  ;;  %v3003_v41 = vor.u32 %v3002_v25, %v2998_v30  ;;  %v3007_v8 = vrot.slane %v3005_v39, 1  ;;  %v1383_v35 = vshll.u32 %v6318_v46, 16 }
 0x169   : > { %v2076_v28 = vsel %vm1283_vm2, %v2071_v15, %v2075_v37  ;;  %v3015_v32 = vor.u32 %v3014_v11, %v3010_v50  ;;  %v2778_v61 = vld [vmem:[#allocation2 + $0x84] sm:$0xe]  ;;  %v6332_v51 = vld [vmem:[#allocation2 + $0x74] ss:$0 sps:$4 sm:$0x11]   ;;  %v1581_v15 = vrot.slane %v4188_v47, 1  ;;  %v4318_v50 = vcombine.low %v2777_v22, %v6254_v33 }
 0x16a   : > { %2117 = vrot.lane.b32.xlu0 %v2076_v28, %s5241_s26  ;;  %v1735_v44 = vld [vmem:[#allocation2 + $0xc0] sm:$0xf]  ;;  %4581 = vmatmul.mubr.msk.bf16.vlgmr.msra.gmra.mrb[0].mxu1 %vm2321_vm12, %v2284_v20  ;;  %v6316_v60 = vpop.permute.xlu1 %2093  ;;  %v2741_v11 = vld [vmem:[#allocation2 + $0x90] sm:$0xf]  ;;  %v2739_v43 = vld [vmem:[#allocation2 + $0x84] sm:$0xf]  ;;  %v6342_v25 = vcombine.low %v1109_v57, %v6322_v27 }
 0x16b   : > { %3245 = vrot.lane.b32.xlu1 %v3205_v63, %s5240_s8  ;;  %v3020_v52 = vsel %vm1283_vm2, %v3015_v32, %v3019_v23  ;;  %v1582_v63 = vrot.slane %v6320_v36, 1  ;;  %v1768_v21 = vld [vmem:[#allocation2 + $0xc0] sm:$0xe]  ;;  %v1388_v30 = vshll.u32 %v6320_v36, 16  ;;  %v6344_v39 = vld [vmem:[#allocation2 + $0x94] sm:$0xf]  ;;  %v4319_v32 = vcombine.low %v2778_v61, %v2740_v55 }
 0x16c   : > { %v1736_v48 = vld [vmem:[#allocation2 + $0xc4] sm:$0xf]  ;;  %v6328_v19 = vld [vmem:[#allocation2 + $0xc8] ss:$0 sps:$4 sm:$0x11]   ;;  %7133 = vst [vmem:[#allocation41_spill] sm:$0xff] %v6342_v25 }
 0x16d   : > { %v6326_v37 = vcombine.low %v1735_v44, %v1736_v48  ;;  %v2085_v28 = vshll.u32 %v6328_v19, 16  ;;  %v6350_v23 = vld [vmem:[#allocation2 + $0x98] ss:$0 sps:$4 sm:$0x11]   ;;  %v1381_v47 = vshrl.u32 %v6318_v46, 16  ;;  %v1583_v36 = vsel %vm1556_vm3, %v1581_v15, %v1582_v63 }
 0x16e   : > { %v6346_v20 = vpop.permute.xlu1 %2097  ;;  %v3209_v22 = vrot.slane %v4318_v50, 1  ;;  %v3210_v57 = vrot.slane %v6276_v12, 1  ;;  %v1385_v42 = vrot.slane %v1383_v35, 1  ;;  %v1395_v61 = vshll.u32 %v6342_v25, 16 }
 0x16f   : > { %7132 = vst [vmem:[#allocation40_spill] sm:$0xff] %v6326_v37  ;;  %3247 = vrot.lane.b32.xlu1 %v3208_v62, %s5240_s8  ;;  %v2078_v17 = vshrl.u32 %v6326_v37, 16  ;;  %v2080_v18 = vshll.u32 %v6326_v37, 16  ;;  %v2087_v44 = vrot.slane %v2085_v28, 1  ;;  %v3008_v62 = vsel %vm1283_vm2, %v3003_v41, %v3007_v8 }
 0x170   : > { %v4243_v28 = vcombine.low %v1768_v21, %v1736_v48  ;;  %v6359_v41 = vld [vmem:[#allocation2 + $0x8c] ss:$0 sps:$4 sm:$0x11]   ;;  %v6362_v8 = vcombine.low %v2741_v11, %v6344_v39  ;;  %v6366_v15 = vcombine.low %v2739_v43, %v2740_v55  ;;  %v2557_v12 = vsel %vm2354_vm13, %v6270_v13, 0 }
 0x171   : > { %v2082_v33 = vrot.slane %v2080_v18, 1  ;;  %v1393_v50 = vshrl.u32 %v6342_v25, 16  ;;  %v3212_v48 = vrot.slane %v4319_v32, 1  ;;  %4613 = vmatpush3.bf16.msra.mxu0 %v2557_v12  ;;  %v3211_v11 = vsel %vm1556_vm3, %v3209_v22, %v3210_v57  ;;  %v1149_v57 = vld [vmem:[#allocation2 + $0x78] sm:$0xe]  ;;  %4681 = vmatpush3.bf16.msra.mxu1 %v2557_v12 }
 0x172   : > { %7134 = vst [vmem:[#allocation42_spill] sm:$0xff] %v6362_v8  ;;  %v3034_v55 = vshrl.u32 %v6362_v8, 16  ;;  %v3036_v35 = vshll.u32 %v6362_v8, 16  ;;  %v3041_v13 = vshll.u32 %v6350_v23, 16  ;;  %v6381_v21 = vpop.permute.xlu1 %2227  ;;  %4749 = vmatprep.subr.msk.bf16.mxu0 %vm2354_vm13, %v6357_v40  ;;  %v1643_v32 = vsel %vm1637_vm10, %v5685_v53, %v6215_v45  ;;  %v1112_v25 = vld [vmem:[#allocation2 + $0x7c] sm:$0xf] }
 0x173   : > { %3121 = vrot.lane.b32.xlu1 %v3020_v52, %s5241_s26  ;;  %v6355_v37 = vpop.permute.xlu0 %2099  ;;  %v2083_v18 = vor.u32 %v2082_v33, %v2078_v17  ;;  %v1400_v52 = vshll.u32 %v6332_v51, 16  ;;  %v3213_v17 = vrot.slane %v6359_v41, 1  ;;  %v2214_v33 = vrot.slane %v4243_v28, 1 }
 0x174   : > { %v1641_v22 = vsel %vm1637_vm10, %v5663_v34, %v6301_v4  ;;  %v3038_v8 = vrot.slane %v3036_v35, 1  ;;  %v1390_v46 = vrot.slane %v1388_v30, 1  ;;  %v3029_v31 = vshll.u32 %v6359_v41, 16  ;;  %v1148_v34 = vld [vmem:[#allocation2 + $0x6c] sm:$0xe] }
 0x175   : > { %v2088_v63 = vsel %vm1283_vm2, %v2083_v18, %v2087_v44  ;;  %v2215_v44 = vrot.slane %v6328_v19, 1  ;;  %v1397_v18 = vrot.slane %v1395_v61, 1  ;;  %v1674_v28 = vsel %vm1670_vm11, %v1641_v22, %v6119_v38  ;;  %v2779_v38 = vld [vmem:[#allocation2 + $0x90] sm:$0xe]  ;;  %v6422_v35 = vld [vmem:[#allocation2 + $0x88] sm:$0xf] }
 0x176   : > { %2119 = vrot.lane.b32.xlu0 %v2088_v63, %s5241_s26  ;;  %v3024_v63 = vshll.u32 %v6366_v15, 16  ;;  %v1386_v19 = vor.u32 %v1385_v42, %v1381_v47  ;;  %v3214_v53 = vsel %vm1556_vm3, %v3212_v48, %v3213_v17  ;;  %4615 = vmatmul.mubr.msk.bf16.vlgmr.msra.gmra.mrb[0].mxu0 %vm2321_vm12, %v1674_v28  ;;  %v3039_v45 = vor.u32 %v3038_v8, %v3034_v55  ;;  %v6413_v17 = vld [vmem:[#allocation2 + $0x80] ss:$0 sps:$4 sm:$0x11]   ;;  %v2743_v22 = vld [vmem:[#allocation2 + $0x9c] sm:$0xf] }
 0x177   : > { %1621 = vrot.lane.b32.xlu1 %v1583_v36, %s5240_s8  ;;  %v6379_v43 = vpop.permute.xlu0 %1615  ;;  %v1111_v36 = vld [vmem:[#allocation2 + $0x78] sm:$0xf]  ;;  %v3043_v4 = vrot.slane %v3041_v13, 1  ;;  %v4190_v61 = vcombine.low %v1149_v57, %v1112_v25  ;;  %v1676_v12 = vsel %vm1670_vm11, %v1643_v32, %v6183_v26  ;;  %v2216_v42 = vsel %vm1556_vm3, %v2214_v33, %v2215_v44  ;;  %v6449_v57 = vld [vmem:[#allocation2 + $0x8c] ss:$0 sps:$4 sm:$0x11]  }
 0x178   : > { %v2256_v30 = vsel %vm1637_vm10, %v5766_v54, %v6268_v9  ;;  %v6406_v47 = vcombine.low %v1111_v36, %v1112_v25  ;;  %4618 = vmatprep.mubr.msk.bf16.mxu0 %vm2321_vm12, %v1676_v12  ;;  %v1398_v41 = vor.u32 %v1397_v18, %v1393_v50  ;;  %v1402_v8 = vrot.slane %v1400_v52, 1  ;;  %v1113_v25 = vld [vmem:[#allocation2 + $0x84] sm:$0xf]  ;;  %v2745_v28 = vld [vmem:[#allocation2 + $0xa8] sm:$0xf] }
 0x179   : > { %v3022_v48 = vshrl.u32 %v6366_v15, 16  ;;  %v3026_v26 = vrot.slane %v3024_v63, 1  ;;  %v1391_v54 = vsel %vm1283_vm2, %v1386_v19, %v1390_v46  ;;  %v4189_v9 = vcombine.low %v1148_v34, %v6322_v27  ;;  %v2780_v27 = vld [vmem:[#allocation2 + $0x9c] sm:$0xe]  ;;  %v6454_v19 = vld [vmem:[#allocation2 + $0xac] sm:$0xf] }
 0x17a   : > { %3119 = vrot.lane.b32.xlu0 %v3008_v62, %s5241_s26  ;;  %v2254_v62 = vsel %vm1637_vm10, %v5697_v16, %v6316_v60  ;;  %v4320_v16 = vcombine.low %v2779_v38, %v6344_v39  ;;  %v3044_v52 = vsel %vm1283_vm2, %v3039_v45, %v3043_v4  ;;  %v1587_v50 = vrot.slane %v4190_v61, 1  ;;  %v6468_v12 = vld [vmem:[#allocation2 + $0xa4] ss:$0 sps:$4 sm:$0x11]  }
 0x17b   : > { %3249 = vrot.lane.b32.xlu1 %v3211_v11, %s5240_s8  ;;  %v6415_v11 = vpop.permute.xlu0 %1488  ;;  %v2286_v60 = vsel %vm1670_vm11, %v2254_v62, %v6207_v3  ;;  %v1588_v13 = vrot.slane %v6413_v17, 1  ;;  %v2288_v46 = vsel %vm1670_vm11, %v2256_v30, %v6227_v59  ;;  %v3031_v33 = vrot.slane %v3029_v31, 1 }
 0x17c   : > { %4584 = vmatprep.mubr.msk.bf16.mxu1 %vm2321_vm12, %v2286_v60  ;;  %v1645_v39 = vsel %vm1637_vm10, %v5690_v0, %v6242_v1  ;;  %v1407_v3 = vshll.u32 %v6406_v47, 16  ;;  %v2258_v44 = vsel %vm1637_vm10, %v5818_v5, %v6346_v20  ;;  %v1403_v32 = vsel %vm1283_vm2, %v1398_v41, %v1402_v8  ;;  %v2744_v0 = vld [vmem:[#allocation2 + $0xa0] sm:$0xf] }
 0x17d   : > { %v6417_v55 = vpop.permute.xlu1 %2101  ;;  %4585 = vmatmul.mubr.msk.bf16.gmra.mrb[4].mxu1 %vm2321_vm12, %v2288_v46  ;;  %v3027_v36 = vor.u32 %v3026_v26, %v3022_v48  ;;  %v1647_v59 = vsel %vm1637_vm10, %v5768_v10, %v6299_v6  ;;  %v6446_v31 = vcombine.low %v1113_v25, %v6422_v35  ;;  %v3215_v18 = vrot.slane %v4320_v16, 1 }
 0x17e   : > { %2247 = vrot.lane.b32.xlu0 %v2216_v42, %s5240_s8  ;;  %v3216_v5 = vrot.slane %v6350_v23, 1  ;;  %v4321_v20 = vcombine.low %v2780_v27, %v2744_v0  ;;  %v2290_v63 = vsel %vm1670_vm11, %v2258_v44, %v6278_v7  ;;  %v1584_v10 = vrot.slane %v4189_v9, 1  ;;  %v6462_v23 = vld [vmem:[#allocation2 + $0xb0] ss:$0 sps:$4 sm:$0x11]  }
 0x17f   : > { %3251 = vrot.lane.b32.xlu1 %v3214_v53, %s5240_s8  ;;  %v1585_v6 = vrot.slane %v6332_v51, 1  ;;  %v1589_v53 = vsel %vm1556_vm3, %v1587_v50, %v1588_v13  ;;  %4588 = vmatprep.mubr.msk.bf16.mxu1 %vm2321_vm12, %v2290_v63  ;;  %v1678_v34 = vsel %vm1670_vm11, %v1645_v39, %v6144_v2  ;;  %v6464_v45 = vpop.permute.xlu0 %1490  ;;  %v1405_v7 = vshrl.u32 %v6406_v47, 16  ;;  %v1116_v44 = vld [vmem:[#allocation2 + $0x94] sm:$0xf]  ;;  %v1117_v63 = vld [vmem:[#allocation2 + $0x9c] sm:$0xf] }
 0x180   : > { %v1409_v4 = vrot.slane %v1407_v3, 1  ;;  %v1412_v61 = vshll.u32 %v6413_v17, 16  ;;  %4619 = vmatmul.mubr.msk.bf16.gmra.mrb[4].mxu0 %vm2321_vm12, %v1678_v34  ;;  %v1680_v51 = vsel %vm1670_vm11, %v1647_v59, %v6251_v24  ;;  %v3032_v38 = vsel %vm1283_vm2, %v3027_v36, %v3031_v33  ;;  %v2781_v59 = vld [vmem:[#allocation2 + $0xa8] sm:$0xe]  ;;  %v6523_v34 = vld [vmem:[#allocation2 + $0xa0] sm:$0xf] }
 0x181   : > { %v1618_v1 = vpop.permute.xlu1 %1617  ;;  %v1419_v2 = vshll.u32 %v6446_v31, 16  ;;  %v6475_v42 = vcombine.low %v2743_v22, %v2744_v0  ;;  %4622 = vmatprep.mubr.msk.bf16.mxu0 %vm2321_vm12, %v1680_v51  ;;  %v6479_v30 = vcombine.low %v2745_v28, %v6454_v19  ;;  %v3217_v41 = vsel %vm1556_vm3, %v3215_v18, %v3216_v5  ;;  %v1115_v0 = vld [vmem:[#allocation2 + $0x90] sm:$0xf]  ;;  %v6511_v18 = vld [vmem:[#allocation2 + $0x98] ss:$0 sps:$4 sm:$0x11]  }
 0x182   : > { %1492 = vrot.lane.b32.xlu0 %v1391_v54, %s5241_s26  ;;  %v2260_v24 = vsel %vm1637_vm10, %v5865_v29, %v6355_v37  ;;  %v3218_v8 = vrot.slane %v4321_v20, 1  ;;  %v3219_v48 = vrot.slane %v6468_v12, 1  ;;  %v3065_v9 = vshll.u32 %v6462_v23, 16  ;;  %v1151_v37 = vld [vmem:[#allocation2 + $0x90] sm:$0xe] }
 0x183   : > { %3125 = vrot.lane.b32.xlu1 %v3044_v52, %s5241_s26  ;;  %v2292_v26 = vsel %vm1670_vm11, %v2260_v24, %v6381_v21  ;;  %v3058_v17 = vshrl.u32 %v6479_v30, 16  ;;  %v3060_v54 = vshll.u32 %v6479_v30, 16  ;;  %v1410_v25 = vor.u32 %v1409_v4, %v1405_v7 }
 0x184   : > { %v1414_v16 = vrot.slane %v1412_v61, 1  ;;  %v1417_v60 = vshrl.u32 %v6446_v31, 16  ;;  %v1424_v29 = vshll.u32 %v6449_v57, 16  ;;  %v1649_v52 = vsel %vm1637_vm10, %v5820_v14, %v6324_v49  ;;  %v1150_v49 = vld [vmem:[#allocation2 + $0x84] sm:$0xe] }
 0x185   : > { %v2230_v62 = vpop.permute.xlu1 %2229  ;;  %4589 = vmatmul.mubr.msk.bf16.gmra.mrb[8].mxu1 %vm2321_vm12, %v2292_v26  ;;  %v3048_v21 = vshll.u32 %v6475_v42, 16  ;;  %v3062_v50 = vrot.slane %v3060_v54, 1  ;;  %v1651_v13 = vsel %vm1637_vm10, %v5877_v58, %v6415_v11  ;;  %v1421_v33 = vrot.slane %v1419_v2, 1  ;;  %v2782_v61 = vld [vmem:[#allocation2 + $0xb4] sm:$0xe] }
 0x186   : > { %1494 = vrot.lane.b32.xlu0 %v1403_v32, %s5241_s26  ;;  %v3053_v39 = vshll.u32 %v6468_v12, 16  ;;  %v1682_v3 = vsel %vm1670_vm11, %v1649_v52, %v6379_v43  ;;  %v1684_v14 = vsel %vm1670_vm11, %v1651_v13, %v1618_v1  ;;  %v3220_v32 = vsel %vm1556_vm3, %v3218_v8, %v3219_v48  ;;  %v2749_v12 = vld [vmem:[#allocation2 + $0xc0] sm:$0xf]  ;;  %v6531_v2 = vld [vmem:[#allocation2 + $0xc4] sm:$0xf]  ;;  %v7136_v8 = vld [vmem:[#allocation24_spill] sm:$0xff] }
 0x187   : > { %1625 = vrot.lane.b32.xlu1 %v1589_v53, %s5240_s8  ;;  %v3063_v36 = vor.u32 %v3062_v50, %v3058_v17  ;;  %v3067_v58 = vrot.slane %v3065_v9, 1  ;;  %v4192_v11 = vcombine.low %v1151_v37, %v1116_v44  ;;  %v1586_v22 = vsel %vm1556_vm3, %v1584_v10, %v1585_v6  ;;  %v2748_v54 = vld [vmem:[#allocation2 + $0xb8] sm:$0xf]  ;;  %v6553_v37 = vld [vmem:[#allocation2 + $0xa4] ss:$0 sps:$4 sm:$0x11]  }
 0x188   : > { %4623 = vmatmul.mubr.msk.bf16.gmra.mrb[8].mxu0 %vm2321_vm12, %v1682_v3  ;;  %v1426_v43 = vrot.slane %v1424_v29, 1  ;;  %v3046_v5 = vshrl.u32 %v6475_v42, 16  ;;  %v3050_v1 = vrot.slane %v3048_v21, 1  ;;  %v2262_v20 = vsel %vm1637_vm10, %v5903_v56, %v6417_v55  ;;  %v6556_v21 = vld [vmem:[#allocation2 + $0xc8] ss:$0 sps:$4 sm:$0x11]  }
 0x189   : > { %v2104_v46 = vpop.permute.xlu0 %2103  ;;  %v2232_v27 = vpop.permute.xlu1 %2231  ;;  %4626 = vmatprep.mubr.msk.bf16.mxu0 %vm2321_vm12, %v1684_v14  ;;  %v1415_v10 = vsel %vm1283_vm2, %v1410_v25, %v1414_v16  ;;  %v1422_v6 = vor.u32 %v1421_v33, %v1417_v60  ;;  %v4322_v7 = vcombine.low %v2781_v59, %v6454_v19  ;;  %v2294_v4 = vsel %vm1670_vm11, %v2262_v20, %v2230_v62  ;;  %v7135_v19 = vld [vmem:[#allocation23_spill] sm:$0xff]  ;;  %v2747_v14 = vld [vmem:[#allocation2 + $0xb4] sm:$0xf] }
 0x18a   : > { %3123 = vrot.lane.b32.xlu0 %v3032_v38, %s5241_s26  ;;  %v3055_v56 = vrot.slane %v3053_v39, 1  ;;  %v3068_v55 = vsel %vm1283_vm2, %v3063_v36, %v3067_v58  ;;  %v1593_v51 = vrot.slane %v4192_v11, 1  ;;  %v1594_v38 = vrot.slane %v6511_v18, 1  ;;  %4592 = vmatprep.mubr.msk.bf16.mxu1 %vm2321_vm12, %v2294_v4  ;;  %v7137_v58 = vld [vmem:[#allocation25_spill] sm:$0xff] }
 0x18b   : > { %3253 = vrot.lane.b32.xlu1 %v3217_v41, %s5240_s8  ;;  %v4191_v41 = vcombine.low %v1150_v49, %v6422_v35  ;;  %v6534_v24 = vcombine.low %v1115_v0, %v1116_v44  ;;  %v1653_v62 = vsel %vm1637_vm10, %v7135_v19, %v6464_v45  ;;  %v2264_v48 = vsel %vm1637_vm10, %v7136_v8, %v2104_v46  ;;  %v6560_v46 = vld [vmem:[#allocation2 + $0xbc] ss:$0 sps:$4 sm:$0x11]  }
 0x18c   : > { %v3051_v26 = vor.u32 %v3050_v1, %v3046_v5  ;;  %v6542_v17 = vcombine.low %v1117_v63, %v6523_v34  ;;  %v2296_v25 = vsel %vm1670_vm11, %v2264_v48, %v2232_v27  ;;  %v3221_v35 = vrot.slane %v4322_v7, 1  ;;  %v1153_v63 = vld [vmem:[#allocation2 + $0xa8] sm:$0xe] }
 0x18d   : > { %v1620_v28 = vpop.permute.xlu0 %1619  ;;  %v6519_v53 = vpop.permute.xlu1 %3105  ;;  %v3222_v16 = vrot.slane %v6462_v23, 1  ;;  %v4323_v60 = vcombine.low %v2782_v61, %v2748_v54  ;;  %v6549_v45 = vcombine.low %v2749_v12, %v6531_v2  ;;  %4593 = vmatmul.mubr.msk.bf16.gmra.mrb[12].mxu1 %vm2321_vm12, %v2296_v25  ;;  %v1595_v52 = vsel %vm1556_vm3, %v1593_v51, %v1594_v38  ;;  %v1120_v61 = vld [vmem:[#allocation2 + $0xac] sm:$0xf]  ;;  %v7138_v12 = vld [vmem:[#allocation21_spill] sm:$0xff] }
 0x18e   : > { %1623 = vrot.lane.b32.xlu0 %v1586_v22, %s5240_s8  ;;  %v1686_v9 = vsel %vm1670_vm11, %v1653_v62, %v1620_v28  ;;  %v1427_v13 = vsel %vm1283_vm2, %v1422_v6, %v1426_v43  ;;  %v1431_v23 = vshll.u32 %v6534_v24, 16  ;;  %v3056_v33 = vsel %vm1283_vm2, %v3051_v26, %v3055_v56  ;;  %v1119_v56 = vld [vmem:[#allocation2 + $0xa8] sm:$0xf] }
 0x18f   : > { %3255 = vrot.lane.b32.xlu1 %v3220_v32, %s5240_s8  ;;  %v3084_v27 = vshll.u32 %v6549_v45, 16  ;;  %v1590_v39 = vrot.slane %v4191_v41, 1  ;;  %v1591_v3 = vrot.slane %v6449_v57, 1  ;;  %v1443_v44 = vshll.u32 %v6542_v17, 16 }
 0x190   : > { %4627 = vmatmul.mubr.msk.bf16.gmra.mrb[12].mxu0 %vm2321_vm12, %v1686_v9  ;;  %v3223_v49 = vsel %vm1556_vm3, %v3221_v35, %v3222_v16  ;;  %v3224_v32 = vrot.slane %v4323_v60, 1  ;;  %v3225_v36 = vrot.slane %v6560_v46, 1  ;;  %v3082_v59 = vshrl.u32 %v6549_v45, 16  ;;  %v2783_v9 = vld [vmem:[#allocation2 + $0xc0] sm:$0xe] }
 0x191   : > { %v2234_v29 = vpop.permute.xlu1 %2233  ;;  %v3086_v22 = vrot.slane %v3084_v27, 1  ;;  %v3089_v57 = vshll.u32 %v6556_v21, 16  ;;  %v1429_v43 = vshrl.u32 %v6534_v24, 16  ;;  %v1433_v5 = vrot.slane %v1431_v23, 1 }
 0x192   : > { %1496 = vrot.lane.b32.xlu0 %v1415_v10, %s5241_s26  ;;  %v1436_v1 = vshll.u32 %v6511_v18, 16  ;;  %v6578_v20 = vcombine.low %v2747_v14, %v2748_v54  ;;  %v1448_v10 = vshll.u32 %v6553_v37, 16  ;;  %v1441_v6 = vshrl.u32 %v6542_v17, 16  ;;  %v1121_v14 = vld [vmem:[#allocation2 + $0xb4] sm:$0xf] }
 0x193   : > { %3129 = vrot.lane.b32.xlu1 %v3068_v55, %s5241_s26  ;;  %v1445_v7 = vrot.slane %v1443_v44, 1  ;;  %v3226_v4 = vsel %vm1556_vm3, %v3224_v32, %v3225_v36  ;;  %v3266_v18 = vsel %vm1637_vm10, %v7138_v12, %v6519_v53  ;;  %v6589_v55 = vld [vmem:[#allocation2 + $0xb0] ss:$0 sps:$4 sm:$0x11]   ;;  %v3087_v51 = vor.u32 %v3086_v22, %v3082_v59  ;;  %v1152_v44 = vld [vmem:[#allocation2 + $0x9c] sm:$0xe] }
 0x194   : > { %v2106_v50 = vpop.permute.xlu0 %2105  ;;  %v3091_v38 = vrot.slane %v3089_v57, 1  ;;  %v4194_v41 = vcombine.low %v1153_v63, %v1120_v61  ;;  %v1592_v62 = vsel %vm1556_vm3, %v1590_v39, %v1591_v3  ;;  %v1434_v8 = vor.u32 %v1433_v5, %v1429_v43  ;;  %v2784_v3 = vld [vmem:[#allocation2 + $0xcc] sm:$0xe]  ;;  %v7139_v32 = vld [vmem:[#allocation22_spill] sm:$0xff] }
 0x195   : > { %v2266_v11 = vsel %vm1637_vm10, %v7137_v58, %v2106_v50  ;;  %v3234_v28 = vpop.permute.xlu1 %3233  ;;  %v1438_v48 = vrot.slane %v1436_v1, 1  ;;  %v3072_v26 = vshll.u32 %v6578_v20, 16  ;;  %v1450_v53 = vrot.slane %v1448_v10, 1 }
 0x196   : > { %1498 = vrot.lane.b32.xlu0 %v1427_v13, %s5241_s26  ;;  %v2298_v0 = vsel %vm1670_vm11, %v2266_v11, %v2234_v29  ;;  %v3298_v19 = vsel %vm1670_vm11, %v3266_v18, %v3234_v28  ;;  %v1446_v25 = vor.u32 %v1445_v7, %v1441_v6  ;;  %v3077_v35 = vshll.u32 %v6560_v46, 16  ;;  %v2752_v11 = vld [vmem:[#allocation2 + $0xd0] sm:$0xf]  ;;  %v7140_v28 = vld [vmem:[#allocation27_spill] sm:$0xff] }
 0x197   : > { %1629 = vrot.lane.b32.xlu1 %v1595_v52, %s5240_s8  ;;  %4596 = vmatprep.mubr.msk.bf16.mxu1 %vm2321_vm12, %v2298_v0  ;;  %v6597_v16 = vcombine.low %v1119_v56, %v1120_v61  ;;  %v1600_v60 = vrot.slane %v6589_v55, 1  ;;  %v3092_v29 = vsel %vm1283_vm2, %v3087_v51, %v3091_v38  ;;  %v1599_v52 = vrot.slane %v4194_v41, 1  ;;  %v2751_v7 = vld [vmem:[#allocation2 + $0xcc] sm:$0xf] }
 0x198   : > { %4648 = vmatprep.mubr.msk.bf16.mxu0 %vm2321_vm12, %v3298_v19  ;;  %v4324_v50 = vcombine.low %v2783_v9, %v6531_v2  ;;  %v3370_v13 = vsel %vm2354_vm13, %v6357_v40, 0  ;;  %v1439_v27 = vsel %vm1283_vm2, %v1434_v8, %v1438_v48  ;;  %v3070_v46 = vshrl.u32 %v6578_v20, 16  ;;  %v4969_v51 = vld [vmem:[#allocation2 + $0xbc] ss:$0 sps:$4 sm:$0x11]  }
 0x199   : > { %v3236_v23 = vpop.permute.xlu1 %3235  ;;  %4647 = vmatpush3.bf16.msra.mxu0 %v3370_v13  ;;  %v1451_v2 = vsel %vm1283_vm2, %v1446_v25, %v1450_v53  ;;  %v3079_v58 = vrot.slane %v3077_v35, 1  ;;  %v1455_v40 = vshll.u32 %v6597_v16, 16  ;;  %v1601_v22 = vsel %vm1556_vm3, %v1599_v52, %v1600_v60 }
 0x19a   : > { %3127 = vrot.lane.b32.xlu0 %v3056_v33, %s5241_s26  ;;  %v3074_v33 = vrot.slane %v3072_v26, 1  ;;  %v3227_v57 = vrot.slane %v4324_v50, 1  ;;  %v3228_v0 = vrot.slane %v6556_v21, 1  ;;  %v4325_v43 = vcombine.low %v2784_v3, %v2752_v11 }
 0x19b   : > { %3257 = vrot.lane.b32.xlu1 %v3223_v49, %s5240_s8  ;;  %v6607_v49 = vld [vmem:[#allocation2 + $0xb8] sm:$0xf]  ;;  %v4193_v1 = vcombine.low %v1152_v44, %v6523_v34  ;;  %v1453_v21 = vshrl.u32 %v6597_v16, 16  ;;  %v1457_v18 = vrot.slane %v1455_v40, 1  ;;  %v1460_v56 = vshll.u32 %v6589_v55, 16 }
 0x19c   : > { %v3075_v5 = vor.u32 %v3074_v33, %v3070_v46  ;;  %v6621_v63 = vcombine.low %v1121_v14, %v6607_v49  ;;  %v1597_v34 = vrot.slane %v6553_v37, 1  ;;  %v3229_v38 = vsel %vm1556_vm3, %v3227_v57, %v3228_v0  ;;  %v7141_v46 = vld [vmem:[#allocation30_spill] sm:$0xff] }
 0x19d   : > { %v2108_v54 = vpop.permute.xlu0 %2107  ;;  %v3110_v12 = vpop.permute.xlu1 %3109  ;;  %v3230_v41 = vrot.slane %v4325_v43, 1  ;;  %v1596_v8 = vrot.slane %v4193_v1, 1  ;;  %v6635_v26 = vcombine.low %v2751_v7, %v2752_v11  ;;  %v1458_v55 = vor.u32 %v1457_v18, %v1453_v21 }
 0x19e   : > { %1627 = vrot.lane.b32.xlu0 %v1592_v62, %s5240_s8  ;;  %v2268_v10 = vsel %vm1637_vm10, %v7140_v28, %v2108_v54  ;;  %v3080_v62 = vsel %vm1283_vm2, %v3075_v5, %v3079_v58  ;;  %v1467_v48 = vshll.u32 %v6621_v63, 16  ;;  %v1462_v54 = vrot.slane %v1460_v56, 1  ;;  %v1154_v58 = vld [vmem:[#allocation2 + $0xb4] sm:$0xe] }
 0x19f   : > { %3259 = vrot.lane.b32.xlu1 %v3226_v4, %s5240_s8  ;;  %v4972_v4 = vld [vmem:[#allocation2 + $0xd4] ss:$0 sps:$4 sm:$0x11]   ;;  %v1472_v9 = vshll.u32 %v4969_v51, 16  ;;  %v1598_v25 = vsel %vm1556_vm3, %v1596_v8, %v1597_v34  ;;  %v1465_v35 = vshrl.u32 %v6621_v63, 16  ;;  %v1603_v1 = vrot.slane %v4969_v51, 1 }
 0x1a0   : > { %v3231_v19 = vrot.slane %v4972_v4, 1  ;;  %v1469_v60 = vrot.slane %v1467_v48, 1  ;;  %v1463_v52 = vsel %vm1283_vm2, %v1458_v55, %v1462_v54  ;;  %v7145_v34 = vld [vmem:[#allocation33_spill] sm:$0xff] }
 0x1a1   : > { %v3108_v39 = vpop.permute.xlu0 %3107  ;;  %v1474_v50 = vrot.slane %v1472_v9, 1 }
 0x1a2   : > { %v3268_v36 = vsel %vm1637_vm10, %v7139_v32, %v3108_v39  ;;  %1500 = vrot.lane.b32.xlu0 %v1439_v27, %s5241_s26  ;;  %v3232_v37 = vsel %vm1556_vm3, %v3230_v41, %v3231_v19  ;;  %v3101_v27 = vshll.u32 %v4972_v4, 16  ;;  %v7142_v39 = vld [vmem:[#allocation26_spill] sm:$0xff]  ;;  %v1470_v14 = vor.u32 %v1469_v60, %v1465_v35  ;;  %v7146_v41 = vld [vmem:[#allocation29_spill] sm:$0xff]  ;;  %v7148_v60 = vld [vmem:[#allocation35_spill] sm:$0xff] }
 0x1a3   : > { %3133 = vrot.lane.b32.xlu1 %v3092_v29, %s5241_s26  ;;  %v3300_v59 = vsel %vm1670_vm11, %v3268_v36, %v3236_v23  ;;  %v3096_v29 = vshll.u32 %v6635_v26, 16  ;;  %v3094_v23 = vshrl.u32 %v6635_v26, 16  ;;  %v3270_v3 = vsel %vm1637_vm10, %v7142_v39, %v3110_v12 }
 0x1a4   : > { %4649 = vmatmul.mubr.msk.bf16.vlgmr.msra.gmra.mrb[0].mxu0 %vm2321_vm12, %v3300_v59  ;;  %v1475_v40 = vsel %vm1283_vm2, %v1470_v14, %v1474_v50  ;;  %v3103_v59 = vrot.slane %v3101_v27, 1  ;;  %v7149_v27 = vld [vmem:[#allocation37_spill] sm:$0xff] }
 0x1a5   : > { %v2236_v6 = vpop.permute.xlu0 %2235  ;;  %v3098_v32 = vrot.slane %v3096_v29, 1 }
 0x1a6   : > { %v2300_v61 = vsel %vm1670_vm11, %v2268_v10, %v2236_v6  ;;  %1502 = vrot.lane.b32.xlu0 %v1451_v2, %s5241_s26  ;;  %v7143_v10 = vld [vmem:[#allocation28_spill] sm:$0xff] }
 0x1a7   : > { %1633 = vrot.lane.b32.xlu1 %v1601_v22, %s5240_s8  ;;  %4597 = vmatmul.mubr.msk.bf16.gmra.mrb[16].mxu1 %vm2321_vm12, %v2300_v61  ;;  %v3099_v11 = vor.u32 %v3098_v32, %v3094_v23  ;;  %v4195_v22 = vcombine.low %v1154_v58, %v6607_v49  ;;  %v7144_v49 = vld [vmem:[#allocation31_spill] sm:$0xff] }
 0x1a9   : > { %v3104_v43 = vsel %vm1283_vm2, %v3099_v11, %v3103_v59  ;;  %v1602_v5 = vrot.slane %v4195_v22, 1  ;;  %v7151_v59 = vld [vmem:[#allocation38_spill] sm:$0xff] }
 0x1aa   : > { %3131 = vrot.lane.b32.xlu0 %v3080_v62, %s5241_s26 }
 0x1ab   : > { %3261 = vrot.lane.b32.xlu1 %v3229_v38, %s5240_s8  ;;  %v2238_v53 = vpop.permute.xlu1 %2237  ;;  %v1604_v61 = vsel %vm1556_vm3, %v1602_v5, %v1603_v1 }
 0x1ae   : > { %1631 = vrot.lane.b32.xlu0 %v1598_v25, %s5240_s8 }
 0x1af   : > { %3263 = vrot.lane.b32.xlu1 %v3232_v37, %s5240_s8  ;;  %v2110_v13 = vpop.permute.xlu0 %2109  ;;  %v3238_v44 = vpop.permute.xlu1 %3237  ;;  %v7147_v37 = vld [vmem:[#allocation32_spill] sm:$0xff] }
 0x1b0   : > { %v2270_v33 = vsel %vm1637_vm10, %v7141_v46, %v2110_v13  ;;  %v3302_v2 = vsel %vm1670_vm11, %v3270_v3, %v3238_v44 }
 0x1b1   : > { %v2302_v36 = vsel %vm1670_vm11, %v2270_v33, %v2238_v53  ;;  %4652 = vmatprep.mubr.msk.bf16.mxu0 %vm2321_vm12, %v3302_v2  ;;  %v7150_v33 = vld [vmem:[#allocation34_spill] sm:$0xff] }
 0x1b2   : > { %4600 = vmatprep.mubr.msk.bf16.mxu1 %vm2321_vm12, %v2302_v36  ;;  %1504 = vrot.lane.b32.xlu0 %v1463_v52, %s5241_s26 }
 0x1b3   : > { %v3240_v57 = vpop.permute.xlu1 %3239 }
 0x1b5   : > { %v2112_v0 = vpop.permute.xlu0 %2111 }
 0x1b6   : > { %1506 = vrot.lane.b32.xlu0 %v1475_v40, %s5241_s26  ;;  %v2272_v12 = vsel %vm1637_vm10, %v7144_v49, %v2112_v0  ;;  %v7154_v49 = vld [vmem:[#allocation39_spill] sm:$0xff] }
 0x1b7   : > { %v3114_v7 = vpop.permute.xlu1 %3113 }
 0x1b8   : > { %v3274_v19 = vsel %vm1637_vm10, %v7146_v41, %v3114_v7 }
 0x1b9   : > { %v3112_v28 = vpop.permute.xlu0 %3111 }
 0x1ba   : > { %v3272_v6 = vsel %vm1637_vm10, %v7143_v10, %v3112_v28  ;;  %3135 = vrot.lane.b32.xlu0 %v3104_v43, %s5241_s26  ;;  %v7153_v28 = vld [vmem:[#allocation40_spill] sm:$0xff] }
 0x1bb   : > { %v3304_v4 = vsel %vm1670_vm11, %v3272_v6, %v3240_v57  ;;  %v7152_v57 = vld [vmem:[#allocation36_spill] sm:$0xff] }
 0x1bc   : > { %4653 = vmatmul.mubr.msk.bf16.gmra.mrb[4].mxu0 %vm2321_vm12, %v3304_v4 }
 0x1bd   : > { %v2240_v21 = vpop.permute.xlu0 %2239 }
 0x1be   : > { %v2304_v18 = vsel %vm1670_vm11, %v2272_v12, %v2240_v21  ;;  %1635 = vrot.lane.b32.xlu0 %v1604_v61, %s5240_s8 }
 0x1bf   : > { %4601 = vmatmul.mubr.msk.bf16.gmra.mrb[20].mxu1 %vm2321_vm12, %v2304_v18 }
 0x1c0   : > { %v2242_v56 = vpop.permute.xlu1 %2241 }
 0x1c4   : > { %v2114_v51 = vpop.permute.xlu0 %2113  ;;  %v3242_v62 = vpop.permute.xlu1 %3241 }
 0x1c5   : > { %v2274_v38 = vsel %vm1637_vm10, %v7145_v34, %v2114_v51  ;;  %v3306_v48 = vsel %vm1670_vm11, %v3274_v19, %v3242_v62 }
 0x1c6   : > { %v2306_v8 = vsel %vm1670_vm11, %v2274_v38, %v2242_v56  ;;  %4656 = vmatprep.mubr.msk.bf16.mxu0 %vm2321_vm12, %v3306_v48  ;;  %v7155_v38 = vld [vmem:[#allocation42_spill] sm:$0xff] }
 0x1c7   : > { %4604 = vmatprep.mubr.msk.bf16.mxu1 %vm2321_vm12, %v2306_v8 }
 0x1c8   : > { %v3244_v54 = vpop.permute.xlu1 %3243 }
 0x1cc   : > { %v2116_v55 = vpop.permute.xlu0 %2115  ;;  %v3118_v35 = vpop.permute.xlu1 %3117 }
 0x1cd   : > { %v2276_v29 = vsel %vm1637_vm10, %v7148_v60, %v2116_v55  ;;  %v3278_v39 = vsel %vm1637_vm10, %v7150_v33, %v3118_v35  ;;  %v7156_v55 = vld [vmem:[#allocation41_spill] sm:$0xff] }
 0x1d0   : > { %v3116_v9 = vpop.permute.xlu0 %3115 }
 0x1d1   : > { %v3276_v53 = vsel %vm1637_vm10, %v7147_v37, %v3116_v9 }
 0x1d2   : > { %v3308_v25 = vsel %vm1670_vm11, %v3276_v53, %v3244_v54 }
 0x1d3   : > { %4657 = vmatmul.mubr.msk.bf16.gmra.mrb[8].mxu0 %vm2321_vm12, %v3308_v25 }
 0x1d4   : > { %v2244_v52 = vpop.permute.xlu0 %2243 }
 0x1d5   : > { %v2308_v50 = vsel %vm1670_vm11, %v2276_v29, %v2244_v52 }
 0x1d6   : > { %4605 = vmatmul.mubr.msk.bf16.gmra.mrb[24].mxu1 %vm2321_vm12, %v2308_v50 }
 0x1d9   : > { %v2246_v13 = vpop.permute.xlu1 %2245 }
 0x1dc   : > { %v2118_v23 = vpop.permute.xlu0 %2117 }
 0x1dd   : > { %v2278_v46 = vsel %vm1637_vm10, %v7149_v27, %v2118_v23  ;;  %v3246_v3 = vpop.permute.xlu1 %3245 }
 0x1de   : > { %v2310_v44 = vsel %vm1670_vm11, %v2278_v46, %v2246_v13  ;;  %v3310_v14 = vsel %vm1670_vm11, %v3278_v39, %v3246_v3 }
 0x1df   : > { %4608 = vmatprep.mubr.msk.bf16.mxu1 %vm2321_vm12, %v2310_v44  ;;  %4660 = vmatprep.mubr.msk.bf16.mxu0 %vm2321_vm12, %v3310_v14 }
 0x1e1   : > { %v3248_v32 = vpop.permute.xlu1 %3247 }
 0x1e5   : > { %v3122_v36 = vpop.permute.xlu1 %3121 }
 0x1e6   : > { %v3282_v22 = vsel %vm1637_vm10, %v7151_v59, %v3122_v36 }
 0x1e8   : > { %v2120_v58 = vpop.permute.xlu0 %2119 }
 0x1e9   : > { %v1622_v2 = vpop.permute.xlu1 %1621  ;;  %v2280_v10 = vsel %vm1637_vm10, %v7153_v28, %v2120_v58 }
 0x1ec   : > { %v3120_v11 = vpop.permute.xlu0 %3119 }
 0x1ed   : > { %v3250_v40 = vpop.permute.xlu1 %3249  ;;  %v3280_v0 = vsel %vm1637_vm10, %v7152_v57, %v3120_v11 }
 0x1ee   : > { %v3314_v43 = vsel %vm1670_vm11, %v3282_v22, %v3250_v40  ;;  %v3312_v5 = vsel %vm1670_vm11, %v3280_v0, %v3248_v32 }
 0x1ef   : > { %4661 = vmatmul.mubr.msk.bf16.gmra.mrb[12].mxu0 %vm2321_vm12, %v3312_v5 }
 0x1f0   : > { %v2248_v6 = vpop.permute.xlu0 %2247  ;;  %4664 = vmatprep.mubr.msk.bf16.mxu0 %vm2321_vm12, %v3314_v43 }
 0x1f1   : > { %v3252_v1 = vpop.permute.xlu1 %3251  ;;  %v2312_v7 = vsel %vm1670_vm11, %v2280_v10, %v2248_v6 }
 0x1f2   : > { %4609 = vmatmul.mubr.msk.bf16.gmra.mrb[28].mxu1 %vm2321_vm12, %v2312_v7 }
 0x1f4   : > { %v1493_v61 = vpop.permute.xlu0 %1492 }
 0x1f5   : > { %v3126_v4 = vpop.permute.xlu1 %3125  ;;  %v1655_v12 = vsel %vm1637_vm10, %v7154_v49, %v1493_v61 }
 0x1f6   : > { %v1688_v21 = vsel %vm1670_vm11, %v1655_v12, %v1622_v2  ;;  %v3286_v41 = vsel %vm1637_vm10, %v7155_v38, %v3126_v4 }
 0x1f7   : > { %4630 = vmatprep.mubr.msk.bf16.mxu1 %vm2321_vm12, %v1688_v21 }
 0x1f8   : > { %v1495_v56 = vpop.permute.xlu0 %1494 }
 0x1f9   : > { %v1626_v18 = vpop.permute.xlu1 %1625  ;;  %v1657_v54 = vsel %vm1637_vm10, %v7156_v55, %v1495_v56 }
 0x1fc   : > { %v3124_v34 = vpop.permute.xlu0 %3123 }
 0x1fd   : > { %v3254_v51 = vpop.permute.xlu1 %3253  ;;  %v3284_v19 = vsel %vm1637_vm10, %v6366_v15, %v3124_v34 }
 0x1fe   : > { %v3318_v62 = vsel %vm1670_vm11, %v3286_v41, %v3254_v51  ;;  %v3316_v8 = vsel %vm1670_vm11, %v3284_v19, %v3252_v1 }
 0x1ff   : > { %4665 = vmatmul.mubr.msk.bf16.gmra.mrb[16].mxu0 %vm2321_vm12, %v3316_v8 }
 0x200   : > { %v1624_v9 = vpop.permute.xlu0 %1623  ;;  %4668 = vmatprep.mubr.msk.bf16.mxu0 %vm2321_vm12, %v3318_v62 }
 0x201   : > { %v3256_v48 = vpop.permute.xlu1 %3255  ;;  %v1690_v37 = vsel %vm1670_vm11, %v1657_v54, %v1624_v9 }
 0x202   : > { %4631 = vmatmul.mubr.msk.bf16.vlgmr.msra.gmra.mrb[16].mxu1 %vm2321_vm12, %v1690_v37 }
 0x204   : > { %v1497_v25 = vpop.permute.xlu0 %1496 }
 0x205   : > { %v3130_v53 = vpop.permute.xlu1 %3129  ;;  %v1659_v15 = vsel %vm1637_vm10, %v6406_v47, %v1497_v25 }
 0x206   : > { %v1692_v35 = vsel %vm1670_vm11, %v1659_v15, %v1626_v18  ;;  %v3290_v13 = vsel %vm1637_vm10, %v6479_v30, %v3130_v53 }
 0x207   : > { %4634 = vmatprep.mubr.msk.bf16.mxu1 %vm2321_vm12, %v1692_v35 }
 0x208   : > { %v1499_v29 = vpop.permute.xlu0 %1498 }
 0x209   : > { %v1630_v60 = vpop.permute.xlu1 %1629  ;;  %v1661_v33 = vsel %vm1637_vm10, %v6446_v31, %v1499_v29 }
 0x20c   : > { %v3128_v50 = vpop.permute.xlu0 %3127 }
 0x20d   : > { %v3258_v52 = vpop.permute.xlu1 %3257  ;;  %v3288_v23 = vsel %vm1637_vm10, %v6475_v42, %v3128_v50 }
 0x20e   : > { %v3322_v27 = vsel %vm1670_vm11, %v3290_v13, %v3258_v52  ;;  %v3320_v46 = vsel %vm1670_vm11, %v3288_v23, %v3256_v48 }
 0x20f   : > { %4669 = vmatmul.mubr.msk.bf16.gmra.mrb[20].mxu0 %vm2321_vm12, %v3320_v46 }
 0x210   : > { %v1628_v39 = vpop.permute.xlu0 %1627  ;;  %4672 = vmatprep.mubr.msk.bf16.mxu0 %vm2321_vm12, %v3322_v27 }
 0x211   : > { %v3260_v47 = vpop.permute.xlu1 %3259  ;;  %v1694_v3 = vsel %vm1670_vm11, %v1661_v33, %v1628_v39 }
 0x212   : > { %4635 = vmatmul.mubr.msk.bf16.gmra.mrb[20].mxu1 %vm2321_vm12, %v1694_v3 }
 0x214   : > { %v1501_v44 = vpop.permute.xlu0 %1500 }
 0x215   : > { %v3134_v30 = vpop.permute.xlu1 %3133  ;;  %v1663_v42 = vsel %vm1637_vm10, %v6534_v24, %v1501_v44 }
 0x216   : > { %v1696_v14 = vsel %vm1670_vm11, %v1663_v42, %v1630_v60  ;;  %v3294_v58 = vsel %vm1637_vm10, %v6549_v45, %v3134_v30 }
 0x217   : > { %4638 = vmatprep.mubr.msk.bf16.mxu1 %vm2321_vm12, %v1696_v14 }
 0x218   : > { %v1503_v36 = vpop.permute.xlu0 %1502 }
 0x219   : > { %v1634_v32 = vpop.permute.xlu1 %1633  ;;  %v1665_v24 = vsel %vm1637_vm10, %v6542_v17, %v1503_v36 }
 0x21c   : > { %v3132_v31 = vpop.permute.xlu0 %3131 }
 0x21d   : > { %v3262_v2 = vpop.permute.xlu1 %3261  ;;  %v3292_v40 = vsel %vm1637_vm10, %v6578_v20, %v3132_v31 }
 0x21e   : > { %v3326_v11 = vsel %vm1670_vm11, %v3294_v58, %v3262_v2  ;;  %v3324_v59 = vsel %vm1670_vm11, %v3292_v40, %v3260_v47 }
 0x21f   : > { %4673 = vmatmul.mubr.msk.bf16.gmra.mrb[24].mxu0 %vm2321_vm12, %v3324_v59 }
 0x220   : > { %v1632_v22 = vpop.permute.xlu0 %1631  ;;  %4676 = vmatprep.mubr.msk.bf16.mxu0 %vm2321_vm12, %v3326_v11 }
 0x221   : > { %v1698_v57 = vsel %vm1670_vm11, %v1665_v24, %v1632_v22  ;;  %v3264_v5 = vpop.permute.xlu1 %3263 }
 0x222   : > { %4639 = vmatmul.mubr.msk.bf16.gmra.mrb[24].mxu1 %vm2321_vm12, %v1698_v57 }
 0x224   : > { %v1505_v45 = vpop.permute.xlu0 %1504 }
 0x225   : > { %v1667_v20 = vsel %vm1637_vm10, %v6597_v16, %v1505_v45 }
 0x226   : > { %v1700_v0 = vsel %vm1670_vm11, %v1667_v20, %v1634_v32 }
 0x227   : > { %4642 = vmatprep.mubr.msk.bf16.mxu1 %vm2321_vm12, %v1700_v0 }
 0x228   : > { %v1507_v43 = vpop.permute.xlu0 %1506 }
 0x229   : > { %v1669_v10 = vsel %vm1637_vm10, %v6621_v63, %v1507_v43 }
 0x22c   : > { %v3136_v1 = vpop.permute.xlu0 %3135 }
 0x22d   : > { %v3296_v17 = vsel %vm1637_vm10, %v6635_v26, %v3136_v1 }
 0x22e   : > { %v3328_v28 = vsel %vm1670_vm11, %v3296_v17, %v3264_v5 }
 0x22f   : > { %4677 = vmatmul.mubr.msk.bf16.gmra.mrb[28].mxu0 %vm2321_vm12, %v3328_v28 }
 0x230   : > { %v1636_v6 = vpop.permute.xlu0 %1635 }
 0x231   : > { %v1702_v16 = vsel %vm1670_vm11, %v1669_v10, %v1636_v6 }
 0x232   : > { %4643 = vmatmul.mubr.msk.bf16.gmra.mrb[28].mxu1 %vm2321_vm12, %v1702_v16 }
 0x23d   : > { %v4582_v7 = vpop.f32.mrb[0].mxu1 }
 0x23e   : > { %v2392_v4 = vpop.f32.mrb[1].mxu1 }
 0x23f   : > { %v4583_v61 = vpop.f32.mrb[2].mxu1 }
 0x240   : > { %v2395_v49 = vpop.f32.mrb[3].mxu1 }
 0x250   : > { %v4586_v12 = vpop.f32.mrb[4].mxu1 }
 0x251   : > { %v2408_v21 = vpop.f32.mrb[5].mxu1 }
 0x252   : > { %v4587_v18 = vpop.f32.mrb[6].mxu1 }
 0x253   : > { %v2411_v26 = vpop.f32.mrb[7].mxu1 }
 0x258   : > { %v6767_v56 = vpop.f32.mrb[8].mxu1 }
 0x259   : > { %v6769_v51 = vpop.f32.mrb[9].mxu1 }
 0x25a   : > { %v6771_v34 = vpop.f32.mrb[10].mxu1 }
 0x25b   : > { %v6773_v63 = vpop.f32.mrb[11].mxu1 }
 0x260   : > { %v6775_v38 = vpop.f32.mrb[12].mxu1 }
 0x261   : > { %v6777_v41 = vpop.f32.mrb[13].mxu1 }
 0x262   : > { %v6779_v19 = vpop.f32.mrb[14].mxu1 }
 0x263   : > { %v6781_v62 = vpop.f32.mrb[15].mxu1 }
 0x277   : > { %v4650_v8 = vpop.f32.mrb[0].mxu0 }
 0x278   : > { %v4682_v48 = vadd.f32 %v4650_v8, %v4582_v7  ;;  %v3406_v55 = vpop.f32.mrb[1].mxu0 }
 0x279   : > { %v4683_v54 = vadd.f32 %v3406_v55, %v2392_v4  ;;  %v4651_v9 = vpop.f32.mrb[2].mxu0 }
 0x27a   : > { %v4417_v37 = vpack.c.bf16 %v4682_v48, %v4682_v48  ;;  %v4684_v53 = vadd.f32 %v4651_v9, %v4583_v61  ;;  %v3409_v25 = vpop.f32.mrb[3].mxu0  ;;  %v3797_v29 = vmul.f32 %v4682_v48, %v4682_v48  ;;  %v3728_v47 = vsel %vm1637_vm10, %v4682_v48, 0.0 }
 0x27b   : > { %v4415_v15 = vpack.c.bf16 %v4683_v54, %v4683_v54  ;;  %v3795_v35 = vmul.f32 %v4683_v54, %v4683_v54  ;;  %v4685_v60 = vadd.f32 %v3409_v25, %v2395_v49  ;;  %v3725_v50 = vsel %vm1637_vm10, %v4683_v54, 0.0 }
 0x27c   : > { %3695 = vst.msk [vmem:[%s6785_s17 + $0x8] sm:$0xf] %vm498_vm0, %v4417_v37  ;;  %v4418_v52 = vpack.c.bf16 %v4684_v53, %v4684_v53  ;;  %v3798_v39 = vmul.f32 %v4684_v53, %v4684_v53  ;;  %v3830_v42 = vsel %vm1637_vm10, %v3797_v29, 0.0  ;;  %v3730_v14 = vsel %vm1637_vm10, %v4684_v53, 0.0 }
 0x27d   : > { %3693 = vst.msk [vmem:[%s6785_s17] sm:$0xf] %vm498_vm0, %v4415_v15  ;;  %v4416_v13 = vpack.c.bf16 %v4685_v60, %v4685_v60  ;;  %v3726_v23 = vsel %vm1637_vm10, %v4685_v60, 0.0  ;;  %v3796_v27 = vmul.f32 %v4685_v60, %v4685_v60  ;;  %v3827_v33 = vsel %vm1637_vm10, %v3795_v35, 0.0 }
 0x27e   : > { %3696 = vst.msk [vmem:[%s6785_s17 + $0xc] sm:$0xf] %vm498_vm0, %v4418_v52  ;;  %v3727_v46 = vadd.f32 %v3726_v23, %v3725_v50  ;;  %v3832_v2 = vsel %vm1637_vm10, %v3798_v39, 0.0 }
 0x27f   : > { %3694 = vst.msk [vmem:[%s6785_s17 + $0x4] sm:$0xf] %vm498_vm0, %v4416_v13  ;;  %v3828_v3 = vsel %vm1637_vm10, %v3796_v27, 0.0 }
 0x280   : > { %v3729_v30 = vadd.f32 %v3728_v47, %v3727_v46  ;;  %v3829_v44 = vadd.f32 %v3828_v3, %v3827_v33 }
 0x282   : > { %v3831_v32 = vadd.f32 %v3830_v42, %v3829_v44  ;;  %v3731_v36 = vadd.f32 %v3730_v14, %v3729_v30 }
 0x284   : > { %v3833_v31 = vadd.f32 %v3832_v2, %v3831_v32 }
 0x28f   : > { %v4654_v58 = vpop.f32.mrb[4].mxu0 }
 0x290   : > { %v4686_v40 = vadd.f32 %v4654_v58, %v4586_v12  ;;  %v3422_v11 = vpop.f32.mrb[5].mxu0 }
 0x291   : > { %v4687_v59 = vadd.f32 %v3422_v11, %v2408_v21  ;;  %v4655_v24 = vpop.f32.mrb[6].mxu0 }
 0x292   : > { %v4421_v22 = vpack.c.bf16 %v4686_v40, %v4686_v40  ;;  %v4688_v57 = vadd.f32 %v4655_v24, %v4587_v18  ;;  %v3425_v45 = vpop.f32.mrb[7].mxu0  ;;  %v3801_v16 = vmul.f32 %v4686_v40, %v4686_v40  ;;  %v3736_v49 = vsel %vm1637_vm10, %v4686_v40, 0.0 }
 0x293   : > { %v4419_v20 = vpack.c.bf16 %v4687_v59, %v4687_v59  ;;  %v3732_v0 = vsel %vm1637_vm10, %v4687_v59, 0.0  ;;  %v3799_v43 = vmul.f32 %v4687_v59, %v4687_v59  ;;  %v4689_v5 = vadd.f32 %v3425_v45, %v2411_v26 }
 0x294   : > { %3699 = vst.msk [vmem:[%s6785_s17 + $0x18] sm:$0xf] %vm498_vm0, %v4421_v22  ;;  %v3733_v1 = vadd.f32 %v3732_v0, %v3731_v36  ;;  %v4422_v17 = vpack.c.bf16 %v4688_v57, %v4688_v57  ;;  %v3802_v12 = vmul.f32 %v4688_v57, %v4688_v57  ;;  %v3738_v26 = vsel %vm1637_vm10, %v4688_v57, 0.0 }
 0x295   : > { %3697 = vst.msk [vmem:[%s6785_s17 + $0x10] sm:$0xf] %vm498_vm0, %v4419_v20  ;;  %v3834_v28 = vsel %vm1637_vm10, %v3799_v43, 0.0  ;;  %v4420_v10 = vpack.c.bf16 %v4689_v5, %v4689_v5  ;;  %v3734_v6 = vsel %vm1637_vm10, %v4689_v5, 0.0  ;;  %v3800_v61 = vmul.f32 %v4689_v5, %v4689_v5 }
 0x296   : > { %v3835_v7 = vadd.f32 %v3834_v28, %v3833_v31  ;;  %3700 = vst.msk [vmem:[%s6785_s17 + $0x1c] sm:$0xf] %vm498_vm0, %v4422_v17  ;;  %v3735_v4 = vadd.f32 %v3734_v6, %v3733_v1  ;;  %v3838_v48 = vsel %vm1637_vm10, %v3801_v16, 0.0  ;;  %v3840_v9 = vsel %vm1637_vm10, %v3802_v12, 0.0 }
 0x297   : > { %3698 = vst.msk [vmem:[%s6785_s17 + $0x14] sm:$0xf] %vm498_vm0, %v4420_v10  ;;  %v3836_v18 = vsel %vm1637_vm10, %v3800_v61, 0.0 }
 0x298   : > { %v3737_v21 = vadd.f32 %v3736_v49, %v3735_v4  ;;  %v3837_v8 = vadd.f32 %v3836_v18, %v3835_v7 }
 0x29a   : > { %v3739_v55 = vadd.f32 %v3738_v26, %v3737_v21  ;;  %v3839_v54 = vadd.f32 %v3838_v48, %v3837_v8 }
 0x29c   : > { %v3841_v37 = vadd.f32 %v3840_v9, %v3839_v54 }
 0x2a6   : > { %v4658_v53 = vpop.f32.mrb[8].mxu0 }
 0x2a7   : > { %v4690_v25 = vadd.f32 %v4658_v53, %v6767_v56  ;;  %v3438_v15 = vpop.f32.mrb[9].mxu0 }
 0x2a8   : > { %v4691_v35 = vadd.f32 %v3438_v15, %v6769_v51  ;;  %v4659_v60 = vpop.f32.mrb[10].mxu0 }
 0x2a9   : > { %v4425_v29 = vpack.c.bf16 %v4690_v25, %v4690_v25  ;;  %v4692_v52 = vadd.f32 %v4659_v60, %v6771_v34  ;;  %v3441_v50 = vpop.f32.mrb[11].mxu0  ;;  %v3805_v34 = vmul.f32 %v4690_v25, %v4690_v25  ;;  %v3744_v42 = vsel %vm1637_vm10, %v4690_v25, 0.0 }
 0x2aa   : > { %v4423_v13 = vpack.c.bf16 %v4691_v35, %v4691_v35  ;;  %v3740_v23 = vsel %vm1637_vm10, %v4691_v35, 0.0  ;;  %v3803_v27 = vmul.f32 %v4691_v35, %v4691_v35  ;;  %v4693_v46 = vadd.f32 %v3441_v50, %v6773_v63 }
 0x2ab   : > { %3703 = vst.msk [vmem:[%s6785_s17 + $0x28] sm:$0xf] %vm498_vm0, %v4425_v29  ;;  %v3741_v47 = vadd.f32 %v3740_v23, %v3739_v55  ;;  %v4426_v56 = vpack.c.bf16 %v4692_v52, %v4692_v52  ;;  %v3806_v63 = vmul.f32 %v4692_v52, %v4692_v52  ;;  %v3746_v36 = vsel %vm1637_vm10, %v4692_v52, 0.0 }
 0x2ac   : > { %3701 = vst.msk [vmem:[%s6785_s17 + $0x20] sm:$0xf] %vm498_vm0, %v4423_v13  ;;  %v3842_v51 = vsel %vm1637_vm10, %v3803_v27, 0.0  ;;  %v4424_v33 = vpack.c.bf16 %v4693_v46, %v4693_v46  ;;  %v3742_v39 = vsel %vm1637_vm10, %v4693_v46, 0.0  ;;  %v3804_v44 = vmul.f32 %v4693_v46, %v4693_v46 }
 0x2ad   : > { %v3843_v3 = vadd.f32 %v3842_v51, %v3841_v37  ;;  %3704 = vst.msk [vmem:[%s6785_s17 + $0x2c] sm:$0xf] %vm498_vm0, %v4426_v56  ;;  %v3743_v30 = vadd.f32 %v3742_v39, %v3741_v47  ;;  %v3846_v31 = vsel %vm1637_vm10, %v3805_v34, 0.0  ;;  %v3848_v11 = vsel %vm1637_vm10, %v3806_v63, 0.0 }
 0x2ae   : > { %3702 = vst.msk [vmem:[%s6785_s17 + $0x24] sm:$0xf] %vm498_vm0, %v4424_v33  ;;  %v3844_v32 = vsel %vm1637_vm10, %v3804_v44, 0.0 }
 0x2af   : > { %v3745_v14 = vadd.f32 %v3744_v42, %v3743_v30  ;;  %v3845_v2 = vadd.f32 %v3844_v32, %v3843_v3 }
 0x2b1   : > { %v3747_v58 = vadd.f32 %v3746_v36, %v3745_v14  ;;  %v3847_v40 = vadd.f32 %v3846_v31, %v3845_v2 }
 0x2b3   : > { %v3849_v59 = vadd.f32 %v3848_v11, %v3847_v40 }
 0x2c2   : > { %v4662_v24 = vpop.f32.mrb[12].mxu0 }
 0x2c3   : > { %v4694_v22 = vadd.f32 %v4662_v24, %v6775_v38  ;;  %v3454_v57 = vpop.f32.mrb[13].mxu0 }
 0x2c4   : > { %v4695_v45 = vadd.f32 %v3454_v57, %v6777_v41  ;;  %v4663_v20 = vpop.f32.mrb[14].mxu0 }
 0x2c5   : > { %v4429_v0 = vpack.c.bf16 %v4694_v22, %v4694_v22  ;;  %v4696_v43 = vadd.f32 %v4663_v20, %v6779_v19  ;;  %v3457_v5 = vpop.f32.mrb[15].mxu0  ;;  %v3809_v19 = vmul.f32 %v4694_v22, %v4694_v22  ;;  %v3752_v12 = vsel %vm1637_vm10, %v4694_v22, 0.0 }
 0x2c6   : > { %v4427_v1 = vpack.c.bf16 %v4695_v45, %v4695_v45  ;;  %v3748_v17 = vsel %vm1637_vm10, %v4695_v45, 0.0  ;;  %v3807_v28 = vmul.f32 %v4695_v45, %v4695_v45  ;;  %v4697_v10 = vadd.f32 %v3457_v5, %v6781_v62 }
 0x2c7   : > { %3707 = vst.msk [vmem:[%s6785_s17 + $0x38] sm:$0xf] %vm498_vm0, %v4429_v0  ;;  %v3749_v6 = vadd.f32 %v3748_v17, %v3747_v58  ;;  %v4430_v38 = vpack.c.bf16 %v4696_v43, %v4696_v43  ;;  %v3810_v62 = vmul.f32 %v4696_v43, %v4696_v43  ;;  %v3754_v26 = vsel %vm1637_vm10, %v4696_v43, 0.0 }
 0x2c8   : > { %3705 = vst.msk [vmem:[%s6785_s17 + $0x30] sm:$0xf] %vm498_vm0, %v4427_v1  ;;  %v3850_v41 = vsel %vm1637_vm10, %v3807_v28, 0.0  ;;  %v4428_v16 = vpack.c.bf16 %v4697_v10, %v4697_v10  ;;  %v3750_v7 = vsel %vm1637_vm10, %v4697_v10, 0.0  ;;  %v3808_v49 = vmul.f32 %v4697_v10, %v4697_v10 }
 0x2c9   : > { %v3851_v4 = vadd.f32 %v3850_v41, %v3849_v59  ;;  %3708 = vst.msk [vmem:[%s6785_s17 + $0x3c] sm:$0xf] %vm498_vm0, %v4430_v38  ;;  %v3751_v61 = vadd.f32 %v3750_v7, %v3749_v6  ;;  %v3854_v48 = vsel %vm1637_vm10, %v3809_v19, 0.0  ;;  %v3856_v9 = vsel %vm1637_vm10, %v3810_v62, 0.0 }
 0x2ca   : > { %3706 = vst.msk [vmem:[%s6785_s17 + $0x34] sm:$0xf] %vm498_vm0, %v4428_v16  ;;  %v3852_v18 = vsel %vm1637_vm10, %v3808_v49, 0.0 }
 0x2cb   : > { %v3753_v21 = vadd.f32 %v3752_v12, %v3751_v61  ;;  %v3853_v8 = vadd.f32 %v3852_v18, %v3851_v4 }
 0x2cd   : > { %v3755_v55 = vadd.f32 %v3754_v26, %v3753_v21  ;;  %v3855_v54 = vadd.f32 %v3854_v48, %v3853_v8 }
 0x2cf   : > { %v3857_v37 = vadd.f32 %v3856_v9, %v3855_v54 }
 0x2d2   : > { %v4666_v53 = vpop.f32.mrb[16].mxu0 }
 0x2d3   : > { %v3470_v25 = vpop.f32.mrb[17].mxu0 }
 0x2d4   : > { %v4667_v15 = vpop.f32.mrb[18].mxu0 }
 0x2d5   : > { %v4632_v35 = vpop.f32.mrb[16].mxu1  ;;  %v3473_v60 = vpop.f32.mrb[19].mxu0 }
 0x2d6   : > { %v4698_v29 = vadd.f32 %v4666_v53, %v4632_v35  ;;  %v2657_v52 = vpop.f32.mrb[17].mxu1 }
 0x2d7   : > { %v4699_v50 = vadd.f32 %v3470_v25, %v2657_v52  ;;  %v4633_v13 = vpop.f32.mrb[18].mxu1 }
 0x2d8   : > { %v4433_v23 = vpack.c.bf16 %v4698_v29, %v4698_v29  ;;  %v4700_v27 = vadd.f32 %v4667_v15, %v4633_v13  ;;  %v2660_v46 = vpop.f32.mrb[19].mxu1  ;;  %v3813_v42 = vmul.f32 %v4698_v29, %v4698_v29  ;;  %v3760_v36 = vsel %vm1637_vm10, %v4698_v29, 0.0 }
 0x2d9   : > { %v4431_v47 = vpack.c.bf16 %v4699_v50, %v4699_v50  ;;  %v3756_v56 = vsel %vm1637_vm10, %v4699_v50, 0.0  ;;  %v3811_v51 = vmul.f32 %v4699_v50, %v4699_v50  ;;  %v4701_v33 = vadd.f32 %v3473_v60, %v2660_v46 }
 0x2da   : > { %3711 = vst.msk [vmem:[%s6785_s17 + $0x48] sm:$0xf] %vm498_vm0, %v4433_v23  ;;  %v3757_v39 = vadd.f32 %v3756_v56, %v3755_v55  ;;  %v4434_v34 = vpack.c.bf16 %v4700_v27, %v4700_v27  ;;  %v3814_v2 = vmul.f32 %v4700_v27, %v4700_v27  ;;  %v3762_v40 = vsel %vm1637_vm10, %v4700_v27, 0.0 }
 0x2db   : > { %3709 = vst.msk [vmem:[%s6785_s17 + $0x40] sm:$0xf] %vm498_vm0, %v4431_v47  ;;  %v3858_v3 = vsel %vm1637_vm10, %v3811_v51, 0.0  ;;  %v4432_v30 = vpack.c.bf16 %v4701_v33, %v4701_v33  ;;  %v3758_v44 = vsel %vm1637_vm10, %v4701_v33, 0.0  ;;  %v3812_v32 = vmul.f32 %v4701_v33, %v4701_v33 }
 0x2dc   : > { %v3859_v63 = vadd.f32 %v3858_v3, %v3857_v37  ;;  %3712 = vst.msk [vmem:[%s6785_s17 + $0x4c] sm:$0xf] %vm498_vm0, %v4434_v34  ;;  %v3759_v14 = vadd.f32 %v3758_v44, %v3757_v39  ;;  %v3862_v59 = vsel %vm1637_vm10, %v3813_v42, 0.0  ;;  %v3864_v57 = vsel %vm1637_vm10, %v3814_v2, 0.0 }
 0x2dd   : > { %3710 = vst.msk [vmem:[%s6785_s17 + $0x44] sm:$0xf] %vm498_vm0, %v4432_v30  ;;  %v3860_v58 = vsel %vm1637_vm10, %v3812_v32, 0.0 }
 0x2de   : > { %v3761_v31 = vadd.f32 %v3760_v36, %v3759_v14  ;;  %v3861_v11 = vadd.f32 %v3860_v58, %v3859_v63 }
 0x2e0   : > { %v3763_v24 = vadd.f32 %v3762_v40, %v3761_v31  ;;  %v3863_v22 = vadd.f32 %v3862_v59, %v3861_v11 }
 0x2e2   : > { %v4670_v45 = vpop.f32.mrb[20].mxu0  ;;  %v3865_v0 = vadd.f32 %v3864_v57, %v3863_v22 }
 0x2e3   : > { %v3486_v20 = vpop.f32.mrb[21].mxu0 }
 0x2e4   : > { %v4671_v43 = vpop.f32.mrb[22].mxu0 }
 0x2e5   : > { %v4636_v5 = vpop.f32.mrb[20].mxu1  ;;  %v3489_v1 = vpop.f32.mrb[23].mxu0 }
 0x2e6   : > { %v4702_v17 = vadd.f32 %v4670_v45, %v4636_v5  ;;  %v2673_v28 = vpop.f32.mrb[21].mxu1 }
 0x2e7   : > { %v4703_v10 = vadd.f32 %v3486_v20, %v2673_v28  ;;  %v4637_v6 = vpop.f32.mrb[22].mxu1 }
 0x2e8   : > { %v4437_v38 = vpack.c.bf16 %v4702_v17, %v4702_v17  ;;  %v4704_v41 = vadd.f32 %v4671_v43, %v4637_v6  ;;  %v2676_v16 = vpop.f32.mrb[23].mxu1  ;;  %v3817_v26 = vmul.f32 %v4702_v17, %v4702_v17  ;;  %v3768_v54 = vsel %vm1637_vm10, %v4702_v17, 0.0 }
 0x2e9   : > { %v4435_v7 = vpack.c.bf16 %v4703_v10, %v4703_v10  ;;  %v3764_v19 = vsel %vm1637_vm10, %v4703_v10, 0.0  ;;  %v3815_v4 = vmul.f32 %v4703_v10, %v4703_v10  ;;  %v4705_v61 = vadd.f32 %v3489_v1, %v2676_v16 }
 0x2ea   : > { %3715 = vst.msk [vmem:[%s6785_s17 + $0x58] sm:$0xf] %vm498_vm0, %v4437_v38  ;;  %v3765_v49 = vadd.f32 %v3764_v19, %v3763_v24  ;;  %v4438_v12 = vpack.c.bf16 %v4704_v41, %v4704_v41  ;;  %v3818_v9 = vmul.f32 %v4704_v41, %v4704_v41  ;;  %v3770_v25 = vsel %vm1637_vm10, %v4704_v41, 0.0 }
 0x2eb   : > { %3713 = vst.msk [vmem:[%s6785_s17 + $0x50] sm:$0xf] %vm498_vm0, %v4435_v7  ;;  %v3866_v62 = vsel %vm1637_vm10, %v3815_v4, 0.0  ;;  %v4436_v21 = vpack.c.bf16 %v4705_v61, %v4705_v61  ;;  %v3766_v18 = vsel %vm1637_vm10, %v4705_v61, 0.0  ;;  %v3816_v55 = vmul.f32 %v4705_v61, %v4705_v61 }
 0x2ec   : > { %v3867_v8 = vadd.f32 %v3866_v62, %v3865_v0  ;;  %3716 = vst.msk [vmem:[%s6785_s17 + $0x5c] sm:$0xf] %vm498_vm0, %v4438_v12  ;;  %v3767_v48 = vadd.f32 %v3766_v18, %v3765_v49  ;;  %v3870_v35 = vsel %vm1637_vm10, %v3817_v26, 0.0  ;;  %v3872_v52 = vsel %vm1637_vm10, %v3818_v9, 0.0 }
 0x2ed   : > { %3714 = vst.msk [vmem:[%s6785_s17 + $0x54] sm:$0xf] %vm498_vm0, %v4436_v21  ;;  %v3868_v53 = vsel %vm1637_vm10, %v3816_v55, 0.0 }
 0x2ee   : > { %v3769_v37 = vadd.f32 %v3768_v54, %v3767_v48  ;;  %v3869_v15 = vadd.f32 %v3868_v53, %v3867_v8 }
 0x2f0   : > { %v3771_v60 = vadd.f32 %v3770_v25, %v3769_v37  ;;  %v3871_v29 = vadd.f32 %v3870_v35, %v3869_v15 }
 0x2f2   : > { %v4674_v50 = vpop.f32.mrb[24].mxu0  ;;  %v3873_v23 = vadd.f32 %v3872_v52, %v3871_v29 }
 0x2f3   : > { %v3502_v13 = vpop.f32.mrb[25].mxu0 }
 0x2f4   : > { %v4675_v27 = vpop.f32.mrb[26].mxu0 }
 0x2f5   : > { %v4640_v46 = vpop.f32.mrb[24].mxu1  ;;  %v3505_v47 = vpop.f32.mrb[27].mxu0 }
 0x2f6   : > { %v4706_v56 = vadd.f32 %v4674_v50, %v4640_v46  ;;  %v2689_v51 = vpop.f32.mrb[25].mxu1 }
 0x2f7   : > { %v4707_v33 = vadd.f32 %v3502_v13, %v2689_v51  ;;  %v4641_v39 = vpop.f32.mrb[26].mxu1 }
 0x2f8   : > { %v4441_v34 = vpack.c.bf16 %v4706_v56, %v4706_v56  ;;  %v4708_v3 = vadd.f32 %v4675_v27, %v4641_v39  ;;  %v2692_v30 = vpop.f32.mrb[27].mxu1  ;;  %v3821_v40 = vmul.f32 %v4706_v56, %v4706_v56  ;;  %v3776_v22 = vsel %vm1637_vm10, %v4706_v56, 0.0 }
 0x2f9   : > { %v4439_v44 = vpack.c.bf16 %v4707_v33, %v4707_v33  ;;  %v3772_v42 = vsel %vm1637_vm10, %v4707_v33, 0.0  ;;  %v3819_v63 = vmul.f32 %v4707_v33, %v4707_v33  ;;  %v4709_v14 = vadd.f32 %v3505_v47, %v2692_v30 }
 0x2fa   : > { %3719 = vst.msk [vmem:[%s6785_s17 + $0x68] sm:$0xf] %vm498_vm0, %v4441_v34  ;;  %v3773_v32 = vadd.f32 %v3772_v42, %v3771_v60  ;;  %v4442_v36 = vpack.c.bf16 %v4708_v3, %v4708_v3  ;;  %v3822_v57 = vmul.f32 %v4708_v3, %v4708_v3  ;;  %v3778_v0 = vsel %vm1637_vm10, %v4708_v3, 0.0 }
 0x2fb   : > { %3717 = vst.msk [vmem:[%s6785_s17 + $0x60] sm:$0xf] %vm498_vm0, %v4439_v44  ;;  %v3874_v2 = vsel %vm1637_vm10, %v3819_v63, 0.0  ;;  %v4440_v31 = vpack.c.bf16 %v4709_v14, %v4709_v14  ;;  %v3774_v58 = vsel %vm1637_vm10, %v4709_v14, 0.0  ;;  %v3820_v24 = vmul.f32 %v4709_v14, %v4709_v14 }
 0x2fc   : > { %v3875_v11 = vadd.f32 %v3874_v2, %v3873_v23  ;;  %3720 = vst.msk [vmem:[%s6785_s17 + $0x6c] sm:$0xf] %vm498_vm0, %v4442_v36  ;;  %v3775_v59 = vadd.f32 %v3774_v58, %v3773_v32  ;;  %v3878_v5 = vsel %vm1637_vm10, %v3821_v40, 0.0  ;;  %v3880_v28 = vsel %vm1637_vm10, %v3822_v57, 0.0 }
 0x2fd   : > { %3718 = vst.msk [vmem:[%s6785_s17 + $0x64] sm:$0xf] %vm498_vm0, %v4440_v31  ;;  %v3876_v20 = vsel %vm1637_vm10, %v3820_v24, 0.0 }
 0x2fe   : > { %v3777_v45 = vadd.f32 %v3776_v22, %v3775_v59  ;;  %v3877_v43 = vadd.f32 %v3876_v20, %v3875_v11 }
 0x300   : > { %v3779_v1 = vadd.f32 %v3778_v0, %v3777_v45  ;;  %v3879_v17 = vadd.f32 %v3878_v5, %v3877_v43 }
 0x302   : > { %v4678_v10 = vpop.f32.mrb[28].mxu0  ;;  %v3881_v38 = vadd.f32 %v3880_v28, %v3879_v17 }
 0x303   : > { %v3518_v6 = vpop.f32.mrb[29].mxu0 }
 0x304   : > { %v4679_v41 = vpop.f32.mrb[30].mxu0 }
 0x305   : > { %v4644_v16 = vpop.f32.mrb[28].mxu1  ;;  %v3521_v7 = vpop.f32.mrb[31].mxu0 }
 0x306   : > { %v4710_v19 = vadd.f32 %v4678_v10, %v4644_v16  ;;  %v2705_v4 = vpop.f32.mrb[29].mxu1 }
 0x307   : > { %v4711_v61 = vadd.f32 %v3518_v6, %v2705_v4  ;;  %v4645_v49 = vpop.f32.mrb[30].mxu1 }
 0x308   : > { %v4445_v12 = vpack.c.bf16 %v4710_v19, %v4710_v19  ;;  %v4712_v62 = vadd.f32 %v4679_v41, %v4645_v49  ;;  %v2708_v21 = vpop.f32.mrb[31].mxu1  ;;  %v3825_v25 = vmul.f32 %v4710_v19, %v4710_v19  ;;  %v3784_v29 = vsel %vm1637_vm10, %v4710_v19, 0.0 }
 0x309   : > { %v4443_v18 = vpack.c.bf16 %v4711_v61, %v4711_v61  ;;  %v3780_v26 = vsel %vm1637_vm10, %v4711_v61, 0.0  ;;  %v3823_v8 = vmul.f32 %v4711_v61, %v4711_v61  ;;  %v4713_v48 = vadd.f32 %v3521_v7, %v2708_v21 }
 0x30a   : > { %3723 = vst.msk [vmem:[%s6785_s17 + $0x78] sm:$0xf] %vm498_vm0, %v4445_v12  ;;  %v3781_v55 = vadd.f32 %v3780_v26, %v3779_v1  ;;  %v4446_v54 = vpack.c.bf16 %v4712_v62, %v4712_v62  ;;  %v3826_v52 = vmul.f32 %v4712_v62, %v4712_v62 }
 0x30b   : > { %3721 = vst.msk [vmem:[%s6785_s17 + $0x70] sm:$0xf] %vm498_vm0, %v4443_v18  ;;  %v3882_v9 = vsel %vm1637_vm10, %v3823_v8, 0.0  ;;  %v4444_v37 = vpack.c.bf16 %v4713_v48, %v4713_v48  ;;  %v3782_v53 = vsel %vm1637_vm10, %v4713_v48, 0.0  ;;  %v3824_v60 = vmul.f32 %v4713_v48, %v4713_v48 }
 0x30c   : > { %v3883_v15 = vadd.f32 %v3882_v9, %v3881_v38  ;;  %3724 = vst.msk [vmem:[%s6785_s17 + $0x7c] sm:$0xf] %vm498_vm0, %v4446_v54  ;;  %v3783_v35 = vadd.f32 %v3782_v53, %v3781_v55 }
 0x30d   : > { %3722 = vst.msk [vmem:[%s6785_s17 + $0x74] sm:$0xf] %vm498_vm0, %v4444_v37  ;;  %v3884_v13 = vsel %vm1637_vm10, %v3824_v60, 0.0 }
 0x30e   : > { %v3785_v50 = vadd.f32 %v3784_v29, %v3783_v35 }
 0x30f   : > { %5106 = shalt.err (!%p5103_p6)
}
 0x310   : > { %s5107_s11 = scalar_lea.hbm %s6915_s18, 2048  ;;  %s5111_s8 = scalar_lea.hbm %s7052_s4, 4096 }
 0x311   : > { %p5108_p13 = scmp.ne.s32.totalorder %s6915_s18, %s5107_s11  ;;  %p5112_p9 = scmp.lt.u32.totalorder %s6915_s18, %s7052_s4 }
 0x312   : > { %p5113_p5 = scmp.lt.u32.totalorder %s5111_s8, %s5107_s11  ;;  %p5115_p2 = scmp.lt.u32.totalorder %s5107_s11, %s6915_s18 }
 0x313   : > { %p5109_p3 = pnand %p5108_p13, %p7157_p0 }
 0x314   : > { %p5114_p10 = por %p5113_p5, %p5112_p9 }
 0x315   : > { %p5110_p4 = pneg %p5109_p3 }
 0x316   : > { %p5116_p7 = por %p5115_p2, %p5114_p10 }
 0x318   : > { %p5117_p8 = pnand %p5116_p7, %p5110_p4 }
 0x31a   : > { %5120 = shalt.err (!%p5117_p8)
}
 0x31b   : > { %s5243_s28 = smov 64   ;;  %v3786_v23 = vsel %vm1637_vm10, %v4712_v62, 0.0  ;;  %v3885_v27 = vadd.f32 %v3884_v13, %v3883_v15  ;;  %v3886_v46 = vsel %vm1637_vm10, %v3825_v25, 0.0  ;;  %v3888_v51 = vsel %vm1637_vm10, %v3826_v52, 0.0  ;;  %s6979_s0 = scalar_lea.sflag [#allocation12], %s278_s1 }
 0x31c   : > { %4764 = dma.vmem_to_hbm [thread:$0]  (%p7157_p0), %s6921_s7, 2048, %s6915_s18, %s3898_s19, %s5243_s28, %s5243_s28, %s5241_s26   ;;  %v3787_v47 = vadd.f32 %v3786_v23, %v3785_v50 }
 0x31d   : > { %v3887_v56 = vadd.f32 %v3886_v46, %v3885_v27  ;;  %s4378_s26 = sshll.u32 %s5302_s25, 4  ;;  %s316_s7 = scalar_lea.vmem [#allocation11], %s5487_s15 }
 0x31e   : > { %v3788_v33 = vrot.slane %v3787_v47, 4  ;;  %s3935_s12 = sshll.u32 %s316_s7, 4  ;;  %s322_s18 = scalar_lea.vmem [#allocation13], %s5487_s15  ;;  %s6967_s12 = int_to_ptr.vmem [resolvable:$true] %s3935_s12 }
 0x31f   : > { %v3889_v39 = vadd.f32 %v3888_v51, %v3887_v56  ;;  %s3948_s19 = sshll.u32 %s322_s18, 4  ;;  %s6965_s13 = scalar_lea.hbm %s7053_s5, %s4378_s26  ;;  %s6975_s19 = int_to_ptr.vmem [resolvable:$true] %s3948_s19 }
 0x320   : > { %v3789_v34 = vadd.f32 %v3788_v33, %v3787_v47  ;;  %s6973_s30 = scalar_lea.hbm %s7054_s6, %s4378_s26  ;;  %s5121_s8 = scalar_lea.vmem %s6967_s12, 16 }
 0x321   : > { %v3890_v3 = vrot.slane %v3889_v39, 4  ;;  %p5122_p11 = scmp.ne.s32.totalorder %s6967_s12, %s5121_s8  ;;  %s5244_s17 = smov [#allocation11]  }
 0x322   : > { %v3790_v30 = vrot.slane %v3789_v34, 2  ;;  %s5125_s20 = sshll.u32 %s5244_s17, 4  ;;  %s5126_s20 = int_to_ptr.vmem [resolvable:$false] %s5125_s20 }
 0x323   : > { %v3891_v44 = vadd.f32 %v3890_v3, %v3889_v39  ;;  %p5123_p12 = pnand %p5122_p11, %p7157_p0  ;;  %s5127_s28 = scalar_lea.vmem %s5126_s20, 32 }
 0x324   : > { %v3791_v42 = vadd.f32 %v3790_v30, %v3789_v34  ;;  %p5128_p6 = scmp.lt.s32.totalorder %s6967_s12, %s5126_s20  ;;  %p5129_p13 = scmp.lt.s32.totalorder %s5127_s28, %s5121_s8 }
 0x325   : > { %v3892_v63 = vrot.slane %v3891_v44, 2  ;;  %p5124_p1 = pneg %p5123_p12 }
 0x326   : > { %v3792_v14 = vrot.slane %v3791_v42, 1  ;;  %p5130_p3 = por %p5129_p13, %p5128_p6 }
 0x327   : > { %v3893_v32 = vadd.f32 %v3892_v63, %v3891_v44 }
 0x328   : > { %v3793_v36 = vadd.f32 %v3792_v14, %v3791_v42  ;;  %p5131_p4 = pnand %p5130_p3, %p5124_p1 }
 0x329   : > { %v3894_v2 = vrot.slane %v3893_v32, 1 }
 0x32a   : > { %3794 = vst.msk [vmem:[%s316_s7] sm:$0x1] %vm501_vm1, %v3793_v36 }
 0x32b   : > { %5134 = shalt.err (!%p5131_p4)
}
 0x32c   : > { %s5135_s25 = scalar_lea.hbm %s6965_s13, 16  ;;  %s5139_s7 = scalar_lea.hbm %s7053_s5, 32 }
 0x32d   : > { %p5136_p9 = scmp.ne.s32.totalorder %s6965_s13, %s5135_s25  ;;  %p5140_p2 = scmp.lt.u32.totalorder %s6965_s13, %s7053_s5 }
 0x32e   : > { %p5141_p7 = scmp.lt.u32.totalorder %s5139_s7, %s5135_s25  ;;  %p5143_p11 = scmp.lt.u32.totalorder %s5135_s25, %s6965_s13 }
 0x32f   : > { %p5137_p5 = pnand %p5136_p9, %p7157_p0 }
 0x330   : > { %p5142_p8 = por %p5141_p7, %p5140_p2 }
 0x331   : > { %p5138_p10 = pneg %p5137_p5 }
 0x332   : > { %p5144_p12 = por %p5143_p11, %p5142_p8 }
 0x334   : > { %p5145_p1 = pnand %p5144_p12, %p5138_p10 }
 0x336   : > { %5148 = shalt.err (!%p5145_p1)
}
 0x337   : > { %4765 = dma.vmem_to_hbm [thread:$0]  (%p7157_p0), %s6967_s12, 16, %s6965_s13, %s6979_s0   ;;  %v3895_v31 = vadd.f32 %v3894_v2, %v3893_v32 }
 0x338   : > { %s5149_s14 = scalar_lea.vmem %s6975_s19, 16  ;;  %s5245_s11 = smov [#allocation13]  }
 0x339   : > { %3896 = vst.msk [vmem:[%s322_s18] sm:$0x1] %vm501_vm1, %v3895_v31  ;;  %p5150_p6 = scmp.ne.s32.totalorder %s6975_s19, %s5149_s14  ;;  %s5153_s8 = sshll.u32 %s5245_s11, 4  ;;  %s5154_s8 = int_to_ptr.vmem [resolvable:$false] %s5153_s8 }
 0x33a   : > { %s5155_s17 = scalar_lea.vmem %s5154_s8, 32  ;;  %p5156_p4 = scmp.lt.s32.totalorder %s6975_s19, %s5154_s8 }
 0x33b   : > { %p5151_p13 = pnand %p5150_p6, %p7157_p0  ;;  %p5157_p9 = scmp.lt.s32.totalorder %s5155_s17, %s5149_s14 }
 0x33d   : > { %p5152_p3 = pneg %p5151_p13  ;;  %p5158_p5 = por %p5157_p9, %p5156_p4 }
 0x33f   : > { %p5159_p10 = pnand %p5158_p5, %p5152_p3 }
 0x341   : > { %5162 = shalt.err (!%p5159_p10)
}
 0x342   : > { %s5163_s15 = scalar_lea.hbm %s6973_s30, 16  ;;  %s5167_s13 = scalar_lea.hbm %s7054_s6, 32 }
 0x343   : > { %p5164_p2 = scmp.ne.s32.totalorder %s6973_s30, %s5163_s15  ;;  %p5168_p11 = scmp.lt.u32.totalorder %s6973_s30, %s7054_s6 }
 0x344   : > { %p5169_p12 = scmp.lt.u32.totalorder %s5167_s13, %s5163_s15  ;;  %p5171_p6 = scmp.lt.u32.totalorder %s5163_s15, %s6973_s30 }
 0x345   : > { %p5165_p7 = pnand %p5164_p2, %p7157_p0 }
 0x346   : > { %p5170_p1 = por %p5169_p12, %p5168_p11 }
 0x347   : > { %p5166_p8 = pneg %p5165_p7 }
 0x348   : > { %p5172_p13 = por %p5171_p6, %p5170_p1 }
 0x34a   : > { %p5173_p3 = pnand %p5172_p13, %p5166_p8 }
 0x34c   : > { %5176 = shalt.err (!%p5173_p3)
}
 0x34d   : > { %4766 = dma.vmem_to_hbm [thread:$0]  (%p7157_p0), %s6975_s19, 16, %s6973_s30, %s6979_s0  }
 0x34e PF: > { %s3960_s25 = sand.u32 1, %s5219_s21   ;;  %p7158_p4 = scmp.ne.s32.totalorder %s7089_s10, 0 }
 0x34f   : > { %p7159_p9 = scmp.ge.s32.totalorder %s5231_s24, 2  ;;  %s3961_s1 = scalar_lea.sflag [#allocation5], %s3960_s25 }
 0x351   : > { %p4785_p5 = pnand %p7159_p9, %p7158_p4 }
 0x353   : > { %5210 = dma.done.wait (!%p4785_p5), %s3961_s1, 2048  }
 0x354   : > { %5212 = vsyncadd (!%p4785_p5), %s3961_s1, 4294965248  ;;  %s7160_s26 = sadd.s32 4294967294, %s5231_s24  }
 0x355   : > { %s3969_s7 = sand.u32 1, %s7160_s26  }
 0x356   : > { %s3970_s29 = scalar_lea.sflag [#allocation12], %s3969_s7 }
 0x357   : > { %5214 = dma.done.wait (!%p4785_p5), %s3970_s29, 32  }
 0x358   : > { %5216 = vsyncadd (!%p4785_p5), %s3970_s29, 4294967264  ;;  %s7161_s9 = sld [smem:[#allocation20_spill]]  ;;  %p22_p0 = scmp.ge.s32.totalorder %s5306_s27, 4  }
 0x359   : > { %s7162_s21 = smov %s5223_s22  ;;  %s7163_s22 = smov %s5227_s23 }
 0x35a   : > { %s7165_s24 = smov %s5306_s27  ;;  %24 = sbr.rel (!%p22_p0) target bundleno = 10 (0xa), region = 128 }
 0x35e   : > { %s7164_s23 = smov %s7161_s9 }
 0x361   :  { %3982 = vsyncpa [#allocation4], 1 }
 0x362   :  { %3984 = vsyncpa [#allocation4 + $0x1], 1 }
 0x363   :  { %3985 = vsyncpa [#allocation7], 1 }
 0x364   :  { %3986 = vsyncpa [#allocation5], 1 }
 0x365   :  { %3988 = vsyncpa [#allocation5 + $0x1], 1 }
 0x366   :  { %3989 = vsyncpa [#allocation12], 1 }
 0x367   :  { %3991 = vsyncpa [#allocation12 + $0x1], 1 }

</bundles_post_ra>
